<compile_context>
chip_gen: v6e
topology: v6e:2x2x1
jax: 0.10.0
libtpu: 0.0.40
codegen_flags: <defaults>
</compile_context>

<pallas_src>
import math

import jax
import jax.numpy as jnp
from jax.experimental import pallas as pl
from jax.experimental.pallas import tpu as pltpu


# ------------------------------- in-kernel helpers -------------------------------

def _snake(x, alpha, inv_alpha):
    """Snake1d: x + (1/(alpha+1e-9)) * sin(alpha*x)^2, reciprocal precomputed."""
    s = jnp.sin(alpha * x)
    return x + inv_alpha * (s * s)


def _stage_taps(stage_ref, h, K, dil, pad, t_cols):
    """Build the tap-stacked (K*C, t_cols) conv input in a VMEM scratch slab.

    Row block k, column t holds h_zero_padded[:, t + k*dil] (pad zeros each side,
    and Snake(0) == 0 so padding commutes with the Snake prologue).  Only
    static-offset stores/loads are used — no concatenate, no strided access.
    Returns the stacked f32 value (caller casts to bf16 for the MXU).
    """
    C, L = h.shape
    rows = K * C
    stage_ref[0:rows, 0:t_cols] = jnp.zeros((rows, t_cols), jnp.float32)
    for k in range(K):
        off = k * dil - pad                        # offset into the UNpadded h
        dst_lo = max(0, -off)
        dst_hi = min(t_cols, L - off)
        if dst_hi > dst_lo:
            stage_ref[k * C:(k + 1) * C, dst_lo:dst_hi] = h[:, dst_lo + off:dst_hi + off]
    return stage_ref[0:rows, 0:t_cols]


def _residual_unit(h, a1, w1, b1, a2, w2, b2, dil, stage_ref):
    """Snake -> WNConv1d(k=7, dil, pad=3*dil) -> Snake -> WNConv1d(k=1) -> + h.

    pad = 3*dil keeps the length, so the residual trim is zero and the residual
    is simply the input value `h` (already live in VMEM/vregs).
    """
    C, L = h.shape
    hs = _snake(h, a1[:, 0:1], a1[:, 1:2])
    X = _stage_taps(stage_ref, hs, 7, dil, 3 * dil, L).astype(jnp.bfloat16)  # (7C, L)
    y = jnp.dot(w1, X, preferred_element_type=jnp.float32) + b1             # (C, L) f32
    ys = _snake(y, a2[:, 0:1], a2[:, 1:2]).astype(jnp.bfloat16)
    z = jnp.dot(w2, ys, preferred_element_type=jnp.float32) + b2            # k=1 conv
    return h + z


def _downsample(h, a, w, b, stride, stage_ref):
    """Snake -> strided WNConv1d(k=2*stride, stride=stride, pad=ceil(stride/2)).

    The strided gather X[:, t] = X_full[:, t*stride] is expressed as a matmul with
    a 0/1 selection matrix (exact on bf16 values), so no strided memory access and
    no glue polyphase transpose is needed.
    """
    C, L = h.shape
    K = 2 * stride
    pad = math.ceil(stride / 2)
    t_full = L + 2 * pad - K + 1
    t_out = (L + 2 * pad - K) // stride + 1
    hs = _snake(h, a[:, 0:1], a[:, 1:2])
    X = _stage_taps(stage_ref, hs, K, 1, pad, t_full).astype(jnp.bfloat16)   # (K*C, t_full)
    r = jax.lax.broadcasted_iota(jnp.int32, (t_full, t_out), 0)
    c = jax.lax.broadcasted_iota(jnp.int32, (t_full, t_out), 1)
    sel = (r == c * stride).astype(jnp.bfloat16)                             # one-hot cols
    Xs = jnp.dot(X, sel, preferred_element_type=jnp.float32).astype(jnp.bfloat16)
    return jnp.dot(w, Xs, preferred_element_type=jnp.float32) + b            # (2C, t_out)


# --------------------------------- fused kernel ---------------------------------

def _make_encoder_kernel(plan):
    k_in, pad_in = plan["k_in"], plan["pad_in"]

    def kernel(*refs):
        stage_ref = refs[-1]          # shared f32 staging scratch (pad + tap-stack)
        out_ref = refs[-2]
        it = iter(refs[:-2])

        # ---- conv_in: WNConv1d(1, d_model, k=7, pad=3).  Cin == 1, so the MXU
        #      would run 1-deep; use cheap exact f32 VPU broadcast-FMAs instead.
        x_ref = next(it)
        w_in = next(it)[...]                          # (d_model, 7) f32
        b_in = next(it)[...]                          # (d_model, 1) f32
        x = x_ref[0]                                  # (1, T) f32
        T = x.shape[1]
        lp = T + 2 * pad_in
        stage_ref[0:1, 0:lp] = jnp.zeros((1, lp), jnp.float32)
        stage_ref[0:1, pad_in:pad_in + T] = x
        xp = stage_ref[0:1, 0:lp]                     # zero-padded input row
        h = jnp.zeros((w_in.shape[0], T), jnp.float32)
        for k in range(k_in):
            h = h + w_in[:, k:k + 1] * xp[:, k:k + T]
        h = h + b_in

        # ---- encoder blocks: 3 fused ResidualUnits + fused Snake/strided conv.
        for blk in plan["blocks"]:
            for dil in blk["dilations"]:
                a1 = next(it)[...]; w1 = next(it)[...]; b1 = next(it)[...]
                a2 = next(it)[...]; w2 = next(it)[...]; b2 = next(it)[...]
                h = _residual_unit(h, a1, w1, b1, a2, w2, b2, dil, stage_ref)
            ad = next(it)[...]; wd = next(it)[...]; bd = next(it)[...]
            h = _downsample(h, ad, wd, bd, blk["stride"], stage_ref)

        # ---- head: Snake -> WNConv1d(d_model_final, d_latent, k=3, pad=1)
        ao = next(it)[...]; wo = next(it)[...]; bo = next(it)[...]
        C, L = h.shape
        hs = _snake(h, ao[:, 0:1], ao[:, 1:2])
        X = _stage_taps(stage_ref, hs, 3, 1, 1, L).astype(jnp.bfloat16)
        out_ref[0] = jnp.dot(wo, X, preferred_element_type=jnp.float32) + bo

    return kernel


# --------------------------------- call wrapper ----------------------------------

def _const_spec(shape):
    # Whole-array block, same block index every grid step -> fetched once and kept
    # resident in VMEM across the batch grid.
    nd = len(shape)
    return pl.BlockSpec(shape, lambda b: (0,) * nd)


def _replay(plan, T):
    """Statically replay the encoder shapes to size the scratch / output / cost."""
    L = T
    C = plan["d_model"]
    stage_rows = 8
    stage_cols = T + 2 * plan["pad_in"]
    flops = 2 * C * plan["k_in"] * T
    trans = 0
    for blk in plan["blocks"]:
        s = blk["stride"]
        for _dil in blk["dilations"]:
            stage_rows = max(stage_rows, 7 * C)
            stage_cols = max(stage_cols, L)
            flops += 2 * C * (7 * C) * L + 2 * C * C * L
            trans += 2 * C * L
        K = 2 * s
        pad = math.ceil(s / 2)
        t_full = L + 2 * pad - K + 1
        t_out = (L + 2 * pad - K) // s + 1
        stage_rows = max(stage_rows, K * C)
        stage_cols = max(stage_cols, t_full)
        flops += 2 * (K * C) * t_full * t_out + 2 * (2 * C) * (K * C) * t_out
        trans += C * L
        C, L = 2 * C, t_out
    stage_rows = max(stage_rows, 3 * C)
    stage_cols = max(stage_cols, L)
    flops += 2 * plan["d_latent"] * (3 * C) * L
    trans += C * L
    return {"L_final": L, "stage_rows": stage_rows, "stage_cols": stage_cols,
            "flops": flops, "trans": trans}


def encoder_forward_pallas(prep, x):
    """Whole encoder forward in one pallas_call.  x: (B, 1, T) f32."""
    plan, arrays = prep["plan"], prep["arrays"]
    B, cin, T = x.shape
    assert cin == 1
    info = _replay(plan, T)
    d_latent, t_final = plan["d_latent"], info["L_final"]

    stage_rows = ((info["stage_rows"] + 7) // 8) * 8
    stage_cols = ((info["stage_cols"] + 127) // 128) * 128

    in_specs = [pl.BlockSpec((1, 1, T), lambda b: (b, 0, 0))]
    in_specs += [_const_spec(tuple(a.shape)) for a in arrays]

    param_bytes = sum(int(a.size) * a.dtype.itemsize for a in arrays)
    cost = pl.CostEstimate(
        flops=int(B * info["flops"]),
        transcendentals=int(B * info["trans"]),
        bytes_accessed=int(4 * x.size + 4 * B * d_latent * t_final + param_bytes),
    )

    return pl.pallas_call(
        _make_encoder_kernel(plan),
        grid=(B,),
        in_specs=in_specs,
        out_specs=pl.BlockSpec((1, d_latent, t_final), lambda b: (b, 0, 0)),
        out_shape=jax.ShapeDtypeStruct((B, d_latent, t_final), jnp.float32),
        scratch_shapes=[pltpu.VMEM((stage_rows, stage_cols), jnp.float32)],
        compiler_params=pltpu.CompilerParams(
            dimension_semantics=("parallel",),      # batch across TCs (v7x megacore)
            vmem_limit_bytes=32 * 1024 * 1024,      # explicit; well under v7x's 64 MiB
        ),
        cost_estimate=cost,
    )(x, *arrays)


# --------------------- parameter preparation (done ONCE, outside fwd) ---------------------

def _effective_weight(v, g):
    # weight_norm: w = g * v / ||v||  (norm over all dims except out-channels)
    norm = jnp.sqrt(jnp.sum(v * v, axis=(1, 2), keepdims=True))
    return v * (g.reshape(-1, 1, 1) / norm)


def _stacked_weight(p):
    # (Cout, Cin, K) -> (Cout, K*Cin) bf16, column index k*Cin + cin, matching the
    # row order produced by _stage_taps.
    w = _effective_weight(p["v"], p["g"])
    cout, cin, k = w.shape
    return jnp.transpose(w, (0, 2, 1)).reshape(cout, k * cin).astype(jnp.bfloat16)


def _col(b):
    return b.reshape(-1, 1).astype(jnp.float32)


def _alpha_pack(a):
    # (C,) -> (C, 2): column 0 = alpha, column 1 = 1/(alpha + 1e-9) (precomputed).
    a = a.astype(jnp.float32)
    return jnp.stack([a, 1.0 / (a + 1e-9)], axis=1)


def prepare_encoder_params(raw):
    """Weight-norm, tap-stacked reshape, bf16 cast, 1/alpha — computed once."""
    arrays = []
    w_in = _effective_weight(raw["conv_in"]["v"], raw["conv_in"]["g"])   # (d_model,1,7)
    plan = {
        "k_in": int(w_in.shape[2]),
        "pad_in": 3,
        "d_model": int(w_in.shape[0]),
        "blocks": [],
        "d_latent": int(raw["conv_out"]["v"].shape[0]),
    }
    arrays.append(w_in[:, 0, :].astype(jnp.float32))          # Cin==1: keep f32 (VPU path)
    arrays.append(_col(raw["conv_in"]["b"]))
    for blk in raw["blocks"]:
        dils = []
        for ru in blk["res"]:
            dils.append(int(ru["dilation"]))
            arrays.append(_alpha_pack(ru["alpha1"]))
            arrays.append(_stacked_weight(ru["conv1"]))
            arrays.append(_col(ru["conv1"]["b"]))
            arrays.append(_alpha_pack(ru["alpha2"]))
            w2 = _effective_weight(ru["conv2"]["v"], ru["conv2"]["g"])
            arrays.append(w2[:, :, 0].astype(jnp.bfloat16))   # k=1 conv: plain (C, C)
            arrays.append(_col(ru["conv2"]["b"]))
        arrays.append(_alpha_pack(blk["alpha"]))
        arrays.append(_stacked_weight(blk["conv_down"]))
        arrays.append(_col(blk["conv_down"]["b"]))
        plan["blocks"].append({"stride": int(blk["stride"]), "dilations": tuple(dils)})
    arrays.append(_alpha_pack(raw["alpha_out"]))
    arrays.append(_stacked_weight(raw["conv_out"]))
    arrays.append(_col(raw["conv_out"]["b"]))
    return {"plan": plan, "arrays": arrays}


# ------------------------------- pure-JAX reference -------------------------------

def ref_snake(x, alpha):
    a = alpha.reshape(1, -1, 1)
    return x + (1.0 / (a + 1e-9)) * jnp.sin(a * x) ** 2


def ref_wnconv1d(x, p, *, stride=1, dilation=1, padding=0):
    w = _effective_weight(p["v"], p["g"])
    return jax.lax.conv_general_dilated(
        x, w,
        window_strides=(stride,),
        padding=[(padding, padding)],
        rhs_dilation=(dilation,),
        dimension_numbers=("NCH", "OIH", "NCH"),
        precision=jax.lax.Precision.HIGHEST,
    ) + p["b"].reshape(1, -1, 1)


def ref_encoder_forward(params, x):
    h = ref_wnconv1d(x, params["conv_in"], padding=3)
    for blk in params["blocks"]:
        s = blk["stride"]
        for ru in blk["res"]:
            dil = ru["dilation"]
            y = ref_snake(h, ru["alpha1"])
            y = ref_wnconv1d(y, ru["conv1"], dilation=dil, padding=3 * dil)
            y = ref_snake(y, ru["alpha2"])
            y = ref_wnconv1d(y, ru["conv2"])
            trim = (h.shape[-1] - y.shape[-1]) // 2
            res = h if trim <= 0 else h[..., trim:h.shape[-1] - trim]
            h = res + y
        h = ref_snake(h, blk["alpha"])
        h = ref_wnconv1d(h, blk["conv_down"], stride=s, padding=math.ceil(s / 2))
    h = ref_snake(h, params["alpha_out"])
    h = ref_wnconv1d(h, params["conv_out"], padding=1)
    return h


# ------------------------------- deterministic params -------------------------------

def init_wnconv(key, cin, cout, k):
    kw, kb = jax.random.split(key)
    bound = 1.0 / math.sqrt(cin * k)                      # PyTorch Conv1d default init
    v = jax.random.uniform(kw, (cout, cin, k), jnp.float32, -bound, bound)
    b = jax.random.uniform(kb, (cout,), jnp.float32, -bound, bound)
    g = jnp.sqrt(jnp.sum(v * v, axis=(1, 2)))             # weight_norm init: g = ||v||
    return {"v": v, "g": g, "b": b}


def build_encoder_params(key, d_model, strides, d_latent):
    keys = iter(jax.random.split(key, 8 + 8 * len(strides)))
    params = {"conv_in": init_wnconv(next(keys), 1, d_model, 7), "blocks": []}
    d = d_model
    for s in strides:
        d_in = d
        d *= 2
        block = {"stride": s, "res": []}
        for dil in (1, 3, 9):
            block["res"].append({
                "dilation": dil,
                "alpha1": jnp.ones((d_in,), jnp.float32),   # Snake1d alpha init = 1
                "conv1": init_wnconv(next(keys), d_in, d_in, 7),
                "alpha2": jnp.ones((d_in,), jnp.float32),
                "conv2": init_wnconv(next(keys), d_in, d_in, 1),
            })
        block["alpha"] = jnp.ones((d_in,), jnp.float32)
        block["conv_down"] = init_wnconv(next(keys), d_in, d, 2 * s)
        params["blocks"].append(block)
    params["alpha_out"] = jnp.ones((d,), jnp.float32)
    params["conv_out"] = init_wnconv(next(keys), d, d_latent, 3)
    return params


# --------------------------------------- main ---------------------------------------

if __name__ == "__main__":
    key = jax.random.PRNGKey(0)
    pkey, xkey = jax.random.split(key)

    # Small Encoder: d_model=8, strides=[2, 2], d_latent=8 (same structure as default).
    d_model, strides, d_latent = 8, (2, 2), 8
    B, T = 2, 64
    raw_params = build_encoder_params(pkey, d_model, strides, d_latent)
    x = jax.random.normal(xkey, (B, 1, T), jnp.float32)     # (batch, 1 channel, length)

    prep = prepare_encoder_params(raw_params)                # weight-norm + bf16, once
    fwd = jax.jit(lambda inp: encoder_forward_pallas(prep, inp))
    out = jax.block_until_ready(fwd(x))

    # Pure-JAX f32 (HIGHEST) reference for correctness.
    ref = jax.block_until_ready(ref_encoder_forward(raw_params, x))

    expected_T = T // (strides[0] * strides[1])
    assert out.shape == (B, d_latent, expected_T), out.shape
    max_err = float(jnp.max(jnp.abs(out - ref)))
    rel_l2 = float(jnp.linalg.norm(out - ref) / jnp.linalg.norm(ref))
    # bf16 MXU operands + f32 accumulation across ~16 stacked conv layers give
    # ~1e-2-scale worst-case deviation vs the f32 HIGHEST reference; a real bug
    # (wrong tap/residual/stride handling) produces O(0.1-1) errors.
    assert max_err < 5e-2, f"max abs err {max_err}"
    assert rel_l2 < 2e-2, f"rel l2 err {rel_l2}"

    print("KERNEL_OK")
</pallas_src>

<mosaic_0001>
module attributes {stable_mosaic.version = 11 : i64} {
  func.func @kernel(%arg0: i32, %arg1: memref<1x1x64xf32, #tpu.memory_space<vmem>>, %arg2: memref<8x7xf32, #tpu.memory_space<vmem>>, %arg3: memref<8x1xf32, #tpu.memory_space<vmem>>, %arg4: memref<8x2xf32, #tpu.memory_space<vmem>>, %arg5: memref<8x56xbf16, #tpu.memory_space<vmem>>, %arg6: memref<8x1xf32, #tpu.memory_space<vmem>>, %arg7: memref<8x2xf32, #tpu.memory_space<vmem>>, %arg8: memref<8x8xbf16, #tpu.memory_space<vmem>>, %arg9: memref<8x1xf32, #tpu.memory_space<vmem>>, %arg10: memref<8x2xf32, #tpu.memory_space<vmem>>, %arg11: memref<8x56xbf16, #tpu.memory_space<vmem>>, %arg12: memref<8x1xf32, #tpu.memory_space<vmem>>, %arg13: memref<8x2xf32, #tpu.memory_space<vmem>>, %arg14: memref<8x8xbf16, #tpu.memory_space<vmem>>, %arg15: memref<8x1xf32, #tpu.memory_space<vmem>>, %arg16: memref<8x2xf32, #tpu.memory_space<vmem>>, %arg17: memref<8x56xbf16, #tpu.memory_space<vmem>>, %arg18: memref<8x1xf32, #tpu.memory_space<vmem>>, %arg19: memref<8x2xf32, #tpu.memory_space<vmem>>, %arg20: memref<8x8xbf16, #tpu.memory_space<vmem>>, %arg21: memref<8x1xf32, #tpu.memory_space<vmem>>, %arg22: memref<8x2xf32, #tpu.memory_space<vmem>>, %arg23: memref<16x32xbf16, #tpu.memory_space<vmem>>, %arg24: memref<16x1xf32, #tpu.memory_space<vmem>>, %arg25: memref<16x2xf32, #tpu.memory_space<vmem>>, %arg26: memref<16x112xbf16, #tpu.memory_space<vmem>>, %arg27: memref<16x1xf32, #tpu.memory_space<vmem>>, %arg28: memref<16x2xf32, #tpu.memory_space<vmem>>, %arg29: memref<16x16xbf16, #tpu.memory_space<vmem>>, %arg30: memref<16x1xf32, #tpu.memory_space<vmem>>, %arg31: memref<16x2xf32, #tpu.memory_space<vmem>>, %arg32: memref<16x112xbf16, #tpu.memory_space<vmem>>, %arg33: memref<16x1xf32, #tpu.memory_space<vmem>>, %arg34: memref<16x2xf32, #tpu.memory_space<vmem>>, %arg35: memref<16x16xbf16, #tpu.memory_space<vmem>>, %arg36: memref<16x1xf32, #tpu.memory_space<vmem>>, %arg37: memref<16x2xf32, #tpu.memory_space<vmem>>, %arg38: memref<16x112xbf16, #tpu.memory_space<vmem>>, %arg39: memref<16x1xf32, #tpu.memory_space<vmem>>, %arg40: memref<16x2xf32, #tpu.memory_space<vmem>>, %arg41: memref<16x16xbf16, #tpu.memory_space<vmem>>, %arg42: memref<16x1xf32, #tpu.memory_space<vmem>>, %arg43: memref<16x2xf32, #tpu.memory_space<vmem>>, %arg44: memref<32x64xbf16, #tpu.memory_space<vmem>>, %arg45: memref<32x1xf32, #tpu.memory_space<vmem>>, %arg46: memref<32x2xf32, #tpu.memory_space<vmem>>, %arg47: memref<8x96xbf16, #tpu.memory_space<vmem>>, %arg48: memref<8x1xf32, #tpu.memory_space<vmem>>, %arg49: memref<1x8x16xf32, #tpu.memory_space<vmem>>, %arg50: memref<112x128xf32, #tpu.memory_space<vmem>>) attributes {dimension_semantics = [#tpu.dimension_semantics<parallel>], iteration_bounds = array<i64: 2>, scalar_prefetch = 0 : i64, scratch_operands = 1 : i64, tpu.core_type = #tpu.core_type<tc>, window_params = [{transform_indices = @transform_0, window_bounds = array<i64: 1, 1, 64>}, {pipeline_mode = #tpu.pipeline_mode<synchronous>, transform_indices = @transform_1, window_bounds = array<i64: 8, 7>}, {pipeline_mode = #tpu.pipeline_mode<synchronous>, transform_indices = @transform_2, window_bounds = array<i64: 8, 1>}, {pipeline_mode = #tpu.pipeline_mode<synchronous>, transform_indices = @transform_3, window_bounds = array<i64: 8, 2>}, {pipeline_mode = #tpu.pipeline_mode<synchronous>, transform_indices = @transform_4, window_bounds = array<i64: 8, 56>}, {pipeline_mode = #tpu.pipeline_mode<synchronous>, transform_indices = @transform_5, window_bounds = array<i64: 8, 1>}, {pipeline_mode = #tpu.pipeline_mode<synchronous>, transform_indices = @transform_6, window_bounds = array<i64: 8, 2>}, {pipeline_mode = #tpu.pipeline_mode<synchronous>, transform_indices = @transform_7, window_bounds = array<i64: 8, 8>}, {pipeline_mode = #tpu.pipeline_mode<synchronous>, transform_indices = @transform_8, window_bounds = array<i64: 8, 1>}, {pipeline_mode = #tpu.pipeline_mode<synchronous>, transform_indices = @transform_9, window_bounds = array<i64: 8, 2>}, {pipeline_mode = #tpu.pipeline_mode<synchronous>, transform_indices = @transform_10, window_bounds = array<i64: 8, 56>}, {pipeline_mode = #tpu.pipeline_mode<synchronous>, transform_indices = @transform_11, window_bounds = array<i64: 8, 1>}, {pipeline_mode = #tpu.pipeline_mode<synchronous>, transform_indices = @transform_12, window_bounds = array<i64: 8, 2>}, {pipeline_mode = #tpu.pipeline_mode<synchronous>, transform_indices = @transform_13, window_bounds = array<i64: 8, 8>}, {pipeline_mode = #tpu.pipeline_mode<synchronous>, transform_indices = @transform_14, window_bounds = array<i64: 8, 1>}, {pipeline_mode = #tpu.pipeline_mode<synchronous>, transform_indices = @transform_15, window_bounds = array<i64: 8, 2>}, {pipeline_mode = #tpu.pipeline_mode<synchronous>, transform_indices = @transform_16, window_bounds = array<i64: 8, 56>}, {pipeline_mode = #tpu.pipeline_mode<synchronous>, transform_indices = @transform_17, window_bounds = array<i64: 8, 1>}, {pipeline_mode = #tpu.pipeline_mode<synchronous>, transform_indices = @transform_18, window_bounds = array<i64: 8, 2>}, {pipeline_mode = #tpu.pipeline_mode<synchronous>, transform_indices = @transform_19, window_bounds = array<i64: 8, 8>}, {pipeline_mode = #tpu.pipeline_mode<synchronous>, transform_indices = @transform_20, window_bounds = array<i64: 8, 1>}, {pipeline_mode = #tpu.pipeline_mode<synchronous>, transform_indices = @transform_21, window_bounds = array<i64: 8, 2>}, {pipeline_mode = #tpu.pipeline_mode<synchronous>, transform_indices = @transform_22, window_bounds = array<i64: 16, 32>}, {pipeline_mode = #tpu.pipeline_mode<synchronous>, transform_indices = @transform_23, window_bounds = array<i64: 16, 1>}, {pipeline_mode = #tpu.pipeline_mode<synchronous>, transform_indices = @transform_24, window_bounds = array<i64: 16, 2>}, {pipeline_mode = #tpu.pipeline_mode<synchronous>, transform_indices = @transform_25, window_bounds = array<i64: 16, 112>}, {pipeline_mode = #tpu.pipeline_mode<synchronous>, transform_indices = @transform_26, window_bounds = array<i64: 16, 1>}, {pipeline_mode = #tpu.pipeline_mode<synchronous>, transform_indices = @transform_27, window_bounds = array<i64: 16, 2>}, {pipeline_mode = #tpu.pipeline_mode<synchronous>, transform_indices = @transform_28, window_bounds = array<i64: 16, 16>}, {pipeline_mode = #tpu.pipeline_mode<synchronous>, transform_indices = @transform_29, window_bounds = array<i64: 16, 1>}, {pipeline_mode = #tpu.pipeline_mode<synchronous>, transform_indices = @transform_30, window_bounds = array<i64: 16, 2>}, {pipeline_mode = #tpu.pipeline_mode<synchronous>, transform_indices = @transform_31, window_bounds = array<i64: 16, 112>}, {pipeline_mode = #tpu.pipeline_mode<synchronous>, transform_indices = @transform_32, window_bounds = array<i64: 16, 1>}, {pipeline_mode = #tpu.pipeline_mode<synchronous>, transform_indices = @transform_33, window_bounds = array<i64: 16, 2>}, {pipeline_mode = #tpu.pipeline_mode<synchronous>, transform_indices = @transform_34, window_bounds = array<i64: 16, 16>}, {pipeline_mode = #tpu.pipeline_mode<synchronous>, transform_indices = @transform_35, window_bounds = array<i64: 16, 1>}, {pipeline_mode = #tpu.pipeline_mode<synchronous>, transform_indices = @transform_36, window_bounds = array<i64: 16, 2>}, {pipeline_mode = #tpu.pipeline_mode<synchronous>, transform_indices = @transform_37, window_bounds = array<i64: 16, 112>}, {pipeline_mode = #tpu.pipeline_mode<synchronous>, transform_indices = @transform_38, window_bounds = array<i64: 16, 1>}, {pipeline_mode = #tpu.pipeline_mode<synchronous>, transform_indices = @transform_39, window_bounds = array<i64: 16, 2>}, {pipeline_mode = #tpu.pipeline_mode<synchronous>, transform_indices = @transform_40, window_bounds = array<i64: 16, 16>}, {pipeline_mode = #tpu.pipeline_mode<synchronous>, transform_indices = @transform_41, window_bounds = array<i64: 16, 1>}, {pipeline_mode = #tpu.pipeline_mode<synchronous>, transform_indices = @transform_42, window_bounds = array<i64: 16, 2>}, {pipeline_mode = #tpu.pipeline_mode<synchronous>, transform_indices = @transform_43, window_bounds = array<i64: 32, 64>}, {pipeline_mode = #tpu.pipeline_mode<synchronous>, transform_indices = @transform_44, window_bounds = array<i64: 32, 1>}, {pipeline_mode = #tpu.pipeline_mode<synchronous>, transform_indices = @transform_45, window_bounds = array<i64: 32, 2>}, {pipeline_mode = #tpu.pipeline_mode<synchronous>, transform_indices = @transform_46, window_bounds = array<i64: 8, 96>}, {pipeline_mode = #tpu.pipeline_mode<synchronous>, transform_indices = @transform_47, window_bounds = array<i64: 8, 1>}, {transform_indices = @transform_48, window_bounds = array<i64: 1, 8, 16>}]} {
    %c0 = arith.constant 0 : index
    %c0_0 = arith.constant 0 : index
    %0 = vector.load %arg2[%c0, %c0_0] : memref<8x7xf32, #tpu.memory_space<vmem>>, vector<8x7xf32>
    %c0_1 = arith.constant 0 : index
    %c0_2 = arith.constant 0 : index
    %1 = vector.load %arg3[%c0_1, %c0_2] : memref<8x1xf32, #tpu.memory_space<vmem>>, vector<8x1xf32>
    %c0_3 = arith.constant 0 : index
    %c0_4 = arith.constant 0 : index
    %c0_5 = arith.constant 0 : index
    %2 = vector.load %arg1[%c0_3, %c0_4, %c0_5] : memref<1x1x64xf32, #tpu.memory_space<vmem>>, vector<1x1x64xf32>
    %3 = vector.shape_cast %2 : vector<1x1x64xf32> to vector<1x64xf32>
    %cst = arith.constant 0.000000e+00 : f32
    %4 = vector.broadcast %cst : f32 to vector<1x70xf32>
    %c0_6 = arith.constant 0 : index
    %c0_7 = arith.constant 0 : index
    %5 = vector.load %arg50[%c0_6, %c0_7] : memref<112x128xf32, #tpu.memory_space<vmem>>, vector<1x70xf32>
    tpu.vector_store %arg50[%c0_6, %c0_7], %4 {strides = array<i32>} : memref<112x128xf32, #tpu.memory_space<vmem>>, vector<1x70xf32>,
    %c0_8 = arith.constant 0 : index
    %c3 = arith.constant 3 : index
    %6 = vector.load %arg50[%c0_8, %c3] : memref<112x128xf32, #tpu.memory_space<vmem>>, vector<1x64xf32>
    tpu.vector_store %arg50[%c0_8, %c3], %3 {strides = array<i32>} : memref<112x128xf32, #tpu.memory_space<vmem>>, vector<1x64xf32>,
    %c0_9 = arith.constant 0 : index
    %c0_10 = arith.constant 0 : index
    %7 = vector.load %arg50[%c0_9, %c0_10] : memref<112x128xf32, #tpu.memory_space<vmem>>, vector<1x70xf32>
    %cst_11 = arith.constant 0.000000e+00 : f32
    %8 = vector.broadcast %cst_11 : f32 to vector<8x64xf32>
    %9 = vector.extract_strided_slice %0 {offsets = [0, 0], sizes = [8, 1], strides = [1, 1]} : vector<8x7xf32> to vector<8x1xf32>
    %10 = vector.extract_strided_slice %7 {offsets = [0, 0], sizes = [1, 64], strides = [1, 1]} : vector<1x70xf32> to vector<1x64xf32>
    %11 = vector.broadcast %9 : vector<8x1xf32> to vector<8x64xf32>
    %12 = vector.broadcast %10 : vector<1x64xf32> to vector<8x64xf32>
    %13 = arith.mulf %11, %12 : vector<8x64xf32>
    %14 = arith.addf %8, %13 : vector<8x64xf32>
    %15 = vector.extract_strided_slice %0 {offsets = [0, 1], sizes = [8, 1], strides = [1, 1]} : vector<8x7xf32> to vector<8x1xf32>
    %16 = vector.extract_strided_slice %7 {offsets = [0, 1], sizes = [1, 64], strides = [1, 1]} : vector<1x70xf32> to vector<1x64xf32>
    %17 = vector.broadcast %15 : vector<8x1xf32> to vector<8x64xf32>
    %18 = vector.broadcast %16 : vector<1x64xf32> to vector<8x64xf32>
    %19 = arith.mulf %17, %18 : vector<8x64xf32>
    %20 = arith.addf %14, %19 : vector<8x64xf32>
    %21 = vector.extract_strided_slice %0 {offsets = [0, 2], sizes = [8, 1], strides = [1, 1]} : vector<8x7xf32> to vector<8x1xf32>
    %22 = vector.extract_strided_slice %7 {offsets = [0, 2], sizes = [1, 64], strides = [1, 1]} : vector<1x70xf32> to vector<1x64xf32>
    %23 = vector.broadcast %21 : vector<8x1xf32> to vector<8x64xf32>
    %24 = vector.broadcast %22 : vector<1x64xf32> to vector<8x64xf32>
    %25 = arith.mulf %23, %24 : vector<8x64xf32>
    %26 = arith.addf %20, %25 : vector<8x64xf32>
    %27 = vector.extract_strided_slice %0 {offsets = [0, 3], sizes = [8, 1], strides = [1, 1]} : vector<8x7xf32> to vector<8x1xf32>
    %28 = vector.extract_strided_slice %7 {offsets = [0, 3], sizes = [1, 64], strides = [1, 1]} : vector<1x70xf32> to vector<1x64xf32>
    %29 = vector.broadcast %27 : vector<8x1xf32> to vector<8x64xf32>
    %30 = vector.broadcast %28 : vector<1x64xf32> to vector<8x64xf32>
    %31 = arith.mulf %29, %30 : vector<8x64xf32>
    %32 = arith.addf %26, %31 : vector<8x64xf32>
    %33 = vector.extract_strided_slice %0 {offsets = [0, 4], sizes = [8, 1], strides = [1, 1]} : vector<8x7xf32> to vector<8x1xf32>
    %34 = vector.extract_strided_slice %7 {offsets = [0, 4], sizes = [1, 64], strides = [1, 1]} : vector<1x70xf32> to vector<1x64xf32>
    %35 = vector.broadcast %33 : vector<8x1xf32> to vector<8x64xf32>
    %36 = vector.broadcast %34 : vector<1x64xf32> to vector<8x64xf32>
    %37 = arith.mulf %35, %36 : vector<8x64xf32>
    %38 = arith.addf %32, %37 : vector<8x64xf32>
    %39 = vector.extract_strided_slice %0 {offsets = [0, 5], sizes = [8, 1], strides = [1, 1]} : vector<8x7xf32> to vector<8x1xf32>
    %40 = vector.extract_strided_slice %7 {offsets = [0, 5], sizes = [1, 64], strides = [1, 1]} : vector<1x70xf32> to vector<1x64xf32>
    %41 = vector.broadcast %39 : vector<8x1xf32> to vector<8x64xf32>
    %42 = vector.broadcast %40 : vector<1x64xf32> to vector<8x64xf32>
    %43 = arith.mulf %41, %42 : vector<8x64xf32>
    %44 = arith.addf %38, %43 : vector<8x64xf32>
    %45 = vector.extract_strided_slice %0 {offsets = [0, 6], sizes = [8, 1], strides = [1, 1]} : vector<8x7xf32> to vector<8x1xf32>
    %46 = vector.extract_strided_slice %7 {offsets = [0, 6], sizes = [1, 64], strides = [1, 1]} : vector<1x70xf32> to vector<1x64xf32>
    %47 = vector.broadcast %45 : vector<8x1xf32> to vector<8x64xf32>
    %48 = vector.broadcast %46 : vector<1x64xf32> to vector<8x64xf32>
    %49 = arith.mulf %47, %48 : vector<8x64xf32>
    %50 = arith.addf %44, %49 : vector<8x64xf32>
    %51 = vector.broadcast %1 : vector<8x1xf32> to vector<8x64xf32>
    %52 = arith.addf %50, %51 : vector<8x64xf32>
    %c0_12 = arith.constant 0 : index
    %c0_13 = arith.constant 0 : index
    %53 = vector.load %arg4[%c0_12, %c0_13] : memref<8x2xf32, #tpu.memory_space<vmem>>, vector<8x2xf32>
    %c0_14 = arith.constant 0 : index
    %c0_15 = arith.constant 0 : index
    %54 = vector.load %arg5[%c0_14, %c0_15] : memref<8x56xbf16, #tpu.memory_space<vmem>>, vector<8x56xbf16>
    %c0_16 = arith.constant 0 : index
    %c0_17 = arith.constant 0 : index
    %55 = vector.load %arg6[%c0_16, %c0_17] : memref<8x1xf32, #tpu.memory_space<vmem>>, vector<8x1xf32>
    %c0_18 = arith.constant 0 : index
    %c0_19 = arith.constant 0 : index
    %56 = vector.load %arg7[%c0_18, %c0_19] : memref<8x2xf32, #tpu.memory_space<vmem>>, vector<8x2xf32>
    %c0_20 = arith.constant 0 : index
    %c0_21 = arith.constant 0 : index
    %57 = vector.load %arg8[%c0_20, %c0_21] : memref<8x8xbf16, #tpu.memory_space<vmem>>, vector<8x8xbf16>
    %c0_22 = arith.constant 0 : index
    %c0_23 = arith.constant 0 : index
    %58 = vector.load %arg9[%c0_22, %c0_23] : memref<8x1xf32, #tpu.memory_space<vmem>>, vector<8x1xf32>
    %59 = vector.extract_strided_slice %53 {offsets = [0, 0], sizes = [8, 1], strides = [1, 1]} : vector<8x2xf32> to vector<8x1xf32>
    %60 = vector.extract_strided_slice %53 {offsets = [0, 1], sizes = [8, 1], strides = [1, 1]} : vector<8x2xf32> to vector<8x1xf32>
    %61 = vector.broadcast %59 : vector<8x1xf32> to vector<8x64xf32>
    %62 = arith.mulf %61, %52 : vector<8x64xf32>
    %63 = math.sin %62 : vector<8x64xf32>
    %64 = arith.mulf %63, %63 : vector<8x64xf32>
    %65 = vector.broadcast %60 : vector<8x1xf32> to vector<8x64xf32>
    %66 = arith.mulf %65, %64 : vector<8x64xf32>
    %67 = arith.addf %52, %66 : vector<8x64xf32>
    %cst_24 = arith.constant 0.000000e+00 : f32
    %68 = vector.broadcast %cst_24 : f32 to vector<56x64xf32>
    %c0_25 = arith.constant 0 : index
    %c0_26 = arith.constant 0 : index
    %69 = vector.load %arg50[%c0_25, %c0_26] : memref<112x128xf32, #tpu.memory_space<vmem>>, vector<56x64xf32>
    tpu.vector_store %arg50[%c0_25, %c0_26], %68 {strides = array<i32>} : memref<112x128xf32, #tpu.memory_space<vmem>>, vector<56x64xf32>,
    %70 = vector.extract_strided_slice %67 {offsets = [0, 0], sizes = [8, 61], strides = [1, 1]} : vector<8x64xf32> to vector<8x61xf32>
    %c0_27 = arith.constant 0 : index
    %c3_28 = arith.constant 3 : index
    %71 = vector.load %arg50[%c0_27, %c3_28] : memref<112x128xf32, #tpu.memory_space<vmem>>, vector<8x61xf32>
    tpu.vector_store %arg50[%c0_27, %c3_28], %70 {strides = array<i32>} : memref<112x128xf32, #tpu.memory_space<vmem>>, vector<8x61xf32>,
    %72 = vector.extract_strided_slice %67 {offsets = [0, 0], sizes = [8, 62], strides = [1, 1]} : vector<8x64xf32> to vector<8x62xf32>
    %c8 = arith.constant 8 : index
    %c2 = arith.constant 2 : index
    %73 = vector.load %arg50[%c8, %c2] : memref<112x128xf32, #tpu.memory_space<vmem>>, vector<8x62xf32>
    tpu.vector_store %arg50[%c8, %c2], %72 {strides = array<i32>} : memref<112x128xf32, #tpu.memory_space<vmem>>, vector<8x62xf32>,
    %74 = vector.extract_strided_slice %67 {offsets = [0, 0], sizes = [8, 63], strides = [1, 1]} : vector<8x64xf32> to vector<8x63xf32>
    %c16 = arith.constant 16 : index
    %c1 = arith.constant 1 : index
    %75 = vector.load %arg50[%c16, %c1] : memref<112x128xf32, #tpu.memory_space<vmem>>, vector<8x63xf32>
    tpu.vector_store %arg50[%c16, %c1], %74 {strides = array<i32>} : memref<112x128xf32, #tpu.memory_space<vmem>>, vector<8x63xf32>,
    %c24 = arith.constant 24 : index
    %c0_29 = arith.constant 0 : index
    %76 = vector.load %arg50[%c24, %c0_29] : memref<112x128xf32, #tpu.memory_space<vmem>>, vector<8x64xf32>
    tpu.vector_store %arg50[%c24, %c0_29], %67 {strides = array<i32>} : memref<112x128xf32, #tpu.memory_space<vmem>>, vector<8x64xf32>,
    %77 = vector.extract_strided_slice %67 {offsets = [0, 1], sizes = [8, 63], strides = [1, 1]} : vector<8x64xf32> to vector<8x63xf32>
    %c32 = arith.constant 32 : index
    %c0_30 = arith.constant 0 : index
    %78 = vector.load %arg50[%c32, %c0_30] : memref<112x128xf32, #tpu.memory_space<vmem>>, vector<8x63xf32>
    tpu.vector_store %arg50[%c32, %c0_30], %77 {strides = array<i32>} : memref<112x128xf32, #tpu.memory_space<vmem>>, vector<8x63xf32>,
    %79 = vector.extract_strided_slice %67 {offsets = [0, 2], sizes = [8, 62], strides = [1, 1]} : vector<8x64xf32> to vector<8x62xf32>
    %c40 = arith.constant 40 : index
    %c0_31 = arith.constant 0 : index
    %80 = vector.load %arg50[%c40, %c0_31] : memref<112x128xf32, #tpu.memory_space<vmem>>, vector<8x62xf32>
    tpu.vector_store %arg50[%c40, %c0_31], %79 {strides = array<i32>} : memref<112x128xf32, #tpu.memory_space<vmem>>, vector<8x62xf32>,
    %81 = vector.extract_strided_slice %67 {offsets = [0, 3], sizes = [8, 61], strides = [1, 1]} : vector<8x64xf32> to vector<8x61xf32>
    %c48 = arith.constant 48 : index
    %c0_32 = arith.constant 0 : index
    %82 = vector.load %arg50[%c48, %c0_32] : memref<112x128xf32, #tpu.memory_space<vmem>>, vector<8x61xf32>
    tpu.vector_store %arg50[%c48, %c0_32], %81 {strides = array<i32>} : memref<112x128xf32, #tpu.memory_space<vmem>>, vector<8x61xf32>,
    %c0_33 = arith.constant 0 : index
    %c0_34 = arith.constant 0 : index
    %83 = vector.load %arg50[%c0_33, %c0_34] : memref<112x128xf32, #tpu.memory_space<vmem>>, vector<56x64xf32>
    %84 = arith.truncf %83 : vector<56x64xf32> to vector<56x64xbf16>
    %cst_35 = arith.constant dense<0.000000e+00> : vector<8x64xf32>
    %85 = tpu.matmul %54, %84, %cst_35 {dimension_numbers = #tpu.dot_dimension_numbers<[1], [0], [0], [1], [0, 0, 1, 1], [], []>} : vector<8x56xbf16>, vector<56x64xbf16>, vector<8x64xf32> -> vector<8x64xf32>
    %86 = vector.broadcast %55 : vector<8x1xf32> to vector<8x64xf32>
    %87 = arith.addf %85, %86 : vector<8x64xf32>
    %88 = vector.extract_strided_slice %56 {offsets = [0, 0], sizes = [8, 1], strides = [1, 1]} : vector<8x2xf32> to vector<8x1xf32>
    %89 = vector.extract_strided_slice %56 {offsets = [0, 1], sizes = [8, 1], strides = [1, 1]} : vector<8x2xf32> to vector<8x1xf32>
    %90 = vector.broadcast %88 : vector<8x1xf32> to vector<8x64xf32>
    %91 = arith.mulf %90, %87 : vector<8x64xf32>
    %92 = math.sin %91 : vector<8x64xf32>
    %93 = arith.mulf %92, %92 : vector<8x64xf32>
    %94 = vector.broadcast %89 : vector<8x1xf32> to vector<8x64xf32>
    %95 = arith.mulf %94, %93 : vector<8x64xf32>
    %96 = arith.addf %87, %95 : vector<8x64xf32>
    %97 = arith.truncf %96 : vector<8x64xf32> to vector<8x64xbf16>
    %cst_36 = arith.constant dense<0.000000e+00> : vector<8x64xf32>
    %98 = tpu.matmul %57, %97, %cst_36 {dimension_numbers = #tpu.dot_dimension_numbers<[1], [0], [0], [1], [0, 0, 1, 1], [], []>} : vector<8x8xbf16>, vector<8x64xbf16>, vector<8x64xf32> -> vector<8x64xf32>
    %99 = vector.broadcast %58 : vector<8x1xf32> to vector<8x64xf32>
    %100 = arith.addf %98, %99 : vector<8x64xf32>
    %101 = arith.addf %52, %100 : vector<8x64xf32>
    %c0_37 = arith.constant 0 : index
    %c0_38 = arith.constant 0 : index
    %102 = vector.load %arg10[%c0_37, %c0_38] : memref<8x2xf32, #tpu.memory_space<vmem>>, vector<8x2xf32>
    %c0_39 = arith.constant 0 : index
    %c0_40 = arith.constant 0 : index
    %103 = vector.load %arg11[%c0_39, %c0_40] : memref<8x56xbf16, #tpu.memory_space<vmem>>, vector<8x56xbf16>
    %c0_41 = arith.constant 0 : index
    %c0_42 = arith.constant 0 : index
    %104 = vector.load %arg12[%c0_41, %c0_42] : memref<8x1xf32, #tpu.memory_space<vmem>>, vector<8x1xf32>
    %c0_43 = arith.constant 0 : index
    %c0_44 = arith.constant 0 : index
    %105 = vector.load %arg13[%c0_43, %c0_44] : memref<8x2xf32, #tpu.memory_space<vmem>>, vector<8x2xf32>
    %c0_45 = arith.constant 0 : index
    %c0_46 = arith.constant 0 : index
    %106 = vector.load %arg14[%c0_45, %c0_46] : memref<8x8xbf16, #tpu.memory_space<vmem>>, vector<8x8xbf16>
    %c0_47 = arith.constant 0 : index
    %c0_48 = arith.constant 0 : index
    %107 = vector.load %arg15[%c0_47, %c0_48] : memref<8x1xf32, #tpu.memory_space<vmem>>, vector<8x1xf32>
    %108 = vector.extract_strided_slice %102 {offsets = [0, 0], sizes = [8, 1], strides = [1, 1]} : vector<8x2xf32> to vector<8x1xf32>
    %109 = vector.extract_strided_slice %102 {offsets = [0, 1], sizes = [8, 1], strides = [1, 1]} : vector<8x2xf32> to vector<8x1xf32>
    %110 = vector.broadcast %108 : vector<8x1xf32> to vector<8x64xf32>
    %111 = arith.mulf %110, %101 : vector<8x64xf32>
    %112 = math.sin %111 : vector<8x64xf32>
    %113 = arith.mulf %112, %112 : vector<8x64xf32>
    %114 = vector.broadcast %109 : vector<8x1xf32> to vector<8x64xf32>
    %115 = arith.mulf %114, %113 : vector<8x64xf32>
    %116 = arith.addf %101, %115 : vector<8x64xf32>
    %cst_49 = arith.constant 0.000000e+00 : f32
    %117 = vector.broadcast %cst_49 : f32 to vector<56x64xf32>
    %c0_50 = arith.constant 0 : index
    %c0_51 = arith.constant 0 : index
    %118 = vector.load %arg50[%c0_50, %c0_51] : memref<112x128xf32, #tpu.memory_space<vmem>>, vector<56x64xf32>
    tpu.vector_store %arg50[%c0_50, %c0_51], %117 {strides = array<i32>} : memref<112x128xf32, #tpu.memory_space<vmem>>, vector<56x64xf32>,
    %119 = vector.extract_strided_slice %116 {offsets = [0, 0], sizes = [8, 55], strides = [1, 1]} : vector<8x64xf32> to vector<8x55xf32>
    %c0_52 = arith.constant 0 : index
    %c9 = arith.constant 9 : index
    %120 = vector.load %arg50[%c0_52, %c9] : memref<112x128xf32, #tpu.memory_space<vmem>>, vector<8x55xf32>
    tpu.vector_store %arg50[%c0_52, %c9], %119 {strides = array<i32>} : memref<112x128xf32, #tpu.memory_space<vmem>>, vector<8x55xf32>,
    %121 = vector.extract_strided_slice %116 {offsets = [0, 0], sizes = [8, 58], strides = [1, 1]} : vector<8x64xf32> to vector<8x58xf32>
    %c8_53 = arith.constant 8 : index
    %c6 = arith.constant 6 : index
    %122 = vector.load %arg50[%c8_53, %c6] : memref<112x128xf32, #tpu.memory_space<vmem>>, vector<8x58xf32>
    tpu.vector_store %arg50[%c8_53, %c6], %121 {strides = array<i32>} : memref<112x128xf32, #tpu.memory_space<vmem>>, vector<8x58xf32>,
    %123 = vector.extract_strided_slice %116 {offsets = [0, 0], sizes = [8, 61], strides = [1, 1]} : vector<8x64xf32> to vector<8x61xf32>
    %c16_54 = arith.constant 16 : index
    %c3_55 = arith.constant 3 : index
    %124 = vector.load %arg50[%c16_54, %c3_55] : memref<112x128xf32, #tpu.memory_space<vmem>>, vector<8x61xf32>
    tpu.vector_store %arg50[%c16_54, %c3_55], %123 {strides = array<i32>} : memref<112x128xf32, #tpu.memory_space<vmem>>, vector<8x61xf32>,
    %c24_56 = arith.constant 24 : index
    %c0_57 = arith.constant 0 : index
    %125 = vector.load %arg50[%c24_56, %c0_57] : memref<112x128xf32, #tpu.memory_space<vmem>>, vector<8x64xf32>
    tpu.vector_store %arg50[%c24_56, %c0_57], %116 {strides = array<i32>} : memref<112x128xf32, #tpu.memory_space<vmem>>, vector<8x64xf32>,
    %126 = vector.extract_strided_slice %116 {offsets = [0, 3], sizes = [8, 61], strides = [1, 1]} : vector<8x64xf32> to vector<8x61xf32>
    %c32_58 = arith.constant 32 : index
    %c0_59 = arith.constant 0 : index
    %127 = vector.load %arg50[%c32_58, %c0_59] : memref<112x128xf32, #tpu.memory_space<vmem>>, vector<8x61xf32>
    tpu.vector_store %arg50[%c32_58, %c0_59], %126 {strides = array<i32>} : memref<112x128xf32, #tpu.memory_space<vmem>>, vector<8x61xf32>,
    %128 = vector.extract_strided_slice %116 {offsets = [0, 6], sizes = [8, 58], strides = [1, 1]} : vector<8x64xf32> to vector<8x58xf32>
    %c40_60 = arith.constant 40 : index
    %c0_61 = arith.constant 0 : index
    %129 = vector.load %arg50[%c40_60, %c0_61] : memref<112x128xf32, #tpu.memory_space<vmem>>, vector<8x58xf32>
    tpu.vector_store %arg50[%c40_60, %c0_61], %128 {strides = array<i32>} : memref<112x128xf32, #tpu.memory_space<vmem>>, vector<8x58xf32>,
    %130 = vector.extract_strided_slice %116 {offsets = [0, 9], sizes = [8, 55], strides = [1, 1]} : vector<8x64xf32> to vector<8x55xf32>
    %c48_62 = arith.constant 48 : index
    %c0_63 = arith.constant 0 : index
    %131 = vector.load %arg50[%c48_62, %c0_63] : memref<112x128xf32, #tpu.memory_space<vmem>>, vector<8x55xf32>
    tpu.vector_store %arg50[%c48_62, %c0_63], %130 {strides = array<i32>} : memref<112x128xf32, #tpu.memory_space<vmem>>, vector<8x55xf32>,
    %c0_64 = arith.constant 0 : index
    %c0_65 = arith.constant 0 : index
    %132 = vector.load %arg50[%c0_64, %c0_65] : memref<112x128xf32, #tpu.memory_space<vmem>>, vector<56x64xf32>
    %133 = arith.truncf %132 : vector<56x64xf32> to vector<56x64xbf16>
    %cst_66 = arith.constant dense<0.000000e+00> : vector<8x64xf32>
    %134 = tpu.matmul %103, %133, %cst_66 {dimension_numbers = #tpu.dot_dimension_numbers<[1], [0], [0], [1], [0, 0, 1, 1], [], []>} : vector<8x56xbf16>, vector<56x64xbf16>, vector<8x64xf32> -> vector<8x64xf32>
    %135 = vector.broadcast %104 : vector<8x1xf32> to vector<8x64xf32>
    %136 = arith.addf %134, %135 : vector<8x64xf32>
    %137 = vector.extract_strided_slice %105 {offsets = [0, 0], sizes = [8, 1], strides = [1, 1]} : vector<8x2xf32> to vector<8x1xf32>
    %138 = vector.extract_strided_slice %105 {offsets = [0, 1], sizes = [8, 1], strides = [1, 1]} : vector<8x2xf32> to vector<8x1xf32>
    %139 = vector.broadcast %137 : vector<8x1xf32> to vector<8x64xf32>
    %140 = arith.mulf %139, %136 : vector<8x64xf32>
    %141 = math.sin %140 : vector<8x64xf32>
    %142 = arith.mulf %141, %141 : vector<8x64xf32>
    %143 = vector.broadcast %138 : vector<8x1xf32> to vector<8x64xf32>
    %144 = arith.mulf %143, %142 : vector<8x64xf32>
    %145 = arith.addf %136, %144 : vector<8x64xf32>
    %146 = arith.truncf %145 : vector<8x64xf32> to vector<8x64xbf16>
    %cst_67 = arith.constant dense<0.000000e+00> : vector<8x64xf32>
    %147 = tpu.matmul %106, %146, %cst_67 {dimension_numbers = #tpu.dot_dimension_numbers<[1], [0], [0], [1], [0, 0, 1, 1], [], []>} : vector<8x8xbf16>, vector<8x64xbf16>, vector<8x64xf32> -> vector<8x64xf32>
    %148 = vector.broadcast %107 : vector<8x1xf32> to vector<8x64xf32>
    %149 = arith.addf %147, %148 : vector<8x64xf32>
    %150 = arith.addf %101, %149 : vector<8x64xf32>
    %c0_68 = arith.constant 0 : index
    %c0_69 = arith.constant 0 : index
    %151 = vector.load %arg16[%c0_68, %c0_69] : memref<8x2xf32, #tpu.memory_space<vmem>>, vector<8x2xf32>
    %c0_70 = arith.constant 0 : index
    %c0_71 = arith.constant 0 : index
    %152 = vector.load %arg17[%c0_70, %c0_71] : memref<8x56xbf16, #tpu.memory_space<vmem>>, vector<8x56xbf16>
    %c0_72 = arith.constant 0 : index
    %c0_73 = arith.constant 0 : index
    %153 = vector.load %arg18[%c0_72, %c0_73] : memref<8x1xf32, #tpu.memory_space<vmem>>, vector<8x1xf32>
    %c0_74 = arith.constant 0 : index
    %c0_75 = arith.constant 0 : index
    %154 = vector.load %arg19[%c0_74, %c0_75] : memref<8x2xf32, #tpu.memory_space<vmem>>, vector<8x2xf32>
    %c0_76 = arith.constant 0 : index
    %c0_77 = arith.constant 0 : index
    %155 = vector.load %arg20[%c0_76, %c0_77] : memref<8x8xbf16, #tpu.memory_space<vmem>>, vector<8x8xbf16>
    %c0_78 = arith.constant 0 : index
    %c0_79 = arith.constant 0 : index
    %156 = vector.load %arg21[%c0_78, %c0_79] : memref<8x1xf32, #tpu.memory_space<vmem>>, vector<8x1xf32>
    %157 = vector.extract_strided_slice %151 {offsets = [0, 0], sizes = [8, 1], strides = [1, 1]} : vector<8x2xf32> to vector<8x1xf32>
    %158 = vector.extract_strided_slice %151 {offsets = [0, 1], sizes = [8, 1], strides = [1, 1]} : vector<8x2xf32> to vector<8x1xf32>
    %159 = vector.broadcast %157 : vector<8x1xf32> to vector<8x64xf32>
    %160 = arith.mulf %159, %150 : vector<8x64xf32>
    %161 = math.sin %160 : vector<8x64xf32>
    %162 = arith.mulf %161, %161 : vector<8x64xf32>
    %163 = vector.broadcast %158 : vector<8x1xf32> to vector<8x64xf32>
    %164 = arith.mulf %163, %162 : vector<8x64xf32>
    %165 = arith.addf %150, %164 : vector<8x64xf32>
    %cst_80 = arith.constant 0.000000e+00 : f32
    %166 = vector.broadcast %cst_80 : f32 to vector<56x64xf32>
    %c0_81 = arith.constant 0 : index
    %c0_82 = arith.constant 0 : index
    %167 = vector.load %arg50[%c0_81, %c0_82] : memref<112x128xf32, #tpu.memory_space<vmem>>, vector<56x64xf32>
    tpu.vector_store %arg50[%c0_81, %c0_82], %166 {strides = array<i32>} : memref<112x128xf32, #tpu.memory_space<vmem>>, vector<56x64xf32>,
    %168 = vector.extract_strided_slice %165 {offsets = [0, 0], sizes = [8, 37], strides = [1, 1]} : vector<8x64xf32> to vector<8x37xf32>
    %c0_83 = arith.constant 0 : index
    %c27 = arith.constant 27 : index
    %169 = vector.load %arg50[%c0_83, %c27] : memref<112x128xf32, #tpu.memory_space<vmem>>, vector<8x37xf32>
    tpu.vector_store %arg50[%c0_83, %c27], %168 {strides = array<i32>} : memref<112x128xf32, #tpu.memory_space<vmem>>, vector<8x37xf32>,
    %170 = vector.extract_strided_slice %165 {offsets = [0, 0], sizes = [8, 46], strides = [1, 1]} : vector<8x64xf32> to vector<8x46xf32>
    %c8_84 = arith.constant 8 : index
    %c18 = arith.constant 18 : index
    %171 = vector.load %arg50[%c8_84, %c18] : memref<112x128xf32, #tpu.memory_space<vmem>>, vector<8x46xf32>
    tpu.vector_store %arg50[%c8_84, %c18], %170 {strides = array<i32>} : memref<112x128xf32, #tpu.memory_space<vmem>>, vector<8x46xf32>,
    %172 = vector.extract_strided_slice %165 {offsets = [0, 0], sizes = [8, 55], strides = [1, 1]} : vector<8x64xf32> to vector<8x55xf32>
    %c16_85 = arith.constant 16 : index
    %c9_86 = arith.constant 9 : index
    %173 = vector.load %arg50[%c16_85, %c9_86] : memref<112x128xf32, #tpu.memory_space<vmem>>, vector<8x55xf32>
    tpu.vector_store %arg50[%c16_85, %c9_86], %172 {strides = array<i32>} : memref<112x128xf32, #tpu.memory_space<vmem>>, vector<8x55xf32>,
    %c24_87 = arith.constant 24 : index
    %c0_88 = arith.constant 0 : index
    %174 = vector.load %arg50[%c24_87, %c0_88] : memref<112x128xf32, #tpu.memory_space<vmem>>, vector<8x64xf32>
    tpu.vector_store %arg50[%c24_87, %c0_88], %165 {strides = array<i32>} : memref<112x128xf32, #tpu.memory_space<vmem>>, vector<8x64xf32>,
    %175 = vector.extract_strided_slice %165 {offsets = [0, 9], sizes = [8, 55], strides = [1, 1]} : vector<8x64xf32> to vector<8x55xf32>
    %c32_89 = arith.constant 32 : index
    %c0_90 = arith.constant 0 : index
    %176 = vector.load %arg50[%c32_89, %c0_90] : memref<112x128xf32, #tpu.memory_space<vmem>>, vector<8x55xf32>
    tpu.vector_store %arg50[%c32_89, %c0_90], %175 {strides = array<i32>} : memref<112x128xf32, #tpu.memory_space<vmem>>, vector<8x55xf32>,
    %177 = vector.extract_strided_slice %165 {offsets = [0, 18], sizes = [8, 46], strides = [1, 1]} : vector<8x64xf32> to vector<8x46xf32>
    %c40_91 = arith.constant 40 : index
    %c0_92 = arith.constant 0 : index
    %178 = vector.load %arg50[%c40_91, %c0_92] : memref<112x128xf32, #tpu.memory_space<vmem>>, vector<8x46xf32>
    tpu.vector_store %arg50[%c40_91, %c0_92], %177 {strides = array<i32>} : memref<112x128xf32, #tpu.memory_space<vmem>>, vector<8x46xf32>,
    %179 = vector.extract_strided_slice %165 {offsets = [0, 27], sizes = [8, 37], strides = [1, 1]} : vector<8x64xf32> to vector<8x37xf32>
    %c48_93 = arith.constant 48 : index
    %c0_94 = arith.constant 0 : index
    %180 = vector.load %arg50[%c48_93, %c0_94] : memref<112x128xf32, #tpu.memory_space<vmem>>, vector<8x37xf32>
    tpu.vector_store %arg50[%c48_93, %c0_94], %179 {strides = array<i32>} : memref<112x128xf32, #tpu.memory_space<vmem>>, vector<8x37xf32>,
    %c0_95 = arith.constant 0 : index
    %c0_96 = arith.constant 0 : index
    %181 = vector.load %arg50[%c0_95, %c0_96] : memref<112x128xf32, #tpu.memory_space<vmem>>, vector<56x64xf32>
    %182 = arith.truncf %181 : vector<56x64xf32> to vector<56x64xbf16>
    %cst_97 = arith.constant dense<0.000000e+00> : vector<8x64xf32>
    %183 = tpu.matmul %152, %182, %cst_97 {dimension_numbers = #tpu.dot_dimension_numbers<[1], [0], [0], [1], [0, 0, 1, 1], [], []>} : vector<8x56xbf16>, vector<56x64xbf16>, vector<8x64xf32> -> vector<8x64xf32>
    %184 = vector.broadcast %153 : vector<8x1xf32> to vector<8x64xf32>
    %185 = arith.addf %183, %184 : vector<8x64xf32>
    %186 = vector.extract_strided_slice %154 {offsets = [0, 0], sizes = [8, 1], strides = [1, 1]} : vector<8x2xf32> to vector<8x1xf32>
    %187 = vector.extract_strided_slice %154 {offsets = [0, 1], sizes = [8, 1], strides = [1, 1]} : vector<8x2xf32> to vector<8x1xf32>
    %188 = vector.broadcast %186 : vector<8x1xf32> to vector<8x64xf32>
    %189 = arith.mulf %188, %185 : vector<8x64xf32>
    %190 = math.sin %189 : vector<8x64xf32>
    %191 = arith.mulf %190, %190 : vector<8x64xf32>
    %192 = vector.broadcast %187 : vector<8x1xf32> to vector<8x64xf32>
    %193 = arith.mulf %192, %191 : vector<8x64xf32>
    %194 = arith.addf %185, %193 : vector<8x64xf32>
    %195 = arith.truncf %194 : vector<8x64xf32> to vector<8x64xbf16>
    %cst_98 = arith.constant dense<0.000000e+00> : vector<8x64xf32>
    %196 = tpu.matmul %155, %195, %cst_98 {dimension_numbers = #tpu.dot_dimension_numbers<[1], [0], [0], [1], [0, 0, 1, 1], [], []>} : vector<8x8xbf16>, vector<8x64xbf16>, vector<8x64xf32> -> vector<8x64xf32>
    %197 = vector.broadcast %156 : vector<8x1xf32> to vector<8x64xf32>
    %198 = arith.addf %196, %197 : vector<8x64xf32>
    %199 = arith.addf %150, %198 : vector<8x64xf32>
    %c0_99 = arith.constant 0 : index
    %c0_100 = arith.constant 0 : index
    %200 = vector.load %arg22[%c0_99, %c0_100] : memref<8x2xf32, #tpu.memory_space<vmem>>, vector<8x2xf32>
    %c0_101 = arith.constant 0 : index
    %c0_102 = arith.constant 0 : index
    %201 = vector.load %arg23[%c0_101, %c0_102] : memref<16x32xbf16, #tpu.memory_space<vmem>>, vector<16x32xbf16>
    %c0_103 = arith.constant 0 : index
    %c0_104 = arith.constant 0 : index
    %202 = vector.load %arg24[%c0_103, %c0_104] : memref<16x1xf32, #tpu.memory_space<vmem>>, vector<16x1xf32>
    %203 = vector.extract_strided_slice %200 {offsets = [0, 0], sizes = [8, 1], strides = [1, 1]} : vector<8x2xf32> to vector<8x1xf32>
    %204 = vector.extract_strided_slice %200 {offsets = [0, 1], sizes = [8, 1], strides = [1, 1]} : vector<8x2xf32> to vector<8x1xf32>
    %205 = vector.broadcast %203 : vector<8x1xf32> to vector<8x64xf32>
    %206 = arith.mulf %205, %199 : vector<8x64xf32>
    %207 = math.sin %206 : vector<8x64xf32>
    %208 = arith.mulf %207, %207 : vector<8x64xf32>
    %209 = vector.broadcast %204 : vector<8x1xf32> to vector<8x64xf32>
    %210 = arith.mulf %209, %208 : vector<8x64xf32>
    %211 = arith.addf %199, %210 : vector<8x64xf32>
    %cst_105 = arith.constant 0.000000e+00 : f32
    %212 = vector.broadcast %cst_105 : f32 to vector<32x63xf32>
    %c0_106 = arith.constant 0 : index
    %c0_107 = arith.constant 0 : index
    %213 = vector.load %arg50[%c0_106, %c0_107] : memref<112x128xf32, #tpu.memory_space<vmem>>, vector<32x63xf32>
    tpu.vector_store %arg50[%c0_106, %c0_107], %212 {strides = array<i32>} : memref<112x128xf32, #tpu.memory_space<vmem>>, vector<32x63xf32>,
    %214 = vector.extract_strided_slice %211 {offsets = [0, 0], sizes = [8, 62], strides = [1, 1]} : vector<8x64xf32> to vector<8x62xf32>
    %c0_108 = arith.constant 0 : index
    %c1_109 = arith.constant 1 : index
    %215 = vector.load %arg50[%c0_108, %c1_109] : memref<112x128xf32, #tpu.memory_space<vmem>>, vector<8x62xf32>
    tpu.vector_store %arg50[%c0_108, %c1_109], %214 {strides = array<i32>} : memref<112x128xf32, #tpu.memory_space<vmem>>, vector<8x62xf32>,
    %216 = vector.extract_strided_slice %211 {offsets = [0, 0], sizes = [8, 63], strides = [1, 1]} : vector<8x64xf32> to vector<8x63xf32>
    %c8_110 = arith.constant 8 : index
    %c0_111 = arith.constant 0 : index
    %217 = vector.load %arg50[%c8_110, %c0_111] : memref<112x128xf32, #tpu.memory_space<vmem>>, vector<8x63xf32>
    tpu.vector_store %arg50[%c8_110, %c0_111], %216 {strides = array<i32>} : memref<112x128xf32, #tpu.memory_space<vmem>>, vector<8x63xf32>,
    %218 = vector.extract_strided_slice %211 {offsets = [0, 1], sizes = [8, 63], strides = [1, 1]} : vector<8x64xf32> to vector<8x63xf32>
    %c16_112 = arith.constant 16 : index
    %c0_113 = arith.constant 0 : index
    %219 = vector.load %arg50[%c16_112, %c0_113] : memref<112x128xf32, #tpu.memory_space<vmem>>, vector<8x63xf32>
    tpu.vector_store %arg50[%c16_112, %c0_113], %218 {strides = array<i32>} : memref<112x128xf32, #tpu.memory_space<vmem>>, vector<8x63xf32>,
    %220 = vector.extract_strided_slice %211 {offsets = [0, 2], sizes = [8, 62], strides = [1, 1]} : vector<8x64xf32> to vector<8x62xf32>
    %c24_114 = arith.constant 24 : index
    %c0_115 = arith.constant 0 : index
    %221 = vector.load %arg50[%c24_114, %c0_115] : memref<112x128xf32, #tpu.memory_space<vmem>>, vector<8x62xf32>
    tpu.vector_store %arg50[%c24_114, %c0_115], %220 {strides = array<i32>} : memref<112x128xf32, #tpu.memory_space<vmem>>, vector<8x62xf32>,
    %c0_116 = arith.constant 0 : index
    %c0_117 = arith.constant 0 : index
    %222 = vector.load %arg50[%c0_116, %c0_117] : memref<112x128xf32, #tpu.memory_space<vmem>>, vector<32x63xf32>
    %223 = arith.truncf %222 : vector<32x63xf32> to vector<32x63xbf16>
    %224 = tpu.iota {dimensions = array<i32: 0>} : vector<63x32xi32>
    %225 = tpu.iota {dimensions = array<i32: 1>} : vector<63x32xi32>
    %c2_i32 = arith.constant 2 : i32
    %226 = vector.broadcast %c2_i32 : i32 to vector<63x32xi32>
    %227 = arith.muli %225, %226 : vector<63x32xi32>
    %228 = arith.cmpi eq, %224, %227 : vector<63x32xi32>
    %229 = arith.extui %228 : vector<63x32xi1> to vector<63x32xi32>
    %230 = arith.sitofp %229 : vector<63x32xi32> to vector<63x32xf32>
    %231 = arith.truncf %230 : vector<63x32xf32> to vector<63x32xbf16>
    %cst_118 = arith.constant dense<0.000000e+00> : vector<32x32xf32>
    %232 = tpu.matmul %223, %231, %cst_118 {dimension_numbers = #tpu.dot_dimension_numbers<[1], [0], [0], [1], [0, 0, 1, 1], [], []>} : vector<32x63xbf16>, vector<63x32xbf16>, vector<32x32xf32> -> vector<32x32xf32>
    %233 = arith.truncf %232 : vector<32x32xf32> to vector<32x32xbf16>
    %cst_119 = arith.constant dense<0.000000e+00> : vector<16x32xf32>
    %234 = tpu.matmul %201, %233, %cst_119 {dimension_numbers = #tpu.dot_dimension_numbers<[1], [0], [0], [1], [0, 0, 1, 1], [], []>} : vector<16x32xbf16>, vector<32x32xbf16>, vector<16x32xf32> -> vector<16x32xf32>
    %235 = vector.broadcast %202 : vector<16x1xf32> to vector<16x32xf32>
    %236 = arith.addf %234, %235 : vector<16x32xf32>
    %c0_120 = arith.constant 0 : index
    %c0_121 = arith.constant 0 : index
    %237 = vector.load %arg25[%c0_120, %c0_121] : memref<16x2xf32, #tpu.memory_space<vmem>>, vector<16x2xf32>
    %c0_122 = arith.constant 0 : index
    %c0_123 = arith.constant 0 : index
    %238 = vector.load %arg26[%c0_122, %c0_123] : memref<16x112xbf16, #tpu.memory_space<vmem>>, vector<16x112xbf16>
    %c0_124 = arith.constant 0 : index
    %c0_125 = arith.constant 0 : index
    %239 = vector.load %arg27[%c0_124, %c0_125] : memref<16x1xf32, #tpu.memory_space<vmem>>, vector<16x1xf32>
    %c0_126 = arith.constant 0 : index
    %c0_127 = arith.constant 0 : index
    %240 = vector.load %arg28[%c0_126, %c0_127] : memref<16x2xf32, #tpu.memory_space<vmem>>, vector<16x2xf32>
    %c0_128 = arith.constant 0 : index
    %c0_129 = arith.constant 0 : index
    %241 = vector.load %arg29[%c0_128, %c0_129] : memref<16x16xbf16, #tpu.memory_space<vmem>>, vector<16x16xbf16>
    %c0_130 = arith.constant 0 : index
    %c0_131 = arith.constant 0 : index
    %242 = vector.load %arg30[%c0_130, %c0_131] : memref<16x1xf32, #tpu.memory_space<vmem>>, vector<16x1xf32>
    %243 = vector.extract_strided_slice %237 {offsets = [0, 0], sizes = [16, 1], strides = [1, 1]} : vector<16x2xf32> to vector<16x1xf32>
    %244 = vector.extract_strided_slice %237 {offsets = [0, 1], sizes = [16, 1], strides = [1, 1]} : vector<16x2xf32> to vector<16x1xf32>
    %245 = vector.broadcast %243 : vector<16x1xf32> to vector<16x32xf32>
    %246 = arith.mulf %245, %236 : vector<16x32xf32>
    %247 = math.sin %246 : vector<16x32xf32>
    %248 = arith.mulf %247, %247 : vector<16x32xf32>
    %249 = vector.broadcast %244 : vector<16x1xf32> to vector<16x32xf32>
    %250 = arith.mulf %249, %248 : vector<16x32xf32>
    %251 = arith.addf %236, %250 : vector<16x32xf32>
    %cst_132 = arith.constant 0.000000e+00 : f32
    %252 = vector.broadcast %cst_132 : f32 to vector<112x32xf32>
    %c0_133 = arith.constant 0 : index
    %c0_134 = arith.constant 0 : index
    %253 = vector.load %arg50[%c0_133, %c0_134] : memref<112x128xf32, #tpu.memory_space<vmem>>, vector<112x32xf32>
    tpu.vector_store %arg50[%c0_133, %c0_134], %252 {strides = array<i32>} : memref<112x128xf32, #tpu.memory_space<vmem>>, vector<112x32xf32>,
    %254 = vector.extract_strided_slice %251 {offsets = [0, 0], sizes = [16, 29], strides = [1, 1]} : vector<16x32xf32> to vector<16x29xf32>
    %c0_135 = arith.constant 0 : index
    %c3_136 = arith.constant 3 : index
    %255 = vector.load %arg50[%c0_135, %c3_136] : memref<112x128xf32, #tpu.memory_space<vmem>>, vector<16x29xf32>
    tpu.vector_store %arg50[%c0_135, %c3_136], %254 {strides = array<i32>} : memref<112x128xf32, #tpu.memory_space<vmem>>, vector<16x29xf32>,
    %256 = vector.extract_strided_slice %251 {offsets = [0, 0], sizes = [16, 30], strides = [1, 1]} : vector<16x32xf32> to vector<16x30xf32>
    %c16_137 = arith.constant 16 : index
    %c2_138 = arith.constant 2 : index
    %257 = vector.load %arg50[%c16_137, %c2_138] : memref<112x128xf32, #tpu.memory_space<vmem>>, vector<16x30xf32>
    tpu.vector_store %arg50[%c16_137, %c2_138], %256 {strides = array<i32>} : memref<112x128xf32, #tpu.memory_space<vmem>>, vector<16x30xf32>,
    %258 = vector.extract_strided_slice %251 {offsets = [0, 0], sizes = [16, 31], strides = [1, 1]} : vector<16x32xf32> to vector<16x31xf32>
    %c32_139 = arith.constant 32 : index
    %c1_140 = arith.constant 1 : index
    %259 = vector.load %arg50[%c32_139, %c1_140] : memref<112x128xf32, #tpu.memory_space<vmem>>, vector<16x31xf32>
    tpu.vector_store %arg50[%c32_139, %c1_140], %258 {strides = array<i32>} : memref<112x128xf32, #tpu.memory_space<vmem>>, vector<16x31xf32>,
    %c48_141 = arith.constant 48 : index
    %c0_142 = arith.constant 0 : index
    %260 = vector.load %arg50[%c48_141, %c0_142] : memref<112x128xf32, #tpu.memory_space<vmem>>, vector<16x32xf32>
    tpu.vector_store %arg50[%c48_141, %c0_142], %251 {strides = array<i32>} : memref<112x128xf32, #tpu.memory_space<vmem>>, vector<16x32xf32>,
    %261 = vector.extract_strided_slice %251 {offsets = [0, 1], sizes = [16, 31], strides = [1, 1]} : vector<16x32xf32> to vector<16x31xf32>
    %c64 = arith.constant 64 : index
    %c0_143 = arith.constant 0 : index
    %262 = vector.load %arg50[%c64, %c0_143] : memref<112x128xf32, #tpu.memory_space<vmem>>, vector<16x31xf32>
    tpu.vector_store %arg50[%c64, %c0_143], %261 {strides = array<i32>} : memref<112x128xf32, #tpu.memory_space<vmem>>, vector<16x31xf32>,
    %263 = vector.extract_strided_slice %251 {offsets = [0, 2], sizes = [16, 30], strides = [1, 1]} : vector<16x32xf32> to vector<16x30xf32>
    %c80 = arith.constant 80 : index
    %c0_144 = arith.constant 0 : index
    %264 = vector.load %arg50[%c80, %c0_144] : memref<112x128xf32, #tpu.memory_space<vmem>>, vector<16x30xf32>
    tpu.vector_store %arg50[%c80, %c0_144], %263 {strides = array<i32>} : memref<112x128xf32, #tpu.memory_space<vmem>>, vector<16x30xf32>,
    %265 = vector.extract_strided_slice %251 {offsets = [0, 3], sizes = [16, 29], strides = [1, 1]} : vector<16x32xf32> to vector<16x29xf32>
    %c96 = arith.constant 96 : index
    %c0_145 = arith.constant 0 : index
    %266 = vector.load %arg50[%c96, %c0_145] : memref<112x128xf32, #tpu.memory_space<vmem>>, vector<16x29xf32>
    tpu.vector_store %arg50[%c96, %c0_145], %265 {strides = array<i32>} : memref<112x128xf32, #tpu.memory_space<vmem>>, vector<16x29xf32>,
    %c0_146 = arith.constant 0 : index
    %c0_147 = arith.constant 0 : index
    %267 = vector.load %arg50[%c0_146, %c0_147] : memref<112x128xf32, #tpu.memory_space<vmem>>, vector<112x32xf32>
    %268 = arith.truncf %267 : vector<112x32xf32> to vector<112x32xbf16>
    %cst_148 = arith.constant dense<0.000000e+00> : vector<16x32xf32>
    %269 = tpu.matmul %238, %268, %cst_148 {dimension_numbers = #tpu.dot_dimension_numbers<[1], [0], [0], [1], [0, 0, 1, 1], [], []>} : vector<16x112xbf16>, vector<112x32xbf16>, vector<16x32xf32> -> vector<16x32xf32>
    %270 = vector.broadcast %239 : vector<16x1xf32> to vector<16x32xf32>
    %271 = arith.addf %269, %270 : vector<16x32xf32>
    %272 = vector.extract_strided_slice %240 {offsets = [0, 0], sizes = [16, 1], strides = [1, 1]} : vector<16x2xf32> to vector<16x1xf32>
    %273 = vector.extract_strided_slice %240 {offsets = [0, 1], sizes = [16, 1], strides = [1, 1]} : vector<16x2xf32> to vector<16x1xf32>
    %274 = vector.broadcast %272 : vector<16x1xf32> to vector<16x32xf32>
    %275 = arith.mulf %274, %271 : vector<16x32xf32>
    %276 = math.sin %275 : vector<16x32xf32>
    %277 = arith.mulf %276, %276 : vector<16x32xf32>
    %278 = vector.broadcast %273 : vector<16x1xf32> to vector<16x32xf32>
    %279 = arith.mulf %278, %277 : vector<16x32xf32>
    %280 = arith.addf %271, %279 : vector<16x32xf32>
    %281 = arith.truncf %280 : vector<16x32xf32> to vector<16x32xbf16>
    %cst_149 = arith.constant dense<0.000000e+00> : vector<16x32xf32>
    %282 = tpu.matmul %241, %281, %cst_149 {dimension_numbers = #tpu.dot_dimension_numbers<[1], [0], [0], [1], [0, 0, 1, 1], [], []>} : vector<16x16xbf16>, vector<16x32xbf16>, vector<16x32xf32> -> vector<16x32xf32>
    %283 = vector.broadcast %242 : vector<16x1xf32> to vector<16x32xf32>
    %284 = arith.addf %282, %283 : vector<16x32xf32>
    %285 = arith.addf %236, %284 : vector<16x32xf32>
    %c0_150 = arith.constant 0 : index
    %c0_151 = arith.constant 0 : index
    %286 = vector.load %arg31[%c0_150, %c0_151] : memref<16x2xf32, #tpu.memory_space<vmem>>, vector<16x2xf32>
    %c0_152 = arith.constant 0 : index
    %c0_153 = arith.constant 0 : index
    %287 = vector.load %arg32[%c0_152, %c0_153] : memref<16x112xbf16, #tpu.memory_space<vmem>>, vector<16x112xbf16>
    %c0_154 = arith.constant 0 : index
    %c0_155 = arith.constant 0 : index
    %288 = vector.load %arg33[%c0_154, %c0_155] : memref<16x1xf32, #tpu.memory_space<vmem>>, vector<16x1xf32>
    %c0_156 = arith.constant 0 : index
    %c0_157 = arith.constant 0 : index
    %289 = vector.load %arg34[%c0_156, %c0_157] : memref<16x2xf32, #tpu.memory_space<vmem>>, vector<16x2xf32>
    %c0_158 = arith.constant 0 : index
    %c0_159 = arith.constant 0 : index
    %290 = vector.load %arg35[%c0_158, %c0_159] : memref<16x16xbf16, #tpu.memory_space<vmem>>, vector<16x16xbf16>
    %c0_160 = arith.constant 0 : index
    %c0_161 = arith.constant 0 : index
    %291 = vector.load %arg36[%c0_160, %c0_161] : memref<16x1xf32, #tpu.memory_space<vmem>>, vector<16x1xf32>
    %292 = vector.extract_strided_slice %286 {offsets = [0, 0], sizes = [16, 1], strides = [1, 1]} : vector<16x2xf32> to vector<16x1xf32>
    %293 = vector.extract_strided_slice %286 {offsets = [0, 1], sizes = [16, 1], strides = [1, 1]} : vector<16x2xf32> to vector<16x1xf32>
    %294 = vector.broadcast %292 : vector<16x1xf32> to vector<16x32xf32>
    %295 = arith.mulf %294, %285 : vector<16x32xf32>
    %296 = math.sin %295 : vector<16x32xf32>
    %297 = arith.mulf %296, %296 : vector<16x32xf32>
    %298 = vector.broadcast %293 : vector<16x1xf32> to vector<16x32xf32>
    %299 = arith.mulf %298, %297 : vector<16x32xf32>
    %300 = arith.addf %285, %299 : vector<16x32xf32>
    %cst_162 = arith.constant 0.000000e+00 : f32
    %301 = vector.broadcast %cst_162 : f32 to vector<112x32xf32>
    %c0_163 = arith.constant 0 : index
    %c0_164 = arith.constant 0 : index
    %302 = vector.load %arg50[%c0_163, %c0_164] : memref<112x128xf32, #tpu.memory_space<vmem>>, vector<112x32xf32>
    tpu.vector_store %arg50[%c0_163, %c0_164], %301 {strides = array<i32>} : memref<112x128xf32, #tpu.memory_space<vmem>>, vector<112x32xf32>,
    %303 = vector.extract_strided_slice %300 {offsets = [0, 0], sizes = [16, 23], strides = [1, 1]} : vector<16x32xf32> to vector<16x23xf32>
    %c0_165 = arith.constant 0 : index
    %c9_166 = arith.constant 9 : index
    %304 = vector.load %arg50[%c0_165, %c9_166] : memref<112x128xf32, #tpu.memory_space<vmem>>, vector<16x23xf32>
    tpu.vector_store %arg50[%c0_165, %c9_166], %303 {strides = array<i32>} : memref<112x128xf32, #tpu.memory_space<vmem>>, vector<16x23xf32>,
    %305 = vector.extract_strided_slice %300 {offsets = [0, 0], sizes = [16, 26], strides = [1, 1]} : vector<16x32xf32> to vector<16x26xf32>
    %c16_167 = arith.constant 16 : index
    %c6_168 = arith.constant 6 : index
    %306 = vector.load %arg50[%c16_167, %c6_168] : memref<112x128xf32, #tpu.memory_space<vmem>>, vector<16x26xf32>
    tpu.vector_store %arg50[%c16_167, %c6_168], %305 {strides = array<i32>} : memref<112x128xf32, #tpu.memory_space<vmem>>, vector<16x26xf32>,
    %307 = vector.extract_strided_slice %300 {offsets = [0, 0], sizes = [16, 29], strides = [1, 1]} : vector<16x32xf32> to vector<16x29xf32>
    %c32_169 = arith.constant 32 : index
    %c3_170 = arith.constant 3 : index
    %308 = vector.load %arg50[%c32_169, %c3_170] : memref<112x128xf32, #tpu.memory_space<vmem>>, vector<16x29xf32>
    tpu.vector_store %arg50[%c32_169, %c3_170], %307 {strides = array<i32>} : memref<112x128xf32, #tpu.memory_space<vmem>>, vector<16x29xf32>,
    %c48_171 = arith.constant 48 : index
    %c0_172 = arith.constant 0 : index
    %309 = vector.load %arg50[%c48_171, %c0_172] : memref<112x128xf32, #tpu.memory_space<vmem>>, vector<16x32xf32>
    tpu.vector_store %arg50[%c48_171, %c0_172], %300 {strides = array<i32>} : memref<112x128xf32, #tpu.memory_space<vmem>>, vector<16x32xf32>,
    %310 = vector.extract_strided_slice %300 {offsets = [0, 3], sizes = [16, 29], strides = [1, 1]} : vector<16x32xf32> to vector<16x29xf32>
    %c64_173 = arith.constant 64 : index
    %c0_174 = arith.constant 0 : index
    %311 = vector.load %arg50[%c64_173, %c0_174] : memref<112x128xf32, #tpu.memory_space<vmem>>, vector<16x29xf32>
    tpu.vector_store %arg50[%c64_173, %c0_174], %310 {strides = array<i32>} : memref<112x128xf32, #tpu.memory_space<vmem>>, vector<16x29xf32>,
    %312 = vector.extract_strided_slice %300 {offsets = [0, 6], sizes = [16, 26], strides = [1, 1]} : vector<16x32xf32> to vector<16x26xf32>
    %c80_175 = arith.constant 80 : index
    %c0_176 = arith.constant 0 : index
    %313 = vector.load %arg50[%c80_175, %c0_176] : memref<112x128xf32, #tpu.memory_space<vmem>>, vector<16x26xf32>
    tpu.vector_store %arg50[%c80_175, %c0_176], %312 {strides = array<i32>} : memref<112x128xf32, #tpu.memory_space<vmem>>, vector<16x26xf32>,
    %314 = vector.extract_strided_slice %300 {offsets = [0, 9], sizes = [16, 23], strides = [1, 1]} : vector<16x32xf32> to vector<16x23xf32>
    %c96_177 = arith.constant 96 : index
    %c0_178 = arith.constant 0 : index
    %315 = vector.load %arg50[%c96_177, %c0_178] : memref<112x128xf32, #tpu.memory_space<vmem>>, vector<16x23xf32>
    tpu.vector_store %arg50[%c96_177, %c0_178], %314 {strides = array<i32>} : memref<112x128xf32, #tpu.memory_space<vmem>>, vector<16x23xf32>,
    %c0_179 = arith.constant 0 : index
    %c0_180 = arith.constant 0 : index
    %316 = vector.load %arg50[%c0_179, %c0_180] : memref<112x128xf32, #tpu.memory_space<vmem>>, vector<112x32xf32>
    %317 = arith.truncf %316 : vector<112x32xf32> to vector<112x32xbf16>
    %cst_181 = arith.constant dense<0.000000e+00> : vector<16x32xf32>
    %318 = tpu.matmul %287, %317, %cst_181 {dimension_numbers = #tpu.dot_dimension_numbers<[1], [0], [0], [1], [0, 0, 1, 1], [], []>} : vector<16x112xbf16>, vector<112x32xbf16>, vector<16x32xf32> -> vector<16x32xf32>
    %319 = vector.broadcast %288 : vector<16x1xf32> to vector<16x32xf32>
    %320 = arith.addf %318, %319 : vector<16x32xf32>
    %321 = vector.extract_strided_slice %289 {offsets = [0, 0], sizes = [16, 1], strides = [1, 1]} : vector<16x2xf32> to vector<16x1xf32>
    %322 = vector.extract_strided_slice %289 {offsets = [0, 1], sizes = [16, 1], strides = [1, 1]} : vector<16x2xf32> to vector<16x1xf32>
    %323 = vector.broadcast %321 : vector<16x1xf32> to vector<16x32xf32>
    %324 = arith.mulf %323, %320 : vector<16x32xf32>
    %325 = math.sin %324 : vector<16x32xf32>
    %326 = arith.mulf %325, %325 : vector<16x32xf32>
    %327 = vector.broadcast %322 : vector<16x1xf32> to vector<16x32xf32>
    %328 = arith.mulf %327, %326 : vector<16x32xf32>
    %329 = arith.addf %320, %328 : vector<16x32xf32>
    %330 = arith.truncf %329 : vector<16x32xf32> to vector<16x32xbf16>
    %cst_182 = arith.constant dense<0.000000e+00> : vector<16x32xf32>
    %331 = tpu.matmul %290, %330, %cst_182 {dimension_numbers = #tpu.dot_dimension_numbers<[1], [0], [0], [1], [0, 0, 1, 1], [], []>} : vector<16x16xbf16>, vector<16x32xbf16>, vector<16x32xf32> -> vector<16x32xf32>
    %332 = vector.broadcast %291 : vector<16x1xf32> to vector<16x32xf32>
    %333 = arith.addf %331, %332 : vector<16x32xf32>
    %334 = arith.addf %285, %333 : vector<16x32xf32>
    %c0_183 = arith.constant 0 : index
    %c0_184 = arith.constant 0 : index
    %335 = vector.load %arg37[%c0_183, %c0_184] : memref<16x2xf32, #tpu.memory_space<vmem>>, vector<16x2xf32>
    %c0_185 = arith.constant 0 : index
    %c0_186 = arith.constant 0 : index
    %336 = vector.load %arg38[%c0_185, %c0_186] : memref<16x112xbf16, #tpu.memory_space<vmem>>, vector<16x112xbf16>
    %c0_187 = arith.constant 0 : index
    %c0_188 = arith.constant 0 : index
    %337 = vector.load %arg39[%c0_187, %c0_188] : memref<16x1xf32, #tpu.memory_space<vmem>>, vector<16x1xf32>
    %c0_189 = arith.constant 0 : index
    %c0_190 = arith.constant 0 : index
    %338 = vector.load %arg40[%c0_189, %c0_190] : memref<16x2xf32, #tpu.memory_space<vmem>>, vector<16x2xf32>
    %c0_191 = arith.constant 0 : index
    %c0_192 = arith.constant 0 : index
    %339 = vector.load %arg41[%c0_191, %c0_192] : memref<16x16xbf16, #tpu.memory_space<vmem>>, vector<16x16xbf16>
    %c0_193 = arith.constant 0 : index
    %c0_194 = arith.constant 0 : index
    %340 = vector.load %arg42[%c0_193, %c0_194] : memref<16x1xf32, #tpu.memory_space<vmem>>, vector<16x1xf32>
    %341 = vector.extract_strided_slice %335 {offsets = [0, 0], sizes = [16, 1], strides = [1, 1]} : vector<16x2xf32> to vector<16x1xf32>
    %342 = vector.extract_strided_slice %335 {offsets = [0, 1], sizes = [16, 1], strides = [1, 1]} : vector<16x2xf32> to vector<16x1xf32>
    %343 = vector.broadcast %341 : vector<16x1xf32> to vector<16x32xf32>
    %344 = arith.mulf %343, %334 : vector<16x32xf32>
    %345 = math.sin %344 : vector<16x32xf32>
    %346 = arith.mulf %345, %345 : vector<16x32xf32>
    %347 = vector.broadcast %342 : vector<16x1xf32> to vector<16x32xf32>
    %348 = arith.mulf %347, %346 : vector<16x32xf32>
    %349 = arith.addf %334, %348 : vector<16x32xf32>
    %cst_195 = arith.constant 0.000000e+00 : f32
    %350 = vector.broadcast %cst_195 : f32 to vector<112x32xf32>
    %c0_196 = arith.constant 0 : index
    %c0_197 = arith.constant 0 : index
    %351 = vector.load %arg50[%c0_196, %c0_197] : memref<112x128xf32, #tpu.memory_space<vmem>>, vector<112x32xf32>
    tpu.vector_store %arg50[%c0_196, %c0_197], %350 {strides = array<i32>} : memref<112x128xf32, #tpu.memory_space<vmem>>, vector<112x32xf32>,
    %352 = vector.extract_strided_slice %349 {offsets = [0, 0], sizes = [16, 5], strides = [1, 1]} : vector<16x32xf32> to vector<16x5xf32>
    %c0_198 = arith.constant 0 : index
    %c27_199 = arith.constant 27 : index
    %353 = vector.load %arg50[%c0_198, %c27_199] : memref<112x128xf32, #tpu.memory_space<vmem>>, vector<16x5xf32>
    tpu.vector_store %arg50[%c0_198, %c27_199], %352 {strides = array<i32>} : memref<112x128xf32, #tpu.memory_space<vmem>>, vector<16x5xf32>,
    %354 = vector.extract_strided_slice %349 {offsets = [0, 0], sizes = [16, 14], strides = [1, 1]} : vector<16x32xf32> to vector<16x14xf32>
    %c16_200 = arith.constant 16 : index
    %c18_201 = arith.constant 18 : index
    %355 = vector.load %arg50[%c16_200, %c18_201] : memref<112x128xf32, #tpu.memory_space<vmem>>, vector<16x14xf32>
    tpu.vector_store %arg50[%c16_200, %c18_201], %354 {strides = array<i32>} : memref<112x128xf32, #tpu.memory_space<vmem>>, vector<16x14xf32>,
    %356 = vector.extract_strided_slice %349 {offsets = [0, 0], sizes = [16, 23], strides = [1, 1]} : vector<16x32xf32> to vector<16x23xf32>
    %c32_202 = arith.constant 32 : index
    %c9_203 = arith.constant 9 : index
    %357 = vector.load %arg50[%c32_202, %c9_203] : memref<112x128xf32, #tpu.memory_space<vmem>>, vector<16x23xf32>
    tpu.vector_store %arg50[%c32_202, %c9_203], %356 {strides = array<i32>} : memref<112x128xf32, #tpu.memory_space<vmem>>, vector<16x23xf32>,
    %c48_204 = arith.constant 48 : index
    %c0_205 = arith.constant 0 : index
    %358 = vector.load %arg50[%c48_204, %c0_205] : memref<112x128xf32, #tpu.memory_space<vmem>>, vector<16x32xf32>
    tpu.vector_store %arg50[%c48_204, %c0_205], %349 {strides = array<i32>} : memref<112x128xf32, #tpu.memory_space<vmem>>, vector<16x32xf32>,
    %359 = vector.extract_strided_slice %349 {offsets = [0, 9], sizes = [16, 23], strides = [1, 1]} : vector<16x32xf32> to vector<16x23xf32>
    %c64_206 = arith.constant 64 : index
    %c0_207 = arith.constant 0 : index
    %360 = vector.load %arg50[%c64_206, %c0_207] : memref<112x128xf32, #tpu.memory_space<vmem>>, vector<16x23xf32>
    tpu.vector_store %arg50[%c64_206, %c0_207], %359 {strides = array<i32>} : memref<112x128xf32, #tpu.memory_space<vmem>>, vector<16x23xf32>,
    %361 = vector.extract_strided_slice %349 {offsets = [0, 18], sizes = [16, 14], strides = [1, 1]} : vector<16x32xf32> to vector<16x14xf32>
    %c80_208 = arith.constant 80 : index
    %c0_209 = arith.constant 0 : index
    %362 = vector.load %arg50[%c80_208, %c0_209] : memref<112x128xf32, #tpu.memory_space<vmem>>, vector<16x14xf32>
    tpu.vector_store %arg50[%c80_208, %c0_209], %361 {strides = array<i32>} : memref<112x128xf32, #tpu.memory_space<vmem>>, vector<16x14xf32>,
    %363 = vector.extract_strided_slice %349 {offsets = [0, 27], sizes = [16, 5], strides = [1, 1]} : vector<16x32xf32> to vector<16x5xf32>
    %c96_210 = arith.constant 96 : index
    %c0_211 = arith.constant 0 : index
    %364 = vector.load %arg50[%c96_210, %c0_211] : memref<112x128xf32, #tpu.memory_space<vmem>>, vector<16x5xf32>
    tpu.vector_store %arg50[%c96_210, %c0_211], %363 {strides = array<i32>} : memref<112x128xf32, #tpu.memory_space<vmem>>, vector<16x5xf32>,
    %c0_212 = arith.constant 0 : index
    %c0_213 = arith.constant 0 : index
    %365 = vector.load %arg50[%c0_212, %c0_213] : memref<112x128xf32, #tpu.memory_space<vmem>>, vector<112x32xf32>
    %366 = arith.truncf %365 : vector<112x32xf32> to vector<112x32xbf16>
    %cst_214 = arith.constant dense<0.000000e+00> : vector<16x32xf32>
    %367 = tpu.matmul %336, %366, %cst_214 {dimension_numbers = #tpu.dot_dimension_numbers<[1], [0], [0], [1], [0, 0, 1, 1], [], []>} : vector<16x112xbf16>, vector<112x32xbf16>, vector<16x32xf32> -> vector<16x32xf32>
    %368 = vector.broadcast %337 : vector<16x1xf32> to vector<16x32xf32>
    %369 = arith.addf %367, %368 : vector<16x32xf32>
    %370 = vector.extract_strided_slice %338 {offsets = [0, 0], sizes = [16, 1], strides = [1, 1]} : vector<16x2xf32> to vector<16x1xf32>
    %371 = vector.extract_strided_slice %338 {offsets = [0, 1], sizes = [16, 1], strides = [1, 1]} : vector<16x2xf32> to vector<16x1xf32>
    %372 = vector.broadcast %370 : vector<16x1xf32> to vector<16x32xf32>
    %373 = arith.mulf %372, %369 : vector<16x32xf32>
    %374 = math.sin %373 : vector<16x32xf32>
    %375 = arith.mulf %374, %374 : vector<16x32xf32>
    %376 = vector.broadcast %371 : vector<16x1xf32> to vector<16x32xf32>
    %377 = arith.mulf %376, %375 : vector<16x32xf32>
    %378 = arith.addf %369, %377 : vector<16x32xf32>
    %379 = arith.truncf %378 : vector<16x32xf32> to vector<16x32xbf16>
    %cst_215 = arith.constant dense<0.000000e+00> : vector<16x32xf32>
    %380 = tpu.matmul %339, %379, %cst_215 {dimension_numbers = #tpu.dot_dimension_numbers<[1], [0], [0], [1], [0, 0, 1, 1], [], []>} : vector<16x16xbf16>, vector<16x32xbf16>, vector<16x32xf32> -> vector<16x32xf32>
    %381 = vector.broadcast %340 : vector<16x1xf32> to vector<16x32xf32>
    %382 = arith.addf %380, %381 : vector<16x32xf32>
    %383 = arith.addf %334, %382 : vector<16x32xf32>
    %c0_216 = arith.constant 0 : index
    %c0_217 = arith.constant 0 : index
    %384 = vector.load %arg43[%c0_216, %c0_217] : memref<16x2xf32, #tpu.memory_space<vmem>>, vector<16x2xf32>
    %c0_218 = arith.constant 0 : index
    %c0_219 = arith.constant 0 : index
    %385 = vector.load %arg44[%c0_218, %c0_219] : memref<32x64xbf16, #tpu.memory_space<vmem>>, vector<32x64xbf16>
    %c0_220 = arith.constant 0 : index
    %c0_221 = arith.constant 0 : index
    %386 = vector.load %arg45[%c0_220, %c0_221] : memref<32x1xf32, #tpu.memory_space<vmem>>, vector<32x1xf32>
    %387 = vector.extract_strided_slice %384 {offsets = [0, 0], sizes = [16, 1], strides = [1, 1]} : vector<16x2xf32> to vector<16x1xf32>
    %388 = vector.extract_strided_slice %384 {offsets = [0, 1], sizes = [16, 1], strides = [1, 1]} : vector<16x2xf32> to vector<16x1xf32>
    %389 = vector.broadcast %387 : vector<16x1xf32> to vector<16x32xf32>
    %390 = arith.mulf %389, %383 : vector<16x32xf32>
    %391 = math.sin %390 : vector<16x32xf32>
    %392 = arith.mulf %391, %391 : vector<16x32xf32>
    %393 = vector.broadcast %388 : vector<16x1xf32> to vector<16x32xf32>
    %394 = arith.mulf %393, %392 : vector<16x32xf32>
    %395 = arith.addf %383, %394 : vector<16x32xf32>
    %cst_222 = arith.constant 0.000000e+00 : f32
    %396 = vector.broadcast %cst_222 : f32 to vector<64x31xf32>
    %c0_223 = arith.constant 0 : index
    %c0_224 = arith.constant 0 : index
    %397 = vector.load %arg50[%c0_223, %c0_224] : memref<112x128xf32, #tpu.memory_space<vmem>>, vector<64x31xf32>
    tpu.vector_store %arg50[%c0_223, %c0_224], %396 {strides = array<i32>} : memref<112x128xf32, #tpu.memory_space<vmem>>, vector<64x31xf32>,
    %398 = vector.extract_strided_slice %395 {offsets = [0, 0], sizes = [16, 30], strides = [1, 1]} : vector<16x32xf32> to vector<16x30xf32>
    %c0_225 = arith.constant 0 : index
    %c1_226 = arith.constant 1 : index
    %399 = vector.load %arg50[%c0_225, %c1_226] : memref<112x128xf32, #tpu.memory_space<vmem>>, vector<16x30xf32>
    tpu.vector_store %arg50[%c0_225, %c1_226], %398 {strides = array<i32>} : memref<112x128xf32, #tpu.memory_space<vmem>>, vector<16x30xf32>,
    %400 = vector.extract_strided_slice %395 {offsets = [0, 0], sizes = [16, 31], strides = [1, 1]} : vector<16x32xf32> to vector<16x31xf32>
    %c16_227 = arith.constant 16 : index
    %c0_228 = arith.constant 0 : index
    %401 = vector.load %arg50[%c16_227, %c0_228] : memref<112x128xf32, #tpu.memory_space<vmem>>, vector<16x31xf32>
    tpu.vector_store %arg50[%c16_227, %c0_228], %400 {strides = array<i32>} : memref<112x128xf32, #tpu.memory_space<vmem>>, vector<16x31xf32>,
    %402 = vector.extract_strided_slice %395 {offsets = [0, 1], sizes = [16, 31], strides = [1, 1]} : vector<16x32xf32> to vector<16x31xf32>
    %c32_229 = arith.constant 32 : index
    %c0_230 = arith.constant 0 : index
    %403 = vector.load %arg50[%c32_229, %c0_230] : memref<112x128xf32, #tpu.memory_space<vmem>>, vector<16x31xf32>
    tpu.vector_store %arg50[%c32_229, %c0_230], %402 {strides = array<i32>} : memref<112x128xf32, #tpu.memory_space<vmem>>, vector<16x31xf32>,
    %404 = vector.extract_strided_slice %395 {offsets = [0, 2], sizes = [16, 30], strides = [1, 1]} : vector<16x32xf32> to vector<16x30xf32>
    %c48_231 = arith.constant 48 : index
    %c0_232 = arith.constant 0 : index
    %405 = vector.load %arg50[%c48_231, %c0_232] : memref<112x128xf32, #tpu.memory_space<vmem>>, vector<16x30xf32>
    tpu.vector_store %arg50[%c48_231, %c0_232], %404 {strides = array<i32>} : memref<112x128xf32, #tpu.memory_space<vmem>>, vector<16x30xf32>,
    %c0_233 = arith.constant 0 : index
    %c0_234 = arith.constant 0 : index
    %406 = vector.load %arg50[%c0_233, %c0_234] : memref<112x128xf32, #tpu.memory_space<vmem>>, vector<64x31xf32>
    %407 = arith.truncf %406 : vector<64x31xf32> to vector<64x31xbf16>
    %408 = tpu.iota {dimensions = array<i32: 0>} : vector<31x16xi32>
    %409 = tpu.iota {dimensions = array<i32: 1>} : vector<31x16xi32>
    %c2_i32_235 = arith.constant 2 : i32
    %410 = vector.broadcast %c2_i32_235 : i32 to vector<31x16xi32>
    %411 = arith.muli %409, %410 : vector<31x16xi32>
    %412 = arith.cmpi eq, %408, %411 : vector<31x16xi32>
    %413 = arith.extui %412 : vector<31x16xi1> to vector<31x16xi32>
    %414 = arith.sitofp %413 : vector<31x16xi32> to vector<31x16xf32>
    %415 = arith.truncf %414 : vector<31x16xf32> to vector<31x16xbf16>
    %cst_236 = arith.constant dense<0.000000e+00> : vector<64x16xf32>
    %416 = tpu.matmul %407, %415, %cst_236 {dimension_numbers = #tpu.dot_dimension_numbers<[1], [0], [0], [1], [0, 0, 1, 1], [], []>} : vector<64x31xbf16>, vector<31x16xbf16>, vector<64x16xf32> -> vector<64x16xf32>
    %417 = arith.truncf %416 : vector<64x16xf32> to vector<64x16xbf16>
    %cst_237 = arith.constant dense<0.000000e+00> : vector<32x16xf32>
    %418 = tpu.matmul %385, %417, %cst_237 {dimension_numbers = #tpu.dot_dimension_numbers<[1], [0], [0], [1], [0, 0, 1, 1], [], []>} : vector<32x64xbf16>, vector<64x16xbf16>, vector<32x16xf32> -> vector<32x16xf32>
    %419 = vector.broadcast %386 : vector<32x1xf32> to vector<32x16xf32>
    %420 = arith.addf %418, %419 : vector<32x16xf32>
    %c0_238 = arith.constant 0 : index
    %c0_239 = arith.constant 0 : index
    %421 = vector.load %arg46[%c0_238, %c0_239] : memref<32x2xf32, #tpu.memory_space<vmem>>, vector<32x2xf32>
    %c0_240 = arith.constant 0 : index
    %c0_241 = arith.constant 0 : index
    %422 = vector.load %arg47[%c0_240, %c0_241] : memref<8x96xbf16, #tpu.memory_space<vmem>>, vector<8x96xbf16>
    %c0_242 = arith.constant 0 : index
    %c0_243 = arith.constant 0 : index
    %423 = vector.load %arg48[%c0_242, %c0_243] : memref<8x1xf32, #tpu.memory_space<vmem>>, vector<8x1xf32>
    %424 = vector.extract_strided_slice %421 {offsets = [0, 0], sizes = [32, 1], strides = [1, 1]} : vector<32x2xf32> to vector<32x1xf32>
    %425 = vector.extract_strided_slice %421 {offsets = [0, 1], sizes = [32, 1], strides = [1, 1]} : vector<32x2xf32> to vector<32x1xf32>
    %426 = vector.broadcast %424 : vector<32x1xf32> to vector<32x16xf32>
    %427 = arith.mulf %426, %420 : vector<32x16xf32>
    %428 = math.sin %427 : vector<32x16xf32>
    %429 = arith.mulf %428, %428 : vector<32x16xf32>
    %430 = vector.broadcast %425 : vector<32x1xf32> to vector<32x16xf32>
    %431 = arith.mulf %430, %429 : vector<32x16xf32>
    %432 = arith.addf %420, %431 : vector<32x16xf32>
    %cst_244 = arith.constant 0.000000e+00 : f32
    %433 = vector.broadcast %cst_244 : f32 to vector<96x16xf32>
    %c0_245 = arith.constant 0 : index
    %c0_246 = arith.constant 0 : index
    %434 = vector.load %arg50[%c0_245, %c0_246] : memref<112x128xf32, #tpu.memory_space<vmem>>, vector<96x16xf32>
    tpu.vector_store %arg50[%c0_245, %c0_246], %433 {strides = array<i32>} : memref<112x128xf32, #tpu.memory_space<vmem>>, vector<96x16xf32>,
    %435 = vector.extract_strided_slice %432 {offsets = [0, 0], sizes = [32, 15], strides = [1, 1]} : vector<32x16xf32> to vector<32x15xf32>
    %c0_247 = arith.constant 0 : index
    %c1_248 = arith.constant 1 : index
    %436 = vector.load %arg50[%c0_247, %c1_248] : memref<112x128xf32, #tpu.memory_space<vmem>>, vector<32x15xf32>
    tpu.vector_store %arg50[%c0_247, %c1_248], %435 {strides = array<i32>} : memref<112x128xf32, #tpu.memory_space<vmem>>, vector<32x15xf32>,
    %c32_249 = arith.constant 32 : index
    %c0_250 = arith.constant 0 : index
    %437 = vector.load %arg50[%c32_249, %c0_250] : memref<112x128xf32, #tpu.memory_space<vmem>>, vector<32x16xf32>
    tpu.vector_store %arg50[%c32_249, %c0_250], %432 {strides = array<i32>} : memref<112x128xf32, #tpu.memory_space<vmem>>, vector<32x16xf32>,
    %438 = vector.extract_strided_slice %432 {offsets = [0, 1], sizes = [32, 15], strides = [1, 1]} : vector<32x16xf32> to vector<32x15xf32>
    %c64_251 = arith.constant 64 : index
    %c0_252 = arith.constant 0 : index
    %439 = vector.load %arg50[%c64_251, %c0_252] : memref<112x128xf32, #tpu.memory_space<vmem>>, vector<32x15xf32>
    tpu.vector_store %arg50[%c64_251, %c0_252], %438 {strides = array<i32>} : memref<112x128xf32, #tpu.memory_space<vmem>>, vector<32x15xf32>,
    %c0_253 = arith.constant 0 : index
    %c0_254 = arith.constant 0 : index
    %440 = vector.load %arg50[%c0_253, %c0_254] : memref<112x128xf32, #tpu.memory_space<vmem>>, vector<96x16xf32>
    %441 = arith.truncf %440 : vector<96x16xf32> to vector<96x16xbf16>
    %cst_255 = arith.constant dense<0.000000e+00> : vector<8x16xf32>
    %442 = tpu.matmul %422, %441, %cst_255 {dimension_numbers = #tpu.dot_dimension_numbers<[1], [0], [0], [1], [0, 0, 1, 1], [], []>} : vector<8x96xbf16>, vector<96x16xbf16>, vector<8x16xf32> -> vector<8x16xf32>
    %443 = vector.broadcast %423 : vector<8x1xf32> to vector<8x16xf32>
    %444 = arith.addf %442, %443 : vector<8x16xf32>
    %c0_256 = arith.constant 0 : index
    %c0_257 = arith.constant 0 : index
    %c0_258 = arith.constant 0 : index
    %445 = vector.load %arg49[%c0_256, %c0_257, %c0_258] : memref<1x8x16xf32, #tpu.memory_space<vmem>>, vector<1x8x16xf32>
    %446 = vector.shape_cast %445 : vector<1x8x16xf32> to vector<8x16xf32>
    %447 = vector.shape_cast %444 : vector<8x16xf32> to vector<1x8x16xf32>
    tpu.vector_store %arg49[%c0_256, %c0_257, %c0_258], %447 {strides = array<i32>} : memref<1x8x16xf32, #tpu.memory_space<vmem>>, vector<1x8x16xf32>,
    return
  }
  func.func @transform_0(%arg0: i32) -> (i32, i32, i32) {
    %c0_i32 = arith.constant 0 : i32
    %c0_i32_0 = arith.constant 0 : i32
    %c0_i32_1 = arith.constant 0 : i32
    return %arg0, %c0_i32, %c0_i32_0 : i32, i32, i32
  }
  func.func @transform_1(%arg0: i32) -> (i32, i32) {
    %c0_i32 = arith.constant 0 : i32
    %c0_i32_0 = arith.constant 0 : i32
    %c0_i32_1 = arith.constant 0 : i32
    return %c0_i32, %c0_i32_0 : i32, i32
  }
  func.func @transform_2(%arg0: i32) -> (i32, i32) {
    %c0_i32 = arith.constant 0 : i32
    %c0_i32_0 = arith.constant 0 : i32
    %c0_i32_1 = arith.constant 0 : i32
    return %c0_i32, %c0_i32_0 : i32, i32
  }
  func.func @transform_3(%arg0: i32) -> (i32, i32) {
    %c0_i32 = arith.constant 0 : i32
    %c0_i32_0 = arith.constant 0 : i32
    %c0_i32_1 = arith.constant 0 : i32
    return %c0_i32, %c0_i32_0 : i32, i32
  }
  func.func @transform_4(%arg0: i32) -> (i32, i32) {
    %c0_i32 = arith.constant 0 : i32
    %c0_i32_0 = arith.constant 0 : i32
    %c0_i32_1 = arith.constant 0 : i32
    return %c0_i32, %c0_i32_0 : i32, i32
  }
  func.func @transform_5(%arg0: i32) -> (i32, i32) {
    %c0_i32 = arith.constant 0 : i32
    %c0_i32_0 = arith.constant 0 : i32
    %c0_i32_1 = arith.constant 0 : i32
    return %c0_i32, %c0_i32_0 : i32, i32
  }
  func.func @transform_6(%arg0: i32) -> (i32, i32) {
    %c0_i32 = arith.constant 0 : i32
    %c0_i32_0 = arith.constant 0 : i32
    %c0_i32_1 = arith.constant 0 : i32
    return %c0_i32, %c0_i32_0 : i32, i32
  }
  func.func @transform_7(%arg0: i32) -> (i32, i32) {
    %c0_i32 = arith.constant 0 : i32
    %c0_i32_0 = arith.constant 0 : i32
    %c0_i32_1 = arith.constant 0 : i32
    return %c0_i32, %c0_i32_0 : i32, i32
  }
  func.func @transform_8(%arg0: i32) -> (i32, i32) {
    %c0_i32 = arith.constant 0 : i32
    %c0_i32_0 = arith.constant 0 : i32
    %c0_i32_1 = arith.constant 0 : i32
    return %c0_i32, %c0_i32_0 : i32, i32
  }
  func.func @transform_9(%arg0: i32) -> (i32, i32) {
    %c0_i32 = arith.constant 0 : i32
    %c0_i32_0 = arith.constant 0 : i32
    %c0_i32_1 = arith.constant 0 : i32
    return %c0_i32, %c0_i32_0 : i32, i32
  }
  func.func @transform_10(%arg0: i32) -> (i32, i32) {
    %c0_i32 = arith.constant 0 : i32
    %c0_i32_0 = arith.constant 0 : i32
    %c0_i32_1 = arith.constant 0 : i32
    return %c0_i32, %c0_i32_0 : i32, i32
  }
  func.func @transform_11(%arg0: i32) -> (i32, i32) {
    %c0_i32 = arith.constant 0 : i32
    %c0_i32_0 = arith.constant 0 : i32
    %c0_i32_1 = arith.constant 0 : i32
    return %c0_i32, %c0_i32_0 : i32, i32
  }
  func.func @transform_12(%arg0: i32) -> (i32, i32) {
    %c0_i32 = arith.constant 0 : i32
    %c0_i32_0 = arith.constant 0 : i32
    %c0_i32_1 = arith.constant 0 : i32
    return %c0_i32, %c0_i32_0 : i32, i32
  }
  func.func @transform_13(%arg0: i32) -> (i32, i32) {
    %c0_i32 = arith.constant 0 : i32
    %c0_i32_0 = arith.constant 0 : i32
    %c0_i32_1 = arith.constant 0 : i32
    return %c0_i32, %c0_i32_0 : i32, i32
  }
  func.func @transform_14(%arg0: i32) -> (i32, i32) {
    %c0_i32 = arith.constant 0 : i32
    %c0_i32_0 = arith.constant 0 : i32
    %c0_i32_1 = arith.constant 0 : i32
    return %c0_i32, %c0_i32_0 : i32, i32
  }
  func.func @transform_15(%arg0: i32) -> (i32, i32) {
    %c0_i32 = arith.constant 0 : i32
    %c0_i32_0 = arith.constant 0 : i32
    %c0_i32_1 = arith.constant 0 : i32
    return %c0_i32, %c0_i32_0 : i32, i32
  }
  func.func @transform_16(%arg0: i32) -> (i32, i32) {
    %c0_i32 = arith.constant 0 : i32
    %c0_i32_0 = arith.constant 0 : i32
    %c0_i32_1 = arith.constant 0 : i32
    return %c0_i32, %c0_i32_0 : i32, i32
  }
  func.func @transform_17(%arg0: i32) -> (i32, i32) {
    %c0_i32 = arith.constant 0 : i32
    %c0_i32_0 = arith.constant 0 : i32
    %c0_i32_1 = arith.constant 0 : i32
    return %c0_i32, %c0_i32_0 : i32, i32
  }
  func.func @transform_18(%arg0: i32) -> (i32, i32) {
    %c0_i32 = arith.constant 0 : i32
    %c0_i32_0 = arith.constant 0 : i32
    %c0_i32_1 = arith.constant 0 : i32
    return %c0_i32, %c0_i32_0 : i32, i32
  }
  func.func @transform_19(%arg0: i32) -> (i32, i32) {
    %c0_i32 = arith.constant 0 : i32
    %c0_i32_0 = arith.constant 0 : i32
    %c0_i32_1 = arith.constant 0 : i32
    return %c0_i32, %c0_i32_0 : i32, i32
  }
  func.func @transform_20(%arg0: i32) -> (i32, i32) {
    %c0_i32 = arith.constant 0 : i32
    %c0_i32_0 = arith.constant 0 : i32
    %c0_i32_1 = arith.constant 0 : i32
    return %c0_i32, %c0_i32_0 : i32, i32
  }
  func.func @transform_21(%arg0: i32) -> (i32, i32) {
    %c0_i32 = arith.constant 0 : i32
    %c0_i32_0 = arith.constant 0 : i32
    %c0_i32_1 = arith.constant 0 : i32
    return %c0_i32, %c0_i32_0 : i32, i32
  }
  func.func @transform_22(%arg0: i32) -> (i32, i32) {
    %c0_i32 = arith.constant 0 : i32
    %c0_i32_0 = arith.constant 0 : i32
    %c0_i32_1 = arith.constant 0 : i32
    return %c0_i32, %c0_i32_0 : i32, i32
  }
  func.func @transform_23(%arg0: i32) -> (i32, i32) {
    %c0_i32 = arith.constant 0 : i32
    %c0_i32_0 = arith.constant 0 : i32
    %c0_i32_1 = arith.constant 0 : i32
    return %c0_i32, %c0_i32_0 : i32, i32
  }
  func.func @transform_24(%arg0: i32) -> (i32, i32) {
    %c0_i32 = arith.constant 0 : i32
    %c0_i32_0 = arith.constant 0 : i32
    %c0_i32_1 = arith.constant 0 : i32
    return %c0_i32, %c0_i32_0 : i32, i32
  }
  func.func @transform_25(%arg0: i32) -> (i32, i32) {
    %c0_i32 = arith.constant 0 : i32
    %c0_i32_0 = arith.constant 0 : i32
    %c0_i32_1 = arith.constant 0 : i32
    return %c0_i32, %c0_i32_0 : i32, i32
  }
  func.func @transform_26(%arg0: i32) -> (i32, i32) {
    %c0_i32 = arith.constant 0 : i32
    %c0_i32_0 = arith.constant 0 : i32
    %c0_i32_1 = arith.constant 0 : i32
    return %c0_i32, %c0_i32_0 : i32, i32
  }
  func.func @transform_27(%arg0: i32) -> (i32, i32) {
    %c0_i32 = arith.constant 0 : i32
    %c0_i32_0 = arith.constant 0 : i32
    %c0_i32_1 = arith.constant 0 : i32
    return %c0_i32, %c0_i32_0 : i32, i32
  }
  func.func @transform_28(%arg0: i32) -> (i32, i32) {
    %c0_i32 = arith.constant 0 : i32
    %c0_i32_0 = arith.constant 0 : i32
    %c0_i32_1 = arith.constant 0 : i32
    return %c0_i32, %c0_i32_0 : i32, i32
  }
  func.func @transform_29(%arg0: i32) -> (i32, i32) {
    %c0_i32 = arith.constant 0 : i32
    %c0_i32_0 = arith.constant 0 : i32
    %c0_i32_1 = arith.constant 0 : i32
    return %c0_i32, %c0_i32_0 : i32, i32
  }
  func.func @transform_30(%arg0: i32) -> (i32, i32) {
    %c0_i32 = arith.constant 0 : i32
    %c0_i32_0 = arith.constant 0 : i32
    %c0_i32_1 = arith.constant 0 : i32
    return %c0_i32, %c0_i32_0 : i32, i32
  }
  func.func @transform_31(%arg0: i32) -> (i32, i32) {
    %c0_i32 = arith.constant 0 : i32
    %c0_i32_0 = arith.constant 0 : i32
    %c0_i32_1 = arith.constant 0 : i32
    return %c0_i32, %c0_i32_0 : i32, i32
  }
  func.func @transform_32(%arg0: i32) -> (i32, i32) {
    %c0_i32 = arith.constant 0 : i32
    %c0_i32_0 = arith.constant 0 : i32
    %c0_i32_1 = arith.constant 0 : i32
    return %c0_i32, %c0_i32_0 : i32, i32
  }
  func.func @transform_33(%arg0: i32) -> (i32, i32) {
    %c0_i32 = arith.constant 0 : i32
    %c0_i32_0 = arith.constant 0 : i32
    %c0_i32_1 = arith.constant 0 : i32
    return %c0_i32, %c0_i32_0 : i32, i32
  }
  func.func @transform_34(%arg0: i32) -> (i32, i32) {
    %c0_i32 = arith.constant 0 : i32
    %c0_i32_0 = arith.constant 0 : i32
    %c0_i32_1 = arith.constant 0 : i32
    return %c0_i32, %c0_i32_0 : i32, i32
  }
  func.func @transform_35(%arg0: i32) -> (i32, i32) {
    %c0_i32 = arith.constant 0 : i32
    %c0_i32_0 = arith.constant 0 : i32
    %c0_i32_1 = arith.constant 0 : i32
    return %c0_i32, %c0_i32_0 : i32, i32
  }
  func.func @transform_36(%arg0: i32) -> (i32, i32) {
    %c0_i32 = arith.constant 0 : i32
    %c0_i32_0 = arith.constant 0 : i32
    %c0_i32_1 = arith.constant 0 : i32
    return %c0_i32, %c0_i32_0 : i32, i32
  }
  func.func @transform_37(%arg0: i32) -> (i32, i32) {
    %c0_i32 = arith.constant 0 : i32
    %c0_i32_0 = arith.constant 0 : i32
    %c0_i32_1 = arith.constant 0 : i32
    return %c0_i32, %c0_i32_0 : i32, i32
  }
  func.func @transform_38(%arg0: i32) -> (i32, i32) {
    %c0_i32 = arith.constant 0 : i32
    %c0_i32_0 = arith.constant 0 : i32
    %c0_i32_1 = arith.constant 0 : i32
    return %c0_i32, %c0_i32_0 : i32, i32
  }
  func.func @transform_39(%arg0: i32) -> (i32, i32) {
    %c0_i32 = arith.constant 0 : i32
    %c0_i32_0 = arith.constant 0 : i32
    %c0_i32_1 = arith.constant 0 : i32
    return %c0_i32, %c0_i32_0 : i32, i32
  }
  func.func @transform_40(%arg0: i32) -> (i32, i32) {
    %c0_i32 = arith.constant 0 : i32
    %c0_i32_0 = arith.constant 0 : i32
    %c0_i32_1 = arith.constant 0 : i32
    return %c0_i32, %c0_i32_0 : i32, i32
  }
  func.func @transform_41(%arg0: i32) -> (i32, i32) {
    %c0_i32 = arith.constant 0 : i32
    %c0_i32_0 = arith.constant 0 : i32
    %c0_i32_1 = arith.constant 0 : i32
    return %c0_i32, %c0_i32_0 : i32, i32
  }
  func.func @transform_42(%arg0: i32) -> (i32, i32) {
    %c0_i32 = arith.constant 0 : i32
    %c0_i32_0 = arith.constant 0 : i32
    %c0_i32_1 = arith.constant 0 : i32
    return %c0_i32, %c0_i32_0 : i32, i32
  }
  func.func @transform_43(%arg0: i32) -> (i32, i32) {
    %c0_i32 = arith.constant 0 : i32
    %c0_i32_0 = arith.constant 0 : i32
    %c0_i32_1 = arith.constant 0 : i32
    return %c0_i32, %c0_i32_0 : i32, i32
  }
  func.func @transform_44(%arg0: i32) -> (i32, i32) {
    %c0_i32 = arith.constant 0 : i32
    %c0_i32_0 = arith.constant 0 : i32
    %c0_i32_1 = arith.constant 0 : i32
    return %c0_i32, %c0_i32_0 : i32, i32
  }
  func.func @transform_45(%arg0: i32) -> (i32, i32) {
    %c0_i32 = arith.constant 0 : i32
    %c0_i32_0 = arith.constant 0 : i32
    %c0_i32_1 = arith.constant 0 : i32
    return %c0_i32, %c0_i32_0 : i32, i32
  }
  func.func @transform_46(%arg0: i32) -> (i32, i32) {
    %c0_i32 = arith.constant 0 : i32
    %c0_i32_0 = arith.constant 0 : i32
    %c0_i32_1 = arith.constant 0 : i32
    return %c0_i32, %c0_i32_0 : i32, i32
  }
  func.func @transform_47(%arg0: i32) -> (i32, i32) {
    %c0_i32 = arith.constant 0 : i32
    %c0_i32_0 = arith.constant 0 : i32
    %c0_i32_1 = arith.constant 0 : i32
    return %c0_i32, %c0_i32_0 : i32, i32
  }
  func.func @transform_48(%arg0: i32) -> (i32, i32, i32) {
    %c0_i32 = arith.constant 0 : i32
    %c0_i32_0 = arith.constant 0 : i32
    %c0_i32_1 = arith.constant 0 : i32
    return %arg0, %c0_i32, %c0_i32_0 : i32, i32, i32
  }
}

</mosaic_0001>

<bundles_post_ra>
// kernel: _lambda_.1
= control target key start
LH: loop header
LB: loop body
LE: loop exit
PB: predicated region body
PF: predicated region fallthrough
CT: control target
= control target key end

     0   :  { %s8784_s6 = smov 1   ;;  %s8785_s10 = smov 2   ;;  %s11471_s0 = inlined_call_operand.smem [shape: u32[49], index: -1, kind: input, shape index: {}] }
   0x1   :  { %s8904_s5 = sld [smem:[%s11471_s0]]   ;;  %s8786_s14 = smov 3  }
   0x2   :  { %s8909_s9 = sld [smem:[%s11471_s0 + %s8784_s6]]   ;;  %s8787_s18 = smov 4  }
   0x3   :  { %s8914_s13 = sld [smem:[%s11471_s0 + %s8785_s10]]   ;;  %s8788_s22 = smov 5  }
   0x4   :  { %s8919_s17 = sld [smem:[%s11471_s0 + %s8786_s14]]   ;;  %s8789_s26 = smov 6  }
   0x5   :  { %s8924_s21 = sld [smem:[%s11471_s0 + %s8787_s18]]   ;;  %s8790_s30 = smov 7  }
   0x6   :  { %s8929_s25 = sld [smem:[%s11471_s0 + %s8788_s22]]   ;;  %s8791_s4 = smov 8  }
   0x7   :  { %11532 = sst [smem:[#allocation60_spill]] %s8904_s5  ;;  %s8792_s10 = smov 9  }
   0x8   :  { %11533 = sst [smem:[#allocation61_spill]] %s8909_s9  ;;  %s8793_s15 = smov 10  }
   0x9   :  { %11534 = sst [smem:[#allocation62_spill]] %s8914_s13  ;;  %s8794_s20 = smov 11  }
   0xa   :  { %11535 = sst [smem:[#allocation63_spill]] %s8919_s17  ;;  %s8796_s1 = smov 13  }
   0xb   :  { %s8934_s29 = sld [smem:[%s11471_s0 + %s8789_s26]]   ;;  %s8795_s26 = smov 12  }
   0xc   :  { %s8939_s3 = sld [smem:[%s11471_s0 + %s8790_s30]]   ;;  %s8797_s7 = smov 14  }
   0xd   :  { %s8944_s8 = sld [smem:[%s11471_s0 + %s8791_s4]]   ;;  %s8799_s22 = smov 16  }
   0xe   :  { %s8949_s14 = sld [smem:[%s11471_s0 + %s8792_s10]]   ;;  %s8800_s28 = smov 17  }
   0xf   :  { %s8954_s19 = sld [smem:[%s11471_s0 + %s8793_s15]]   ;;  %s8798_s15 = smov 15  }
  0x10   :  { %s8959_s24 = sld [smem:[%s11471_s0 + %s8794_s20]]  }
  0x11   :  { %11536 = sst [smem:[#allocation64_spill]] %s8934_s29 }
  0x12   :  { %11537 = sst [smem:[#allocation65_spill]] %s8939_s3 }
  0x13   :  { %11538 = sst [smem:[#allocation66_spill]] %s8944_s8 }
  0x14   :  { %11539 = sst [smem:[#allocation67_spill]] %s8949_s14 }
  0x15   :  { %s8964_s30 = sld [smem:[%s11471_s0 + %s8795_s26]]  }
  0x16   :  { %11540 = sst [smem:[#allocation68_spill]] %s8959_s24 }
  0x17   :  { %s8969_s6 = sld [smem:[%s11471_s0 + %s8796_s1]]  }
  0x18   :  { %s8974_s12 = sld [smem:[%s11471_s0 + %s8797_s7]]   ;;  %s8801_s7 = smov 18  }
  0x19   :  { %s8979_s20 = sld [smem:[%s11471_s0 + %s8798_s15]]   ;;  %s8802_s15 = smov 19  }
  0x1a   :  { %s8984_s27 = sld [smem:[%s11471_s0 + %s8799_s22]]   ;;  %s8803_s22 = smov 20  }
  0x1b   :  { %11541 = sst [smem:[#allocation69_spill]] %s8964_s30 }
  0x1c   :  { %s8989_s4 = sld [smem:[%s11471_s0 + %s8800_s28]]   ;;  %s8804_s28 = smov 21  }
  0x1d   :  { %11542 = sst [smem:[#allocation70_spill]] %s8969_s6 }
  0x1e   :  { %11543 = sst [smem:[#allocation71_spill]] %s8974_s12 }
  0x1f   :  { %11544 = sst [smem:[#allocation72_spill]] %s8979_s20 }
  0x20   :  { %s8994_s30 = sld [smem:[%s11471_s0 + %s8801_s7]]   ;;  %s8805_s7 = smov 22  }
  0x21   :  { %s8999_s20 = sld [smem:[%s11471_s0 + %s8802_s15]]   ;;  %s8806_s15 = smov 23  }
  0x22   :  { %11545 = sst [smem:[#allocation73_spill]] %s8989_s4 }
  0x23   :  { %s9004_s14 = sld [smem:[%s11471_s0 + %s8803_s22]]   ;;  %s8807_s22 = smov 24  }
  0x24   :  { %s9009_s29 = sld [smem:[%s11471_s0 + %s8804_s28]]   ;;  %s8808_s28 = smov 25  }
  0x25   :  { %s9019_s17 = sld [smem:[%s11471_s0 + %s8806_s15]]   ;;  %s8810_s15 = smov 27  }
  0x26   :  { %11546 = sst [smem:[#allocation74_spill]] %s8994_s30 }
  0x27   :  { %s9014_s30 = sld [smem:[%s11471_s0 + %s8805_s7]]   ;;  %s8809_s7 = smov 26  }
  0x28   :  { %s9024_s5 = sld [smem:[%s11471_s0 + %s8807_s22]]   ;;  %s8811_s22 = smov 28  }
  0x29   :  { %11547 = sst [smem:[#allocation75_spill]] %s9004_s14 }
  0x2a   :  { %11548 = sst [smem:[#allocation76_spill]] %s9009_s29 }
  0x2b   :  { %11549 = sst [smem:[#allocation77_spill]] %s9019_s17 }
  0x2c   :  { %s9029_s29 = sld [smem:[%s11471_s0 + %s8808_s28]]   ;;  %s8812_s28 = smov 29  }
  0x2d   :  { %s9034_s14 = sld [smem:[%s11471_s0 + %s8809_s7]]   ;;  %s8813_s7 = smov 30  }
  0x2e   :  { %11550 = sst [smem:[#allocation78_spill]] %s9024_s5 }
  0x2f   :  { %s9039_s17 = sld [smem:[%s11471_s0 + %s8810_s15]]   ;;  %s8814_s15 = smov 31  }
  0x30   :  { %s9044_s5 = sld [smem:[%s11471_s0 + %s8811_s22]]   ;;  %s8815_s22 = smov 32  }
  0x31   :  { %s9049_s4 = sld [smem:[%s11471_s0 + %s8812_s28]]   ;;  %s8816_s28 = smov 33  }
  0x32   :  { %s9064_s12 = sld [smem:[%s11471_s0 + %s8815_s22]]   ;;  %s8819_s22 = smov 36  }
  0x33   :  { %11551 = sst [smem:[#allocation79_spill]] %s9034_s14 }
  0x34   :  { %s9054_s14 = sld [smem:[%s11471_s0 + %s8813_s7]]   ;;  %s8817_s7 = smov 34  }
  0x35   :  { %11552 = sst [smem:[#allocation80_spill]] %s9039_s17 }
  0x36   :  { %11553 = sst [smem:[#allocation81_spill]] %s9044_s5 }
  0x37   :  { %11554 = sst [smem:[#allocation82_spill]] %s9049_s4 }
  0x38   :  { %s9059_s17 = sld [smem:[%s11471_s0 + %s8814_s15]]   ;;  %s8818_s15 = smov 35  }
  0x39   :  { %11557 = sst [smem:[#allocation85_spill]] %s9064_s12 }
  0x3a   :  { %11555 = sst [smem:[#allocation83_spill]] %s9054_s14 }
  0x3b   :  { %s9069_s4 = sld [smem:[%s11471_s0 + %s8816_s28]]   ;;  %s8820_s28 = smov 37  }
  0x3c   :  { %s9074_s14 = sld [smem:[%s11471_s0 + %s8817_s7]]   ;;  %s8821_s7 = smov 38  }
  0x3d   :  { %s9079_s24 = sld [smem:[%s11471_s0 + %s8818_s15]]   ;;  %s8822_s15 = smov 39  }
  0x3e   :  { %11556 = sst [smem:[#allocation84_spill]] %s9059_s17 }
  0x3f   :  { %s9084_s12 = sld [smem:[%s11471_s0 + %s8819_s22]]   ;;  %s8823_s22 = smov 40  }
  0x40   :  { %s9094_s8 = sld [smem:[%s11471_s0 + %s8821_s7]]   ;;  %s8825_s7 = smov 42  }
  0x41   :  { %11558 = sst [smem:[#allocation86_spill]] %s9069_s4 }
  0x42   :  { %11559 = sst [smem:[#allocation87_spill]] %s9074_s14 }
  0x43   :  { %11560 = sst [smem:[#allocation88_spill]] %s9079_s24 }
  0x44   :  { %s9089_s4 = sld [smem:[%s11471_s0 + %s8820_s28]]   ;;  %s8824_s28 = smov 41  }
  0x45   :  { %11561 = sst [smem:[#allocation89_spill]] %s9084_s12 }
  0x46   :  { %11563 = sst [smem:[#allocation91_spill]] %s9094_s8 }
  0x47   :  { %s9099_s24 = sld [smem:[%s11471_s0 + %s8822_s15]]   ;;  %s8826_s15 = smov 43  }
  0x48   :  { %s9104_s12 = sld [smem:[%s11471_s0 + %s8823_s22]]   ;;  %s8827_s22 = smov 44  }
  0x49   :  { %s9114_s8 = sld [smem:[%s11471_s0 + %s8825_s7]]   ;;  %s8829_s7 = smov 46  }
  0x4a   :  { %11562 = sst [smem:[#allocation90_spill]] %s9089_s4 }
  0x4b   :  { %s9109_s4 = sld [smem:[%s11471_s0 + %s8824_s28]]   ;;  %s8828_s28 = smov 45  }
  0x4d   :  { %11564 = sst [smem:[#allocation92_spill]] %s9099_s24 }
  0x4e   :  { %11565 = sst [smem:[#allocation93_spill]] %s9104_s12 }
  0x4f   :  { %11567 = sst [smem:[#allocation95_spill]] %s9114_s8 }
  0x50   :  { %s9119_s24 = sld [smem:[%s11471_s0 + %s8826_s15]]   ;;  %s8830_s15 = smov 47  }
  0x51   :  { %11566 = sst [smem:[#allocation94_spill]] %s9109_s4 }
  0x52   :  { %s9124_s12 = sld [smem:[%s11471_s0 + %s8827_s22]]   ;;  %s8831_s22 = smov 48  }
  0x53   :  { %s9129_s4 = sld [smem:[%s11471_s0 + %s8828_s28]]  }
  0x54   :  { %s9134_s8 = sld [smem:[%s11471_s0 + %s8829_s7]]  }
  0x56   :  { %11568 = sst [smem:[#allocation96_spill]] %s9119_s24 }
  0x57   :  { %s9139_s24 = sld [smem:[%s11471_s0 + %s8830_s15]]  }
  0x58   :  { %11569 = sst [smem:[#allocation97_spill]] %s9124_s12 }
  0x59   :  { %11570 = sst [smem:[#allocation98_spill]] %s9129_s4 }
  0x5a   :  { %11571 = sst [smem:[#allocation99_spill]] %s9134_s8 }
  0x5b   :  { %s9144_s12 = sld [smem:[%s11471_s0 + %s8831_s22]]  }
  0x61   :  { %11572 = sst [smem:[#allocation100_spill]] %s9144_s12 }
  0x62   :  { %102 = vsyncpa [#allocation4], 0 }
  0x63   :  { %104 = vsyncpa [#allocation4 + $0x1], 0 }
  0x64   :  { %105 = vsyncpa [#allocation7], 0 }
  0x65   :  { %106 = vsyncpa [#allocation10], 0 }
  0x66   :  { %107 = vsyncpa [#allocation13], 0 }
  0x67   :  { %108 = vsyncpa [#allocation16], 0 }
  0x68   :  { %109 = vsyncpa [#allocation19], 0 }
  0x69   :  { %110 = vsyncpa [#allocation22], 0 }
  0x6a   :  { %111 = vsyncpa [#allocation25], 0 }
  0x6b   :  { %112 = vsyncpa [#allocation28], 0 }
  0x6c   :  { %113 = vsyncpa [#allocation31], 0 }
  0x6d   :  { %114 = vsyncpa [#allocation34], 0 }
  0x6e   :  { %115 = vsyncpa [#allocation37], 0 }
  0x6f   :  { %116 = vsyncpa [#allocation40], 0 }
  0x70   :  { %117 = vsyncpa [#allocation43], 0 }
  0x71   :  { %118 = vsyncpa [#allocation5], 0 }
  0x72   :  { %120 = vsyncpa [#allocation5 + $0x1], 0  ;;  %s9146_s28 = smov 0   ;;  %s9148_s0 = smov 0  }
  0x73   :  { %s9150_s1 = smov 0   ;;  %s9152_s2 = smov 0  }
  0x74 LB: > { %s11573_s4 = sld [smem:[#allocation98_spill]]  ;;  %s8832_s7 = smov [#allocation6]   ;;  %s8770_s28 = sphi %s9146_s28, %s11700_s28   ;;  %s8782_s2 = sphi %s9152_s2, %s11703_s2   ;;  %s8778_s1 = sphi %s9150_s1, %s11702_s1   ;;  %s8774_s0 = sphi %s9148_s0, %s11701_s0  }
  0x75   : > { %s1183_s10 = sshll.u32 %s8832_s7, 4  ;;  %s9167_s11 = sadd.s32 4294967295, %s8782_s2   ;;  %s1184_s10 = int_to_ptr.vmem [resolvable:$true] %s1183_s10 }
  0x76   : > { %p6875_p0 = scmp.ge.s32.totalorder %s8782_s2, 1  ;;  %p11486_p1 = scmp.eq.s32.totalorder %s9167_s11, 0 }
  0x77   : > { %p1170_p2 = scmp.lt.s32.totalorder %s8782_s2, 3  ;;  %s8833_s16 = smov [#allocation9]  }
  0x78   : > { %s1208_s18 = sshll.u32 %s8833_s16, 4  ;;  %s8834_s22 = smov [#allocation12]   ;;  %s1209_s18 = int_to_ptr.vmem [resolvable:$true] %s1208_s18 }
  0x79   : > { %p9172_p3 = pnand %p6875_p0, %p1170_p2  ;;  %s1233_s23 = sshll.u32 %s8834_s22, 4  ;;  %s9185_s23 = int_to_ptr.vmem [resolvable:$true] %s1233_s23 }
  0x7a   : > { %s8835_s7 = smov [#allocation15]   ;;  %s7999_s16 = scalar_lea.vmem %s1184_s10, 128 }
  0x7b   : > { %s11574_s15 = scalar_select %p9172_p3, 1, 0 }
  0x7c   : > { %p7552_p5 = pneg %p9172_p3  ;;  %s9187_s12 = sshll.u32 %s8835_s7, 4  ;;  %s1259_s12 = int_to_ptr.vmem [resolvable:$true] %s9187_s12 }
  0x7d   : > { %p8000_p8 = scmp.ne.s32.totalorder %s1184_s10, %s7999_s16  ;;  %p8007_p11 = scmp.lt.s32.totalorder %s1184_s10, %s1184_s10 }
  0x7e   : > { %p9181_p6 = pnand %p7552_p5, %p11486_p1  ;;  %p8008_p12 = scmp.lt.s32.totalorder %s7999_s16, %s7999_s16 }
  0x80   : > { %p9191_p7 = pneg %p9181_p6  ;;  %p8009_p13 = por %p8008_p12, %p8007_p11 }
  0x82   : > { %p8002_p9 = pnand %p8000_p8, %p9191_p7 }
  0x84   : > { %p8003_p10 = pneg %p8002_p9 }
  0x86   : > { %p8010_p0 = pnand %p8009_p13, %p8003_p10 }
  0x88   : > { %8013 = shalt.err (!%p8010_p0)
}
  0x89   : > { %s11577_s9 = sld [smem:[#allocation61_spill]]  ;;  %s8025_s22 = scalar_lea.vmem %s1209_s18, 64 }
  0x8a   : > { %p8026_p2 = scmp.ne.s32.totalorder %s1209_s18, %s8025_s22  ;;  %p8033_p1 = scmp.lt.s32.totalorder %s1209_s18, %s1209_s18 }
  0x8b   : > { %p8034_p3 = scmp.lt.s32.totalorder %s8025_s22, %s8025_s22 }
  0x8c   : > { %p8028_p5 = pnand %p8026_p2, %p9191_p7 }
  0x8d   : > { %p8035_p8 = por %p8034_p3, %p8033_p1 }
  0x8e   : > { %p8029_p4 = pneg %p8028_p5 }
  0x8f   : > { %7555 = dma.hbm_to_vmem [thread:$0]  (!%p9181_p6), %s11577_s9, 128, %s1184_s10, [#allocation7]  }
  0x90   : > { %p8036_p9 = pnand %p8035_p8, %p8029_p4 }
  0x92   : > { %8039 = shalt.err (!%p8036_p9)
}
  0x93   : > { %7561 = dma.hbm_to_vmem [thread:$0]  (!%p9181_p6), %s8924_s21, 64, %s1209_s18, [#allocation10]  }
  0x94   : > { %s8051_s7 = scalar_lea.vmem %s9185_s23, 64  ;;  %p8059_p13 = scmp.lt.s32.totalorder %s9185_s23, %s9185_s23 }
  0x95   : > { %p8052_p10 = scmp.ne.s32.totalorder %s9185_s23, %s8051_s7  ;;  %p8060_p0 = scmp.lt.s32.totalorder %s8051_s7, %s8051_s7 }
  0x97   : > { %p8054_p11 = pnand %p8052_p10, %p9191_p7  ;;  %p8061_p2 = por %p8060_p0, %p8059_p13 }
  0x99   : > { %p8055_p12 = pneg %p8054_p11 }
  0x9b   : > { %p8062_p1 = pnand %p8061_p2, %p8055_p12 }
  0x9d   : > { %8065 = shalt.err (!%p8062_p1)
}
  0x9e   : > { %s11578_s3 = sld [smem:[#allocation65_spill]]  ;;  %s8836_s10 = smov [#allocation18]  }
  0x9f   : > { %s1283_s18 = sshll.u32 %s8836_s10, 4  ;;  %s8077_s16 = scalar_lea.vmem %s1259_s12, 64  ;;  %s1284_s18 = int_to_ptr.vmem [resolvable:$true] %s1283_s18 }
  0xa0   : > { %p8078_p3 = scmp.ne.s32.totalorder %s1259_s12, %s8077_s16  ;;  %p8085_p8 = scmp.lt.s32.totalorder %s1259_s12, %s1259_s12 }
  0xa1   : > { %p8086_p9 = scmp.lt.s32.totalorder %s8077_s16, %s8077_s16 }
  0xa2   : > { %p8080_p4 = pnand %p8078_p3, %p9191_p7 }
  0xa3   : > { %p8087_p10 = por %p8086_p9, %p8085_p8 }
  0xa4   : > { %7567 = dma.hbm_to_vmem [thread:$0]  (!%p9181_p6), %s11578_s3, 64, %s9185_s23, [#allocation13]  }
  0xa5   : > { %p8081_p5 = pneg %p8080_p4 }
  0xa7   : > { %p8088_p11 = pnand %p8087_p10, %p8081_p5 }
  0xa9   : > { %8091 = shalt.err (!%p8088_p11)
}
  0xaa   : > { %7573 = dma.hbm_to_vmem [thread:$0]  (!%p9181_p6), %s8954_s19, 64, %s1259_s12, [#allocation16]  }
  0xab   : > { %s8103_s23 = scalar_lea.vmem %s1284_s18, 64  ;;  %p8111_p2 = scmp.lt.s32.totalorder %s1284_s18, %s1284_s18 }
  0xac   : > { %p8104_p12 = scmp.ne.s32.totalorder %s1284_s18, %s8103_s23  ;;  %p8112_p1 = scmp.lt.s32.totalorder %s8103_s23, %s8103_s23 }
  0xae   : > { %p8106_p13 = pnand %p8104_p12, %p9191_p7  ;;  %p8113_p3 = por %p8112_p1, %p8111_p2 }
  0xb0   : > { %p8107_p0 = pneg %p8106_p13 }
  0xb2   : > { %p8114_p4 = pnand %p8113_p3, %p8107_p0 }
  0xb4   : > { %8117 = shalt.err (!%p8114_p4)
}
  0xb5   : > { %s11579_s6 = sld [smem:[#allocation70_spill]]  ;;  %s8837_s22 = smov [#allocation21]  }
  0xb6   : > { %s1308_s7 = sshll.u32 %s8837_s22, 4  ;;  %s8838_s12 = smov [#allocation24]   ;;  %s1309_s7 = int_to_ptr.vmem [resolvable:$true] %s1308_s7 }
  0xb7   : > { %s1333_s10 = sshll.u32 %s8838_s12, 4  ;;  %s8129_s16 = scalar_lea.vmem %s1309_s7, 64  ;;  %s1334_s10 = int_to_ptr.vmem [resolvable:$true] %s1333_s10 }
  0xb8   : > { %p8130_p5 = scmp.ne.s32.totalorder %s1309_s7, %s8129_s16  ;;  %p8137_p10 = scmp.lt.s32.totalorder %s1309_s7, %s1309_s7 }
  0xb9   : > { %p8138_p11 = scmp.lt.s32.totalorder %s8129_s16, %s8129_s16 }
  0xba   : > { %p8132_p8 = pnand %p8130_p5, %p9191_p7 }
  0xbb   : > { %7579 = dma.hbm_to_vmem [thread:$0]  (!%p9181_p6), %s11579_s6, 64, %s1284_s18, [#allocation19]  }
  0xbc   : > { %p8133_p9 = pneg %p8132_p8  ;;  %p8139_p12 = por %p8138_p11, %p8137_p10 }
  0xbe   : > { %p8140_p13 = pnand %p8139_p12, %p8133_p9 }
  0xc0   : > { %8143 = shalt.err (!%p8140_p13)
}
  0xc1   : > { %7585 = dma.hbm_to_vmem [thread:$0]  (!%p9181_p6), %s8984_s27, 64, %s1309_s7, [#allocation22]  }
  0xc2   : > { %s8155_s18 = scalar_lea.vmem %s1334_s10, 64  ;;  %p8163_p3 = scmp.lt.s32.totalorder %s1334_s10, %s1334_s10 }
  0xc3   : > { %p8156_p0 = scmp.ne.s32.totalorder %s1334_s10, %s8155_s18  ;;  %p8164_p4 = scmp.lt.s32.totalorder %s8155_s18, %s8155_s18 }
  0xc5   : > { %p8158_p2 = pnand %p8156_p0, %p9191_p7  ;;  %p8165_p5 = por %p8164_p4, %p8163_p3 }
  0xc7   : > { %p8159_p1 = pneg %p8158_p2 }
  0xc9   : > { %p8166_p8 = pnand %p8165_p5, %p8159_p1 }
  0xcb   : > { %8169 = shalt.err (!%p8166_p8)
}
  0xcc   : > { %7591 = dma.hbm_to_vmem [thread:$0]  (!%p9181_p6), %s8999_s20, 64, %s1334_s10, [#allocation25]  }
  0xcd   : > { %s8839_s23 = smov [#allocation27]  }
  0xce   : > { %s1357_s22 = sshll.u32 %s8839_s23, 4  ;;  %s1358_s22 = int_to_ptr.vmem [resolvable:$true] %s1357_s22 }
  0xcf   : > { %s8181_s7 = scalar_lea.vmem %s1358_s22, 128  ;;  %p8189_p12 = scmp.lt.s32.totalorder %s1358_s22, %s1358_s22 }
  0xd0   : > { %p8182_p9 = scmp.ne.s32.totalorder %s1358_s22, %s8181_s7  ;;  %p8190_p13 = scmp.lt.s32.totalorder %s8181_s7, %s8181_s7 }
  0xd2   : > { %p8184_p10 = pnand %p8182_p9, %p9191_p7  ;;  %p8191_p0 = por %p8190_p13, %p8189_p12 }
  0xd4   : > { %p8185_p11 = pneg %p8184_p10 }
  0xd6   : > { %p8192_p2 = pnand %p8191_p0, %p8185_p11 }
  0xd8   : > { %8195 = shalt.err (!%p8192_p2)
}
  0xd9   : > { %s11488_s12 = smov 64   ;;  %s11490_s16 = smov 4  }
  0xda   : > { %7597 = dma.hbm_to_vmem [thread:$0]  (!%p9181_p6), %s9014_s30, 128, %s1358_s22, [#allocation28], %s11488_s12, %s11488_s12, %s11490_s16  }
  0xdb   : > { %s8842_s10 = smov [#allocation30]   ;;  %s8843_s23 = smov [#allocation33]  }
  0xdc   : > { %s1386_s18 = sshll.u32 %s8842_s10, 4  ;;  %s1415_s3 = sshll.u32 %s8843_s23, 4  ;;  %s1387_s18 = int_to_ptr.vmem [resolvable:$true] %s1386_s18  ;;  %s1416_s3 = int_to_ptr.vmem [resolvable:$true] %s1415_s3 }
  0xdd   : > { %s8207_s7 = scalar_lea.vmem %s1387_s18, 128  ;;  %p8215_p5 = scmp.lt.s32.totalorder %s1387_s18, %s1387_s18 }
  0xde   : > { %p8208_p1 = scmp.ne.s32.totalorder %s1387_s18, %s8207_s7  ;;  %p8216_p8 = scmp.lt.s32.totalorder %s8207_s7, %s8207_s7 }
  0xe0   : > { %p8210_p3 = pnand %p8208_p1, %p9191_p7  ;;  %p8217_p9 = por %p8216_p8, %p8215_p5 }
  0xe2   : > { %p8211_p4 = pneg %p8210_p3 }
  0xe4   : > { %p8218_p10 = pnand %p8217_p9, %p8211_p4 }
  0xe6   : > { %8221 = shalt.err (!%p8218_p10)
}
  0xe7   : > { %7603 = dma.hbm_to_vmem [thread:$0]  (!%p9181_p6), %s9029_s29, 128, %s1387_s18, [#allocation31], %s11488_s12, %s11488_s12, %s11490_s16  }
  0xe8   : > { %s8233_s22 = scalar_lea.vmem %s1416_s3, 128  ;;  %p8241_p0 = scmp.lt.s32.totalorder %s1416_s3, %s1416_s3 }
  0xe9   : > { %p8234_p11 = scmp.ne.s32.totalorder %s1416_s3, %s8233_s22  ;;  %p8242_p2 = scmp.lt.s32.totalorder %s8233_s22, %s8233_s22 }
  0xeb   : > { %p8236_p12 = pnand %p8234_p11, %p9191_p7  ;;  %p8243_p1 = por %p8242_p2, %p8241_p0 }
  0xed   : > { %p8237_p13 = pneg %p8236_p12 }
  0xef   : > { %p8244_p3 = pnand %p8243_p1, %p8237_p13 }
  0xf1   : > { %8247 = shalt.err (!%p8244_p3)
}
  0xf2   : > { %s11580_s5 = sld [smem:[#allocation81_spill]]  ;;  %s8844_s10 = smov [#allocation36]  }
  0xf3   : > { %s1444_s18 = sshll.u32 %s8844_s10, 4  ;;  %s8845_s23 = smov [#allocation39]   ;;  %s1445_s18 = int_to_ptr.vmem [resolvable:$true] %s1444_s18 }
  0xf4   : > { %s1473_s7 = sshll.u32 %s8845_s23, 4  ;;  %s8259_s6 = scalar_lea.vmem %s1445_s18, 128  ;;  %s1474_s7 = int_to_ptr.vmem [resolvable:$true] %s1473_s7 }
  0xf5   : > { %p8260_p4 = scmp.ne.s32.totalorder %s1445_s18, %s8259_s6  ;;  %p8267_p9 = scmp.lt.s32.totalorder %s1445_s18, %s1445_s18 }
  0xf6   : > { %p8268_p10 = scmp.lt.s32.totalorder %s8259_s6, %s8259_s6 }
  0xf7   : > { %p8262_p5 = pnand %p8260_p4, %p9191_p7 }
  0xf8   : > { %7609 = dma.hbm_to_vmem [thread:$0]  (!%p9181_p6), %s11580_s5, 128, %s1416_s3, [#allocation34], %s11488_s12, %s11488_s12, %s11490_s16  }
  0xf9   : > { %p8263_p8 = pneg %p8262_p5  ;;  %p8269_p11 = por %p8268_p10, %p8267_p9 }
  0xfb   : > { %p8270_p12 = pnand %p8269_p11, %p8263_p8 }
  0xfd   : > { %8273 = shalt.err (!%p8270_p12)
}
  0xfe   : > { %s11581_s17 = sld [smem:[#allocation84_spill]]  ;;  %s8285_s3 = scalar_lea.vmem %s1474_s7, 128 }
  0xff   : > { %p8286_p13 = scmp.ne.s32.totalorder %s1474_s7, %s8285_s3  ;;  %p8293_p1 = scmp.lt.s32.totalorder %s1474_s7, %s1474_s7 }
 0x100   : > { %p8294_p3 = scmp.lt.s32.totalorder %s8285_s3, %s8285_s3 }
 0x101   : > { %p8288_p0 = pnand %p8286_p13, %p9191_p7 }
 0x102   : > { %p8295_p4 = por %p8294_p3, %p8293_p1 }
 0x103   : > { %p8289_p2 = pneg %p8288_p0 }
 0x104   : > { %7615 = dma.hbm_to_vmem [thread:$0]  (!%p9181_p6), %s11581_s17, 128, %s1445_s18, [#allocation37], %s11488_s12, %s11488_s12, %s11490_s16  }
 0x105   : > { %p8296_p5 = pnand %p8295_p4, %p8289_p2 }
 0x107   : > { %8299 = shalt.err (!%p8296_p5)
}
 0x108   : > { %s11582_s14 = sld [smem:[#allocation87_spill]]  ;;  %s8846_s6 = smov [#allocation8]  }
 0x109   : > { %s1194_s22 = sshll.u32 %s8846_s6, 4  ;;  %s8847_s10 = smov [#allocation11]   ;;  %s1195_s22 = int_to_ptr.vmem [resolvable:$true] %s1194_s22 }
 0x10a   : > { %s1219_s18 = sshll.u32 %s8847_s10, 4  ;;  %s8311_s23 = scalar_lea.vmem %s1195_s22, 128  ;;  %s1220_s18 = int_to_ptr.vmem [resolvable:$true] %s1219_s18 }
 0x10b   : > { %p8312_p8 = scmp.ne.s32.totalorder %s1195_s22, %s8311_s23  ;;  %p8319_p11 = scmp.lt.s32.totalorder %s1195_s22, %s1195_s22 }
 0x10c   : > { %p8320_p12 = scmp.lt.s32.totalorder %s8311_s23, %s8311_s23 }
 0x10d   : > { %p8314_p9 = pnand %p8312_p8, %p9191_p7 }
 0x10e   : > { %7621 = dma.hbm_to_vmem [thread:$0]  (!%p9181_p6), %s11582_s14, 128, %s1474_s7, [#allocation40], %s11488_s12, %s11488_s12, %s11490_s16  }
 0x10f   : > { %p8315_p10 = pneg %p8314_p9  ;;  %p8321_p13 = por %p8320_p12, %p8319_p11 }
 0x111   : > { %p8322_p0 = pnand %p8321_p13, %p8315_p10 }
 0x113   : > { %8325 = shalt.err (!%p8322_p0)
}
 0x114   : > { %s11583_s13 = sld [smem:[#allocation62_spill]]  ;;  %s8337_s7 = scalar_lea.vmem %s1220_s18, 128 }
 0x115   : > { %p8338_p2 = scmp.ne.s32.totalorder %s1220_s18, %s8337_s7  ;;  %p8345_p4 = scmp.lt.s32.totalorder %s1220_s18, %s1220_s18 }
 0x116   : > { %p8346_p5 = scmp.lt.s32.totalorder %s8337_s7, %s8337_s7 }
 0x117   : > { %p8340_p1 = pnand %p8338_p2, %p9191_p7 }
 0x118   : > { %p8347_p8 = por %p8346_p5, %p8345_p4 }
 0x119   : > { %p8341_p3 = pneg %p8340_p1 }
 0x11a   : > { %7558 = dma.hbm_to_vmem [thread:$0]  (!%p9181_p6), %s11583_s13, 128, %s1195_s22, [#allocation7]  }
 0x11b   : > { %p8348_p9 = pnand %p8347_p8, %p8341_p3 }
 0x11d   : > { %8351 = shalt.err (!%p8348_p9)
}
 0x11e   : > { %7564 = dma.hbm_to_vmem [thread:$0]  (!%p9181_p6), %s8929_s25, 128, %s1220_s18, [#allocation10]  }
 0x11f   : > { %s8848_s3 = smov [#allocation14]   ;;  %s8849_s10 = smov [#allocation17]  }
 0x120   : > { %s1244_s6 = sshll.u32 %s8848_s3, 4  ;;  %s1269_s23 = sshll.u32 %s8849_s10, 4  ;;  %s1245_s6 = int_to_ptr.vmem [resolvable:$true] %s1244_s6  ;;  %s1270_s23 = int_to_ptr.vmem [resolvable:$true] %s1269_s23 }
 0x121   : > { %s8363_s22 = scalar_lea.vmem %s1245_s6, 128  ;;  %p8371_p13 = scmp.lt.s32.totalorder %s1245_s6, %s1245_s6 }
 0x122   : > { %p8364_p10 = scmp.ne.s32.totalorder %s1245_s6, %s8363_s22  ;;  %p8372_p0 = scmp.lt.s32.totalorder %s8363_s22, %s8363_s22 }
 0x124   : > { %p8366_p11 = pnand %p8364_p10, %p9191_p7  ;;  %p8373_p2 = por %p8372_p0, %p8371_p13 }
 0x126   : > { %p8367_p12 = pneg %p8366_p11 }
 0x128   : > { %p8374_p1 = pnand %p8373_p2, %p8367_p12 }
 0x12a   : > { %8377 = shalt.err (!%p8374_p1)
}
 0x12b   : > { %s11584_s7 = sld [smem:[#allocation66_spill]]  ;;  %s8389_s18 = scalar_lea.vmem %s1270_s23, 128 }
 0x12c   : > { %p8390_p3 = scmp.ne.s32.totalorder %s1270_s23, %s8389_s18  ;;  %p8397_p8 = scmp.lt.s32.totalorder %s1270_s23, %s1270_s23 }
 0x12d   : > { %p8398_p9 = scmp.lt.s32.totalorder %s8389_s18, %s8389_s18 }
 0x12e   : > { %p8392_p4 = pnand %p8390_p3, %p9191_p7 }
 0x12f   : > { %p8399_p10 = por %p8398_p9, %p8397_p8 }
 0x130   : > { %p8393_p5 = pneg %p8392_p4 }
 0x131   : > { %7570 = dma.hbm_to_vmem [thread:$0]  (!%p9181_p6), %s11584_s7, 128, %s1245_s6, [#allocation13]  }
 0x132   : > { %p8400_p11 = pnand %p8399_p10, %p8393_p5 }
 0x134   : > { %8403 = shalt.err (!%p8400_p11)
}
 0x135   : > { %s11585_s3 = sld [smem:[#allocation68_spill]]  ;;  %s8850_s10 = smov [#allocation20]  }
 0x136   : > { %s1294_s22 = sshll.u32 %s8850_s10, 4  ;;  %s8851_s12 = smov [#allocation23]   ;;  %s1295_s22 = int_to_ptr.vmem [resolvable:$true] %s1294_s22 }
 0x137   : > { %s1319_s16 = sshll.u32 %s8851_s12, 4  ;;  %s8415_s6 = scalar_lea.vmem %s1295_s22, 128  ;;  %s1320_s16 = int_to_ptr.vmem [resolvable:$true] %s1319_s16 }
 0x138   : > { %p8416_p12 = scmp.ne.s32.totalorder %s1295_s22, %s8415_s6  ;;  %p8423_p2 = scmp.lt.s32.totalorder %s1295_s22, %s1295_s22 }
 0x139   : > { %p8424_p1 = scmp.lt.s32.totalorder %s8415_s6, %s8415_s6 }
 0x13a   : > { %p8418_p13 = pnand %p8416_p12, %p9191_p7 }
 0x13b   : > { %7576 = dma.hbm_to_vmem [thread:$0]  (!%p9181_p6), %s11585_s3, 128, %s1270_s23, [#allocation16]  }
 0x13c   : > { %p8419_p0 = pneg %p8418_p13  ;;  %p8425_p3 = por %p8424_p1, %p8423_p2 }
 0x13e   : > { %p8426_p4 = pnand %p8425_p3, %p8419_p0 }
 0x140   : > { %8429 = shalt.err (!%p8426_p4)
}
 0x141   : > { %s11586_s7 = sld [smem:[#allocation71_spill]]  ;;  %s8441_s23 = scalar_lea.vmem %s1320_s16, 128 }
 0x142   : > { %p8442_p5 = scmp.ne.s32.totalorder %s1320_s16, %s8441_s23  ;;  %p8449_p10 = scmp.lt.s32.totalorder %s1320_s16, %s1320_s16 }
 0x143   : > { %p8450_p11 = scmp.lt.s32.totalorder %s8441_s23, %s8441_s23 }
 0x144   : > { %p8444_p8 = pnand %p8442_p5, %p9191_p7 }
 0x145   : > { %p8451_p12 = por %p8450_p11, %p8449_p10 }
 0x146   : > { %p8445_p9 = pneg %p8444_p8 }
 0x147   : > { %7582 = dma.hbm_to_vmem [thread:$0]  (!%p9181_p6), %s11586_s7, 128, %s1295_s22, [#allocation19]  }
 0x148   : > { %p8452_p13 = pnand %p8451_p12, %p8445_p9 }
 0x14a   : > { %8455 = shalt.err (!%p8452_p13)
}
 0x14b   : > { %s11587_s12 = sld [smem:[#allocation73_spill]]  ;;  %s8852_s18 = smov [#allocation26]  }
 0x14c   : > { %s1344_s3 = sshll.u32 %s8852_s18, 4  ;;  %s8853_s10 = smov [#allocation29]   ;;  %s1345_s3 = int_to_ptr.vmem [resolvable:$true] %s1344_s3 }
 0x14d   : > { %s1370_s6 = sshll.u32 %s8853_s10, 4  ;;  %s8467_s22 = scalar_lea.vmem %s1345_s3, 128  ;;  %s1371_s6 = int_to_ptr.vmem [resolvable:$true] %s1370_s6 }
 0x14e   : > { %p8468_p0 = scmp.ne.s32.totalorder %s1345_s3, %s8467_s22  ;;  %p8475_p3 = scmp.lt.s32.totalorder %s1345_s3, %s1345_s3 }
 0x14f   : > { %p8476_p4 = scmp.lt.s32.totalorder %s8467_s22, %s8467_s22 }
 0x150   : > { %p8470_p2 = pnand %p8468_p0, %p9191_p7 }
 0x151   : > { %7588 = dma.hbm_to_vmem [thread:$0]  (!%p9181_p6), %s11587_s12, 128, %s1320_s16, [#allocation22]  }
 0x152   : > { %p8471_p1 = pneg %p8470_p2  ;;  %p8477_p5 = por %p8476_p4, %p8475_p3 }
 0x154   : > { %p8478_p8 = pnand %p8477_p5, %p8471_p1 }
 0x156   : > { %8481 = shalt.err (!%p8478_p8)
}
 0x157   : > { %s11588_s7 = sld [smem:[#allocation75_spill]]  ;;  %s8493_s16 = scalar_lea.vmem %s1371_s6, 256 }
 0x158   : > { %p8494_p9 = scmp.ne.s32.totalorder %s1371_s6, %s8493_s16  ;;  %p8501_p12 = scmp.lt.s32.totalorder %s1371_s6, %s1371_s6 }
 0x159   : > { %p8502_p13 = scmp.lt.s32.totalorder %s8493_s16, %s8493_s16 }
 0x15a   : > { %p8496_p10 = pnand %p8494_p9, %p9191_p7 }
 0x15b   : > { %p8503_p0 = por %p8502_p13, %p8501_p12 }
 0x15c   : > { %p8497_p11 = pneg %p8496_p10 }
 0x15d   : > { %7594 = dma.hbm_to_vmem [thread:$0]  (!%p9181_p6), %s11588_s7, 128, %s1345_s3, [#allocation25]  }
 0x15e   : > { %p8504_p2 = pnand %p8503_p0, %p8497_p11 }
 0x160   : > { %8507 = shalt.err (!%p8504_p2)
}
 0x161   : > { %s8854_s23 = smov 128   ;;  %s11589_s12 = sld [smem:[#allocation77_spill]] }
 0x162   : > { %s8855_s18 = smov 8   ;;  %s8856_s3 = smov [#allocation32]  }
 0x163   : > { %s1399_s10 = sshll.u32 %s8856_s3, 4  ;;  %s8857_s22 = smov [#allocation35]   ;;  %s1400_s10 = int_to_ptr.vmem [resolvable:$true] %s1399_s10 }
 0x164   : > { %s1428_s7 = sshll.u32 %s8857_s22, 4  ;;  %s8519_s16 = scalar_lea.vmem %s1400_s10, 256  ;;  %s1429_s7 = int_to_ptr.vmem [resolvable:$true] %s1428_s7 }
 0x165   : > { %p8520_p1 = scmp.ne.s32.totalorder %s1400_s10, %s8519_s16  ;;  %p8527_p5 = scmp.lt.s32.totalorder %s1400_s10, %s1400_s10 }
 0x166   : > { %p8528_p8 = scmp.lt.s32.totalorder %s8519_s16, %s8519_s16 }
 0x167   : > { %7600 = dma.hbm_to_vmem [thread:$0]  (!%p9181_p6), %s11589_s12, 256, %s1371_s6, [#allocation28], %s8854_s23, %s8854_s23, %s8855_s18  }
 0x168   : > { %p8522_p3 = pnand %p8520_p1, %p9191_p7  ;;  %p8529_p9 = por %p8528_p8, %p8527_p5 }
 0x16a   : > { %p8523_p4 = pneg %p8522_p3 }
 0x16c   : > { %p8530_p10 = pnand %p8529_p9, %p8523_p4 }
 0x16e   : > { %8533 = shalt.err (!%p8530_p10)
}
 0x16f   : > { %s11590_s6 = sld [smem:[#allocation79_spill]]  ;;  %s8545_s12 = scalar_lea.vmem %s1429_s7, 256 }
 0x170   : > { %p8546_p11 = scmp.ne.s32.totalorder %s1429_s7, %s8545_s12  ;;  %p8553_p0 = scmp.lt.s32.totalorder %s1429_s7, %s1429_s7 }
 0x171   : > { %p8554_p2 = scmp.lt.s32.totalorder %s8545_s12, %s8545_s12 }
 0x172   : > { %p8548_p12 = pnand %p8546_p11, %p9191_p7 }
 0x173   : > { %p8555_p1 = por %p8554_p2, %p8553_p0 }
 0x174   : > { %p8549_p13 = pneg %p8548_p12 }
 0x175   : > { %7606 = dma.hbm_to_vmem [thread:$0]  (!%p9181_p6), %s11590_s6, 256, %s1400_s10, [#allocation31], %s8854_s23, %s8854_s23, %s8855_s18  }
 0x176   : > { %p8556_p3 = pnand %p8555_p1, %p8549_p13 }
 0x178   : > { %8559 = shalt.err (!%p8556_p3)
}
 0x179   : > { %s11591_s3 = sld [smem:[#allocation82_spill]]  ;;  %s8858_s22 = smov [#allocation38]  }
 0x17a   : > { %s1457_s10 = sshll.u32 %s8858_s22, 4  ;;  %s8859_s16 = smov [#allocation41]   ;;  %s1458_s10 = int_to_ptr.vmem [resolvable:$true] %s1457_s10 }
 0x17b   : > { %s1492_s6 = sshll.u32 %s8859_s16, 4  ;;  %s8571_s5 = scalar_lea.vmem %s1458_s10, 256  ;;  %s1493_s6 = int_to_ptr.vmem [resolvable:$true] %s1492_s6 }
 0x17c   : > { %p8572_p4 = scmp.ne.s32.totalorder %s1458_s10, %s8571_s5  ;;  %p8579_p9 = scmp.lt.s32.totalorder %s1458_s10, %s1458_s10 }
 0x17d   : > { %p8580_p10 = scmp.lt.s32.totalorder %s8571_s5, %s8571_s5 }
 0x17e   : > { %p8574_p5 = pnand %p8572_p4, %p9191_p7 }
 0x17f   : > { %7612 = dma.hbm_to_vmem [thread:$0]  (!%p9181_p6), %s11591_s3, 256, %s1429_s7, [#allocation34], %s8854_s23, %s8854_s23, %s8855_s18  }
 0x180   : > { %p8575_p8 = pneg %p8574_p5  ;;  %p8581_p11 = por %p8580_p10, %p8579_p9 }
 0x182   : > { %p8582_p12 = pnand %p8581_p11, %p8575_p8 }
 0x184   : > { %8585 = shalt.err (!%p8582_p12)
}
 0x185   : > { %s11592_s7 = sld [smem:[#allocation85_spill]]  ;;  %s8597_s12 = scalar_lea.vmem %s1493_s6, 128 }
 0x186   : > { %p8598_p13 = scmp.ne.s32.totalorder %s1493_s6, %s8597_s12  ;;  %p8605_p1 = scmp.lt.s32.totalorder %s1493_s6, %s1493_s6 }
 0x187   : > { %p8606_p3 = scmp.lt.s32.totalorder %s8597_s12, %s8597_s12 }
 0x188   : > { %p8600_p0 = pnand %p8598_p13, %p9191_p7 }
 0x189   : > { %p8607_p4 = por %p8606_p3, %p8605_p1 }
 0x18a   : > { %p8601_p2 = pneg %p8600_p0 }
 0x18b   : > { %7618 = dma.hbm_to_vmem [thread:$0]  (!%p9181_p6), %s11592_s7, 256, %s1458_s10, [#allocation37], %s8854_s23, %s8854_s23, %s8855_s18  }
 0x18c   : > { %p8608_p5 = pnand %p8607_p4, %p8601_p2 }
 0x18e   : > { %8611 = shalt.err (!%p8608_p5)
}
 0x18f   : > { %s11593_s5 = smov 4   ;;  %s11594_s3 = smov 64  }
 0x190   : > { %s11595_s22 = sld [smem:[#allocation90_spill]]  ;;  %s8860_s16 = smov [#allocation42]  }
 0x191   : > { %s1511_s23 = sshll.u32 %s8860_s16, 4  ;;  %s1512_s23 = int_to_ptr.vmem [resolvable:$true] %s1511_s23 }
 0x192   : > { %s8623_s18 = scalar_lea.vmem %s1512_s23, 128  ;;  %p8631_p11 = scmp.lt.s32.totalorder %s1512_s23, %s1512_s23 }
 0x193   : > { %p8624_p8 = scmp.ne.s32.totalorder %s1512_s23, %s8623_s18  ;;  %p8632_p12 = scmp.lt.s32.totalorder %s8623_s18, %s8623_s18 }
 0x195   : > { %p8626_p9 = pnand %p8624_p8, %p9191_p7  ;;  %p8633_p13 = por %p8632_p12, %p8631_p11 }
 0x196   : > { %7624 = dma.hbm_to_vmem [thread:$0]  (!%p9181_p6), %s11595_s22, 128, %s1493_s6, [#allocation40], %s11594_s3, %s11594_s3, %s11593_s5  }
 0x197   : > { %p8627_p10 = pneg %p8626_p9 }
 0x199   : > { %p8634_p0 = pnand %p8633_p13, %p8627_p10 }
 0x19b   : > { %8637 = shalt.err (!%p8634_p0)
}
 0x19c   : > { %s11596_s10 = sld [smem:[#allocation93_spill]]  ;;  %s6874_s8 = sadd.s32 4294967294, %s8782_s2  }
 0x19d   : > { %s9361_s26 = sadd.s32 1, %s8782_s2   ;;  %s133_s6 = sadd.s32 1, %s8778_s1 }
 0x19e   : > { %s11597_s7 = sld [smem:[#allocation60_spill]]  ;;  %s130_s12 = ssub.s32 %s8782_s2, %s9361_s26 }
 0x19f   : > { %p140_p7 = scmp.ne.s32.totalorder %s8778_s1, %s8774_s0  ;;  %p131_p2 = scmp.eq.s32.totalorder %s130_s12, 0 }
 0x1a0   : > { %p141_p1 = scmp.eq.s32.totalorder %s8782_s2, 0  ;;  %p146_p3 = scmp.ne.s32.totalorder %s8774_s0, %s8770_s28 }
 0x1a1   : > { %p1157_p4 = scmp.eq.s32.totalorder %s9167_s11, 1  ;;  %p11598_p8 = scmp.eq.s32.totalorder %s9167_s11, 0 }
 0x1a2   : > { %7627 = dma.hbm_to_vmem [thread:$0]  (!%p9181_p6), %s11596_s10, 128, %s1512_s23, [#allocation43], %s11594_s3, %s11594_s3, %s11593_s5  }
 0x1a3   : > { %s9373_s22 = scalar_select %p131_p2, %s8778_s1, %s133_s6  }
 0x1a4   : > { %p142_p5 = por %p141_p1, %p140_p7  ;;  %p9377_p9 = por %p11598_p8, %p146_p3 }
 0x1a5   : > { %p9381_p6 = por %p1157_p4, %p140_p7  ;;  %p1163_p10 = scmp.eq.s32.totalorder %s6874_s8, 1 }
 0x1a6   : > { %s11599_s5 = scalar_select %p9377_p9, 1, 0 }
 0x1a7   : > { %s11600_s3 = scalar_select %p9381_p6, 1, 0 }
 0x1a8   : > { %p7661_p11 = scmp.lt.s32.totalorder %s8782_s2, 2  ;;  %s1546_s16 = sand.u32 1, %s8778_s1  }
 0x1a9   : > { %p9387_p12 = por %p1163_p10, %p146_p3  ;;  %s6902_s18 = sshll.u32 %s8782_s2, 4 }
 0x1aa   : > { %s9393_s10 = scalar_lea.hbm %s11597_s7, %s6902_s18  ;;  %s1549_s6 = scalar_lea.vmem [#allocation3], %s1546_s16 }
 0x1ab   : > { %s11601_s23 = scalar_select %p9387_p12, 1, 0 }
 0x1ac   : > { %s1556_s12 = sshll.u32 %s1549_s6, 4  ;;  %p9395_p13 = pnand %p7661_p11, %p142_p5  ;;  %s1557_s12 = int_to_ptr.vmem [resolvable:$true] %s1556_s12 }
 0x1ad   : > { %s1547_s8 = scalar_lea.sflag [#allocation4], %s1546_s16  ;;  %s8638_s13 = scalar_lea.hbm %s9393_s10, 16 }
 0x1ae   : > { %s11602_s9 = scalar_select %p9395_p13, 1, 0 }
 0x1af   : > { %p8639_p0 = scmp.ne.s32.totalorder %s9393_s10, %s8638_s13  ;;  %p8640_p7 = pneg %p9395_p13 }
 0x1b0   : > { %s8643_s18 = scalar_lea.hbm %s11597_s7, 32  ;;  %p8644_p3 = scmp.lt.s32.totalorder %s9393_s10, %s11597_s7 }
 0x1b1   : > { %p8641_p2 = pnand %p8640_p7, %p8639_p0  ;;  %p8645_p4 = scmp.lt.s32.totalorder %s8643_s18, %s8638_s13 }
 0x1b3   : > { %p8642_p1 = pneg %p8641_p2  ;;  %p8646_p8 = por %p8645_p4, %p8644_p3 }
 0x1b5   : > { %p8647_p10 = pnand %p8646_p8, %p8642_p1 }
 0x1b7   : > { %8650 = shalt.err (!%p8647_p10)
}
 0x1b8   : > { %s8651_s6 = scalar_lea.vmem %s1557_s12, 16  ;;  %s8861_s14 = smov [#allocation3]  }
 0x1b9   : > { %p8652_p12 = scmp.ne.s32.totalorder %s1557_s12, %s8651_s6  ;;  %s8656_s17 = sshll.u32 %s8861_s14, 4  ;;  %s8657_s17 = int_to_ptr.vmem [resolvable:$false] %s8656_s17 }
 0x1ba   : > { %s8658_s16 = scalar_lea.vmem %s8657_s17, 32  ;;  %p8659_p6 = scmp.lt.s32.totalorder %s1557_s12, %s8657_s17 }
 0x1bb   : > { %p8654_p5 = pnand %p8652_p12, %p8640_p7  ;;  %p8660_p9 = scmp.lt.s32.totalorder %s8658_s16, %s8651_s6 }
 0x1bd   : > { %p8655_p11 = pneg %p8654_p5  ;;  %p8661_p13 = por %p8660_p9, %p8659_p6 }
 0x1bf   : > { %p8662_p0 = pnand %p8661_p13, %p8655_p11 }
 0x1c1   : > { %8665 = shalt.err (!%p8662_p0)
}
 0x1c2   : > { %p11603_p2 = scmp.ne.s32.totalorder %s11602_s9, 0  ;;  %p11604_p1 = scmp.ne.s32.totalorder %s11574_s15, 0 }
 0x1c3   : > { %s9412_s13 = sand.u32 (!%p11604_p1), 1, %s8774_s0   ;;  %p11605_p12 = scmp.ne.s32.totalorder (!%p11604_p1), %s11599_s5, 0 }
 0x1c4   : > { %7631 = dma.hbm_to_vmem [thread:$0]  (!%p11603_p2), %s9393_s10, 16, %s1557_s12, %s1547_s8  }
 0x1c5   : > { %1565 = sbr.rel (%p11604_p1) target bundleno = 6950 (0x1b26), region = 212  ;;  %s1568_s14 = scalar_lea.sflag (!%p11604_p1), [#allocation4], %s9412_s13 }
 0x1c6   : > { %s1570_s18 = scalar_lea.vmem (!%p11604_p1), [#allocation3], %s9412_s13 }
 0x1ca   : > { %8709 = dma.done.wait (%p11605_p12), %s1568_s14, 16  }
 0x1cb   : > { %8711 = vsyncadd (%p11605_p12), %s1568_s14, 4294967280  ;;  %p11606_p9 = scmp.eq.s32.totalorder %s9167_s11, 0 }
 0x1cd   : > { %8713 = dma.done.wait (%p11606_p9), [#allocation7], 256   ;;  %p11607_p6 = pmov %p11606_p9 }
 0x1cf   : > { %8715 = vsyncadd (%p11607_p6), [#allocation7], 4294967040  ;;  %p11608_p13 = pmov %p11607_p6 }
 0x1d0   : > { %p11609_p7 = pmov %p11607_p6 }
 0x1d1   : > { %8717 = dma.done.wait (%p11608_p13), [#allocation10], 192  }
 0x1d2   : > { %8719 = vsyncadd (%p11609_p7), [#allocation10], 4294967104  ;;  %p11610_p3 = pmov %p11607_p6 }
 0x1d4   : > { %8721 = dma.done.wait (%p11610_p3), [#allocation13], 192   ;;  %p11611_p4 = pmov %p11610_p3 }
 0x1d5   : > { %p11612_p8 = pmov %p11610_p3 }
 0x1d6   : > { %8723 = vsyncadd (%p11611_p4), [#allocation13], 4294967104 }
 0x1d7   : > { %8725 = dma.done.wait (%p11612_p8), [#allocation16], 192   ;;  %p11613_p10 = pmov %p11610_p3 }
 0x1d8   : > { %p11614_p5 = pmov %p11610_p3 }
 0x1d9   : > { %8727 = vsyncadd (%p11613_p10), [#allocation16], 4294967104 }
 0x1da   : > { %8729 = dma.done.wait (%p11614_p5), [#allocation19], 192   ;;  %p11615_p11 = pmov %p11610_p3 }
 0x1db   : > { %p11616_p0 = pmov %p11610_p3 }
 0x1dc   : > { %8731 = vsyncadd (%p11615_p11), [#allocation19], 4294967104 }
 0x1dd   : > { %8733 = dma.done.wait (%p11616_p0), [#allocation22], 192   ;;  %p11617_p2 = pmov %p11616_p0 }
 0x1de   : > { %p11618_p1 = pmov %p11616_p0 }
 0x1df   : > { %8735 = vsyncadd (%p11617_p2), [#allocation22], 4294967104 }
 0x1e0   : > { %8737 = dma.done.wait (%p11618_p1), [#allocation25], 192   ;;  %p11619_p12 = pmov %p11616_p0 }
 0x1e1   : > { %p11620_p9 = pmov %p11616_p0 }
 0x1e2   : > { %8739 = vsyncadd (%p11619_p12), [#allocation25], 4294967104 }
 0x1e3   : > { %8741 = dma.done.wait (%p11620_p9), [#allocation28], 384   ;;  %p11621_p6 = pmov %p11616_p0 }
 0x1e4   : > { %p11622_p13 = pmov %p11616_p0 }
 0x1e5   : > { %8743 = vsyncadd (%p11621_p6), [#allocation28], 4294966912 }
 0x1e6   : > { %8745 = dma.done.wait (%p11622_p13), [#allocation31], 384   ;;  %p11623_p7 = pmov %p11616_p0 }
 0x1e7   : > { %p11624_p3 = pmov %p11616_p0 }
 0x1e8   : > { %8747 = vsyncadd (%p11623_p7), [#allocation31], 4294966912 }
 0x1e9   : > { %8749 = dma.done.wait (%p11624_p3), [#allocation34], 384   ;;  %p11625_p4 = pmov %p11616_p0 }
 0x1ea   : > { %p11626_p8 = pmov %p11616_p0 }
 0x1eb   : > { %8751 = vsyncadd (%p11625_p4), [#allocation34], 4294966912 }
 0x1ec   : > { %8753 = dma.done.wait (%p11626_p8), [#allocation37], 384   ;;  %p11627_p10 = pmov %p11616_p0 }
 0x1ed   : > { %p11628_p5 = pmov %p11616_p0 }
 0x1ee   : > { %8755 = vsyncadd (%p11627_p10), [#allocation37], 4294966912 }
 0x1ef   : > { %8757 = dma.done.wait (%p11628_p5), [#allocation40], 256   ;;  %p11629_p11 = pmov %p11616_p0 }
 0x1f1   : > { %8759 = vsyncadd (%p11629_p11), [#allocation40], 4294967040 }
 0x1f2   : > { %8761 = dma.done.wait (%p11616_p0), [#allocation43], 128   ;;  %p11630_p2 = pmov %p11616_p0 }
 0x1f3   : > { %v8862_v0 = vmov 2   ;;  %v8863_v1 = vmov 1   ;;  %vm1786_vm0 = vcmask 565248   ;;  %v8864_v2 = vmov 0.0   ;;  %v6930_v3 = vld [vmem:[%s1570_s18] ss:$0 sm:$0xff] }
 0x1f4   : > { %8763 = vsyncadd (%p11630_p2), [#allocation43], 4294967168  ;;  %7831 = vset.pattern.permute.xlu1 %v8862_v0  ;;  %7830 = vset.pattern.permute.xlu0 %v8863_v1  ;;  %1787 = vst.msk [vmem:[#allocation2] sm:$0x1] %vm1786_vm0, %v8864_v2  ;;  %v1783_v4 = vld [vmem:[#allocation6] sm:$0xff]  ;;  %s11501_s9 = smov 3  }
 0x1f5   : > { %7162 = vmatprep.subr.bf16.mxu0 %v8864_v2  ;;  %7174 = vmatprep.subr.bf16.mxu1 %v8864_v2  ;;  %v8866_v5 = vmov 3   ;;  %v8867_v6 = vmov 5   ;;  %v8868_v7 = vmov 4   ;;  %v8869_v8 = vmov 0   ;;  %s11513_s17 = smov 126   ;;  %s11517_s15 = smov 127  }
 0x1f6   : > { %1793 = vrot.lane.b32.xlu0 %v6930_v3, %s11501_s9  ;;  %1821 = vperm.xlu1 %7831, %v1783_v4   ;;  %v8870_v9 = vmov 6   ;;  %vm1796_vm1 = vcmask 540696   ;;  %s11631_s5 = sld [smem:[#allocation63_spill]]  ;;  %s11503_s10 = smov 125   ;;  %v1784_v21 = vld [vmem:[#allocation8] sm:$0xff]  ;;  %vm11511_vm2 = vcmask 523264  }
 0x1f7   : > { %s8874_s12 = smov 124   ;;  %s8875_s8 = smov 123   ;;  %2004 = vst.msk [vmem:[#allocation2 + $0x20] sm:$0xff] %vm11511_vm2, %v8864_v2  ;;  %2001 = vst.msk [vmem:[#allocation2 + $0x8] sm:$0xff] %vm11511_vm2, %v8864_v2  ;;  %v8877_v54 = vmov 683565275  }
 0x1f8   : > { %s11499_s6 = smov 122   ;;  %2002 = vst.msk [vmem:[#allocation2 + $0x10] sm:$0xff] %vm11511_vm2, %v8864_v2  ;;  %2003 = vst.msk [vmem:[#allocation2 + $0x18] sm:$0xff] %vm11511_vm2, %v8864_v2  ;;  %v8878_v56 = vmov 2475754826   ;;  %s11632_s16 = sld [smem:[#allocation64_spill]] }
 0x1f9   : > { %2005 = vst.msk [vmem:[#allocation2 + $0x28] sm:$0xff] %vm11511_vm2, %v8864_v2  ;;  %2006 = vst.msk [vmem:[#allocation2 + $0x30] sm:$0xff] %vm11511_vm2, %v8864_v2  ;;  %v8879_v59 = vmov 2131351028   ;;  %v8880_v62 = vmov 2102212464  }
 0x1fa   : > { %7832 = vset.pattern.permute.xlu1 %v8866_v5  ;;  %1811 = vperm.xlu0 %7830, %v1783_v4   ;;  %v8881_v3 = vmov 920167782   ;;  %s11515_s14 = smov 1   ;;  %s11633_s18 = sld [smem:[#allocation67_spill]]  ;;  %vm8885_vm0 = vmmov 0  }
 0x1fb   : > { %1831 = vperm.xlu1 %7832, %v1783_v4   ;;  %7170 = vmatprep.mubr.msk.bf16.mxu0 %vm8885_vm0, %v8864_v2  ;;  %s11668_s7 = smov 27   ;;  %p11697_p12 = scmp.ne.s32.totalorder %s11600_s3, 0 }
 0x1fc   : > { %v1876_v25 = vld [vmem:[%s11631_s5] sm:$0xff]  ;;  %s11495_s5 = smov 2   ;;  %7176 = vmatprep.mubr.msk.bf16.mxu1 %vm8885_vm0, %v8864_v2 }
 0x1fe   : > { %7834 = vset.pattern.permute.xlu0 %v8867_v6  ;;  %v8882_v6 = vmov 1326507024  }
 0x1ff   : > { %7833 = vset.pattern.permute.xlu1 %v8868_v7  ;;  %1851 = vperm.xlu0 %7834, %v1783_v4  }
 0x200   : > { %1841 = vperm.xlu1 %7833, %v1783_v4  }
 0x203   : > { %7837 = vset.pattern.permute.xlu0 %v8869_v8 }
 0x204   : > { %7835 = vset.pattern.permute.xlu1 %v8870_v9 }
 0x205   : > { %1861 = vperm.xlu1 %7835, %v1783_v4  }
 0x209   : > { %7836 = vset.pattern.permute.xlu1 %v8869_v8 }
 0x20a   : > { %1801 = vperm.xlu1 %7836, %v1783_v4  }
 0x268   : > { %v1794_v10 = vpop.permute.xlu0 %1793 }
 0x269   : > { %1797 = vst.msk [vmem:[#allocation2] sm:$0x1] %vm1796_vm1, %v1794_v10  ;;  %vm2027_vm1 = vcmask 515072  }
 0x270   : > { %v6931_v11 = vld [vmem:[#allocation2] ss:$0 sm:$0xff] }
 0x271   : > { %v1822_v12 = vpop.permute.xlu1 %1821  ;;  %2000 = vst.msk [vmem:[#allocation2] sm:$0xff] %vm11511_vm2, %v8864_v2 }
 0x272   : > { %v1824_v13 = vmul.f32 %v6931_v11, %v1822_v12 }
 0x274   : > { %1826 = vrot.lane.b32.xlu1 %v1824_v13, %s11513_s17 }
 0x275   : > { %v1812_v14 = vpop.permute.xlu0 %1811 }
 0x276   : > { %v1814_v15 = vmul.f32 %v6931_v11, %v1812_v14  ;;  %v1832_v16 = vpop.permute.xlu1 %1831 }
 0x277   : > { %v1834_v17 = vmul.f32 %v6931_v11, %v1832_v16 }
 0x278   : > { %1816 = vrot.lane.b32.xlu0 %v1814_v15, %s11517_s15 }
 0x27a   : > { %v1852_v20 = vpop.permute.xlu0 %1851 }
 0x27b   : > { %v1842_v18 = vpop.permute.xlu1 %1841  ;;  %v1854_v22 = vmul.f32 %v6931_v11, %v1852_v20 }
 0x27c   : > { %v1844_v19 = vmul.f32 %v6931_v11, %v1842_v18  ;;  %1836 = vrot.lane.b32.xlu0 %v1834_v17, %s11503_s10 }
 0x27e   : > { %1846 = vrot.lane.b32.xlu1 %v1844_v19, %s8874_s12  ;;  %s11634_s12 = sld [smem:[#allocation69_spill]] }
 0x280   : > { %v1862_v23 = vpop.permute.xlu1 %1861  ;;  %1872 = vperm.xlu0 %7837, %v1784_v21  }
 0x281   : > { %v1864_v24 = vmul.f32 %v6931_v11, %v1862_v23 }
 0x282   : > { %1856 = vrot.lane.b32.xlu1 %v1854_v22, %s8875_s8  ;;  %s11635_s8 = sld [smem:[#allocation72_spill]] }
 0x284   : > { %1866 = vrot.lane.b32.xlu0 %v1864_v24, %s11499_s6 }
 0x285   : > { %v1802_v26 = vpop.permute.xlu1 %1801 }
 0x286   : > { %1884 = vperm.xlu1 %7836, %v1876_v25   ;;  %v1808_v28 = vmul.f32 %v6931_v11, %v1802_v26 }
 0x28a   : > { %7838 = vset.pattern.permute.xlu1 %v8863_v1 }
 0x28b   : > { %1994 = vperm.xlu1 %7838, %v1876_v25  }
 0x28f   : > { %7839 = vset.pattern.permute.xlu1 %v8869_v8 }
 0x2e6   : > { %v1827_v30 = vpop.permute.xlu1 %1826 }
 0x2ea   : > { %v1817_v27 = vpop.permute.xlu0 %1816 }
 0x2eb   : > { %v1819_v29 = vadd.f32 %v1817_v27, %v1808_v28 }
 0x2ed   : > { %v1829_v31 = vadd.f32 %v1827_v30, %v1819_v29 }
 0x2ee   : > { %v1837_v32 = vpop.permute.xlu0 %1836 }
 0x2ef   : > { %v1839_v34 = vadd.f32 %v1837_v32, %v1829_v31 }
 0x2f0   : > { %v1847_v33 = vpop.permute.xlu1 %1846 }
 0x2f1   : > { %v1849_v37 = vadd.f32 %v1847_v33, %v1839_v34 }
 0x2f4   : > { %v1857_v35 = vpop.permute.xlu1 %1856 }
 0x2f5   : > { %v1859_v38 = vadd.f32 %v1857_v35, %v1849_v37 }
 0x2fb   : > { %v1873_v36 = vpop.permute.xlu0 %1872 }
 0x2ff   : > { %v1867_v39 = vpop.permute.xlu0 %1866 }
 0x300   : > { %v1869_v40 = vadd.f32 %v1867_v39, %v1859_v38 }
 0x301   : > { %v1885_v42 = vpop.permute.xlu1 %1884 }
 0x302   : > { %v9502_v41 = vadd.f32 %v1873_v36, %v1869_v40 }
 0x304   : > { %v9505_v43 = vmul.f32 %v1885_v42, %v9502_v41 }
 0x306   : > { %v1891_v44 = vand.u32 2139095040, %v9505_v43  ;;  %v1888_v48 = vand.u32 2147483647, %v9505_v43  ;;  %vm1890_vm10 = vcmp.lt.s32.totalorder %v9505_v43, 0  ;;  %vm1980_vm15 = vweird.f32 %v9505_v43 }
 0x308   : > { %v1892_v45 = vshrl.u32 %v1891_v44, 23  ;;  %v1895_v51 = vand.u32 8388607, %v1888_v48  ;;  %vm1889_vm11 = vcmp.le.f32.partialorder %v1888_v48, 0.7853982 }
 0x30a   : > { %v6932_v46 = vadd.s32 4294967169, %v1892_v45  ;;  %v1896_v9 = vor.u32 8388608, %v1895_v51 }
 0x30c   : > { %v1898_v47 = vadd.s32 1, %v6932_v46  ;;  %v1936_v23 = vshll.u32 %v1896_v9, 8 }
 0x30e   : > { %vm1899_vm3 = vcmp.gt.s32.totalorder %v1898_v47, 0 }
 0x30f   : > { %v1900_v49 = vsel %vm1899_vm3, %v1898_v47, 0  ;;  %vm2037_vm3 = vcmask 498688  }
 0x310   : > { %v1902_v50 = vand.u32 31, %v1900_v49  ;;  %v1901_v53 = vshrl.u32 %v1900_v49, 5 }
 0x312   : > { %v1903_v52 = vsub.s32 32, %v1902_v50  ;;  %v1905_v55 = vshll.u32 %v8877_v54, %v1902_v50  ;;  %v1908_v57 = vshll.u32 %v8878_v56, %v1902_v50  ;;  %v1911_v61 = vshll.u32 %v8879_v59, %v1902_v50 }
 0x313   : > { %v1914_v0 = vshll.u32 %v8880_v62, %v1902_v50  ;;  %v1917_v5 = vshll.u32 %v8881_v3, %v1902_v50  ;;  %vm1920_vm4 = vcmp.lt.s32.totalorder %v1901_v53, 1  ;;  %vm1923_vm5 = vcmp.lt.s32.totalorder %v1901_v53, 4 }
 0x314   : > { %v1906_v58 = vshrl.u32 %v8878_v56, %v1903_v52  ;;  %v1909_v60 = vshrl.u32 %v8879_v59, %v1903_v52  ;;  %v1912_v63 = vshrl.u32 %v8880_v62, %v1903_v52  ;;  %v1915_v4 = vshrl.u32 %v8881_v3, %v1903_v52 }
 0x315   : > { %v1918_v7 = vshrl.u32 %v8882_v6, %v1903_v52  ;;  %v1904_v18 = vshrl.u32 %v8877_v54, %v1903_v52  ;;  %vm1922_vm6 = vcmp.lt.s32.totalorder %v1901_v53, 3  ;;  %vm1921_vm7 = vcmp.lt.s32.totalorder %v1901_v53, 2 }
 0x316   : > { %v1907_v10 = vor.u32 %v1906_v58, %v1905_v55  ;;  %v1910_v11 = vor.u32 %v1909_v60, %v1908_v57  ;;  %v1913_v12 = vor.u32 %v1912_v63, %v1911_v61  ;;  %v1916_v13 = vor.u32 %v1915_v4, %v1914_v0 }
 0x317   : > { %v1919_v14 = vor.u32 %v1918_v7, %v1917_v5 }
 0x318   : > { %v1925_v15 = vsel %vm1923_vm5, %v1913_v12, 2102212464  ;;  %v1928_v16 = vsel %vm1920_vm4, %v1907_v10, %v1910_v11  ;;  %v1932_v17 = vsel %vm1920_vm4, %v1910_v11, %v1913_v12  ;;  %v1929_v19 = vsel %vm1923_vm5, %v1916_v13, 920167782 }
 0x319   : > { %v1933_v20 = vsel %vm1923_vm5, %v1919_v14, 1326507024  ;;  %v1930_v21 = vsel %vm1922_vm6, %v1913_v12, %v1929_v19  ;;  %v1924_v24 = vsel %vm1920_vm4, %v1904_v18, %v1907_v10  ;;  %v1926_v25 = vsel %vm1922_vm6, %v1910_v11, %v1925_v15 }
 0x31a   : > { %v1934_v22 = vsel %vm1922_vm6, %v1916_v13, %v1933_v20  ;;  %v1931_v26 = vsel %vm1921_vm7, %v1928_v16, %v1930_v21  ;;  %v1927_v32 = vsel %vm1921_vm7, %v1924_v24, %v1926_v25  ;;  %v1995_v20 = vpop.permute.xlu1 %1994  ;;  %v1878_v25 = vld [vmem:[#allocation11] sm:$0xff]  ;;  %vm2021_vm4 = vcmask 523272  }
 0x31b   : > { %v1935_v27 = vsel %vm1921_vm7, %v1932_v17, %v1934_v22  ;;  %v9525_v30 = vmul.u32.u64.low %v1936_v23, %v1931_v26  ;;  %v9526_v31 = vmul.u32.u64.high %v1936_v23, %v1931_v26, %v9525_v30  ;;  %v1943_v34 = vmul.u32 %v1936_v23, %v1927_v32  ;;  %v1879_v26 = vld [vmem:[%s11632_s16] sm:$0xff]  ;;  %s11522_s16 = smov 119  }
 0x31c   : > { %v9522_v28 = vmul.u32.u64.low %v1936_v23, %v1935_v27  ;;  %v9523_v29 = vmul.u32.u64.high %v1936_v23, %v1935_v27, %v9522_v28  ;;  %v1881_v27 = vld [vmem:[#allocation14] sm:$0xff]  ;;  %vm2032_vm5 = vcmask 506880   ;;  %vm2016_vm6 = vcmask 523280  }
 0x31d   : > { %v1946_v33 = vadd.s32 1, %v9526_v31  ;;  %v2274_v28 = vld [vmem:[%s11633_s18] sm:$0xff]  ;;  %vm2011_vm7 = vcmask 523288   ;;  %s11497_s18 = smov 6  }
 0x31e   : > { %vm1945_vm8 = vc.u32 %v9523_v29, %v9525_v30  ;;  %v1944_v49 = vadd.s32 %v9525_v30, %v9523_v29 }
 0x31f   : > { %v1947_v35 = vsel %vm1945_vm8, %v1946_v33, %v9526_v31  ;;  %vm2059_vm8 = vcmask 1043456  }
 0x320   : > { %v1948_v36 = vadd.s32 %v1947_v35, %v1943_v34 }
 0x322   : > { %v1949_v37 = vadd.s32 536870912, %v1948_v36 }
 0x324   : > { %v1950_v38 = vshrl.u32 %v1949_v37, 30 }
 0x326   : > { %v1951_v39 = vshll.u32 %v1950_v38, 30  ;;  %v1974_v5 = vsub.s32 4, %v1950_v38 }
 0x328   : > { %v1952_v40 = vsub.s32 %v1948_v36, %v1951_v39  ;;  %v1975_v10 = vsel %vm1890_vm10, %v1974_v5, %v1950_v38 }
 0x329   : > { %v1977_v11 = vsel %vm1889_vm11, 0, %v1975_v10 }
 0x32a   : > { %v1954_v42 = vsub.s32 0, %v1952_v40  ;;  %v1981_v12 = vadd.s32 3, %v1977_v11 }
 0x32c   : > { %v6933_v44 = vmin.u32 %v1954_v42, %v1952_v40  ;;  %v1982_v13 = vand.u32 3, %v1981_v12 }
 0x32e   : > { %v1956_v45 = vclz %v6933_v44  ;;  %vm1987_vm12 = vcmp.eq.s32.totalorder %v1982_v13, 2  ;;  %vm1984_vm13 = vcmp.eq.s32.totalorder %v1982_v13, 0  ;;  %vm1983_vm14 = vcmp.lt.s32.totalorder %v1982_v13, 2 }
 0x330   : > { %v6934_v46 = vadd.s32 4294967294, %v1956_v45 }
 0x332   : > { %vm6935_vm9 = vcmp.lt.s32.totalorder %v6934_v46, 0 }
 0x333   : > { %v1959_v47 = vsel %vm6935_vm9, 0, %v6934_v46  ;;  %vm2055_vm9 = vcmask 457728  }
 0x334   : > { %v1960_v50 = vsub.s32 32, %v1959_v47  ;;  %v1964_v51 = vsub.s32 4294967266, %v1959_v47  ;;  %v1961_v52 = vshll.u32 %v1952_v40, %v1959_v47 }
 0x336   : > { %v1962_v53 = vshrl.u32 %v1944_v49, %v1960_v50  ;;  %v1965_v55 = vadd.s32 127, %v1964_v51  ;;  %v1877_v49 = vld [vmem:[#allocation9] sm:$0xf] }
 0x338   : > { %v1963_v57 = vor.u32 %v1962_v53, %v1961_v52  ;;  %v1966_v58 = vshll.u32 %v1965_v55, 23 }
 0x33a   : > { %v1967_v60 = vor.u32 4788187, %v1966_v58  ;;  %v1970_v63 = vcvt.s32.f32 %v1963_v57 }
 0x33c   : > { %v1968_v61 = vand.u32 2147483647, %v1967_v60 }
 0x33e   : > { %v1971_v0 = vmul.f32 %v1970_v63, %v1968_v61 }
 0x340   : > { %v1972_v4 = vxor.u32 2147483648, %v1971_v0 }
 0x342   : > { %v1973_v7 = vsel %vm1890_vm10, %v1972_v4, %v1971_v0 }
 0x343   : > { %v1976_v9 = vsel %vm1889_vm11, %v9505_v43, %v1973_v7 }
 0x344   : > { %7888 = vcosq.f32 %v1976_v9 }
 0x345   : > { %7890 = vsinq.f32 %v1976_v9 }
 0x351   : > { %v7889_v14 = vpop.eup %7888 }
 0x352   : > { %v7891_v15 = vpop.eup %7890  ;;  %v1988_v16 = vxor.u32 2147483648, %v7889_v14 }
 0x353   : > { %v1985_v17 = vxor.u32 2147483648, %v7891_v15 }
 0x354   : > { %v1989_v18 = vsel %vm1987_vm12, %v1988_v16, %v7891_v15 }
 0x355   : > { %v1986_v19 = vsel %vm1984_vm13, %v7889_v14, %v1985_v17 }
 0x356   : > { %v1990_v48 = vsel %vm1983_vm14, %v1986_v19, %v1989_v18 }
 0x357   : > { %v1991_v21 = vsel %vm1980_vm15, nan, %v1990_v48 }
 0x358   : > { %v1992_v22 = vmul.f32 %v1991_v21, %v1991_v21 }
 0x35a   : > { %v1997_v23 = vmul.f32 %v1995_v20, %v1992_v22 }
 0x35c   : > { %v1998_v24 = vadd.f32 %v1997_v23, %v9502_v41 }
 0x35e   : > { %2024 = vrot.lane.b32.xlu1 %v1998_v24, %s11517_s15  ;;  %2034 = vrot.lane.b32.xlu0 %v1998_v24, %s11503_s10  ;;  %2023 = vst.msk [vmem:[#allocation2 + $0x18] sm:$0xff] %vm11511_vm2, %v1998_v24 }
 0x362   : > { %2018 = vrot.lane.b32.xlu1 %v1998_v24, %s11515_s14  ;;  %2029 = vrot.lane.b32.xlu0 %v1998_v24, %s11513_s17 }
 0x365   : > { %v2042_v43 = vld [vmem:[#allocation2 + $0x18] sm:$0xff] }
 0x366   : > { %2013 = vrot.lane.b32.xlu1 %v1998_v24, %s11495_s5  ;;  %2008 = vrot.lane.b32.xlu0 %v1998_v24, %s11501_s9  ;;  %2400 = vst.msk [vmem:[#allocation2 + $0x18] sm:$0xff] %vm11511_vm2, %v8864_v2  ;;  %s11524_s5 = smov 9  }
 0x36a   : > { %2052 = vperm.xlu0 %7837, %v1878_v25   ;;  %2105 = vperm.xlu1 %7839, %v1879_v26  }
 0x36e   : > { %7840 = vset.pattern.permute.xlu0 %v8863_v1  ;;  %2223 = vperm.xlu1 %7839, %v1881_v27  }
 0x36f   : > { %2215 = vperm.xlu0 %7840, %v1879_v26  }
 0x372   : > { %2282 = vperm.xlu1 %7839, %v2274_v28  }
 0x373   : > { %2392 = vperm.xlu0 %7840, %v2274_v28  }
 0x377   : > { %7841 = vset.pattern.permute.xlu0 %v8869_v8 }
 0x3d0   : > { %v2025_v29 = vpop.permute.xlu1 %2024  ;;  %v2035_v30 = vpop.permute.xlu0 %2034 }
 0x3d1   : > { %2028 = vst.msk [vmem:[#allocation2 + $0x20] sm:$0xff] %vm2027_vm1, %v2025_v29 }
 0x3d2   : > { %2038 = vst.msk [vmem:[#allocation2 + $0x30] sm:$0xff] %vm2037_vm3, %v2035_v30 }
 0x3d4   : > { %v2019_v31 = vpop.permute.xlu1 %2018  ;;  %v2030_v32 = vpop.permute.xlu0 %2029 }
 0x3d5   : > { %2022 = vst.msk [vmem:[#allocation2 + $0x10] sm:$0xff] %vm2021_vm4, %v2019_v31 }
 0x3d6   : > { %2033 = vst.msk [vmem:[#allocation2 + $0x28] sm:$0xff] %vm2032_vm5, %v2030_v32 }
 0x3d8   : > { %v2014_v33 = vpop.permute.xlu1 %2013  ;;  %v2009_v34 = vpop.permute.xlu0 %2008  ;;  %v2043_v36 = vld [vmem:[#allocation2 + $0x20] sm:$0xff] }
 0x3d9   : > { %v2045_v35 = vld [vmem:[#allocation2 + $0x30] sm:$0xff]  ;;  %2017 = vst.msk [vmem:[#allocation2 + $0x8] sm:$0xff] %vm2016_vm6, %v2014_v33 }
 0x3da   : > { %2012 = vst.msk [vmem:[#allocation2] sm:$0xff] %vm2011_vm7, %v2009_v34  ;;  %v2049_v37 = vpack.c.bf16 %v2045_v35, %v2045_v35 }
 0x3db   : > { %2403 = vst.msk [vmem:[#allocation2 + $0x30] sm:$0xff] %vm11511_vm2, %v8864_v2  ;;  %2401 = vst.msk [vmem:[#allocation2 + $0x20] sm:$0xff] %vm11511_vm2, %v8864_v2 }
 0x3dc   : > { %v2061_v38 = vsel %vm2059_vm8, %v2049_v37, 0  ;;  %v2041_v40 = vld [vmem:[#allocation2 + $0x10] sm:$0xff] }
 0x3dd   : > { %7163 = vmatpush3.bf16.msra.mxu0 %v2061_v38  ;;  %v2044_v39 = vld [vmem:[#allocation2 + $0x28] sm:$0xff]  ;;  %2399 = vst.msk [vmem:[#allocation2 + $0x10] sm:$0xff] %vm11511_vm2, %v8864_v2  ;;  %v2047_v46 = vpack.c.bf16 %v2042_v43, %v2041_v40 }
 0x3de   : > { %7164 = vmatprep.subr.bf16.mxu0 %v8864_v2  ;;  %v2048_v42 = vpack.c.bf16 %v2044_v39, %v2043_v36  ;;  %2402 = vst.msk [vmem:[#allocation2 + $0x28] sm:$0xff] %vm11511_vm2, %v8864_v2 }
 0x3e0   : > { %v2040_v45 = vld [vmem:[#allocation2 + $0x8] sm:$0xff] }
 0x3e1   : > { %7165 = vmatpush3.bf16.msra.mxu0 %v2048_v42  ;;  %v2039_v44 = vld [vmem:[#allocation2] sm:$0xff]  ;;  %2398 = vst.msk [vmem:[#allocation2 + $0x8] sm:$0xff] %vm11511_vm2, %v8864_v2 }
 0x3e2   : > { %7166 = vmatprep.subr.bf16.mxu0 %v8864_v2  ;;  %2397 = vst.msk [vmem:[#allocation2] sm:$0xff] %vm11511_vm2, %v8864_v2  ;;  %v2046_v47 = vpack.c.bf16 %v2040_v45, %v2039_v44 }
 0x3e5   : > { %7167 = vmatpush3.bf16.msra.mxu0 %v2047_v46  ;;  %v2053_v50 = vpop.permute.xlu0 %2052  ;;  %v2106_v53 = vpop.permute.xlu1 %2105 }
 0x3e6   : > { %7168 = vmatprep.subr.bf16.mxu0 %v8864_v2 }
 0x3e9   : > { %7169 = vmatpush3.bf16.msra.mxu0 %v2046_v47 }
 0x3ea   : > { %7192 = vmatprep.subr.bf16.mxu0 %v8864_v2 }
 0x3ec   : > { %7171 = vmatmul.mubr.msk.bf16.vlgmr.msra.gmra.mxu0 %vm2055_vm9, %v1877_v49 }
 0x3ed   : > { %7194 = vmatprep.mubr.msk.bf16.mxu0 %vm8885_vm0, %v8864_v2 }
 0x4ac   : > { %v2097_v51 = vpop.f32.mrf.mxu0 }
 0x4ad   : > { %v9579_v52 = vadd.f32 %v2097_v51, %v2053_v50 }
 0x4ae   : > { %v7172_v55 = vpop.f32.mrf.mxu0 }
 0x4af   : > { %v9582_v57 = vmul.f32 %v2106_v53, %v9579_v52 }
 0x4b0   : > { %v2100_v58 = vpop.f32.mrf.mxu0 }
 0x4b1   : > { %v2112_v60 = vand.u32 2139095040, %v9582_v57  ;;  %v2109_v5 = vand.u32 2147483647, %v9582_v57  ;;  %vm2111_vm6 = vcmp.lt.s32.totalorder %v9582_v57, 0 }
 0x4b2   : > { %v7173_v61 = vpop.f32.mrf.mxu0 }
 0x4b3   : > { %v2113_v63 = vshrl.u32 %v2112_v60, 23  ;;  %v2116_v10 = vand.u32 8388607, %v2109_v5 }
 0x4b5   : > { %v6937_v0 = vadd.s32 4294967169, %v2113_v63  ;;  %v2117_v22 = vor.u32 8388608, %v2116_v10 }
 0x4b7   : > { %v2119_v4 = vadd.s32 1, %v6937_v0  ;;  %v2157_v35 = vshll.u32 %v2117_v22, 8 }
 0x4b9   : > { %vm2120_vm10 = vcmp.gt.s32.totalorder %v2119_v4, 0 }
 0x4ba   : > { %v2121_v7 = vsel %vm2120_vm10, %v2119_v4, 0  ;;  %vm2110_vm10 = vcmp.le.f32.partialorder %v2109_v5, 0.7853982 }
 0x4bb   : > { %v2123_v9 = vand.u32 31, %v2121_v7  ;;  %v2122_v12 = vshrl.u32 %v2121_v7, 5 }
 0x4bd   : > { %v2124_v11 = vsub.s32 32, %v2123_v9  ;;  %v2126_v13 = vshll.u32 %v8877_v54, %v2123_v9  ;;  %v2129_v14 = vshll.u32 %v8878_v56, %v2123_v9  ;;  %v2132_v17 = vshll.u32 %v8879_v59, %v2123_v9 }
 0x4be   : > { %v2135_v19 = vshll.u32 %v8880_v62, %v2123_v9  ;;  %v2138_v20 = vshll.u32 %v8881_v3, %v2123_v9  ;;  %vm2141_vm11 = vcmp.lt.s32.totalorder %v2122_v12, 1  ;;  %vm2144_vm12 = vcmp.lt.s32.totalorder %v2122_v12, 4 }
 0x4bf   : > { %v2127_v15 = vshrl.u32 %v8878_v56, %v2124_v11  ;;  %v2130_v16 = vshrl.u32 %v8879_v59, %v2124_v11  ;;  %v2133_v18 = vshrl.u32 %v8880_v62, %v2124_v11  ;;  %v2136_v48 = vshrl.u32 %v8881_v3, %v2124_v11 }
 0x4c0   : > { %v2139_v21 = vshrl.u32 %v8882_v6, %v2124_v11  ;;  %v2125_v30 = vshrl.u32 %v8877_v54, %v2124_v11  ;;  %vm2143_vm13 = vcmp.lt.s32.totalorder %v2122_v12, 3  ;;  %vm2142_vm14 = vcmp.lt.s32.totalorder %v2122_v12, 2 }
 0x4c1   : > { %v2128_v23 = vor.u32 %v2127_v15, %v2126_v13  ;;  %v2131_v24 = vor.u32 %v2130_v16, %v2129_v14  ;;  %v2134_v43 = vor.u32 %v2133_v18, %v2132_v17  ;;  %v2137_v25 = vor.u32 %v2136_v48, %v2135_v19 }
 0x4c2   : > { %v2140_v26 = vor.u32 %v2139_v21, %v2138_v20 }
 0x4c3   : > { %v2146_v27 = vsel %vm2144_vm12, %v2134_v43, 2102212464  ;;  %v2149_v28 = vsel %vm2141_vm11, %v2128_v23, %v2131_v24  ;;  %v2153_v29 = vsel %vm2141_vm11, %v2131_v24, %v2134_v43  ;;  %v2150_v31 = vsel %vm2144_vm12, %v2137_v25, 920167782 }
 0x4c4   : > { %v2154_v32 = vsel %vm2144_vm12, %v2140_v26, 1326507024  ;;  %v2151_v33 = vsel %vm2143_vm13, %v2134_v43, %v2150_v31  ;;  %v2145_v36 = vsel %vm2141_vm11, %v2125_v30, %v2128_v23  ;;  %v2147_v37 = vsel %vm2143_vm13, %v2131_v24, %v2146_v27 }
 0x4c5   : > { %v2155_v34 = vsel %vm2143_vm13, %v2137_v25, %v2154_v32  ;;  %v2152_v38 = vsel %vm2142_vm14, %v2149_v28, %v2151_v33  ;;  %v2148_v46 = vsel %vm2142_vm14, %v2145_v36, %v2147_v37 }
 0x4c6   : > { %v2156_v39 = vsel %vm2142_vm14, %v2153_v29, %v2155_v34  ;;  %v9602_v44 = vmul.u32.u64.low %v2157_v35, %v2152_v38  ;;  %v9603_v45 = vmul.u32.u64.high %v2157_v35, %v2152_v38, %v9602_v44  ;;  %v2164_v49 = vmul.u32 %v2157_v35, %v2148_v46 }
 0x4c7   : > { %v9599_v40 = vmul.u32.u64.low %v2157_v35, %v2156_v39  ;;  %v9600_v42 = vmul.u32.u64.high %v2157_v35, %v2156_v39, %v9599_v40  ;;  %vm2201_vm14 = vweird.f32 %v9582_v57  ;;  %v2216_v35 = vpop.permute.xlu0 %2215 }
 0x4c8   : > { %v2167_v47 = vadd.s32 1, %v9603_v45  ;;  %v1880_v40 = vld [vmem:[#allocation12] sm:$0xf] }
 0x4c9   : > { %vm2166_vm15 = vc.u32 %v9600_v42, %v9602_v44  ;;  %v2165_v9 = vadd.s32 %v9602_v44, %v9600_v42 }
 0x4ca   : > { %v2168_v50 = vsel %vm2166_vm15, %v2167_v47, %v9603_v45  ;;  %vm2226_vm15 = vcmask 64512  }
 0x4cb   : > { %v2169_v51 = vadd.s32 %v2168_v50, %v2164_v49 }
 0x4cd   : > { %v2170_v53 = vadd.s32 536870912, %v2169_v51 }
 0x4cf   : > { %v2171_v55 = vshrl.u32 %v2170_v53, 30 }
 0x4d1   : > { %v2172_v58 = vshll.u32 %v2171_v55, 30  ;;  %v2195_v21 = vsub.s32 4, %v2171_v55 }
 0x4d3   : > { %v2173_v60 = vsub.s32 %v2169_v51, %v2172_v58  ;;  %v2196_v24 = vsel %vm2111_vm6, %v2195_v21, %v2171_v55 }
 0x4d4   : > { %v2198_v43 = vsel %vm2110_vm10, 0, %v2196_v24 }
 0x4d5   : > { %v2175_v61 = vsub.s32 0, %v2173_v60  ;;  %v2202_v25 = vadd.s32 3, %v2198_v43 }
 0x4d7   : > { %v6938_v63 = vmin.u32 %v2175_v61, %v2173_v60  ;;  %v2203_v26 = vand.u32 3, %v2202_v25 }
 0x4d9   : > { %v2177_v0 = vclz %v6938_v63  ;;  %vm2208_vm11 = vcmp.eq.s32.totalorder %v2203_v26, 2  ;;  %vm2205_vm12 = vcmp.eq.s32.totalorder %v2203_v26, 0  ;;  %vm2204_vm13 = vcmp.lt.s32.totalorder %v2203_v26, 2 }
 0x4db   : > { %v6939_v4 = vadd.s32 4294967294, %v2177_v0 }
 0x4dd   : > { %vm6940_vm4 = vcmp.lt.s32.totalorder %v6939_v4, 0 }
 0x4de   : > { %v2180_v7 = vsel %vm6940_vm4, 0, %v6939_v4 }
 0x4df   : > { %v2181_v10 = vsub.s32 32, %v2180_v7  ;;  %v2185_v11 = vsub.s32 4294967266, %v2180_v7  ;;  %v2182_v12 = vshll.u32 %v2173_v60, %v2180_v7 }
 0x4e1   : > { %v2183_v13 = vshrl.u32 %v2165_v9, %v2181_v10  ;;  %v2186_v14 = vadd.s32 127, %v2185_v11 }
 0x4e3   : > { %v2184_v15 = vor.u32 %v2183_v13, %v2182_v12  ;;  %v2187_v16 = vshll.u32 %v2186_v14, 23 }
 0x4e5   : > { %v2188_v17 = vor.u32 4788187, %v2187_v16  ;;  %v2191_v19 = vcvt.s32.f32 %v2184_v15 }
 0x4e7   : > { %v2189_v18 = vand.u32 2147483647, %v2188_v17 }
 0x4e9   : > { %v2192_v48 = vmul.f32 %v2191_v19, %v2189_v18 }
 0x4eb   : > { %v2193_v20 = vxor.u32 2147483648, %v2192_v48 }
 0x4ed   : > { %v2194_v22 = vsel %vm2111_vm6, %v2193_v20, %v2192_v48 }
 0x4ee   : > { %v2197_v23 = vsel %vm2110_vm10, %v9582_v57, %v2194_v22  ;;  %v2224_v57 = vpop.permute.xlu1 %2223 }
 0x4ef   : > { %7892 = vcosq.f32 %v2197_v23 }
 0x4f0   : > { %7894 = vsinq.f32 %v2197_v23 }
 0x4fc   : > { %v7893_v27 = vpop.eup %7892 }
 0x4fd   : > { %v7895_v28 = vpop.eup %7894  ;;  %v2209_v29 = vxor.u32 2147483648, %v7893_v27 }
 0x4fe   : > { %v2206_v30 = vxor.u32 2147483648, %v7895_v28 }
 0x4ff   : > { %v2210_v31 = vsel %vm2208_vm11, %v2209_v29, %v7895_v28 }
 0x500   : > { %v2207_v32 = vsel %vm2205_vm12, %v7893_v27, %v2206_v30 }
 0x501   : > { %v2211_v5 = vsel %vm2204_vm13, %v2207_v32, %v2210_v31 }
 0x502   : > { %v2212_v33 = vsel %vm2201_vm14, nan, %v2211_v5 }
 0x503   : > { %v2213_v34 = vmul.f32 %v2212_v33, %v2212_v33 }
 0x505   : > { %v2218_v36 = vmul.f32 %v2216_v35, %v2213_v34 }
 0x507   : > { %v2219_v37 = vadd.f32 %v2218_v36, %v9579_v52  ;;  %v2283_v52 = vpop.permute.xlu1 %2282 }
 0x509   : > { %v2220_v38 = vpack.c.bf16 %v2219_v37, %v2219_v37 }
 0x50b   : > { %v2231_v39 = vsel %vm2059_vm8, %v2220_v38, 0 }
 0x50c   : > { %7175 = vmatpush3.bf16.msra.mxu1 %v2231_v39 }
 0x50d   : > { %7180 = vmatprep.subr.bf16.mxu1 %v8864_v2 }
 0x50f   : > { %7177 = vmatmul.mubr.msk.bf16.vlgmr.msra.gmra.mxu1 %vm2226_vm15, %v1880_v40 }
 0x510   : > { %7188 = vmatprep.mubr.msk.bf16.mxu1 %vm8885_vm0, %v8864_v2 }
 0x5cf   : > { %v2267_v42 = vpop.f32.mrf.mxu1 }
 0x5d0   : > { %v2268_v44 = vadd.f32 %v2267_v42, %v2224_v57 }
 0x5d1   : > { %v7178_v45 = vpop.f32.mrf.mxu1 }
 0x5d2   : > { %v9621_v46 = vadd.f32 %v2268_v44, %v9502_v41 }
 0x5d3   : > { %v2270_v47 = vpop.f32.mrf.mxu1 }
 0x5d4   : > { %v9624_v49 = vmul.f32 %v2283_v52, %v9621_v46 }
 0x5d5   : > { %v7179_v50 = vpop.f32.mrf.mxu1 }
 0x5d6   : > { %v2289_v51 = vand.u32 2139095040, %v9624_v49  ;;  %v2286_v60 = vand.u32 2147483647, %v9624_v49 }
 0x5d8   : > { %v2290_v53 = vshrl.u32 %v2289_v51, 23  ;;  %v2293_v41 = vand.u32 8388607, %v2286_v60 }
 0x5da   : > { %v6942_v55 = vadd.s32 4294967169, %v2290_v53  ;;  %v2294_v18 = vor.u32 8388608, %v2293_v41 }
 0x5dc   : > { %v2296_v58 = vadd.s32 1, %v6942_v55  ;;  %v2334_v30 = vshll.u32 %v2294_v18, 8 }
 0x5de   : > { %vm2297_vm4 = vcmp.gt.s32.totalorder %v2296_v58, 0 }
 0x5df   : > { %v2298_v61 = vsel %vm2297_vm4, %v2296_v58, 0  ;;  %vm2288_vm4 = vcmp.lt.s32.totalorder %v9624_v49, 0 }
 0x5e0   : > { %v2300_v63 = vand.u32 31, %v2298_v61  ;;  %v2299_v4 = vshrl.u32 %v2298_v61, 5 }
 0x5e2   : > { %v2301_v0 = vsub.s32 32, %v2300_v63  ;;  %v2303_v7 = vshll.u32 %v8877_v54, %v2300_v63  ;;  %v2306_v9 = vshll.u32 %v8878_v56, %v2300_v63  ;;  %v2309_v12 = vshll.u32 %v8879_v59, %v2300_v63 }
 0x5e3   : > { %v2312_v14 = vshll.u32 %v8880_v62, %v2300_v63  ;;  %v2315_v16 = vshll.u32 %v8881_v3, %v2300_v63  ;;  %vm2318_vm6 = vcmp.lt.s32.totalorder %v2299_v4, 1  ;;  %vm2321_vm10 = vcmp.lt.s32.totalorder %v2299_v4, 4 }
 0x5e4   : > { %v2304_v10 = vshrl.u32 %v8878_v56, %v2301_v0  ;;  %v2307_v11 = vshrl.u32 %v8879_v59, %v2301_v0  ;;  %v2310_v13 = vshrl.u32 %v8880_v62, %v2301_v0  ;;  %v2313_v15 = vshrl.u32 %v8881_v3, %v2301_v0 }
 0x5e5   : > { %v2316_v17 = vshrl.u32 %v8882_v6, %v2301_v0  ;;  %v2302_v25 = vshrl.u32 %v8877_v54, %v2301_v0  ;;  %vm2320_vm11 = vcmp.lt.s32.totalorder %v2299_v4, 3  ;;  %vm2319_vm12 = vcmp.lt.s32.totalorder %v2299_v4, 2 }
 0x5e6   : > { %v2305_v19 = vor.u32 %v2304_v10, %v2303_v7  ;;  %v2308_v48 = vor.u32 %v2307_v11, %v2306_v9  ;;  %v2311_v20 = vor.u32 %v2310_v13, %v2309_v12  ;;  %v2314_v21 = vor.u32 %v2313_v15, %v2312_v14 }
 0x5e7   : > { %v2317_v22 = vor.u32 %v2316_v17, %v2315_v16 }
 0x5e8   : > { %v2323_v23 = vsel %vm2321_vm10, %v2311_v20, 2102212464  ;;  %v2326_v24 = vsel %vm2318_vm6, %v2305_v19, %v2308_v48  ;;  %v2330_v43 = vsel %vm2318_vm6, %v2308_v48, %v2311_v20  ;;  %v2327_v26 = vsel %vm2321_vm10, %v2314_v21, 920167782 }
 0x5e9   : > { %v2331_v27 = vsel %vm2321_vm10, %v2317_v22, 1326507024  ;;  %v2328_v28 = vsel %vm2320_vm11, %v2311_v20, %v2327_v26  ;;  %v2322_v31 = vsel %vm2318_vm6, %v2302_v25, %v2305_v19  ;;  %v2324_v32 = vsel %vm2320_vm11, %v2308_v48, %v2323_v23 }
 0x5ea   : > { %v2332_v29 = vsel %vm2320_vm11, %v2314_v21, %v2331_v27  ;;  %v2329_v5 = vsel %vm2319_vm12, %v2326_v24, %v2328_v28  ;;  %v2325_v38 = vsel %vm2319_vm12, %v2322_v31, %v2324_v32  ;;  %vm2287_vm6 = vcmp.le.f32.partialorder %v2286_v60, 0.7853982  ;;  %v2276_v32 = vld [vmem:[#allocation17] sm:$0xff] }
 0x5eb   : > { %v2333_v33 = vsel %vm2319_vm12, %v2330_v43, %v2332_v29  ;;  %v9644_v36 = vmul.u32.u64.low %v2334_v30, %v2329_v5  ;;  %v9645_v37 = vmul.u32.u64.high %v2334_v30, %v2329_v5, %v9644_v36  ;;  %v2341_v40 = vmul.u32 %v2334_v30, %v2325_v38  ;;  %v2393_v29 = vpop.permute.xlu0 %2392  ;;  %v2277_v5 = vld [vmem:[%s11634_s12] sm:$0xff]  ;;  %s11636_s12 = sld [smem:[#allocation74_spill]] }
 0x5ec   : > { %v9641_v34 = vmul.u32.u64.low %v2334_v30, %v2333_v33  ;;  %v9642_v35 = vmul.u32.u64.high %v2334_v30, %v2333_v33, %v9641_v34  ;;  %v2666_v33 = vld [vmem:[%s11635_s8] sm:$0xff]  ;;  %s11509_s8 = smov 101  }
 0x5ed   : > { %v2344_v39 = vadd.s32 1, %v9645_v37 }
 0x5ee   : > { %vm2343_vm13 = vc.u32 %v9642_v35, %v9644_v36  ;;  %v2342_v61 = vadd.s32 %v9644_v36, %v9642_v35 }
 0x5ef   : > { %v2345_v57 = vsel %vm2343_vm13, %v2344_v39, %v9645_v37  ;;  %vm2378_vm13 = vweird.f32 %v9624_v49 }
 0x5f0   : > { %v2346_v42 = vadd.s32 %v2345_v57, %v2341_v40 }
 0x5f2   : > { %v2347_v44 = vadd.s32 536870912, %v2346_v42 }
 0x5f4   : > { %v2348_v45 = vshrl.u32 %v2347_v44, 30 }
 0x5f6   : > { %v2349_v52 = vshll.u32 %v2348_v45, 30  ;;  %v2372_v16 = vsub.s32 4, %v2348_v45 }
 0x5f8   : > { %v2350_v47 = vsub.s32 %v2346_v42, %v2349_v52  ;;  %v2373_v19 = vsel %vm2288_vm4, %v2372_v16, %v2348_v45 }
 0x5f9   : > { %v2375_v48 = vsel %vm2287_vm6, 0, %v2373_v19 }
 0x5fa   : > { %v2352_v50 = vsub.s32 0, %v2350_v47  ;;  %v2379_v20 = vadd.s32 3, %v2375_v48 }
 0x5fc   : > { %v6943_v51 = vmin.u32 %v2352_v50, %v2350_v47  ;;  %v2380_v21 = vand.u32 3, %v2379_v20 }
 0x5fe   : > { %v2354_v53 = vclz %v6943_v51  ;;  %vm2385_vm10 = vcmp.eq.s32.totalorder %v2380_v21, 2  ;;  %vm2382_vm11 = vcmp.eq.s32.totalorder %v2380_v21, 0  ;;  %vm2381_vm12 = vcmp.lt.s32.totalorder %v2380_v21, 2 }
 0x600   : > { %v6944_v55 = vadd.s32 4294967294, %v2354_v53 }
 0x602   : > { %vm6945_vm14 = vcmp.lt.s32.totalorder %v6944_v55, 0 }
 0x603   : > { %v2357_v58 = vsel %vm6945_vm14, 0, %v6944_v55  ;;  %vm2432_vm14 = vcmask 449536  }
 0x604   : > { %v2358_v63 = vsub.s32 32, %v2357_v58  ;;  %v2362_v41 = vsub.s32 4294967266, %v2357_v58  ;;  %v2359_v0 = vshll.u32 %v2350_v47, %v2357_v58  ;;  %v2275_v58 = vld [vmem:[#allocation15] sm:$0xf] }
 0x606   : > { %v2360_v4 = vshrl.u32 %v2342_v61, %v2358_v63  ;;  %v2363_v7 = vadd.s32 127, %v2362_v41  ;;  %v2279_v61 = vld [vmem:[#allocation20] sm:$0xff] }
 0x608   : > { %v2361_v9 = vor.u32 %v2360_v4, %v2359_v0  ;;  %v2364_v10 = vshll.u32 %v2363_v7, 23 }
 0x60a   : > { %v2365_v11 = vor.u32 4788187, %v2364_v10  ;;  %v2368_v13 = vcvt.s32.f32 %v2361_v9 }
 0x60c   : > { %v2366_v12 = vand.u32 2147483647, %v2365_v11 }
 0x60e   : > { %v2369_v14 = vmul.f32 %v2368_v13, %v2366_v12 }
 0x610   : > { %v2370_v15 = vxor.u32 2147483648, %v2369_v14 }
 0x612   : > { %v2371_v17 = vsel %vm2288_vm4, %v2370_v15, %v2369_v14  ;;  %vm2427_vm4 = vcmask 474112  }
 0x613   : > { %v2374_v18 = vsel %vm2287_vm6, %v9624_v49, %v2371_v17  ;;  %vm2413_vm6 = vcmask 523312  }
 0x614   : > { %7896 = vcosq.f32 %v2374_v18 }
 0x615   : > { %7898 = vsinq.f32 %v2374_v18 }
 0x621   : > { %v7897_v22 = vpop.eup %7896 }
 0x622   : > { %v7899_v23 = vpop.eup %7898  ;;  %v2386_v24 = vxor.u32 2147483648, %v7897_v22 }
 0x623   : > { %v2383_v43 = vxor.u32 2147483648, %v7899_v23 }
 0x624   : > { %v2387_v25 = vsel %vm2385_vm10, %v2386_v24, %v7899_v23  ;;  %vm2408_vm10 = vcmask 523336  }
 0x625   : > { %v2384_v26 = vsel %vm2382_vm11, %v7897_v22, %v2383_v43 }
 0x626   : > { %v2388_v60 = vsel %vm2381_vm12, %v2384_v26, %v2387_v25 }
 0x627   : > { %v2389_v27 = vsel %vm2378_vm13, nan, %v2388_v60 }
 0x628   : > { %v2390_v28 = vmul.f32 %v2389_v27, %v2389_v27 }
 0x62a   : > { %v2395_v30 = vmul.f32 %v2393_v29, %v2390_v28 }
 0x62c   : > { %v2396_v31 = vadd.f32 %v2395_v30, %v9621_v46 }
 0x62e   : > { %2419 = vst.msk [vmem:[#allocation2 + $0x18] sm:$0xff] %vm11511_vm2, %v2396_v31  ;;  %2420 = vrot.lane.b32.xlu0 %v2396_v31, %s11503_s10  ;;  %2429 = vrot.lane.b32.xlu1 %v2396_v31, %s11522_s16  ;;  %s11505_s10 = smov 27  }
 0x632   : > { %2415 = vrot.lane.b32.xlu0 %v2396_v31, %s11501_s9  ;;  %2424 = vrot.lane.b32.xlu1 %v2396_v31, %s11499_s6  ;;  %s11637_s6 = sld [smem:[#allocation76_spill]]  ;;  %s11507_s9 = smov 18  }
 0x635   : > { %v2437_v49 = vld [vmem:[#allocation2 + $0x18] sm:$0xff] }
 0x636   : > { %2410 = vrot.lane.b32.xlu0 %v2396_v31, %s11497_s18  ;;  %2405 = vrot.lane.b32.xlu1 %v2396_v31, %s11524_s5  ;;  %2792 = vst.msk [vmem:[#allocation2 + $0x18] sm:$0xff] %vm11511_vm2, %v8864_v2  ;;  %s11520_s18 = smov 110  }
 0x63a   : > { %2447 = vperm.xlu1 %7839, %v2276_v32   ;;  %2498 = vperm.xlu0 %7841, %v2277_v5  }
 0x63e   : > { %7842 = vset.pattern.permute.xlu1 %v8863_v1  ;;  %2674 = vperm.xlu0 %7841, %v2666_v33  }
 0x63f   : > { %2608 = vperm.xlu1 %7842, %v2277_v5  }
 0x643   : > { %7843 = vset.pattern.permute.xlu1 %v8869_v8 }
 0x644   : > { %2616 = vperm.xlu1 %7843, %v2279_v61  }
 0x648   : > { %7844 = vset.pattern.permute.xlu1 %v8863_v1 }
 0x649   : > { %2784 = vperm.xlu1 %7844, %v2666_v33  }
 0x64d   : > { %7845 = vset.pattern.permute.xlu1 %v8869_v8 }
 0x6a0   : > { %v2421_v34 = vpop.permute.xlu0 %2420  ;;  %v2430_v35 = vpop.permute.xlu1 %2429 }
 0x6a1   : > { %2423 = vst.msk [vmem:[#allocation2 + $0x20] sm:$0xff] %vm2037_vm3, %v2421_v34 }
 0x6a2   : > { %2433 = vst.msk [vmem:[#allocation2 + $0x30] sm:$0xff] %vm2432_vm14, %v2430_v35 }
 0x6a4   : > { %v2416_v36 = vpop.permute.xlu0 %2415  ;;  %v2425_v37 = vpop.permute.xlu1 %2424 }
 0x6a5   : > { %2418 = vst.msk [vmem:[#allocation2 + $0x10] sm:$0xff] %vm2011_vm7, %v2416_v36 }
 0x6a6   : > { %2428 = vst.msk [vmem:[#allocation2 + $0x28] sm:$0xff] %vm2427_vm4, %v2425_v37 }
 0x6a8   : > { %v2411_v38 = vpop.permute.xlu0 %2410  ;;  %v2406_v39 = vpop.permute.xlu1 %2405  ;;  %v2438_v57 = vld [vmem:[#allocation2 + $0x20] sm:$0xff] }
 0x6a9   : > { %v2440_v40 = vld [vmem:[#allocation2 + $0x30] sm:$0xff]  ;;  %2414 = vst.msk [vmem:[#allocation2 + $0x8] sm:$0xff] %vm2413_vm6, %v2411_v38 }
 0x6aa   : > { %2409 = vst.msk [vmem:[#allocation2] sm:$0xff] %vm2408_vm10, %v2406_v39  ;;  %v2444_v42 = vpack.c.bf16 %v2440_v40, %v2440_v40 }
 0x6ab   : > { %2795 = vst.msk [vmem:[#allocation2 + $0x30] sm:$0xff] %vm11511_vm2, %v8864_v2  ;;  %2793 = vst.msk [vmem:[#allocation2 + $0x20] sm:$0xff] %vm11511_vm2, %v8864_v2 }
 0x6ac   : > { %v2454_v44 = vsel %vm2059_vm8, %v2444_v42, 0  ;;  %v2436_v52 = vld [vmem:[#allocation2 + $0x10] sm:$0xff] }
 0x6ad   : > { %7181 = vmatpush3.bf16.msra.mxu1 %v2454_v44  ;;  %v2439_v45 = vld [vmem:[#allocation2 + $0x28] sm:$0xff]  ;;  %2791 = vst.msk [vmem:[#allocation2 + $0x10] sm:$0xff] %vm11511_vm2, %v8864_v2  ;;  %v2442_v53 = vpack.c.bf16 %v2437_v49, %v2436_v52 }
 0x6ae   : > { %7182 = vmatprep.subr.bf16.mxu1 %v8864_v2  ;;  %v2443_v47 = vpack.c.bf16 %v2439_v45, %v2438_v57  ;;  %2794 = vst.msk [vmem:[#allocation2 + $0x28] sm:$0xff] %vm11511_vm2, %v8864_v2 }
 0x6b0   : > { %v2435_v51 = vld [vmem:[#allocation2 + $0x8] sm:$0xff] }
 0x6b1   : > { %7183 = vmatpush3.bf16.msra.mxu1 %v2443_v47  ;;  %v2434_v50 = vld [vmem:[#allocation2] sm:$0xff]  ;;  %2790 = vst.msk [vmem:[#allocation2 + $0x8] sm:$0xff] %vm11511_vm2, %v8864_v2 }
 0x6b2   : > { %7184 = vmatprep.subr.bf16.mxu1 %v8864_v2  ;;  %2789 = vst.msk [vmem:[#allocation2] sm:$0xff] %vm11511_vm2, %v8864_v2  ;;  %v2441_v55 = vpack.c.bf16 %v2435_v51, %v2434_v50 }
 0x6b5   : > { %7185 = vmatpush3.bf16.msra.mxu1 %v2442_v53  ;;  %v2448_v63 = vpop.permute.xlu1 %2447  ;;  %v2499_v4 = vpop.permute.xlu0 %2498 }
 0x6b6   : > { %7186 = vmatprep.subr.bf16.mxu1 %v8864_v2 }
 0x6b9   : > { %7187 = vmatpush3.bf16.msra.mxu1 %v2441_v55 }
 0x6ba   : > { %7198 = vmatprep.subr.bf16.mxu1 %v8864_v2 }
 0x6bc   : > { %7189 = vmatmul.mubr.msk.bf16.vlgmr.msra.gmra.mxu1 %vm2055_vm9, %v2275_v58 }
 0x6bd   : > { %7206 = vmatprep.mubr.msk.bf16.mxu1 %vm8885_vm0, %v8864_v2 }
 0x77c   : > { %v2490_v41 = vpop.f32.mrf.mxu1 }
 0x77d   : > { %v9696_v0 = vadd.f32 %v2490_v41, %v2448_v63 }
 0x77e   : > { %v7190_v7 = vpop.f32.mrf.mxu1 }
 0x77f   : > { %v9699_v9 = vmul.f32 %v2499_v4, %v9696_v0 }
 0x780   : > { %v2493_v10 = vpop.f32.mrf.mxu1 }
 0x781   : > { %v2505_v11 = vand.u32 2139095040, %v9699_v9  ;;  %v2502_v16 = vand.u32 2147483647, %v9699_v9 }
 0x782   : > { %v7191_v12 = vpop.f32.mrf.mxu1 }
 0x783   : > { %v2506_v13 = vshrl.u32 %v2505_v11, 23  ;;  %v2509_v19 = vand.u32 8388607, %v2502_v16 }
 0x785   : > { %v6947_v14 = vadd.s32 4294967169, %v2506_v13  ;;  %v2510_v29 = vor.u32 8388608, %v2509_v19 }
 0x787   : > { %v2512_v15 = vadd.s32 1, %v6947_v14  ;;  %v2550_v57 = vshll.u32 %v2510_v29, 8 }
 0x789   : > { %vm2513_vm3 = vcmp.gt.s32.totalorder %v2512_v15, 0 }
 0x78a   : > { %v2514_v17 = vsel %vm2513_vm3, %v2512_v15, 0  ;;  %vm2504_vm3 = vcmp.lt.s32.totalorder %v9699_v9, 0 }
 0x78b   : > { %v2516_v18 = vand.u32 31, %v2514_v17  ;;  %v2515_v20 = vshrl.u32 %v2514_v17, 5 }
 0x78d   : > { %v2517_v48 = vsub.s32 32, %v2516_v18  ;;  %v2519_v21 = vshll.u32 %v8877_v54, %v2516_v18  ;;  %v2522_v22 = vshll.u32 %v8878_v56, %v2516_v18  ;;  %v2525_v43 = vshll.u32 %v8879_v59, %v2516_v18 }
 0x78e   : > { %v2528_v26 = vshll.u32 %v8880_v62, %v2516_v18  ;;  %v2531_v27 = vshll.u32 %v8881_v3, %v2516_v18  ;;  %vm2534_vm7 = vcmp.lt.s32.totalorder %v2515_v20, 1  ;;  %vm2537_vm11 = vcmp.lt.s32.totalorder %v2515_v20, 4 }
 0x78f   : > { %v2520_v23 = vshrl.u32 %v8878_v56, %v2517_v48  ;;  %v2523_v24 = vshrl.u32 %v8879_v59, %v2517_v48  ;;  %v2526_v25 = vshrl.u32 %v8880_v62, %v2517_v48  ;;  %v2529_v60 = vshrl.u32 %v8881_v3, %v2517_v48 }
 0x790   : > { %v2532_v28 = vshrl.u32 %v8882_v6, %v2517_v48  ;;  %v2518_v36 = vshrl.u32 %v8877_v54, %v2517_v48  ;;  %vm2536_vm12 = vcmp.lt.s32.totalorder %v2515_v20, 3  ;;  %vm2535_vm13 = vcmp.lt.s32.totalorder %v2515_v20, 2 }
 0x791   : > { %v2521_v30 = vor.u32 %v2520_v23, %v2519_v21  ;;  %v2524_v31 = vor.u32 %v2523_v24, %v2522_v22  ;;  %v2527_v49 = vor.u32 %v2526_v25, %v2525_v43  ;;  %v2530_v32 = vor.u32 %v2529_v60, %v2528_v26 }
 0x792   : > { %v2533_v5 = vor.u32 %v2532_v28, %v2531_v27 }
 0x793   : > { %v2539_v33 = vsel %vm2537_vm11, %v2527_v49, 2102212464  ;;  %v2542_v34 = vsel %vm2534_vm7, %v2521_v30, %v2524_v31  ;;  %v2546_v35 = vsel %vm2534_vm7, %v2524_v31, %v2527_v49  ;;  %v2543_v37 = vsel %vm2537_vm11, %v2530_v32, 920167782 }
 0x794   : > { %v2547_v38 = vsel %vm2537_vm11, %v2533_v5, 1326507024  ;;  %v2544_v39 = vsel %vm2536_vm12, %v2527_v49, %v2543_v37  ;;  %v2538_v42 = vsel %vm2534_vm7, %v2518_v36, %v2521_v30  ;;  %v2540_v44 = vsel %vm2536_vm12, %v2524_v31, %v2539_v33 }
 0x795   : > { %v2548_v40 = vsel %vm2536_vm12, %v2530_v32, %v2547_v38  ;;  %v2545_v45 = vsel %vm2535_vm13, %v2542_v34, %v2544_v39  ;;  %v2541_v55 = vsel %vm2535_vm13, %v2538_v42, %v2540_v44  ;;  %vm2503_vm7 = vcmp.le.f32.partialorder %v2502_v16, 0.7853982  ;;  %v2609_v39 = vpop.permute.xlu1 %2608 }
 0x796   : > { %v2549_v52 = vsel %vm2535_vm13, %v2546_v35, %v2548_v40  ;;  %v9719_v51 = vmul.u32.u64.low %v2550_v57, %v2545_v45  ;;  %v9720_v53 = vmul.u32.u64.high %v2550_v57, %v2545_v45, %v9719_v51  ;;  %v2557_v61 = vmul.u32 %v2550_v57, %v2541_v55 }
 0x797   : > { %v9716_v47 = vmul.u32.u64.low %v2550_v57, %v2549_v52  ;;  %v9717_v50 = vmul.u32.u64.high %v2550_v57, %v2549_v52, %v9716_v47 }
 0x798   : > { %v2560_v58 = vadd.s32 1, %v9720_v53  ;;  %v2278_v47 = vld [vmem:[#allocation18] sm:$0xf] }
 0x799   : > { %vm2559_vm4 = vc.u32 %v9717_v50, %v9719_v51  ;;  %v2558_v18 = vadd.s32 %v9719_v51, %v9717_v50 }
 0x79a   : > { %v2561_v63 = vsel %vm2559_vm4, %v2560_v58, %v9720_v53  ;;  %vm2594_vm4 = vweird.f32 %v9699_v9 }
 0x79b   : > { %v2562_v41 = vadd.s32 %v2561_v63, %v2557_v61 }
 0x79d   : > { %v2563_v4 = vadd.s32 536870912, %v2562_v41 }
 0x79f   : > { %v2564_v7 = vshrl.u32 %v2563_v4, 30 }
 0x7a1   : > { %v2565_v10 = vshll.u32 %v2564_v7, 30  ;;  %v2588_v28 = vsub.s32 4, %v2564_v7 }
 0x7a3   : > { %v2566_v11 = vsub.s32 %v2562_v41, %v2565_v10  ;;  %v2589_v31 = vsel %vm2504_vm3, %v2588_v28, %v2564_v7 }
 0x7a4   : > { %v2591_v49 = vsel %vm2503_vm7, 0, %v2589_v31 }
 0x7a5   : > { %v2568_v12 = vsub.s32 0, %v2566_v11  ;;  %v2595_v32 = vadd.s32 3, %v2591_v49 }
 0x7a7   : > { %v6948_v13 = vmin.u32 %v2568_v12, %v2566_v11  ;;  %v2596_v5 = vand.u32 3, %v2595_v32 }
 0x7a9   : > { %v2570_v14 = vclz %v6948_v13  ;;  %vm2601_vm11 = vcmp.eq.s32.totalorder %v2596_v5, 2  ;;  %vm2598_vm12 = vcmp.eq.s32.totalorder %v2596_v5, 0  ;;  %vm2597_vm13 = vcmp.lt.s32.totalorder %v2596_v5, 2 }
 0x7ab   : > { %v6949_v15 = vadd.s32 4294967294, %v2570_v14 }
 0x7ad   : > { %vm6950_vm6 = vcmp.lt.s32.totalorder %v6949_v15, 0 }
 0x7ae   : > { %v2573_v17 = vsel %vm6950_vm6, 0, %v6949_v15 }
 0x7af   : > { %v2574_v19 = vsub.s32 32, %v2573_v17  ;;  %v2578_v48 = vsub.s32 4294967266, %v2573_v17  ;;  %v2575_v20 = vshll.u32 %v2566_v11, %v2573_v17 }
 0x7b1   : > { %v2576_v21 = vshrl.u32 %v2558_v18, %v2574_v19  ;;  %v2579_v22 = vadd.s32 127, %v2578_v48 }
 0x7b3   : > { %v2577_v23 = vor.u32 %v2576_v21, %v2575_v20  ;;  %v2580_v24 = vshll.u32 %v2579_v22, 23 }
 0x7b5   : > { %v2581_v43 = vor.u32 4788187, %v2580_v24  ;;  %v2584_v26 = vcvt.s32.f32 %v2577_v23 }
 0x7b7   : > { %v2582_v25 = vand.u32 2147483647, %v2581_v43 }
 0x7b9   : > { %v2585_v60 = vmul.f32 %v2584_v26, %v2582_v25 }
 0x7bb   : > { %v2586_v27 = vxor.u32 2147483648, %v2585_v60 }
 0x7bd   : > { %v2587_v29 = vsel %vm2504_vm3, %v2586_v27, %v2585_v60 }
 0x7be   : > { %v2590_v30 = vsel %vm2503_vm7, %v9699_v9, %v2587_v29  ;;  %v2617_v9 = vpop.permute.xlu1 %2616 }
 0x7bf   : > { %7900 = vcosq.f32 %v2590_v30 }
 0x7c0   : > { %7902 = vsinq.f32 %v2590_v30 }
 0x7cc   : > { %v7901_v33 = vpop.eup %7900 }
 0x7cd   : > { %v7903_v34 = vpop.eup %7902  ;;  %v2602_v35 = vxor.u32 2147483648, %v7901_v33 }
 0x7ce   : > { %v2599_v36 = vxor.u32 2147483648, %v7903_v34 }
 0x7cf   : > { %v2603_v37 = vsel %vm2601_vm11, %v2602_v35, %v7903_v34 }
 0x7d0   : > { %v2600_v38 = vsel %vm2598_vm12, %v7901_v33, %v2599_v36 }
 0x7d1   : > { %v2604_v16 = vsel %vm2597_vm13, %v2600_v38, %v2603_v37 }
 0x7d2   : > { %v2605_v40 = vsel %vm2594_vm4, nan, %v2604_v16 }
 0x7d3   : > { %v2606_v57 = vmul.f32 %v2605_v40, %v2605_v40 }
 0x7d5   : > { %v2611_v42 = vmul.f32 %v2609_v39, %v2606_v57 }
 0x7d7   : > { %v2612_v44 = vadd.f32 %v2611_v42, %v9696_v0  ;;  %v2675_v0 = vpop.permute.xlu0 %2674 }
 0x7d9   : > { %v2613_v45 = vpack.c.bf16 %v2612_v44, %v2612_v44 }
 0x7db   : > { %v2623_v52 = vsel %vm2059_vm8, %v2613_v45, 0 }
 0x7dc   : > { %7193 = vmatpush3.bf16.msra.mxu0 %v2623_v52 }
 0x7dd   : > { %7210 = vmatprep.subr.bf16.mxu0 %v8864_v2 }
 0x7df   : > { %7195 = vmatmul.mubr.msk.bf16.vlgmr.msra.gmra.mxu0 %vm2226_vm15, %v2278_v47 }
 0x7e0   : > { %7212 = vmatprep.mubr.msk.bf16.mxu0 %vm8885_vm0, %v8864_v2 }
 0x89f   : > { %v2659_v50 = vpop.f32.mrf.mxu0 }
 0x8a0   : > { %v2660_v51 = vadd.f32 %v2659_v50, %v2617_v9 }
 0x8a1   : > { %v7196_v53 = vpop.f32.mrf.mxu0 }
 0x8a2   : > { %v9738_v55 = vadd.f32 %v2660_v51, %v9621_v46 }
 0x8a3   : > { %v2662_v58 = vpop.f32.mrf.mxu0 }
 0x8a4   : > { %v9741_v61 = vmul.f32 %v2675_v0, %v9738_v55 }
 0x8a5   : > { %v7197_v63 = vpop.f32.mrf.mxu0 }
 0x8a6   : > { %v2681_v41 = vand.u32 2139095040, %v9741_v61  ;;  %v2678_v11 = vand.u32 2147483647, %v9741_v61 }
 0x8a8   : > { %v2682_v4 = vshrl.u32 %v2681_v41, 23  ;;  %v2685_v46 = vand.u32 8388607, %v2678_v11 }
 0x8aa   : > { %v6952_v7 = vadd.s32 4294967169, %v2682_v4  ;;  %v2686_v25 = vor.u32 8388608, %v2685_v46 }
 0x8ac   : > { %v2688_v10 = vadd.s32 1, %v6952_v7  ;;  %v2726_v36 = vshll.u32 %v2686_v25, 8 }
 0x8ae   : > { %vm2689_vm6 = vcmp.gt.s32.totalorder %v2688_v10, 0 }
 0x8af   : > { %v2690_v12 = vsel %vm2689_vm6, %v2688_v10, 0  ;;  %vm2680_vm6 = vcmp.lt.s32.totalorder %v9741_v61, 0 }
 0x8b0   : > { %v2692_v13 = vand.u32 31, %v2690_v12  ;;  %v2691_v15 = vshrl.u32 %v2690_v12, 5 }
 0x8b2   : > { %v2693_v14 = vsub.s32 32, %v2692_v13  ;;  %v2695_v17 = vshll.u32 %v8877_v54, %v2692_v13  ;;  %v2698_v18 = vshll.u32 %v8878_v56, %v2692_v13  ;;  %v2701_v20 = vshll.u32 %v8879_v59, %v2692_v13 }
 0x8b3   : > { %v2704_v22 = vshll.u32 %v8880_v62, %v2692_v13  ;;  %v2707_v24 = vshll.u32 %v8881_v3, %v2692_v13  ;;  %vm2710_vm3 = vcmp.lt.s32.totalorder %v2691_v15, 1  ;;  %vm2713_vm7 = vcmp.lt.s32.totalorder %v2691_v15, 4 }
 0x8b4   : > { %v2696_v19 = vshrl.u32 %v8878_v56, %v2693_v14  ;;  %v2699_v48 = vshrl.u32 %v8879_v59, %v2693_v14  ;;  %v2702_v21 = vshrl.u32 %v8880_v62, %v2693_v14  ;;  %v2705_v23 = vshrl.u32 %v8881_v3, %v2693_v14 }
 0x8b5   : > { %v2708_v43 = vshrl.u32 %v8882_v6, %v2693_v14  ;;  %v2694_v32 = vshrl.u32 %v8877_v54, %v2693_v14  ;;  %vm2712_vm11 = vcmp.lt.s32.totalorder %v2691_v15, 3  ;;  %vm2711_vm12 = vcmp.lt.s32.totalorder %v2691_v15, 2 }
 0x8b6   : > { %v2697_v26 = vor.u32 %v2696_v19, %v2695_v17  ;;  %v2700_v60 = vor.u32 %v2699_v48, %v2698_v18  ;;  %v2703_v27 = vor.u32 %v2702_v21, %v2701_v20  ;;  %v2706_v28 = vor.u32 %v2705_v23, %v2704_v22 }
 0x8b7   : > { %v2709_v29 = vor.u32 %v2708_v43, %v2707_v24 }
 0x8b8   : > { %v2715_v30 = vsel %vm2713_vm7, %v2703_v27, 2102212464  ;;  %v2718_v31 = vsel %vm2710_vm3, %v2697_v26, %v2700_v60  ;;  %v2722_v49 = vsel %vm2710_vm3, %v2700_v60, %v2703_v27  ;;  %v2719_v5 = vsel %vm2713_vm7, %v2706_v28, 920167782 }
 0x8b9   : > { %v2723_v33 = vsel %vm2713_vm7, %v2709_v29, 1326507024  ;;  %v2720_v34 = vsel %vm2712_vm11, %v2703_v27, %v2719_v5  ;;  %v2714_v37 = vsel %vm2710_vm3, %v2694_v32, %v2697_v26  ;;  %v2716_v38 = vsel %vm2712_vm11, %v2700_v60, %v2715_v30 }
 0x8ba   : > { %v2724_v35 = vsel %vm2712_vm11, %v2706_v28, %v2723_v33  ;;  %v2721_v16 = vsel %vm2711_vm12, %v2718_v31, %v2720_v34  ;;  %v2717_v45 = vsel %vm2711_vm12, %v2714_v37, %v2716_v38  ;;  %vm2679_vm3 = vcmp.le.f32.partialorder %v2678_v11, 0.7853982  ;;  %v2785_v33 = vpop.permute.xlu1 %2784  ;;  %v2668_v38 = vld [vmem:[#allocation23] sm:$0xff] }
 0x8bb   : > { %v2725_v39 = vsel %vm2711_vm12, %v2722_v49, %v2724_v35  ;;  %v9761_v42 = vmul.u32.u64.low %v2726_v36, %v2721_v16  ;;  %v9762_v44 = vmul.u32.u64.high %v2726_v36, %v2721_v16, %v9761_v42  ;;  %v2733_v47 = vmul.u32 %v2726_v36, %v2717_v45  ;;  %v2669_v16 = vld [vmem:[%s11636_s12] sm:$0xff]  ;;  %s11641_s12 = smov 125  }
 0x8bc   : > { %v9758_v40 = vmul.u32.u64.low %v2726_v36, %v2725_v39  ;;  %v9759_v57 = vmul.u32.u64.high %v2726_v36, %v2725_v39, %v9758_v40  ;;  %v2671_v39 = vld [vmem:[#allocation26] sm:$0xff] }
 0x8bd   : > { %v2736_v52 = vadd.s32 1, %v9762_v44  ;;  %v3058_v40 = vld [vmem:[%s11637_s6] sm:$0xff]  ;;  %s11640_s6 = sld [smem:[#allocation78_spill]] }
 0x8be   : > { %vm2735_vm13 = vc.u32 %v9759_v57, %v9761_v42  ;;  %v2734_v12 = vadd.s32 %v9761_v42, %v9759_v57 }
 0x8bf   : > { %v2737_v9 = vsel %vm2735_vm13, %v2736_v52, %v9762_v44  ;;  %vm2770_vm13 = vweird.f32 %v9741_v61 }
 0x8c0   : > { %v2738_v50 = vadd.s32 %v2737_v9, %v2733_v47 }
 0x8c2   : > { %v2739_v51 = vadd.s32 536870912, %v2738_v50 }
 0x8c4   : > { %v2740_v53 = vshrl.u32 %v2739_v51, 30 }
 0x8c6   : > { %v2741_v0 = vshll.u32 %v2740_v53, 30  ;;  %v2764_v24 = vsub.s32 4, %v2740_v53 }
 0x8c8   : > { %v2742_v58 = vsub.s32 %v2738_v50, %v2741_v0  ;;  %v2765_v26 = vsel %vm2680_vm6, %v2764_v24, %v2740_v53 }
 0x8c9   : > { %v2767_v60 = vsel %vm2679_vm3, 0, %v2765_v26 }
 0x8ca   : > { %v2744_v63 = vsub.s32 0, %v2742_v58  ;;  %v2771_v27 = vadd.s32 3, %v2767_v60 }
 0x8cc   : > { %v6953_v41 = vmin.u32 %v2744_v63, %v2742_v58  ;;  %v2772_v28 = vand.u32 3, %v2771_v27 }
 0x8ce   : > { %v2746_v4 = vclz %v6953_v41  ;;  %vm2777_vm7 = vcmp.eq.s32.totalorder %v2772_v28, 2  ;;  %vm2774_vm11 = vcmp.eq.s32.totalorder %v2772_v28, 0  ;;  %vm2773_vm12 = vcmp.lt.s32.totalorder %v2772_v28, 2 }
 0x8d0   : > { %v6954_v7 = vadd.s32 4294967294, %v2746_v4 }
 0x8d2   : > { %vm6955_vm4 = vcmp.lt.s32.totalorder %v6954_v7, 0 }
 0x8d3   : > { %v2749_v10 = vsel %vm6955_vm4, 0, %v6954_v7  ;;  %vm3324_vm4 = vcmask 261120  }
 0x8d4   : > { %v2750_v13 = vsub.s32 32, %v2749_v10  ;;  %v2754_v14 = vsub.s32 4294967266, %v2749_v10  ;;  %v2751_v46 = vshll.u32 %v2742_v58, %v2749_v10  ;;  %3622 = vst.msk [vmem:[#allocation2 + $0x38] sm:$0xff] %vm3324_vm4, %v8864_v2  ;;  %3623 = vst.msk [vmem:[#allocation2 + $0x40] sm:$0xff] %vm3324_vm4, %v8864_v2 }
 0x8d5   : > { %3624 = vst.msk [vmem:[#allocation2 + $0x48] sm:$0xff] %vm3324_vm4, %v8864_v2  ;;  %3625 = vst.msk [vmem:[#allocation2 + $0x50] sm:$0xff] %vm3324_vm4, %v8864_v2 }
 0x8d6   : > { %v2752_v15 = vshrl.u32 %v2734_v12, %v2750_v13  ;;  %v2755_v17 = vadd.s32 127, %v2754_v14  ;;  %3626 = vst.msk [vmem:[#allocation2 + $0x58] sm:$0xff] %vm3324_vm4, %v8864_v2  ;;  %3627 = vst.msk [vmem:[#allocation2 + $0x60] sm:$0xff] %vm3324_vm4, %v8864_v2  ;;  %v2667_v12 = vld [vmem:[#allocation21] sm:$0xf] }
 0x8d7   : > { %3628 = vst.msk [vmem:[#allocation2 + $0x68] sm:$0xff] %vm3324_vm4, %v8864_v2 }
 0x8d8   : > { %v2753_v18 = vor.u32 %v2752_v15, %v2751_v46  ;;  %v2756_v19 = vshll.u32 %v2755_v17, 23 }
 0x8da   : > { %v2757_v48 = vor.u32 4788187, %v2756_v19  ;;  %v2760_v21 = vcvt.s32.f32 %v2753_v18 }
 0x8dc   : > { %v2758_v20 = vand.u32 2147483647, %v2757_v48 }
 0x8de   : > { %v2761_v22 = vmul.f32 %v2760_v21, %v2758_v20 }
 0x8e0   : > { %v2762_v23 = vxor.u32 2147483648, %v2761_v22 }
 0x8e2   : > { %v2763_v43 = vsel %vm2680_vm6, %v2762_v23, %v2761_v22  ;;  %vm2824_vm6 = vcmask 302080  }
 0x8e3   : > { %v2766_v25 = vsel %vm2679_vm3, %v9741_v61, %v2763_v43  ;;  %vm2819_vm3 = vcmask 375808  }
 0x8e4   : > { %7904 = vcosq.f32 %v2766_v25 }
 0x8e5   : > { %7906 = vsinq.f32 %v2766_v25 }
 0x8f1   : > { %v7905_v29 = vpop.eup %7904 }
 0x8f2   : > { %v7907_v30 = vpop.eup %7906  ;;  %v2778_v31 = vxor.u32 2147483648, %v7905_v29 }
 0x8f3   : > { %v2775_v49 = vxor.u32 2147483648, %v7907_v30 }
 0x8f4   : > { %v2779_v32 = vsel %vm2777_vm7, %v2778_v31, %v7907_v30  ;;  %vm2805_vm7 = vcmask 523408  }
 0x8f5   : > { %v2776_v5 = vsel %vm2774_vm11, %v7905_v29, %v2775_v49  ;;  %vm2800_vm11 = vcmask 523480  }
 0x8f6   : > { %v2780_v11 = vsel %vm2773_vm12, %v2776_v5, %v2779_v32 }
 0x8f7   : > { %v2781_v34 = vsel %vm2770_vm13, nan, %v2780_v11 }
 0x8f8   : > { %v2782_v35 = vmul.f32 %v2781_v34, %v2781_v34 }
 0x8fa   : > { %v2787_v36 = vmul.f32 %v2785_v33, %v2782_v35 }
 0x8fc   : > { %v2788_v37 = vadd.f32 %v2787_v36, %v9738_v55 }
 0x8fe   : > { %2811 = vst.msk [vmem:[#allocation2 + $0x18] sm:$0xff] %vm11511_vm2, %v2788_v37  ;;  %2812 = vrot.lane.b32.xlu1 %v2788_v37, %s11522_s16  ;;  %2821 = vrot.lane.b32.xlu0 %v2788_v37, %s11509_s8  ;;  %s11644_s8 = smov 3  }
 0x902   : > { %2807 = vrot.lane.b32.xlu1 %v2788_v37, %s11524_s5  ;;  %2816 = vrot.lane.b32.xlu0 %v2788_v37, %s11520_s18 }
 0x905   : > { %v2829_v61 = vld [vmem:[#allocation2 + $0x18] sm:$0xff] }
 0x906   : > { %2802 = vrot.lane.b32.xlu1 %v2788_v37, %s11507_s9  ;;  %2797 = vrot.lane.b32.xlu0 %v2788_v37, %s11505_s10  ;;  %3183 = vst.msk [vmem:[#allocation2 + $0x18] sm:$0xff] %vm2027_vm1, %v8864_v2  ;;  %s11642_s10 = sld [smem:[#allocation80_spill]]  ;;  %s11643_s9 = smov 2  }
 0x90a   : > { %2839 = vperm.xlu0 %7841, %v2668_v38   ;;  %2890 = vperm.xlu1 %7845, %v2669_v16  }
 0x90e   : > { %7846 = vset.pattern.permute.xlu0 %v8863_v1  ;;  %3008 = vperm.xlu1 %7845, %v2671_v39  }
 0x90f   : > { %3000 = vperm.xlu0 %7846, %v2669_v16  }
 0x912   : > { %3065 = vperm.xlu1 %7845, %v3058_v40  }
 0x913   : > { %3175 = vperm.xlu0 %7846, %v3058_v40  }
 0x917   : > { %7847 = vset.pattern.permute.xlu0 %v8869_v8 }
 0x970   : > { %v2813_v57 = vpop.permute.xlu1 %2812  ;;  %v2822_v42 = vpop.permute.xlu0 %2821 }
 0x971   : > { %2815 = vst.msk [vmem:[#allocation2 + $0x20] sm:$0xff] %vm2432_vm14, %v2813_v57 }
 0x972   : > { %2825 = vst.msk [vmem:[#allocation2 + $0x30] sm:$0xff] %vm2824_vm6, %v2822_v42 }
 0x974   : > { %v2808_v44 = vpop.permute.xlu1 %2807  ;;  %v2817_v45 = vpop.permute.xlu0 %2816 }
 0x975   : > { %2810 = vst.msk [vmem:[#allocation2 + $0x10] sm:$0xff] %vm2408_vm10, %v2808_v44 }
 0x976   : > { %2820 = vst.msk [vmem:[#allocation2 + $0x28] sm:$0xff] %vm2819_vm3, %v2817_v45 }
 0x978   : > { %v2803_v52 = vpop.permute.xlu1 %2802  ;;  %v2798_v47 = vpop.permute.xlu0 %2797  ;;  %v2830_v50 = vld [vmem:[#allocation2 + $0x20] sm:$0xff] }
 0x979   : > { %v2832_v9 = vld [vmem:[#allocation2 + $0x30] sm:$0xff]  ;;  %2806 = vst.msk [vmem:[#allocation2 + $0x8] sm:$0xff] %vm2805_vm7, %v2803_v52 }
 0x97a   : > { %2801 = vst.msk [vmem:[#allocation2] sm:$0xff] %vm2800_vm11, %v2798_v47  ;;  %v2836_v51 = vpack.c.bf16 %v2832_v9, %v2832_v9 }
 0x97b   : > { %3621 = vst.msk [vmem:[#allocation2 + $0x30] sm:$0xff] %vm3324_vm4, %v8864_v2  ;;  %3619 = vst.msk [vmem:[#allocation2 + $0x20] sm:$0xff] %vm3324_vm4, %v8864_v2 }
 0x97c   : > { %v2846_v53 = vsel %vm2059_vm8, %v2836_v51, 0  ;;  %v2828_v58 = vld [vmem:[#allocation2 + $0x10] sm:$0xff] }
 0x97d   : > { %7199 = vmatpush3.bf16.msra.mxu1 %v2846_v53  ;;  %v2831_v0 = vld [vmem:[#allocation2 + $0x28] sm:$0xff]  ;;  %3182 = vst.msk [vmem:[#allocation2 + $0x10] sm:$0xff] %vm2027_vm1, %v8864_v2  ;;  %v2834_v7 = vpack.c.bf16 %v2829_v61, %v2828_v58 }
 0x97e   : > { %7200 = vmatprep.subr.bf16.mxu1 %v8864_v2  ;;  %v2835_v63 = vpack.c.bf16 %v2831_v0, %v2830_v50  ;;  %3620 = vst.msk [vmem:[#allocation2 + $0x28] sm:$0xff] %vm3324_vm4, %v8864_v2 }
 0x980   : > { %v2827_v4 = vld [vmem:[#allocation2 + $0x8] sm:$0xff] }
 0x981   : > { %7201 = vmatpush3.bf16.msra.mxu1 %v2835_v63  ;;  %v2826_v41 = vld [vmem:[#allocation2] sm:$0xff]  ;;  %3181 = vst.msk [vmem:[#allocation2 + $0x8] sm:$0xff] %vm2027_vm1, %v8864_v2 }
 0x982   : > { %7202 = vmatprep.subr.bf16.mxu1 %v8864_v2  ;;  %3180 = vst.msk [vmem:[#allocation2] sm:$0xff] %vm2027_vm1, %v8864_v2  ;;  %v2833_v10 = vpack.c.bf16 %v2827_v4, %v2826_v41 }
 0x985   : > { %7203 = vmatpush3.bf16.msra.mxu1 %v2834_v7  ;;  %v2840_v13 = vpop.permute.xlu0 %2839  ;;  %v2891_v15 = vpop.permute.xlu1 %2890 }
 0x986   : > { %7204 = vmatprep.subr.bf16.mxu1 %v8864_v2 }
 0x989   : > { %7205 = vmatpush3.bf16.msra.mxu1 %v2833_v10 }
 0x98a   : > { %7236 = vmatprep.subr.bf16.mxu1 %v8864_v2 }
 0x98c   : > { %7207 = vmatmul.mubr.msk.bf16.vlgmr.msra.gmra.mxu1 %vm2055_vm9, %v2667_v12 }
 0x98d   : > { %7250 = vmatprep.mubr.msk.bf16.mxu1 %vm8885_vm0, %v8864_v2 }
 0xa4c   : > { %v2882_v14 = vpop.f32.mrf.mxu1 }
 0xa4d   : > { %v9823_v46 = vadd.f32 %v2882_v14, %v2840_v13 }
 0xa4e   : > { %v7208_v17 = vpop.f32.mrf.mxu1 }
 0xa4f   : > { %v9826_v18 = vmul.f32 %v2891_v15, %v9823_v46 }
 0xa50   : > { %v2885_v19 = vpop.f32.mrf.mxu1 }
 0xa51   : > { %v2897_v48 = vand.u32 2139095040, %v9826_v18  ;;  %v2894_v21 = vand.u32 2147483647, %v9826_v18  ;;  %vm2896_vm7 = vcmp.lt.s32.totalorder %v9826_v18, 0 }
 0xa52   : > { %v7209_v20 = vpop.f32.mrf.mxu1 }
 0xa53   : > { %v2898_v22 = vshrl.u32 %v2897_v48, 23  ;;  %v2901_v24 = vand.u32 8388607, %v2894_v21  ;;  %vm2895_vm11 = vcmp.le.f32.partialorder %v2894_v21, 0.7853982 }
 0xa55   : > { %v6957_v23 = vadd.s32 4294967169, %v2898_v22  ;;  %v2902_v26 = vor.u32 8388608, %v2901_v24 }
 0xa57   : > { %v2904_v43 = vadd.s32 1, %v6957_v23  ;;  %v2942_v31 = vshll.u32 %v2902_v26, 8 }
 0xa59   : > { %vm2905_vm9 = vcmp.gt.s32.totalorder %v2904_v43, 0 }
 0xa5a   : > { %v2906_v25 = vsel %vm2905_vm9, %v2904_v43, 0 }
 0xa5b   : > { %v2908_v60 = vand.u32 31, %v2906_v25  ;;  %v2907_v27 = vshrl.u32 %v2906_v25, 5 }
 0xa5d   : > { %v2909_v28 = vsub.s32 32, %v2908_v60  ;;  %v2920_v29 = vshll.u32 %v8880_v62, %v2908_v60  ;;  %v2923_v30 = vshll.u32 %v8881_v3, %v2908_v60  ;;  %v2911_v5 = vshll.u32 %v8877_v54, %v2908_v60 }
 0xa5e   : > { %v2914_v33 = vshll.u32 %v8878_v56, %v2908_v60  ;;  %v2917_v35 = vshll.u32 %v8879_v59, %v2908_v60  ;;  %vm2929_vm14 = vcmp.lt.s32.totalorder %v2907_v27, 4  ;;  %vm2926_vm10 = vcmp.lt.s32.totalorder %v2907_v27, 1 }
 0xa5f   : > { %v2921_v49 = vshrl.u32 %v8881_v3, %v2909_v28  ;;  %v2924_v32 = vshrl.u32 %v8882_v6, %v2909_v28  ;;  %v2912_v11 = vshrl.u32 %v8878_v56, %v2909_v28  ;;  %v2915_v34 = vshrl.u32 %v8879_v59, %v2909_v28 }
 0xa60   : > { %v2918_v36 = vshrl.u32 %v8880_v62, %v2909_v28  ;;  %v2910_v16 = vshrl.u32 %v8877_v54, %v2909_v28  ;;  %vm2927_vm12 = vcmp.lt.s32.totalorder %v2907_v27, 2  ;;  %vm2928_vm13 = vcmp.lt.s32.totalorder %v2907_v27, 3 }
 0xa61   : > { %v2922_v37 = vor.u32 %v2921_v49, %v2920_v29  ;;  %v2925_v61 = vor.u32 %v2924_v32, %v2923_v30  ;;  %v2913_v38 = vor.u32 %v2912_v11, %v2911_v5  ;;  %v2916_v39 = vor.u32 %v2915_v34, %v2914_v33 }
 0xa62   : > { %v2919_v40 = vor.u32 %v2918_v36, %v2917_v35 }
 0xa63   : > { %v2935_v57 = vsel %vm2929_vm14, %v2922_v37, 920167782  ;;  %v2939_v42 = vsel %vm2929_vm14, %v2925_v61, 1326507024  ;;  %v2934_v45 = vsel %vm2926_vm10, %v2913_v38, %v2916_v39  ;;  %v2930_v9 = vsel %vm2926_vm10, %v2910_v16, %v2913_v38 }
 0xa64   : > { %v2931_v44 = vsel %vm2929_vm14, %v2919_v40, 2102212464  ;;  %v2936_v52 = vsel %vm2928_vm13, %v2919_v40, %v2935_v57  ;;  %v2938_v47 = vsel %vm2926_vm10, %v2916_v39, %v2919_v40  ;;  %v2940_v53 = vsel %vm2928_vm13, %v2922_v37, %v2939_v42 }
 0xa65   : > { %v2932_v50 = vsel %vm2928_vm13, %v2916_v39, %v2931_v44  ;;  %v2937_v51 = vsel %vm2927_vm12, %v2934_v45, %v2936_v52  ;;  %v2941_v0 = vsel %vm2927_vm12, %v2938_v47, %v2940_v53  ;;  %vm3251_vm13 = vcmask 1046528  }
 0xa66   : > { %v9843_v58 = vmul.u32.u64.low %v2942_v31, %v2937_v51  ;;  %v9844_v63 = vmul.u32.u64.high %v2942_v31, %v2937_v51, %v9843_v58  ;;  %v9846_v41 = vmul.u32.u64.low %v2942_v31, %v2941_v0  ;;  %v9847_v4 = vmul.u32.u64.high %v2942_v31, %v2941_v0, %v9846_v41 }
 0xa67   : > { %v2933_v7 = vsel %vm2927_vm12, %v2930_v9, %v2932_v50  ;;  %vm2986_vm12 = vweird.f32 %v9826_v18  ;;  %v3001_v9 = vpop.permute.xlu0 %3000 }
 0xa68   : > { %v2952_v10 = vadd.s32 1, %v9844_v63  ;;  %v2949_v12 = vmul.u32 %v2942_v31, %v2933_v7  ;;  %vm2951_vm6 = vc.u32 %v9847_v4, %v9843_v58  ;;  %v2950_v25 = vadd.s32 %v9843_v58, %v9847_v4  ;;  %v2670_v58 = vld [vmem:[#allocation24] sm:$0xf] }
 0xa6a   : > { %v2953_v13 = vsel %vm2951_vm6, %v2952_v10, %v9844_v63  ;;  %v3205_v63 = vlaneseq  ;;  %vm3252_vm6 = vcmask 1047552  }
 0xa6b   : > { %v2954_v14 = vadd.s32 %v2953_v13, %v2949_v12 }
 0xa6c   : > { %v9861_v41 = vshrl.u32 %v3205_v63, 7  ;;  %v3215_v4 = vand.u32 127, %v3205_v63 }
 0xa6d   : > { %v2955_v15 = vadd.s32 536870912, %v2954_v14 }
 0xa6e   : > { %v3213_v7 = vadd.s32 56, %v9861_v41  ;;  %v9865_v10 = vmul.u32 2, %v3215_v4 }
 0xa6f   : > { %v2956_v17 = vshrl.u32 %v2955_v15, 30 }
 0xa71   : > { %v2957_v19 = vshll.u32 %v2956_v17, 30  ;;  %v2980_v34 = vsub.s32 4, %v2956_v17 }
 0xa73   : > { %v2958_v48 = vsub.s32 %v2954_v14, %v2957_v19  ;;  %v2981_v37 = vsel %vm2896_vm7, %v2980_v34, %v2956_v17 }
 0xa74   : > { %v2983_v61 = vsel %vm2895_vm11, 0, %v2981_v37 }
 0xa75   : > { %v2960_v20 = vsub.s32 0, %v2958_v48  ;;  %v2987_v38 = vadd.s32 3, %v2983_v61 }
 0xa77   : > { %v6958_v22 = vmin.u32 %v2960_v20, %v2958_v48  ;;  %v2988_v16 = vand.u32 3, %v2987_v38 }
 0xa79   : > { %v2962_v23 = vclz %v6958_v22  ;;  %vm2993_vm9 = vcmp.eq.s32.totalorder %v2988_v16, 2  ;;  %vm2990_vm14 = vcmp.eq.s32.totalorder %v2988_v16, 0  ;;  %vm2989_vm10 = vcmp.lt.s32.totalorder %v2988_v16, 2 }
 0xa7b   : > { %v6959_v24 = vadd.s32 4294967294, %v2962_v23 }
 0xa7d   : > { %vm6960_vm3 = vcmp.lt.s32.totalorder %v6959_v24, 0 }
 0xa7e   : > { %v2965_v43 = vsel %vm6960_vm3, 0, %v6959_v24  ;;  %vm3224_vm3 = vcmp.eq.s32.totalorder %v3213_v7, %v9865_v10 }
 0xa7f   : > { %v2966_v26 = vsub.s32 32, %v2965_v43  ;;  %v2970_v60 = vsub.s32 4294967266, %v2965_v43  ;;  %v2967_v27 = vshll.u32 %v2958_v48, %v2965_v43  ;;  %v6973_v14 = vsel %vm3224_vm3, 1.0, %v8864_v2  ;;  %v3009_v48 = vpop.permute.xlu1 %3008 }
 0xa81   : > { %v2968_v28 = vshrl.u32 %v2950_v25, %v2966_v26  ;;  %v2971_v29 = vadd.s32 127, %v2970_v60 }
 0xa83   : > { %v2969_v30 = vor.u32 %v2968_v28, %v2967_v27  ;;  %v2972_v31 = vshll.u32 %v2971_v29, 23  ;;  %v3066_v43 = vpop.permute.xlu1 %3065 }
 0xa85   : > { %v2973_v49 = vor.u32 4788187, %v2972_v31  ;;  %v2976_v5 = vcvt.s32.f32 %v2969_v30 }
 0xa87   : > { %v2974_v32 = vand.u32 2147483647, %v2973_v49 }
 0xa89   : > { %v2977_v11 = vmul.f32 %v2976_v5, %v2974_v32 }
 0xa8b   : > { %v2978_v33 = vxor.u32 2147483648, %v2977_v11 }
 0xa8d   : > { %v2979_v35 = vsel %vm2896_vm7, %v2978_v33, %v2977_v11 }
 0xa8e   : > { %v2982_v36 = vsel %vm2895_vm11, %v9826_v18, %v2979_v35  ;;  %v3212_v18 = vadd.s32 48, %v9861_v41 }
 0xa8f   : > { %7908 = vcosq.f32 %v2982_v36 }
 0xa90   : > { %7910 = vsinq.f32 %v2982_v36 }
 0xa9c   : > { %v7909_v39 = vpop.eup %7908 }
 0xa9d   : > { %v7911_v40 = vpop.eup %7910  ;;  %v2994_v57 = vxor.u32 2147483648, %v7909_v39 }
 0xa9e   : > { %v2991_v42 = vxor.u32 2147483648, %v7911_v40 }
 0xa9f   : > { %v2995_v44 = vsel %vm2993_vm9, %v2994_v57, %v7911_v40 }
 0xaa0   : > { %v2992_v45 = vsel %vm2990_vm14, %v7909_v39, %v2991_v42 }
 0xaa1   : > { %v2996_v21 = vsel %vm2989_vm10, %v2992_v45, %v2995_v44 }
 0xaa2   : > { %v2997_v52 = vsel %vm2986_vm12, nan, %v2996_v21 }
 0xaa3   : > { %v2998_v47 = vmul.f32 %v2997_v52, %v2997_v52 }
 0xaa5   : > { %v3003_v50 = vmul.f32 %v3001_v9, %v2998_v47 }
 0xaa7   : > { %v3004_v51 = vadd.f32 %v3003_v50, %v9823_v46  ;;  %v8893_v46 = vmov 65535  }
 0xaa8   : > { %v3253_v12 = vsel %vm3251_vm13, 4294967295, %v8893_v46 }
 0xaa9   : > { %v3005_v53 = vpack.c.bf16 %v3004_v51, %v3004_v51  ;;  %v9871_v15 = vsel %vm3252_vm6, %v3253_v12, 0 }
 0xaab   : > { %v3015_v0 = vsel %vm2059_vm8, %v3005_v53, 0  ;;  %vm3223_vm8 = vcmp.eq.s32.totalorder %v3212_v18, %v9865_v10 }
 0xaac   : > { %7211 = vmatpush3.bf16.msra.mxu0 %v3015_v0  ;;  %v6972_v13 = vsel %vm3223_vm8, 1.0, %v8864_v2 }
 0xaad   : > { %v3244_v17 = vpack.c.bf16 %v6973_v14, %v6972_v13 }
 0xaaf   : > { %7213 = vmatmul.mubr.msk.bf16.vlgmr.msra.gmra.mxu0 %vm2226_vm15, %v2670_v58  ;;  %v3256_v19 = vand.u32 %v9871_v15, %v3244_v17 }
 0xab1   : > { %7216 = vmatprep.subr.bf16.mxu0 %v3256_v19 }
 0xab2   : > { %7217 = vmatpush3.bf16.msra.mxu0 %v3256_v19 }
 0xb6f   : > { %v3051_v20 = vpop.f32.mrf.mxu0 }
 0xb70   : > { %v3052_v22 = vadd.f32 %v3051_v20, %v3009_v48 }
 0xb71   : > { %v7214_v23 = vpop.f32.mrf.mxu0 }
 0xb72   : > { %v9875_v24 = vadd.f32 %v3052_v22, %v9738_v55 }
 0xb73   : > { %v3054_v25 = vpop.f32.mrf.mxu0 }
 0xb74   : > { %v9878_v26 = vmul.f32 %v3066_v43, %v9875_v24 }
 0xb75   : > { %v7215_v60 = vpop.f32.mrf.mxu0 }
 0xb76   : > { %v3072_v27 = vand.u32 2139095040, %v9878_v26  ;;  %v3069_v31 = vand.u32 2147483647, %v9878_v26  ;;  %vm3071_vm13 = vcmp.lt.s32.totalorder %v9878_v26, 0 }
 0xb78   : > { %v3073_v28 = vshrl.u32 %v3072_v27, 23  ;;  %v3076_v55 = vand.u32 8388607, %v3069_v31  ;;  %vm3070_vm6 = vcmp.le.f32.partialorder %v3069_v31, 0.7853982 }
 0xb7a   : > { %v6962_v29 = vadd.s32 4294967169, %v3073_v28  ;;  %v3077_v57 = vor.u32 8388608, %v3076_v55 }
 0xb7c   : > { %v3079_v30 = vadd.s32 1, %v6962_v29  ;;  %v3117_v4 = vshll.u32 %v3077_v57, 8 }
 0xb7e   : > { %vm3080_vm15 = vcmp.gt.s32.totalorder %v3079_v30, 0 }
 0xb7f   : > { %v3081_v49 = vsel %vm3080_vm15, %v3079_v30, 0 }
 0xb80   : > { %v3083_v32 = vand.u32 31, %v3081_v49  ;;  %v3082_v11 = vshrl.u32 %v3081_v49, 5 }
 0xb82   : > { %v3084_v5 = vsub.s32 32, %v3083_v32  ;;  %v3086_v33 = vshll.u32 %v8877_v54, %v3083_v32  ;;  %v3089_v34 = vshll.u32 %v8878_v56, %v3083_v32  ;;  %v3092_v37 = vshll.u32 %v8879_v59, %v3083_v32 }
 0xb83   : > { %v3095_v38 = vshll.u32 %v8880_v62, %v3083_v32  ;;  %v3098_v39 = vshll.u32 %v8881_v3, %v3083_v32  ;;  %vm3101_vm7 = vcmp.lt.s32.totalorder %v3082_v11, 1  ;;  %vm3104_vm11 = vcmp.lt.s32.totalorder %v3082_v11, 4 }
 0xb84   : > { %v3087_v35 = vshrl.u32 %v8878_v56, %v3084_v5  ;;  %v3090_v36 = vshrl.u32 %v8879_v59, %v3084_v5  ;;  %v3093_v61 = vshrl.u32 %v8880_v62, %v3084_v5  ;;  %v3096_v16 = vshrl.u32 %v8881_v3, %v3084_v5 }
 0xb85   : > { %v3099_v40 = vshrl.u32 %v8882_v6, %v3084_v5  ;;  %v3085_v51 = vshrl.u32 %v8877_v54, %v3084_v5  ;;  %vm3103_vm9 = vcmp.lt.s32.totalorder %v3082_v11, 3  ;;  %vm3102_vm14 = vcmp.lt.s32.totalorder %v3082_v11, 2 }
 0xb86   : > { %v3088_v42 = vor.u32 %v3087_v35, %v3086_v33  ;;  %v3091_v44 = vor.u32 %v3090_v36, %v3089_v34  ;;  %v3094_v45 = vor.u32 %v3093_v61, %v3092_v37  ;;  %v3097_v21 = vor.u32 %v3096_v16, %v3095_v38 }
 0xb87   : > { %v3100_v52 = vor.u32 %v3099_v40, %v3098_v39 }
 0xb88   : > { %v3106_v47 = vsel %vm3104_vm11, %v3094_v45, 2102212464  ;;  %v3109_v9 = vsel %vm3101_vm7, %v3088_v42, %v3091_v44  ;;  %v3113_v50 = vsel %vm3101_vm7, %v3091_v44, %v3094_v45  ;;  %v3110_v53 = vsel %vm3104_vm11, %v3097_v21, 920167782 }
 0xb89   : > { %v3114_v0 = vsel %vm3104_vm11, %v3100_v52, 1326507024  ;;  %v3111_v58 = vsel %vm3103_vm9, %v3094_v45, %v3110_v53  ;;  %v3105_v18 = vsel %vm3101_vm7, %v3085_v51, %v3088_v42  ;;  %v3107_v7 = vsel %vm3103_vm9, %v3091_v44, %v3106_v47 }
 0xb8a   : > { %v3115_v63 = vsel %vm3103_vm9, %v3097_v21, %v3114_v0  ;;  %v3112_v46 = vsel %vm3102_vm14, %v3109_v9, %v3111_v58  ;;  %v3108_v48 = vsel %vm3102_vm14, %v3105_v18, %v3107_v7  ;;  %v3211_v51 = vadd.s32 40, %v9861_v41 }
 0xb8b   : > { %v3116_v12 = vsel %vm3102_vm14, %v3113_v50, %v3115_v63  ;;  %v9898_v17 = vmul.u32.u64.low %v3117_v4, %v3112_v46  ;;  %v9899_v19 = vmul.u32.u64.high %v3117_v4, %v3112_v46, %v9898_v17  ;;  %v3124_v22 = vmul.u32 %v3117_v4, %v3108_v48 }
 0xb8c   : > { %v9895_v13 = vmul.u32.u64.low %v3117_v4, %v3116_v12  ;;  %v9896_v14 = vmul.u32.u64.high %v3117_v4, %v3116_v12, %v9895_v13  ;;  %v3210_v50 = vadd.s32 32, %v9861_v41  ;;  %vm3222_vm3 = vcmp.eq.s32.totalorder %v3211_v51, %v9865_v10 }
 0xb8d   : > { %v3127_v20 = vadd.s32 1, %v9899_v19  ;;  %v8894_v4 = vmov 1.0|1.0   ;;  %v9915_v18 = vadd.s32 16, %v9861_v41  ;;  %v9918_v7 = vadd.s32 24, %v9861_v41 }
 0xb8e   : > { %vm3126_vm10 = vc.u32 %v9896_v14, %v9898_v17  ;;  %v3125_v5 = vadd.s32 %v9898_v17, %v9896_v14  ;;  %vm3221_vm8 = vcmp.eq.s32.totalorder %v3210_v50, %v9865_v10  ;;  %v3207_v12 = vadd.s32 8, %v9861_v41  ;;  %v3176_v17 = vpop.permute.xlu0 %3175 }
 0xb8f   : > { %v3128_v23 = vsel %vm3126_vm10, %v3127_v20, %v9899_v19  ;;  %vm6974_vm7 = vmpackc.low %vm3222_vm3, %vm3221_vm8  ;;  %vm3217_vm14 = vcmp.eq.s32.totalorder %v9861_v41, %v9865_v10  ;;  %vm3161_vm10 = vweird.f32 %v9878_v26  ;;  %v3062_v20 = vld [vmem:[#allocation29 + $0x8] sm:$0xff] }
 0xb90   : > { %v3129_v43 = vadd.s32 %v3128_v23, %v3124_v22  ;;  %7218 = vmatprep.subr.msk.bf16.mxu0 %vm6974_vm7, %v8894_v4  ;;  %vm3218_vm8 = vcmp.eq.s32.totalorder %v3207_v12, %v9865_v10 }
 0xb91   : > { %7219 = vmatpush3.bf16.msk.msra.mxu0 %vm6974_vm7, %v8894_v4  ;;  %vm9937_vm3 = vmpackc.low %vm3218_vm8, %vm3217_vm14 }
 0xb92   : > { %v3130_v25 = vadd.s32 536870912, %v3129_v43 }
 0xb94   : > { %v3131_v60 = vshrl.u32 %v3130_v25, 30 }
 0xb96   : > { %v3132_v27 = vshll.u32 %v3131_v60, 30  ;;  %v3155_v42 = vsub.s32 4, %v3131_v60 }
 0xb98   : > { %v3133_v28 = vsub.s32 %v3129_v43, %v3132_v27  ;;  %v3156_v21 = vsel %vm3071_vm13, %v3155_v42, %v3131_v60 }
 0xb99   : > { %v3158_v52 = vsel %vm3070_vm6, 0, %v3156_v21 }
 0xb9a   : > { %v3135_v29 = vsub.s32 0, %v3133_v28  ;;  %v3162_v47 = vadd.s32 3, %v3158_v52 }
 0xb9c   : > { %v6963_v30 = vmin.u32 %v3135_v29, %v3133_v28  ;;  %v3163_v9 = vand.u32 3, %v3162_v47 }
 0xb9e   : > { %v3137_v49 = vclz %v6963_v30  ;;  %vm3168_vm15 = vcmp.eq.s32.totalorder %v3163_v9, 2  ;;  %vm3165_vm11 = vcmp.eq.s32.totalorder %v3163_v9, 0  ;;  %vm3164_vm9 = vcmp.lt.s32.totalorder %v3163_v9, 2 }
 0xba0   : > { %v6964_v32 = vadd.s32 4294967294, %v3137_v49  ;;  %v3061_v49 = vld [vmem:[#allocation29] sm:$0xff] }
 0xba2   : > { %vm6965_vm12 = vcmp.lt.s32.totalorder %v6964_v32, 0 }
 0xba3   : > { %v3140_v55 = vsel %vm6965_vm12, 0, %v6964_v32  ;;  %vm3219_vm12 = vcmp.eq.s32.totalorder %v9915_v18, %v9865_v10  ;;  %v3370_v32 = vld [vmem:[%s11640_s6 + $0x8] sm:$0xff] }
 0xba4   : > { %v3141_v11 = vsub.s32 32, %v3140_v55  ;;  %v3145_v33 = vsub.s32 4294967266, %v3140_v55  ;;  %v3142_v34 = vshll.u32 %v3133_v28, %v3140_v55 }
 0xba6   : > { %v3143_v35 = vshrl.u32 %v3125_v5, %v3141_v11  ;;  %v3146_v36 = vadd.s32 127, %v3145_v33 }
 0xba8   : > { %v3144_v37 = vor.u32 %v3143_v35, %v3142_v34  ;;  %v3147_v61 = vshll.u32 %v3146_v36, 23  ;;  %v7879_v36 = vld [vmem:[#allocation27] sm:$0xff]  }
 0xbaa   : > { %v3148_v38 = vor.u32 4788187, %v3147_v61  ;;  %v3151_v39 = vcvt.s32.f32 %v3144_v37 }
 0xbac   : > { %v3149_v16 = vand.u32 2147483647, %v3148_v38 }
 0xbae   : > { %v3152_v40 = vmul.f32 %v3151_v39, %v3149_v16 }
 0xbb0   : > { %v3153_v57 = vxor.u32 2147483648, %v3152_v40 }
 0xbb2   : > { %v3154_v44 = vsel %vm3071_vm13, %v3153_v57, %v3152_v40  ;;  %vm11519_vm13 = vcmp.eq.s32.totalorder %v9918_v7, %v9865_v10 }
 0xbb3   : > { %v3157_v45 = vsel %vm3070_vm6, %v9878_v26, %v3154_v44  ;;  %vm6976_vm6 = vmpackc.low %vm11519_vm13, %vm3219_vm12 }
 0xbb4   : > { %7912 = vcosq.f32 %v3157_v45  ;;  %7220 = vmatprep.subr.msk.bf16.mxu0 %vm6976_vm6, %v8894_v4 }
 0xbb5   : > { %7914 = vsinq.f32 %v3157_v45  ;;  %7221 = vmatpush3.bf16.msk.msra.mxu0 %vm6976_vm6, %v8894_v4 }
 0xbb6   : > { %7222 = vmatprep.subr.msk.bf16.mxu0 %vm9937_vm3, %v8894_v4 }
 0xbb9   : > { %7223 = vmatpush3.bf16.msk.msra.mxu0 %vm9937_vm3, %v8894_v4 }
 0xbba   : > { %7228 = vmatprep.subr.bf16.mxu0 %v8864_v2 }
 0xbc1   : > { %v7913_v53 = vpop.eup %7912 }
 0xbc2   : > { %v7915_v0 = vpop.eup %7914  ;;  %v3169_v58 = vxor.u32 2147483648, %v7913_v53 }
 0xbc3   : > { %v3166_v31 = vxor.u32 2147483648, %v7915_v0 }
 0xbc4   : > { %v3170_v63 = vsel %vm3168_vm15, %v3169_v58, %v7915_v0  ;;  %vm3188_vm15 = vcmask 515080  }
 0xbc5   : > { %v3167_v46 = vsel %vm3165_vm11, %v7913_v53, %v3166_v31 }
 0xbc6   : > { %v3171_v13 = vsel %vm3164_vm9, %v3167_v46, %v3170_v63 }
 0xbc7   : > { %v3172_v14 = vsel %vm3161_vm10, nan, %v3171_v13 }
 0xbc8   : > { %v3173_v41 = vmul.f32 %v3172_v14, %v3172_v14 }
 0xbca   : > { %v3178_v19 = vmul.f32 %v3176_v17, %v3173_v41 }
 0xbcc   : > { %v3179_v48 = vadd.f32 %v3178_v19, %v9875_v24  ;;  %v3369_v24 = vld [vmem:[%s11640_s6] sm:$0xff]  ;;  %s11666_s6 = smov 18  }
 0xbce   : > { %3190 = vst.msk [vmem:[#allocation2 + $0x8] sm:$0xff] %vm2027_vm1, %v3179_v48  ;;  %3191 = vrot.lane.b32.xlu0 %v3179_v48, %s11517_s15  ;;  %3185 = vrot.lane.b32.xlu1 %v3179_v48, %s11515_s14 }
 0xbd2   : > { %3195 = vrot.lane.b32.xlu1 %v3179_v48, %s11513_s17  ;;  %3311 = vperm.xlu0 %7847, %v3061_v49  }
 0xbd5   : > { %v3200_v22 = vld [vmem:[#allocation2 + $0x8] sm:$0xff] }
 0xbd6   : > { %3316 = vperm.xlu1 %7845, %v3062_v20   ;;  %3616 = vst.msk [vmem:[#allocation2 + $0x8] sm:$0xff] %vm3324_vm4, %v8864_v2  ;;  %3388 = vperm.xlu0 %7847, %v3370_v32  }
 0xbda   : > { %3383 = vperm.xlu1 %7845, %v3369_v24   ;;  %7849 = vset.pattern.permute.xlu0 %v8863_v1 }
 0xbdb   : > { %3608 = vperm.xlu0 %7849, %v3370_v32  }
 0xbde   : > { %7848 = vset.pattern.permute.xlu1 %v8863_v1 }
 0xbdf   : > { %3604 = vperm.xlu1 %7848, %v3369_v24   ;;  %7850 = vset.pattern.permute.xlu0 %v8869_v8 }
 0xbe3   : > { %7851 = vset.pattern.permute.xlu1 %v8869_v8 }
 0xc40   : > { %v3192_v23 = vpop.permute.xlu0 %3191  ;;  %v3186_v43 = vpop.permute.xlu1 %3185 }
 0xc41   : > { %3194 = vst.msk [vmem:[#allocation2 + $0x10] sm:$0xff] %vm2027_vm1, %v3192_v23 }
 0xc42   : > { %3189 = vst.msk [vmem:[#allocation2] sm:$0xff] %vm3188_vm15, %v3186_v43 }
 0xc44   : > { %v3196_v25 = vpop.permute.xlu1 %3195 }
 0xc45   : > { %3198 = vst.msk [vmem:[#allocation2 + $0x18] sm:$0xff] %vm2032_vm5, %v3196_v25 }
 0xc48   : > { %v3201_v27 = vld [vmem:[#allocation2 + $0x10] sm:$0xff] }
 0xc49   : > { %v3199_v60 = vld [vmem:[#allocation2] sm:$0xff]  ;;  %3617 = vst.msk [vmem:[#allocation2 + $0x10] sm:$0xff] %vm3324_vm4, %v8864_v2 }
 0xc4a   : > { %v3203_v28 = vpack.c.bf16 %v3200_v22, %v3199_v60  ;;  %3615 = vst.msk [vmem:[#allocation2] sm:$0xff] %vm3324_vm4, %v8864_v2 }
 0xc4c   : > { %7224 = vmatprep.mubr.msk.bf16.mxu0 %vm2027_vm1, %v3203_v28  ;;  %v3202_v29 = vld [vmem:[#allocation2 + $0x18] sm:$0xff] }
 0xc4d   : > { %v3204_v30 = vpack.c.bf16 %v3202_v29, %v3201_v27  ;;  %3618 = vst.msk [vmem:[#allocation2 + $0x18] sm:$0xff] %vm3324_vm4, %v8864_v2  ;;  %v3312_v61 = vpop.permute.xlu0 %3311 }
 0xc4f   : > { %7225 = vmatmul.mubr.msk.bf16.vlgmr.msra.gmra.mxu0 %vm2027_vm1, %v3204_v30 }
 0xc50   : > { %7232 = vmatprep.mubr.msk.bf16.mxu0 %vm8885_vm0, %v8864_v2 }
 0xc51   : > { %v3317_v37 = vpop.permute.xlu1 %3316  ;;  %v3389_v52 = vpop.permute.xlu0 %3388 }
 0xc55   : > { %v3384_v39 = vpop.permute.xlu1 %3383 }
 0xd0f   : > { %v7226_v55 = vpop.f32.mrf.mxu0 }
 0xd11   : > { %v3292_v5 = vpop.f32.mrf.mxu0 }
 0xd13   : > { %v7227_v11 = vpop.f32.mrf.mxu0 }
 0xd14   : > { %v3308_v33 = vpack.c.bf16 %v7227_v11, %v7226_v55 }
 0xd15   : > { %v3295_v34 = vpop.f32.mrf.mxu0 }
 0xd16   : > { %7229 = vmatpush3.bf16.msra.mxu0 %v3308_v33  ;;  %v3307_v35 = vpack.c.bf16 %v3295_v34, %v3292_v5 }
 0xd17   : > { %7230 = vmatprep.subr.bf16.mxu0 %v8864_v2 }
 0xd1a   : > { %7231 = vmatpush3.bf16.msra.mxu0 %v3307_v35 }
 0xd1b   : > { %7254 = vmatprep.subr.bf16.mxu0 %v8864_v2 }
 0xd1d   : > { %7233 = vmatmul.mubr.msk.bf16.vlgmr.msra.gmra.mxu0 %vm3324_vm4, %v7879_v36 }
 0xd1e   : > { %7256 = vmatprep.mubr.msk.bf16.mxu0 %vm8885_vm0, %v8864_v2 }
 0xddd   : > { %v3362_v38 = vpop.f32.mrf.mxu0 }
 0xdde   : > { %v9979_v16 = vadd.f32 %v3362_v38, %v3312_v61 }
 0xddf   : > { %v7234_v40 = vpop.f32.mrf.mxu0 }
 0xde0   : > { %v9982_v57 = vmul.f32 %v3384_v39, %v9979_v16 }
 0xde1   : > { %v3365_v42 = vpop.f32.mrf.mxu0 }
 0xde2   : > { %v3396_v44 = vand.u32 2139095040, %v9982_v57  ;;  %v9985_v45 = vadd.f32 %v3365_v42, %v3317_v37  ;;  %v3393_v21 = vand.u32 2147483647, %v9982_v57 }
 0xde3   : > { %v7235_v47 = vpop.f32.mrf.mxu0 }
 0xde4   : > { %v3397_v9 = vshrl.u32 %v3396_v44, 23  ;;  %v9989_v50 = vmul.f32 %v3389_v52, %v9985_v45  ;;  %v3400_v0 = vand.u32 8388607, %v3393_v21 }
 0xde6   : > { %v6984_v51 = vadd.s32 4294967169, %v3397_v9  ;;  %v3500_v53 = vand.u32 2139095040, %v9989_v50  ;;  %v3497_v58 = vand.u32 2147483647, %v9989_v50  ;;  %v3401_v12 = vor.u32 8388608, %v3400_v0 }
 0xde8   : > { %v3403_v31 = vadd.s32 1, %v6984_v51  ;;  %v3501_v63 = vshrl.u32 %v3500_v53, 23  ;;  %v3504_v13 = vand.u32 8388607, %v3497_v58  ;;  %v9998_v22 = vshll.u32 %v3401_v12, 8 }
 0xdea   : > { %vm3404_vm1 = vcmp.gt.s32.totalorder %v3403_v31, 0  ;;  %v6988_v46 = vadd.s32 4294967169, %v3501_v63  ;;  %v3505_v24 = vor.u32 8388608, %v3504_v13 }
 0xdeb   : > { %v3405_v14 = vsel %vm3404_vm1, %v3403_v31, 0 }
 0xdec   : > { %v3406_v41 = vshrl.u32 %v3405_v14, 5  ;;  %v3407_v17 = vand.u32 31, %v3405_v14  ;;  %v3507_v19 = vadd.s32 1, %v6988_v46  ;;  %v10012_v42 = vshll.u32 %v3505_v24, 8 }
 0xdee   : > { %v3408_v48 = vsub.s32 32, %v3407_v17  ;;  %v3419_v20 = vshll.u32 %v8880_v62, %v3407_v17  ;;  %v3422_v23 = vshll.u32 %v8881_v3, %v3407_v17  ;;  %vm3428_vm5 = vcmp.lt.s32.totalorder %v3406_v41, 4 }
 0xdef   : > { %vm3508_vm7 = vcmp.gt.s32.totalorder %v3507_v19, 0  ;;  %v3410_v43 = vshll.u32 %v8877_v54, %v3407_v17  ;;  %v3413_v28 = vshll.u32 %v8878_v56, %v3407_v17  ;;  %v3416_v32 = vshll.u32 %v8879_v59, %v3407_v17 }
 0xdf0   : > { %v3420_v25 = vshrl.u32 %v8881_v3, %v3408_v48  ;;  %v3423_v60 = vshrl.u32 %v8882_v6, %v3408_v48  ;;  %v3509_v27 = vsel %vm3508_vm7, %v3507_v19, 0  ;;  %v3411_v30 = vshrl.u32 %v8878_v56, %v3408_v48 }
 0xdf1   : > { %v3511_v29 = vand.u32 31, %v3509_v27  ;;  %v3414_v49 = vshrl.u32 %v8879_v59, %v3408_v48  ;;  %v3409_v11 = vshrl.u32 %v8877_v54, %v3408_v48  ;;  %v3417_v33 = vshrl.u32 %v8880_v62, %v3408_v48 }
 0xdf2   : > { %v3421_v55 = vor.u32 %v3420_v25, %v3419_v20  ;;  %v3424_v5 = vor.u32 %v3423_v60, %v3422_v23  ;;  %v3412_v35 = vor.u32 %v3411_v30, %v3410_v43  ;;  %vm3425_vm11 = vcmp.lt.s32.totalorder %v3406_v41, 1 }
 0xdf3   : > { %v3512_v34 = vsub.s32 32, %v3511_v29  ;;  %v3415_v36 = vor.u32 %v3414_v49, %v3413_v28  ;;  %v3418_v38 = vor.u32 %v3417_v33, %v3416_v32  ;;  %vm3427_vm9 = vcmp.lt.s32.totalorder %v3406_v41, 3 }
 0xdf4   : > { %v3434_v37 = vsel %vm3428_vm5, %v3421_v55, 920167782  ;;  %v3438_v61 = vsel %vm3428_vm5, %v3424_v5, 1326507024  ;;  %vm3426_vm14 = vcmp.lt.s32.totalorder %v3406_v41, 2  ;;  %v3429_v44 = vsel %vm3425_vm11, %v3409_v11, %v3412_v35 }
 0xdf5   : > { %v3433_v39 = vsel %vm3425_vm11, %v3412_v35, %v3415_v36  ;;  %v3439_v40 = vsel %vm3427_vm9, %v3421_v55, %v3438_v61  ;;  %v3430_v52 = vsel %vm3428_vm5, %v3418_v38, 2102212464  ;;  %v3435_v47 = vsel %vm3427_vm9, %v3418_v38, %v3434_v37 }
 0xdf6   : > { %v3437_v9 = vsel %vm3425_vm11, %v3415_v36, %v3418_v38  ;;  %v3431_v51 = vsel %vm3427_vm9, %v3415_v36, %v3430_v52  ;;  %v3436_v53 = vsel %vm3426_vm14, %v3433_v39, %v3435_v47  ;;  %v3515_v31 = vshrl.u32 %v8878_v56, %v3512_v34 }
 0xdf7   : > { %v3440_v0 = vsel %vm3426_vm14, %v3437_v9, %v3439_v40  ;;  %v3510_v63 = vshrl.u32 %v3509_v27, 5  ;;  %v3514_v13 = vshll.u32 %v8877_v54, %v3511_v29  ;;  %v3432_v14 = vsel %vm3426_vm14, %v3429_v44, %v3431_v51 }
 0xdf8   : > { %v10017_v46 = vmul.u32.u64.low %v9998_v22, %v3440_v0  ;;  %v10018_v12 = vmul.u32.u64.high %v9998_v22, %v3440_v0, %v10017_v46  ;;  %v10022_v17 = vmul.u32.u64.low %v9998_v22, %v3436_v53  ;;  %v10023_v19 = vmul.u32.u64.high %v9998_v22, %v3436_v53, %v10022_v17 }
 0xdf9   : > { %v3517_v41 = vshll.u32 %v8878_v56, %v3511_v29  ;;  %v3516_v48 = vor.u32 %v3515_v31, %v3514_v13  ;;  %v3518_v20 = vshrl.u32 %v8879_v59, %v3512_v34  ;;  %v3520_v24 = vshll.u32 %v8879_v59, %v3511_v29 }
 0xdfa   : > { %v3521_v23 = vshrl.u32 %v8880_v62, %v3512_v34  ;;  %v3523_v43 = vshll.u32 %v8880_v62, %v3511_v29  ;;  %v3524_v25 = vshrl.u32 %v8881_v3, %v3512_v34  ;;  %v3526_v60 = vshll.u32 %v8881_v3, %v3511_v29 }
 0xdfb   : > { %v3527_v27 = vshrl.u32 %v8882_v6, %v3512_v34  ;;  %vm3450_vm10 = vc.u32 %v10018_v12, %v10022_v17  ;;  %v3513_v28 = vshrl.u32 %v8877_v54, %v3512_v34  ;;  %v3519_v30 = vor.u32 %v3518_v20, %v3517_v41 }
 0xdfc   : > { %v3522_v49 = vor.u32 %v3521_v23, %v3520_v24  ;;  %v3451_v32 = vadd.s32 1, %v10023_v19  ;;  %v3525_v55 = vor.u32 %v3524_v25, %v3523_v43  ;;  %vm3529_vm6 = vcmp.lt.s32.totalorder %v3510_v63, 1 }
 0xdfd   : > { %v3528_v5 = vor.u32 %v3527_v27, %v3526_v60  ;;  %v3448_v11 = vmul.u32 %v9998_v22, %v3432_v14  ;;  %vm3531_vm8 = vcmp.lt.s32.totalorder %v3510_v63, 3  ;;  %vm3532_vm15 = vcmp.lt.s32.totalorder %v3510_v63, 4 }
 0xdfe   : > { %v3537_v33 = vsel %vm3529_vm6, %v3516_v48, %v3519_v30  ;;  %v3452_v29 = vsel %vm3450_vm10, %v3451_v32, %v10023_v19  ;;  %v3534_v35 = vsel %vm3532_vm15, %v3522_v49, 2102212464  ;;  %v3538_v36 = vsel %vm3532_vm15, %v3525_v55, 920167782 }
 0xdff   : > { %v3541_v37 = vsel %vm3529_vm6, %v3519_v30, %v3522_v49  ;;  %v3453_v61 = vadd.s32 %v3452_v29, %v3448_v11  ;;  %vm3530_vm1 = vcmp.lt.s32.totalorder %v3510_v63, 2  ;;  %v3539_v34 = vsel %vm3531_vm8, %v3522_v49, %v3538_v36 }
 0xe00   : > { %v3542_v38 = vsel %vm3532_vm15, %v3528_v5, 1326507024  ;;  %v3533_v39 = vsel %vm3529_vm6, %v3513_v28, %v3516_v48  ;;  %v3535_v40 = vsel %vm3531_vm8, %v3519_v30, %v3534_v35  ;;  %v3540_v44 = vsel %vm3530_vm1, %v3537_v33, %v3539_v34 }
 0xe01   : > { %v3543_v52 = vsel %vm3531_vm8, %v3525_v55, %v3542_v38  ;;  %v3454_v47 = vadd.s32 536870912, %v3453_v61  ;;  %v10039_v22 = vmul.u32.u64.low %v10012_v42, %v3540_v44  ;;  %v10040_v51 = vmul.u32.u64.high %v10012_v42, %v3540_v44, %v10039_v22 }
 0xe02   : > { %v3544_v9 = vsel %vm3530_vm1, %v3541_v37, %v3543_v52  ;;  %v3536_v46 = vsel %vm3530_vm1, %v3533_v39, %v3535_v40  ;;  %v3449_v32 = vadd.s32 %v10022_v17, %v10018_v12  ;;  %vm3395_vm9 = vcmp.lt.s32.totalorder %v9982_v57, 0 }
 0xe03   : > { %v10043_v53 = vmul.u32.u64.low %v10012_v42, %v3544_v9  ;;  %v10044_v0 = vmul.u32.u64.high %v10012_v42, %v3544_v9, %v10043_v53  ;;  %v3455_v31 = vshrl.u32 %v3454_v47, 30  ;;  %v3555_v63 = vadd.s32 1, %v10040_v51 }
 0xe04   : > { %v3552_v14 = vmul.u32 %v10012_v42, %v3536_v46  ;;  %vm3394_vm14 = vcmp.le.f32.partialorder %v3393_v21, 0.7853982  ;;  %vm3499_vm10 = vcmp.lt.s32.totalorder %v9989_v50, 0  ;;  %vm3498_vm6 = vcmp.le.f32.partialorder %v3497_v58, 0.7853982 }
 0xe05   : > { %v3456_v13 = vshll.u32 %v3455_v31, 30  ;;  %vm3554_vm5 = vc.u32 %v10044_v0, %v10039_v22  ;;  %v3553_v44 = vadd.s32 %v10039_v22, %v10044_v0  ;;  %v3479_v46 = vsub.s32 4, %v3455_v31 }
 0xe06   : > { %v3556_v41 = vsel %vm3554_vm5, %v3555_v63, %v10040_v51  ;;  %vm3485_vm5 = vweird.f32 %v9982_v57 }
 0xe07   : > { %v3457_v19 = vsub.s32 %v3453_v61, %v3456_v13  ;;  %v3557_v48 = vadd.s32 %v3556_v41, %v3552_v14  ;;  %v3480_v22 = vsel %vm3395_vm9, %v3479_v46, %v3455_v31 }
 0xe09   : > { %v3459_v20 = vsub.s32 0, %v3457_v19  ;;  %v3558_v24 = vadd.s32 536870912, %v3557_v48 }
 0xe0b   : > { %v6985_v23 = vmin.u32 %v3459_v20, %v3457_v19  ;;  %v3559_v43 = vshrl.u32 %v3558_v24, 30  ;;  %v3482_v24 = vsel %vm3394_vm14, 0, %v3480_v22 }
 0xe0d   : > { %v3461_v25 = vclz %v6985_v23  ;;  %v3560_v60 = vshll.u32 %v3559_v43, 30 }
 0xe0f   : > { %v6986_v27 = vadd.s32 4294967294, %v3461_v25  ;;  %v3561_v28 = vsub.s32 %v3557_v48, %v3560_v60  ;;  %v3583_v25 = vsub.s32 4, %v3559_v43  ;;  %v3486_v60 = vadd.s32 3, %v3482_v24 }
 0xe11   : > { %vm6987_vm7 = vcmp.lt.s32.totalorder %v6986_v27, 0  ;;  %v3563_v49 = vsub.s32 0, %v3561_v28  ;;  %v3487_v31 = vand.u32 3, %v3486_v60 }
 0xe12   : > { %v3464_v30 = vsel %vm6987_vm7, 0, %v6986_v27 }
 0xe13   : > { %v3465_v42 = vsub.s32 32, %v3464_v30  ;;  %v3469_v55 = vsub.s32 4294967266, %v3464_v30  ;;  %v6989_v5 = vmin.u32 %v3563_v49, %v3561_v28  ;;  %v3466_v11 = vshll.u32 %v3457_v19, %v3464_v30 }
 0xe14   : > { %vm3492_vm8 = vcmp.eq.s32.totalorder %v3487_v31, 2  ;;  %vm3489_vm15 = vcmp.eq.s32.totalorder %v3487_v31, 0  ;;  %vm3488_vm1 = vcmp.lt.s32.totalorder %v3487_v31, 2 }
 0xe15   : > { %v3467_v33 = vshrl.u32 %v3449_v32, %v3465_v42  ;;  %v3470_v29 = vadd.s32 127, %v3469_v55  ;;  %v3565_v35 = vclz %v6989_v5 }
 0xe17   : > { %v3468_v36 = vor.u32 %v3467_v33, %v3466_v11  ;;  %v3471_v37 = vshll.u32 %v3470_v29, 23  ;;  %v6990_v61 = vadd.s32 4294967294, %v3565_v35  ;;  %v3605_v29 = vpop.permute.xlu1 %3604 }
 0xe19   : > { %v3472_v34 = vor.u32 4788187, %v3471_v37  ;;  %vm6991_vm11 = vcmp.lt.s32.totalorder %v6990_v61, 0  ;;  %v3475_v39 = vcvt.s32.f32 %v3468_v36 }
 0xe1a   : > { %v3568_v40 = vsel %vm6991_vm11, 0, %v6990_v61 }
 0xe1b   : > { %v3473_v38 = vand.u32 2147483647, %v3472_v34  ;;  %v3569_v52 = vsub.s32 32, %v3568_v40  ;;  %v3573_v47 = vsub.s32 4294967266, %v3568_v40  ;;  %v3570_v17 = vshll.u32 %v3561_v28, %v3568_v40 }
 0xe1c   : > { %v3584_v28 = vsel %vm3499_vm10, %v3583_v25, %v3559_v43 }
 0xe1d   : > { %v3476_v12 = vmul.f32 %v3475_v39, %v3473_v38  ;;  %v3571_v9 = vshrl.u32 %v3553_v44, %v3569_v52  ;;  %v3574_v51 = vadd.s32 127, %v3573_v47  ;;  %v3586_v49 = vsel %vm3498_vm6, 0, %v3584_v28  ;;  %v3609_v47 = vpop.permute.xlu0 %3608 }
 0xe1e   : > { %v3590_v11 = vadd.s32 3, %v3586_v49 }
 0xe1f   : > { %v3477_v53 = vxor.u32 2147483648, %v3476_v12  ;;  %v3572_v13 = vor.u32 %v3571_v9, %v3570_v17  ;;  %v3575_v63 = vshll.u32 %v3574_v51, 23 }
 0xe20   : > { %v3591_v43 = vand.u32 3, %v3590_v11 }
 0xe21   : > { %v3478_v14 = vsel %vm3395_vm9, %v3477_v53, %v3476_v12  ;;  %v3576_v41 = vor.u32 4788187, %v3575_v63  ;;  %v3579_v48 = vcvt.s32.f32 %v3572_v13  ;;  %v3373_v13 = vld [vmem:[#allocation32] sm:$0xff]  ;;  %v3374_v63 = vld [vmem:[#allocation32 + $0x8] sm:$0xff] }
 0xe22   : > { %v3481_v19 = vsel %vm3394_vm14, %v9982_v57, %v3478_v14  ;;  %vm3596_vm7 = vcmp.eq.s32.totalorder %v3591_v43, 2  ;;  %vm3593_vm11 = vcmp.eq.s32.totalorder %v3591_v43, 0  ;;  %vm3592_vm9 = vcmp.lt.s32.totalorder %v3591_v43, 2  ;;  %v3376_v14 = vld [vmem:[%s11642_s10 + $0x8] sm:$0xff] }
 0xe23   : > { %7916 = vcosq.f32 %v3481_v19  ;;  %v3577_v0 = vand.u32 2147483647, %v3576_v41  ;;  %vm3589_vm14 = vweird.f32 %v9989_v50 }
 0xe24   : > { %7918 = vsinq.f32 %v3481_v19  ;;  %v3375_v19 = vld [vmem:[%s11642_s10] sm:$0xff] }
 0xe25   : > { %v3580_v20 = vmul.f32 %v3579_v48, %v3577_v0 }
 0xe27   : > { %v3581_v23 = vxor.u32 2147483648, %v3580_v20 }
 0xe29   : > { %v3582_v21 = vsel %vm3499_vm10, %v3581_v23, %v3580_v20  ;;  %vm11512_vm10 = vcmask 244736  }
 0xe2a   : > { %v3585_v27 = vsel %vm3498_vm6, %v9989_v50, %v3582_v21  ;;  %vm3684_vm6 = vcmask 236544  }
 0xe2b   : > { %7920 = vcosq.f32 %v3585_v27 }
 0xe2c   : > { %7922 = vsinq.f32 %v3585_v27 }
 0xe30   : > { %v7917_v30 = vpop.eup %7916 }
 0xe31   : > { %v7919_v32 = vpop.eup %7918  ;;  %v3493_v42 = vxor.u32 2147483648, %v7917_v30 }
 0xe32   : > { %v3490_v55 = vxor.u32 2147483648, %v7919_v32 }
 0xe33   : > { %v3494_v5 = vsel %vm3492_vm8, %v3493_v42, %v7919_v32  ;;  %vm3666_vm8 = vcmask 252928  }
 0xe34   : > { %v3491_v33 = vsel %vm3489_vm15, %v7917_v30, %v3490_v55  ;;  %vm3655_vm15 = vcmask 261128  }
 0xe35   : > { %v3495_v58 = vsel %vm3488_vm1, %v3491_v33, %v3494_v5  ;;  %vm3646_vm1 = vcmask 261136  }
 0xe36   : > { %v3496_v35 = vsel %vm3485_vm5, nan, %v3495_v58  ;;  %vm3637_vm5 = vcmask 261144  }
 0xe37   : > { %v3601_v36 = vmul.f32 %v3496_v35, %v3496_v35 }
 0xe38   : > { %v7921_v37 = vpop.eup %7920 }
 0xe39   : > { %v3611_v61 = vmul.f32 %v3605_v29, %v3601_v36  ;;  %v7923_v34 = vpop.eup %7922  ;;  %v3597_v38 = vxor.u32 2147483648, %v7921_v37 }
 0xe3a   : > { %v3594_v40 = vxor.u32 2147483648, %v7923_v34 }
 0xe3b   : > { %v3613_v39 = vadd.f32 %v3611_v61, %v9979_v16  ;;  %v3598_v44 = vsel %vm3596_vm7, %v3597_v38, %v7923_v34  ;;  %vm3723_vm7 = vcmask 916480  }
 0xe3c   : > { %v3595_v52 = vsel %vm3593_vm11, %v7921_v37, %v3594_v40  ;;  %v3379_v40 = vld [vmem:[#allocation35] sm:$0xff] }
 0xe3d   : > { %3658 = vst.msk [vmem:[#allocation2 + $0x30] sm:$0xff] %vm3324_vm4, %v3613_v39  ;;  %3669 = vrot.lane.b32.xlu0 %v3613_v39, %s11513_s17  ;;  %3678 = vrot.lane.b32.xlu1 %v3613_v39, %s11641_s12  ;;  %v3599_v57 = vsel %vm3592_vm9, %v3595_v52, %v3598_v44  ;;  %v3380_v52 = vld [vmem:[#allocation35 + $0x8] sm:$0xff] }
 0xe3e   : > { %v3600_v12 = vsel %vm3589_vm14, nan, %v3599_v57 }
 0xe3f   : > { %v3602_v17 = vmul.f32 %v3600_v12, %v3600_v12 }
 0xe41   : > { %3660 = vrot.lane.b32.xlu0 %v3613_v39, %s11517_s15  ;;  %v3612_v9 = vmul.f32 %v3609_v47, %v3602_v17 }
 0xe43   : > { %v3614_v51 = vadd.f32 %v3612_v9, %v9985_v45 }
 0xe44   : > { %v10068_v53 = vld [vmem:[#allocation2 + $0x30] sm:$0xff] }
 0xe45   : > { %3649 = vrot.lane.b32.xlu0 %v3613_v39, %s11515_s14  ;;  %4317 = vst.msk [vmem:[#allocation2 + $0x30] sm:$0xff] %vm3324_vm4, %v8864_v2  ;;  %3659 = vst.msk [vmem:[#allocation2 + $0x38] sm:$0xff] %vm3324_vm4, %v3614_v51  ;;  %3680 = vrot.lane.b32.xlu1 %v3614_v51, %s11641_s12 }
 0xe49   : > { %3640 = vrot.lane.b32.xlu0 %v3613_v39, %s11643_s9  ;;  %3671 = vrot.lane.b32.xlu1 %v3614_v51, %s11513_s17  ;;  %s11652_s17 = smov 122  }
 0xe4c   : > { %v10078_v50 = vld [vmem:[#allocation2 + $0x38] sm:$0xff] }
 0xe4d   : > { %3631 = vrot.lane.b32.xlu0 %v3613_v39, %s11644_s8  ;;  %3662 = vrot.lane.b32.xlu1 %v3614_v51, %s11517_s15  ;;  %v3704_v46 = vpack.c.bf16 %v10078_v50, %v10068_v53  ;;  %4318 = vst.msk [vmem:[#allocation2 + $0x38] sm:$0xff] %vm3324_vm4, %v8864_v2  ;;  %v7880_v39 = vld [vmem:[#allocation30] sm:$0xff]   ;;  %s11654_s15 = smov 6  }
 0xe51   : > { %3651 = vrot.lane.b32.xlu1 %v3614_v51, %s11515_s14  ;;  %3710 = vperm.xlu0 %7850, %v3373_v13   ;;  %s11653_s14 = sld [smem:[#allocation86_spill]] }
 0xe55   : > { %3642 = vrot.lane.b32.xlu1 %v3614_v51, %s11643_s9  ;;  %3775 = vperm.xlu0 %7850, %v3376_v14   ;;  %s11645_s9 = sld [smem:[#allocation83_spill]] }
 0xe59   : > { %3633 = vrot.lane.b32.xlu1 %v3614_v51, %s11644_s8  ;;  %7853 = vset.pattern.permute.xlu0 %v8863_v1 }
 0xe5a   : > { %3995 = vperm.xlu0 %7853, %v3376_v14  }
 0xe5b   : > { %v4065_v44 = vld [vmem:[%s11645_s9] sm:$0xff]  ;;  %v4066_v57 = vld [vmem:[%s11645_s9 + $0x8] sm:$0xff]  ;;  %s11670_s9 = smov 9  }
 0xe5d   : > { %3715 = vperm.xlu1 %7851, %v3374_v63  }
 0xe5e   : > { %7855 = vset.pattern.permute.xlu0 %v8869_v8 }
 0xe5f   : > { %4079 = vperm.xlu0 %7855, %v4065_v44  }
 0xe61   : > { %3770 = vperm.xlu1 %7851, %v3375_v19  }
 0xe63   : > { %7857 = vset.pattern.permute.xlu0 %v8863_v1 }
 0xe64   : > { %4304 = vperm.xlu0 %7857, %v4066_v57  }
 0xe65   : > { %7852 = vset.pattern.permute.xlu1 %v8863_v1 }
 0xe66   : > { %3991 = vperm.xlu1 %7852, %v3375_v19  }
 0xe68   : > { %7858 = vset.pattern.permute.xlu0 %v8869_v8 }
 0xe6a   : > { %7854 = vset.pattern.permute.xlu1 %v8869_v8 }
 0xe6b   : > { %4005 = vperm.xlu1 %7854, %v3379_v40  }
 0xe6f   : > { %4010 = vperm.xlu1 %7854, %v3380_v52  }
 0xe73   : > { %4084 = vperm.xlu1 %7854, %v4066_v57  }
 0xe77   : > { %7856 = vset.pattern.permute.xlu1 %v8863_v1 }
 0xe78   : > { %4300 = vperm.xlu1 %7856, %v4065_v44  }
 0xe7c   : > { %7859 = vset.pattern.permute.xlu1 %v8869_v8 }
 0xeaf   : > { %v3670_v41 = vpop.permute.xlu0 %3669  ;;  %v3679_v22 = vpop.permute.xlu1 %3678 }
 0xeb0   : > { %3676 = vst.msk [vmem:[#allocation2 + $0x50] sm:$0xff] %vm11512_vm10, %v3670_v41 }
 0xeb1   : > { %3685 = vst.msk [vmem:[#allocation2 + $0x60] sm:$0xff] %vm3684_vm6, %v3679_v22 }
 0xeb3   : > { %v3661_v0 = vpop.permute.xlu0 %3660 }
 0xeb4   : > { %3667 = vst.msk [vmem:[#allocation2 + $0x40] sm:$0xff] %vm3666_vm8, %v3661_v0 }
 0xeb7   : > { %v3650_v48 = vpop.permute.xlu0 %3649  ;;  %v3697_v24 = vld [vmem:[#allocation2 + $0x50] sm:$0xff]  ;;  %v3681_v23 = vpop.permute.xlu1 %3680 }
 0xeb8   : > { %v3699_v20 = vld [vmem:[#allocation2 + $0x60] sm:$0xff]  ;;  %3656 = vst.msk [vmem:[#allocation2 + $0x20] sm:$0xff] %vm3655_vm15, %v3650_v48 }
 0xeb9   : > { %4323 = vst.msk [vmem:[#allocation2 + $0x60] sm:$0xff] %vm3324_vm4, %v8864_v2  ;;  %4321 = vst.msk [vmem:[#allocation2 + $0x50] sm:$0xff] %vm3324_vm4, %v8864_v2 }
 0xeba   : > { %3686 = vst.msk [vmem:[#allocation2 + $0x68] sm:$0xff] %vm3684_vm6, %v3681_v23 }
 0xebb   : > { %v3641_v25 = vpop.permute.xlu0 %3640  ;;  %v3695_v60 = vld [vmem:[#allocation2 + $0x40] sm:$0xff]  ;;  %v3672_v21 = vpop.permute.xlu1 %3671 }
 0xebc   : > { %3647 = vst.msk [vmem:[#allocation2 + $0x10] sm:$0xff] %vm3646_vm1, %v3641_v25 }
 0xebd   : > { %4319 = vst.msk [vmem:[#allocation2 + $0x40] sm:$0xff] %vm3324_vm4, %v8864_v2 }
 0xebe   : > { %3677 = vst.msk [vmem:[#allocation2 + $0x58] sm:$0xff] %vm11512_vm10, %v3672_v21 }
 0xebf   : > { %v3632_v27 = vpop.permute.xlu0 %3631  ;;  %v3691_v28 = vld [vmem:[#allocation2 + $0x20] sm:$0xff]  ;;  %v3663_v31 = vpop.permute.xlu1 %3662 }
 0xec0   : > { %3638 = vst.msk [vmem:[#allocation2] sm:$0xff] %vm3637_vm5, %v3632_v27 }
 0xec1   : > { %v3700_v30 = vld [vmem:[#allocation2 + $0x68] sm:$0xff]  ;;  %4315 = vst.msk [vmem:[#allocation2 + $0x20] sm:$0xff] %vm3324_vm4, %v8864_v2 }
 0xec2   : > { %3668 = vst.msk [vmem:[#allocation2 + $0x48] sm:$0xff] %vm3666_vm8, %v3663_v31  ;;  %v3707_v49 = vpack.c.bf16 %v3700_v30, %v3699_v20 }
 0xec3   : > { %4324 = vst.msk [vmem:[#allocation2 + $0x68] sm:$0xff] %vm3324_vm4, %v8864_v2  ;;  %v3689_v32 = vld [vmem:[#allocation2 + $0x10] sm:$0xff]  ;;  %v3652_v42 = vpop.permute.xlu1 %3651 }
 0xec4   : > { %7237 = vmatpush3.bf16.msra.mxu1 %v3707_v49  ;;  %4313 = vst.msk [vmem:[#allocation2 + $0x10] sm:$0xff] %vm3324_vm4, %v8864_v2 }
 0xec5   : > { %7238 = vmatprep.subr.bf16.mxu1 %v8864_v2  ;;  %v3698_v55 = vld [vmem:[#allocation2 + $0x58] sm:$0xff]  ;;  %3657 = vst.msk [vmem:[#allocation2 + $0x28] sm:$0xff] %vm3655_vm15, %v3652_v42 }
 0xec6   : > { %v3706_v5 = vpack.c.bf16 %v3698_v55, %v3697_v24  ;;  %4322 = vst.msk [vmem:[#allocation2 + $0x58] sm:$0xff] %vm3324_vm4, %v8864_v2 }
 0xec7   : > { %v3687_v11 = vld [vmem:[#allocation2] sm:$0xff]  ;;  %v3643_v33 = vpop.permute.xlu1 %3642 }
 0xec8   : > { %7239 = vmatpush3.bf16.msra.mxu1 %v3706_v5  ;;  %4311 = vst.msk [vmem:[#allocation2] sm:$0xff] %vm3324_vm4, %v8864_v2 }
 0xec9   : > { %7240 = vmatprep.subr.bf16.mxu1 %v8864_v2  ;;  %v3696_v58 = vld [vmem:[#allocation2 + $0x48] sm:$0xff]  ;;  %3648 = vst.msk [vmem:[#allocation2 + $0x18] sm:$0xff] %vm3646_vm1, %v3643_v33 }
 0xeca   : > { %v3705_v29 = vpack.c.bf16 %v3696_v58, %v3695_v60  ;;  %4320 = vst.msk [vmem:[#allocation2 + $0x48] sm:$0xff] %vm3324_vm4, %v8864_v2 }
 0xecb   : > { %v3634_v35 = vpop.permute.xlu1 %3633 }
 0xecc   : > { %7241 = vmatpush3.bf16.msra.mxu1 %v3705_v29  ;;  %v3692_v36 = vld [vmem:[#allocation2 + $0x28] sm:$0xff]  ;;  %3639 = vst.msk [vmem:[#allocation2 + $0x8] sm:$0xff] %vm3637_vm5, %v3634_v35  ;;  %v3711_v12 = vpop.permute.xlu0 %3710 }
 0xecd   : > { %7242 = vmatprep.subr.bf16.mxu1 %v8864_v2  ;;  %4316 = vst.msk [vmem:[#allocation2 + $0x28] sm:$0xff] %vm3324_vm4, %v8864_v2  ;;  %v3703_v37 = vpack.c.bf16 %v3692_v36, %v3691_v28 }
 0xed0   : > { %7243 = vmatpush3.bf16.msra.mxu1 %v3704_v46  ;;  %v3690_v43 = vld [vmem:[#allocation2 + $0x18] sm:$0xff]  ;;  %v3776_v19 = vpop.permute.xlu0 %3775 }
 0xed1   : > { %7244 = vmatprep.subr.bf16.mxu1 %v8864_v2  ;;  %4314 = vst.msk [vmem:[#allocation2 + $0x18] sm:$0xff] %vm3324_vm4, %v8864_v2  ;;  %v3702_v34 = vpack.c.bf16 %v3690_v43, %v3689_v32 }
 0xed3   : > { %v3688_v61 = vld [vmem:[#allocation2 + $0x8] sm:$0xff] }
 0xed4   : > { %7245 = vmatpush3.bf16.msra.mxu1 %v3703_v37  ;;  %4312 = vst.msk [vmem:[#allocation2 + $0x8] sm:$0xff] %vm3324_vm4, %v8864_v2  ;;  %v3701_v38 = vpack.c.bf16 %v3688_v61, %v3687_v11 }
 0xed5   : > { %7246 = vmatprep.subr.bf16.mxu1 %v8864_v2 }
 0xed8   : > { %7247 = vmatpush3.bf16.msra.mxu1 %v3702_v34  ;;  %v3716_v47 = vpop.permute.xlu1 %3715 }
 0xed9   : > { %7248 = vmatprep.subr.bf16.mxu1 %v8864_v2 }
 0xedc   : > { %7249 = vmatpush3.bf16.msra.mxu1 %v3701_v38  ;;  %v3771_v9 = vpop.permute.xlu1 %3770 }
 0xedd   : > { %7278 = vmatprep.subr.bf16.mxu1 %v8864_v2 }
 0xedf   : > { %7251 = vmatmul.mubr.msk.bf16.vlgmr.msra.gmra.mxu1 %vm3723_vm7, %v7880_v39 }
 0xee0   : > { %7280 = vmatprep.mubr.msk.bf16.mxu1 %vm8885_vm0, %v8864_v2 }
 0xf9f   : > { %v3761_v17 = vpop.f32.mrf.mxu1 }
 0xfa0   : > { %v10148_v51 = vadd.f32 %v3761_v17, %v3711_v12 }
 0xfa1   : > { %v7252_v53 = vpop.f32.mrf.mxu1 }
 0xfa2   : > { %v10151_v50 = vmul.f32 %v3771_v9, %v10148_v51 }
 0xfa3   : > { %v3764_v46 = vpop.f32.mrf.mxu1 }
 0xfa4   : > { %v3780_v13 = vand.u32 2147483647, %v10151_v50  ;;  %v3783_v63 = vand.u32 2139095040, %v10151_v50  ;;  %v10156_v14 = vadd.f32 %v3764_v46, %v3716_v47  ;;  %vm3872_vm2 = vweird.f32 %v10151_v50 }
 0xfa5   : > { %v7253_v41 = vpop.f32.mrf.mxu1 }
 0xfa6   : > { %v3784_v22 = vshrl.u32 %v3783_v63, 23  ;;  %v10159_v0 = vmul.f32 %v3776_v19, %v10156_v14  ;;  %v3787_v48 = vand.u32 8388607, %v3780_v13 }
 0xfa8   : > { %v6994_v20 = vadd.s32 4294967169, %v3784_v22  ;;  %v3887_v24 = vand.u32 2139095040, %v10159_v0  ;;  %v3884_v23 = vand.u32 2147483647, %v10159_v0  ;;  %v3788_v21 = vor.u32 8388608, %v3787_v48 }
 0xfaa   : > { %v3790_v25 = vadd.s32 1, %v6994_v20  ;;  %v3888_v60 = vshrl.u32 %v3887_v24, 23  ;;  %v3891_v27 = vand.u32 8388607, %v3884_v23  ;;  %v10167_v32 = vshll.u32 %v3788_v21, 8 }
 0xfac   : > { %vm3791_vm11 = vcmp.gt.s32.totalorder %v3790_v25, 0  ;;  %v6998_v28 = vadd.s32 4294967169, %v3888_v60  ;;  %v3892_v42 = vor.u32 8388608, %v3891_v27 }
 0xfad   : > { %v3792_v31 = vsel %vm3791_vm11, %v3790_v25, 0 }
 0xfae   : > { %v3793_v30 = vshrl.u32 %v3792_v31, 5  ;;  %v3794_v49 = vand.u32 31, %v3792_v31  ;;  %v3894_v33 = vadd.s32 1, %v6998_v28 }
 0xfb0   : > { %v3795_v55 = vsub.s32 32, %v3794_v49  ;;  %v3797_v5 = vshll.u32 %v8877_v54, %v3794_v49  ;;  %v3800_v11 = vshll.u32 %v8878_v56, %v3794_v49  ;;  %v3803_v58 = vshll.u32 %v8879_v59, %v3794_v49 }
 0xfb1   : > { %v3806_v29 = vshll.u32 %v8880_v62, %v3794_v49  ;;  %v3809_v35 = vshll.u32 %v8881_v3, %v3794_v49  ;;  %vm3812_vm9 = vcmp.lt.s32.totalorder %v3793_v30, 1  ;;  %vm3813_vm14 = vcmp.lt.s32.totalorder %v3793_v30, 2 }
 0xfb2   : > { %v3798_v36 = vshrl.u32 %v8878_v56, %v3795_v55  ;;  %v3801_v43 = vshrl.u32 %v8879_v59, %v3795_v55  ;;  %v3804_v37 = vshrl.u32 %v8880_v62, %v3795_v55  ;;  %v3796_v61 = vshrl.u32 %v8877_v54, %v3795_v55 }
 0xfb3   : > { %v3807_v34 = vshrl.u32 %v8881_v3, %v3795_v55  ;;  %v3810_v38 = vshrl.u32 %v8882_v6, %v3795_v55  ;;  %vm3814_vm15 = vcmp.lt.s32.totalorder %v3793_v30, 3  ;;  %vm3895_vm1 = vcmp.gt.s32.totalorder %v3894_v33, 0 }
 0xfb4   : > { %v3799_v39 = vor.u32 %v3798_v36, %v3797_v5  ;;  %v3802_v40 = vor.u32 %v3801_v43, %v3800_v11  ;;  %v3805_v44 = vor.u32 %v3804_v37, %v3803_v58  ;;  %vm3815_vm11 = vcmp.lt.s32.totalorder %v3793_v30, 4 }
 0xfb5   : > { %v3808_v52 = vor.u32 %v3807_v34, %v3806_v29  ;;  %v3811_v57 = vor.u32 %v3810_v38, %v3809_v35  ;;  %v3896_v47 = vsel %vm3895_vm1, %v3894_v33, 0  ;;  %v3932_v5 = vshll.u32 %v3892_v42, 8 }
 0xfb6   : > { %v3816_v12 = vsel %vm3812_vm9, %v3796_v61, %v3799_v39  ;;  %v3817_v17 = vsel %vm3815_vm11, %v3805_v44, 2102212464  ;;  %v3820_v9 = vsel %vm3812_vm9, %v3799_v39, %v3802_v40  ;;  %v3824_v53 = vsel %vm3812_vm9, %v3802_v40, %v3805_v44 }
 0xfb7   : > { %v3818_v46 = vsel %vm3814_vm15, %v3802_v40, %v3817_v17  ;;  %v3821_v63 = vsel %vm3815_vm11, %v3808_v52, 920167782  ;;  %v3825_v19 = vsel %vm3815_vm11, %v3811_v57, 1326507024  ;;  %v3897_v41 = vshrl.u32 %v3896_v47, 5 }
 0xfb8   : > { %v3819_v22 = vsel %vm3813_vm14, %v3816_v12, %v3818_v46  ;;  %v3822_v48 = vsel %vm3814_vm15, %v3805_v44, %v3821_v63  ;;  %v3826_v20 = vsel %vm3814_vm15, %v3808_v52, %v3825_v19  ;;  %v3898_v24 = vand.u32 31, %v3896_v47 }
 0xfb9   : > { %v3823_v25 = vsel %vm3813_vm14, %v3820_v9, %v3822_v48  ;;  %v3827_v60 = vsel %vm3813_vm14, %v3824_v53, %v3826_v20  ;;  %v3835_v49 = vmul.u32 %v10167_v32, %v3819_v22  ;;  %vm3919_vm9 = vcmp.lt.s32.totalorder %v3897_v41, 4 }
 0xfba   : > { %v10190_v21 = vmul.u32.u64.low %v10167_v32, %v3827_v60  ;;  %v10191_v27 = vmul.u32.u64.high %v10167_v32, %v3827_v60, %v10190_v21  ;;  %v10194_v28 = vmul.u32.u64.low %v10167_v32, %v3823_v25  ;;  %v10195_v31 = vmul.u32.u64.high %v10167_v32, %v3823_v25, %v10194_v28 }
 0xfbb   : > { %v3899_v55 = vsub.s32 32, %v3898_v24  ;;  %v3910_v11 = vshll.u32 %v8880_v62, %v3898_v24  ;;  %v3913_v33 = vshll.u32 %v8881_v3, %v3898_v24  ;;  %v3901_v30 = vshll.u32 %v8877_v54, %v3898_v24 }
 0xfbc   : > { %v3904_v36 = vshll.u32 %v8878_v56, %v3898_v24  ;;  %vm3837_vm14 = vc.u32 %v10191_v27, %v10194_v28  ;;  %v3838_v32 = vadd.s32 1, %v10195_v31  ;;  %v3907_v43 = vshll.u32 %v8879_v59, %v3898_v24 }
 0xfbd   : > { %v3911_v58 = vshrl.u32 %v8881_v3, %v3899_v55  ;;  %v3914_v29 = vshrl.u32 %v8882_v6, %v3899_v55  ;;  %v3902_v35 = vshrl.u32 %v8878_v56, %v3899_v55  ;;  %v3905_v42 = vshrl.u32 %v8879_v59, %v3899_v55 }
 0xfbe   : > { %v3908_v38 = vshrl.u32 %v8880_v62, %v3899_v55  ;;  %v3839_v39 = vsel %vm3837_vm14, %v3838_v32, %v10195_v31  ;;  %vm3916_vm15 = vcmp.lt.s32.totalorder %v3897_v41, 1  ;;  %vm3918_vm1 = vcmp.lt.s32.totalorder %v3897_v41, 3 }
 0xfbf   : > { %v3912_v37 = vor.u32 %v3911_v58, %v3910_v11  ;;  %v3915_v61 = vor.u32 %v3914_v29, %v3913_v33  ;;  %v3903_v34 = vor.u32 %v3902_v35, %v3901_v30  ;;  %v3906_v40 = vor.u32 %v3905_v42, %v3904_v36 }
 0xfc0   : > { %v3840_v44 = vadd.s32 %v3839_v39, %v3835_v49  ;;  %v3909_v47 = vor.u32 %v3908_v38, %v3907_v43  ;;  %v3900_v12 = vshrl.u32 %v8877_v54, %v3899_v55  ;;  %vm3917_vm11 = vcmp.lt.s32.totalorder %v3897_v41, 2 }
 0xfc1   : > { %v3925_v52 = vsel %vm3919_vm9, %v3912_v37, 920167782  ;;  %v3929_v57 = vsel %vm3919_vm9, %v3915_v61, 1326507024  ;;  %v3924_v17 = vsel %vm3916_vm15, %v3903_v34, %v3906_v40  ;;  %v3836_v41 = vadd.s32 %v10194_v28, %v10191_v27 }
 0xfc2   : > { %v3930_v9 = vsel %vm3918_vm1, %v3912_v37, %v3929_v57  ;;  %v3841_v53 = vadd.s32 536870912, %v3840_v44  ;;  %v3921_v46 = vsel %vm3919_vm9, %v3909_v47, 2102212464  ;;  %v3926_v63 = vsel %vm3918_vm1, %v3909_v47, %v3925_v52 }
 0xfc3   : > { %v3928_v19 = vsel %vm3916_vm15, %v3906_v40, %v3909_v47  ;;  %v3920_v22 = vsel %vm3916_vm15, %v3900_v12, %v3903_v34  ;;  %v3927_v48 = vsel %vm3917_vm11, %v3924_v17, %v3926_v63  ;;  %v3922_v25 = vsel %vm3918_vm1, %v3906_v40, %v3921_v46 }
 0xfc4   : > { %v3931_v20 = vsel %vm3917_vm11, %v3928_v19, %v3930_v9  ;;  %v3842_v24 = vshrl.u32 %v3841_v53, 30  ;;  %v10225_v31 = vmul.u32.u64.low %v3932_v5, %v3927_v48  ;;  %v10226_v49 = vmul.u32.u64.high %v3932_v5, %v3927_v48, %v10225_v31 }
 0xfc5   : > { %v10222_v60 = vmul.u32.u64.low %v3932_v5, %v3931_v20  ;;  %v10223_v21 = vmul.u32.u64.high %v3932_v5, %v3931_v20, %v10222_v60  ;;  %v3923_v11 = vsel %vm3917_vm11, %v3920_v22, %v3922_v25  ;;  %vm3782_vm1 = vcmp.lt.s32.totalorder %v10151_v50, 0 }
 0xfc6   : > { %v3843_v55 = vshll.u32 %v3842_v24, 30  ;;  %v3942_v30 = vadd.s32 1, %v10226_v49  ;;  %v3939_v29 = vmul.u32 %v3932_v5, %v3923_v11  ;;  %vm10240_vm11 = vcmp.le.f32.partialorder %v3780_v13, 0.7853982 }
 0xfc7   : > { %vm3941_vm9 = vc.u32 %v10223_v21, %v10225_v31  ;;  %v3940_v27 = vadd.s32 %v10225_v31, %v10223_v21  ;;  %v3866_v21 = vsub.s32 4, %v3842_v24 }
 0xfc8   : > { %v3844_v33 = vsub.s32 %v3840_v44, %v3843_v55  ;;  %v3943_v35 = vsel %vm3941_vm9, %v3942_v30, %v10226_v49  ;;  %vm3886_vm9 = vcmp.lt.s32.totalorder %v10159_v0, 0 }
 0xfc9   : > { %v3944_v32 = vadd.s32 %v3943_v35, %v3939_v29 }
 0xfca   : > { %v3846_v58 = vsub.s32 0, %v3844_v33 }
 0xfcb   : > { %v3945_v43 = vadd.s32 536870912, %v3944_v32 }
 0xfcc   : > { %v6995_v36 = vmin.u32 %v3846_v58, %v3844_v33 }
 0xfcd   : > { %v3946_v61 = vshrl.u32 %v3945_v43, 30 }
 0xfce   : > { %v3848_v42 = vclz %v6995_v36  ;;  %v3867_v36 = vsel %vm3782_vm1, %v3866_v21, %v3842_v24 }
 0xfcf   : > { %v3947_v38 = vshll.u32 %v3946_v61, 30  ;;  %v3869_v43 = vsel %vm10240_vm11, 0, %v3867_v36 }
 0xfd0   : > { %v6996_v37 = vadd.s32 4294967294, %v3848_v42 }
 0xfd1   : > { %v3948_v44 = vsub.s32 %v3944_v32, %v3947_v38  ;;  %v3873_v38 = vadd.s32 3, %v3869_v43 }
 0xfd2   : > { %vm6997_vm14 = vcmp.lt.s32.totalorder %v6996_v37, 0 }
 0xfd3   : > { %v3851_v34 = vsel %vm6997_vm14, 0, %v6996_v37  ;;  %v3950_v47 = vsub.s32 0, %v3948_v44  ;;  %vm10254_vm14 = vcmp.le.f32.partialorder %v3884_v23, 0.7853982 }
 0xfd4   : > { %v3852_v39 = vsub.s32 32, %v3851_v34  ;;  %v3856_v40 = vsub.s32 4294967266, %v3851_v34  ;;  %v3853_v52 = vshll.u32 %v3844_v33, %v3851_v34  ;;  %v3970_v34 = vsub.s32 4, %v3946_v61 }
 0xfd5   : > { %v6999_v9 = vmin.u32 %v3950_v47, %v3948_v44 }
 0xfd6   : > { %v3854_v57 = vshrl.u32 %v3836_v41, %v3852_v39  ;;  %v3857_v5 = vadd.s32 127, %v3856_v40 }
 0xfd7   : > { %v3952_v46 = vclz %v6999_v9 }
 0xfd8   : > { %v3855_v12 = vor.u32 %v3854_v57, %v3853_v52  ;;  %v3858_v17 = vshll.u32 %v3857_v5, 23  ;;  %v3971_v52 = vsel %vm3886_vm9, %v3970_v34, %v3946_v61  ;;  %v3874_v57 = vand.u32 3, %v3873_v38 }
 0xfd9   : > { %v7000_v22 = vadd.s32 4294967294, %v3952_v46 }
 0xfda   : > { %v3859_v53 = vor.u32 4788187, %v3858_v17  ;;  %v3862_v19 = vcvt.s32.f32 %v3855_v12  ;;  %v3973_v12 = vsel %vm10254_vm14, 0, %v3971_v52 }
 0xfdb   : > { %vm7001_vm15 = vcmp.lt.s32.totalorder %v7000_v22, 0  ;;  %v3977_v9 = vadd.s32 3, %v3973_v12 }
 0xfdc   : > { %v3860_v63 = vand.u32 2147483647, %v3859_v53  ;;  %v3955_v25 = vsel %vm7001_vm15, 0, %v7000_v22  ;;  %vm3876_vm15 = vcmp.eq.s32.totalorder %v3874_v57, 0 }
 0xfdd   : > { %v3956_v28 = vsub.s32 32, %v3955_v25  ;;  %v3960_v60 = vsub.s32 4294967266, %v3955_v25  ;;  %v3957_v33 = vshll.u32 %v3948_v44, %v3955_v25  ;;  %v3978_v46 = vand.u32 3, %v3977_v9 }
 0xfde   : > { %v3863_v48 = vmul.f32 %v3862_v19, %v3860_v63 }
 0xfdf   : > { %v3958_v30 = vshrl.u32 %v3940_v27, %v3956_v28  ;;  %v3961_v58 = vadd.s32 127, %v3960_v60  ;;  %vm3980_vm10 = vcmp.eq.s32.totalorder %v3978_v46, 0  ;;  %v3992_v27 = vpop.permute.xlu1 %3991 }
 0xfe0   : > { %v3864_v20 = vxor.u32 2147483648, %v3863_v48 }
 0xfe1   : > { %v3959_v31 = vor.u32 %v3958_v30, %v3957_v33  ;;  %v3962_v29 = vshll.u32 %v3961_v58, 23 }
 0xfe2   : > { %v3865_v49 = vsel %vm3782_vm1, %v3864_v20, %v3863_v48  ;;  %vm3879_vm1 = vcmp.eq.s32.totalorder %v3874_v57, 2 }
 0xfe3   : > { %v3868_v11 = vsel %vm10240_vm11, %v10151_v50, %v3865_v49  ;;  %v3963_v35 = vor.u32 4788187, %v3962_v29  ;;  %v3966_v32 = vcvt.s32.f32 %v3959_v31  ;;  %vm3875_vm11 = vcmp.lt.s32.totalorder %v3874_v57, 2  ;;  %v3996_v49 = vpop.permute.xlu0 %3995  ;;  %v7881_v31 = vld [vmem:[#allocation33] sm:$0xff]  }
 0xfe4   : > { %7924 = vcosq.f32 %v3868_v11 }
 0xfe5   : > { %7926 = vsinq.f32 %v3868_v11  ;;  %v3964_v13 = vand.u32 2147483647, %v3963_v35 }
 0xfe7   : > { %v3967_v42 = vmul.f32 %v3966_v32, %v3964_v13  ;;  %v4080_v32 = vpop.permute.xlu0 %4079 }
 0xfe9   : > { %v3968_v37 = vxor.u32 2147483648, %v3967_v42 }
 0xfeb   : > { %v3969_v39 = vsel %vm3886_vm9, %v3968_v37, %v3967_v42  ;;  %vm3983_vm9 = vcmp.eq.s32.totalorder %v3978_v46, 2 }
 0xfec   : > { %v3972_v24 = vsel %vm10254_vm14, %v10159_v0, %v3969_v39  ;;  %vm3979_vm14 = vcmp.lt.s32.totalorder %v3978_v46, 2 }
 0xfed   : > { %7928 = vcosq.f32 %v3972_v24 }
 0xfee   : > { %7930 = vsinq.f32 %v3972_v24 }
 0xff1   : > { %v7925_v40 = vpop.eup %7924 }
 0xff2   : > { %v7927_v44 = vpop.eup %7926  ;;  %v3880_v47 = vxor.u32 2147483648, %v7925_v40 }
 0xff3   : > { %v3877_v5 = vxor.u32 2147483648, %v7927_v44 }
 0xff4   : > { %v3881_v17 = vsel %vm3879_vm1, %v3880_v47, %v7927_v44 }
 0xff5   : > { %v3878_v23 = vsel %vm3876_vm15, %v7925_v40, %v3877_v5  ;;  %vm3976_vm15 = vweird.f32 %v10159_v0  ;;  %v4006_v0 = vpop.permute.xlu1 %4005 }
 0xff6   : > { %v3882_v53 = vsel %vm3875_vm11, %v3878_v23, %v3881_v17 }
 0xff7   : > { %v3883_v19 = vsel %vm3872_vm2, nan, %v3882_v53  ;;  %vm4018_vm2 = vcmask 130048  }
 0xff8   : > { %v3988_v20 = vmul.f32 %v3883_v19, %v3883_v19 }
 0xff9   : > { %v4011_v35 = vpop.permute.xlu1 %4010 }
 0xffa   : > { %v7929_v63 = vpop.eup %7928  ;;  %v3998_v11 = vmul.f32 %v3992_v27, %v3988_v20 }
 0xffb   : > { %v7931_v61 = vpop.eup %7930  ;;  %v3984_v22 = vxor.u32 2147483648, %v7929_v63 }
 0xffc   : > { %v3981_v48 = vxor.u32 2147483648, %v7931_v61  ;;  %v4000_v30 = vadd.f32 %v3998_v11, %v10148_v51 }
 0xffd   : > { %v3985_v25 = vsel %vm3983_vm9, %v3984_v22, %v7931_v61  ;;  %v4085_v39 = vpop.permute.xlu1 %4084 }
 0xffe   : > { %v3982_v28 = vsel %vm3980_vm10, %v7929_v63, %v3981_v48 }
 0xfff   : > { %v3986_v60 = vsel %vm3979_vm14, %v3982_v28, %v3985_v25 }
0x1000   : > { %v3987_v55 = vsel %vm3976_vm15, nan, %v3986_v60 }
0x1001   : > { %v3989_v33 = vmul.f32 %v3987_v55, %v3987_v55 }
0x1003   : > { %v3999_v50 = vmul.f32 %v3996_v49, %v3989_v33 }
0x1005   : > { %v4001_v58 = vadd.f32 %v3999_v50, %v10156_v14 }
0x1007   : > { %v4002_v21 = vpack.c.bf16 %v4001_v58, %v4000_v30 }
0x1009   : > { %7255 = vmatpush3.bf16.msra.mxu0 %v4002_v21 }
0x100a   : > { %7260 = vmatprep.subr.bf16.mxu0 %v8864_v2 }
0x100c   : > { %7257 = vmatmul.mubr.msk.bf16.vlgmr.msra.gmra.mxu0 %vm4018_vm2, %v7881_v31 }
0x100d   : > { %7274 = vmatprep.mubr.msk.bf16.mxu0 %vm8885_vm0, %v8864_v2 }
0x10cc   : > { %v4056_v29 = vpop.f32.mrf.mxu0 }
0x10cd   : > { %v4057_v36 = vadd.f32 %v4056_v29, %v4006_v0 }
0x10ce   : > { %v7258_v13 = vpop.f32.mrf.mxu0 }
0x10cf   : > { %v10272_v51 = vadd.f32 %v4057_v36, %v9979_v16 }
0x10d0   : > { %v4059_v14 = vpop.f32.mrf.mxu0 }
0x10d1   : > { %v10275_v42 = vmul.f32 %v4080_v32, %v10272_v51  ;;  %v4060_v43 = vadd.f32 %v4059_v14, %v4011_v35 }
0x10d2   : > { %v7259_v37 = vpop.f32.mrf.mxu0 }
0x10d3   : > { %v4089_v34 = vand.u32 2147483647, %v10275_v42  ;;  %v4092_v38 = vand.u32 2139095040, %v10275_v42  ;;  %v10280_v41 = vadd.f32 %v4060_v43, %v9985_v45 }
0x10d5   : > { %v4093_v24 = vshrl.u32 %v4092_v38, 23  ;;  %v10283_v40 = vmul.f32 %v4085_v39, %v10280_v41  ;;  %v4096_v16 = vand.u32 8388607, %v4089_v34 }
0x10d7   : > { %v7004_v44 = vadd.s32 4294967169, %v4093_v24  ;;  %v4196_v52 = vand.u32 2139095040, %v10283_v40  ;;  %v4097_v47 = vor.u32 8388608, %v4096_v16  ;;  %v4193_v23 = vand.u32 2147483647, %v10283_v40 }
0x10d9   : > { %v4099_v57 = vadd.s32 1, %v7004_v44  ;;  %v4197_v5 = vshrl.u32 %v4196_v52, 23  ;;  %v10289_v53 = vshll.u32 %v4097_v47, 8  ;;  %v4200_v61 = vand.u32 8388607, %v4193_v23 }
0x10db   : > { %vm4100_vm10 = vcmp.gt.s32.totalorder %v4099_v57, 0  ;;  %v7008_v12 = vadd.s32 4294967169, %v4197_v5  ;;  %v4201_v43 = vor.u32 8388608, %v4200_v61 }
0x10dc   : > { %v4101_v45 = vsel %vm4100_vm10, %v4099_v57, 0 }
0x10dd   : > { %v4102_v17 = vshrl.u32 %v4101_v45, 5  ;;  %v4103_v9 = vand.u32 31, %v4101_v45  ;;  %v4203_v19 = vadd.s32 1, %v7008_v12 }
0x10df   : > { %v4104_v46 = vsub.s32 32, %v4103_v9  ;;  %v4106_v63 = vshll.u32 %v8877_v54, %v4103_v9  ;;  %v4109_v22 = vshll.u32 %v8878_v56, %v4103_v9  ;;  %v4112_v48 = vshll.u32 %v8879_v59, %v4103_v9 }
0x10e0   : > { %v4115_v20 = vshll.u32 %v8880_v62, %v4103_v9  ;;  %v4118_v25 = vshll.u32 %v8881_v3, %v4103_v9  ;;  %vm4121_vm1 = vcmp.lt.s32.totalorder %v4102_v17, 1  ;;  %vm4123_vm11 = vcmp.lt.s32.totalorder %v4102_v17, 3 }
0x10e1   : > { %v4107_v27 = vshrl.u32 %v8878_v56, %v4104_v46  ;;  %v4110_v28 = vshrl.u32 %v8879_v59, %v4104_v46  ;;  %v4113_v60 = vshrl.u32 %v8880_v62, %v4104_v46  ;;  %v4105_v49 = vshrl.u32 %v8877_v54, %v4104_v46 }
0x10e2   : > { %v4116_v55 = vshrl.u32 %v8881_v3, %v4104_v46  ;;  %v4119_v11 = vshrl.u32 %v8882_v6, %v4104_v46  ;;  %vm4204_vm9 = vcmp.gt.s32.totalorder %v4203_v19, 0  ;;  %vm4124_vm14 = vcmp.lt.s32.totalorder %v4102_v17, 4 }
0x10e3   : > { %v4108_v33 = vor.u32 %v4107_v27, %v4106_v63  ;;  %v4111_v50 = vor.u32 %v4110_v28, %v4109_v22  ;;  %v4114_v30 = vor.u32 %v4113_v60, %v4112_v48  ;;  %v4205_v31 = vsel %vm4204_vm9, %v4203_v19, 0 }
0x10e4   : > { %v4117_v58 = vor.u32 %v4116_v55, %v4115_v20  ;;  %v4120_v21 = vor.u32 %v4119_v11, %v4118_v25  ;;  %vm4122_vm15 = vcmp.lt.s32.totalorder %v4102_v17, 2  ;;  %v4207_v39 = vand.u32 31, %v4205_v31 }
0x10e5   : > { %v4125_v0 = vsel %vm4121_vm1, %v4105_v49, %v4108_v33  ;;  %v4126_v29 = vsel %vm4124_vm14, %v4114_v30, 2102212464  ;;  %v4129_v35 = vsel %vm4121_vm1, %v4108_v33, %v4111_v50  ;;  %v4133_v36 = vsel %vm4121_vm1, %v4111_v50, %v4114_v30 }
0x10e6   : > { %v4127_v13 = vsel %vm4123_vm11, %v4111_v50, %v4126_v29  ;;  %v4130_v32 = vsel %vm4124_vm14, %v4117_v58, 920167782  ;;  %v4134_v14 = vsel %vm4124_vm14, %v4120_v21, 1326507024  ;;  %v4206_v12 = vshrl.u32 %v4205_v31, 5 }
0x10e7   : > { %v4131_v37 = vsel %vm4123_vm11, %v4114_v30, %v4130_v32  ;;  %v4135_v38 = vsel %vm4123_vm11, %v4117_v58, %v4134_v14  ;;  %v4128_v24 = vsel %vm4122_vm15, %v4125_v0, %v4127_v13  ;;  %v4208_v45 = vsub.s32 32, %v4207_v39 }
0x10e8   : > { %v4132_v16 = vsel %vm4122_vm15, %v4129_v35, %v4131_v37  ;;  %v4136_v44 = vsel %vm4122_vm15, %v4133_v36, %v4135_v38  ;;  %v4241_v9 = vshll.u32 %v4201_v43, 8  ;;  %v4144_v46 = vmul.u32 %v10289_v53, %v4128_v24 }
0x10e9   : > { %v10311_v52 = vmul.u32.u64.low %v10289_v53, %v4136_v44  ;;  %v10312_v57 = vmul.u32.u64.high %v10289_v53, %v4136_v44, %v10311_v52  ;;  %v10315_v5 = vmul.u32.u64.low %v10289_v53, %v4132_v16  ;;  %v10316_v47 = vmul.u32.u64.high %v10289_v53, %v4132_v16, %v10315_v5 }
0x10ea   : > { %v4210_v17 = vshll.u32 %v8877_v54, %v4207_v39  ;;  %v4213_v63 = vshll.u32 %v8878_v56, %v4207_v39  ;;  %v4216_v19 = vshll.u32 %v8879_v59, %v4207_v39  ;;  %v4211_v61 = vshrl.u32 %v8878_v56, %v4208_v45 }
0x10eb   : > { %v4214_v22 = vshrl.u32 %v8879_v59, %v4208_v45  ;;  %v4217_v48 = vshrl.u32 %v8880_v62, %v4208_v45  ;;  %v4219_v20 = vshll.u32 %v8880_v62, %v4207_v39  ;;  %vm4146_vm10 = vc.u32 %v10312_v57, %v10315_v5 }
0x10ec   : > { %v4147_v25 = vadd.s32 1, %v10316_v47  ;;  %v4220_v53 = vshrl.u32 %v8881_v3, %v4208_v45  ;;  %v4222_v27 = vshll.u32 %v8881_v3, %v4207_v39  ;;  %v4212_v28 = vor.u32 %v4211_v61, %v4210_v17 }
0x10ed   : > { %v4215_v60 = vor.u32 %v4214_v22, %v4213_v63  ;;  %v4218_v49 = vor.u32 %v4217_v48, %v4216_v19  ;;  %v4223_v55 = vshrl.u32 %v8882_v6, %v4208_v45  ;;  %vm4225_vm1 = vcmp.lt.s32.totalorder %v4206_v12, 1 }
0x10ee   : > { %v4148_v11 = vsel %vm4146_vm10, %v4147_v25, %v10316_v47  ;;  %v4221_v33 = vor.u32 %v4220_v53, %v4219_v20  ;;  %vm4228_vm11 = vcmp.lt.s32.totalorder %v4206_v12, 4  ;;  %vm4227_vm9 = vcmp.lt.s32.totalorder %v4206_v12, 3 }
0x10ef   : > { %v4149_v50 = vadd.s32 %v4148_v11, %v4144_v46  ;;  %v4224_v30 = vor.u32 %v4223_v55, %v4222_v27  ;;  %v4230_v58 = vsel %vm4228_vm11, %v4218_v49, 2102212464  ;;  %v4209_v21 = vshrl.u32 %v8877_v54, %v4208_v45 }
0x10f0   : > { %v4233_v31 = vsel %vm4225_vm1, %v4212_v28, %v4215_v60  ;;  %v4234_v0 = vsel %vm4228_vm11, %v4221_v33, 920167782  ;;  %v4237_v29 = vsel %vm4225_vm1, %v4215_v60, %v4218_v49  ;;  %vm4226_vm14 = vcmp.lt.s32.totalorder %v4206_v12, 2 }
0x10f1   : > { %v4150_v35 = vadd.s32 536870912, %v4149_v50  ;;  %v4235_v36 = vsel %vm4227_vm9, %v4218_v49, %v4234_v0  ;;  %v4238_v13 = vsel %vm4228_vm11, %v4224_v30, 1326507024  ;;  %v4229_v32 = vsel %vm4225_vm1, %v4209_v21, %v4212_v28 }
0x10f2   : > { %v4231_v14 = vsel %vm4227_vm9, %v4215_v60, %v4230_v58  ;;  %v4236_v43 = vsel %vm4226_vm14, %v4233_v31, %v4235_v36  ;;  %v4239_v37 = vsel %vm4227_vm9, %v4221_v33, %v4238_v13  ;;  %v4145_v49 = vadd.s32 %v10315_v5, %v10312_v57 }
0x10f3   : > { %v4151_v38 = vshrl.u32 %v4150_v35, 30  ;;  %v4240_v39 = vsel %vm4226_vm14, %v4237_v29, %v4239_v37  ;;  %v10335_v24 = vmul.u32.u64.low %v4241_v9, %v4236_v43  ;;  %v10336_v16 = vmul.u32.u64.high %v4241_v9, %v4236_v43, %v10335_v24 }
0x10f4   : > { %v10338_v44 = vmul.u32.u64.low %v4241_v9, %v4240_v39  ;;  %v10339_v52 = vmul.u32.u64.high %v4241_v9, %v4240_v39, %v10338_v44  ;;  %v4232_v45 = vsel %vm4226_vm14, %v4229_v32, %v4231_v14  ;;  %vm4091_vm11 = vcmp.lt.s32.totalorder %v10275_v42, 0 }
0x10f5   : > { %v4152_v47 = vshll.u32 %v4151_v38, 30  ;;  %v4251_v17 = vadd.s32 1, %v10336_v16  ;;  %v4248_v12 = vmul.u32 %v4241_v9, %v4232_v45  ;;  %v4175_v39 = vsub.s32 4, %v4151_v38 }
0x10f6   : > { %vm4250_vm15 = vc.u32 %v10339_v52, %v10335_v24  ;;  %v4249_v43 = vadd.s32 %v10335_v24, %v10339_v52  ;;  %vm4090_vm9 = vcmp.le.f32.partialorder %v4089_v34, 0.7853982  ;;  %vm4195_vm14 = vcmp.lt.s32.totalorder %v10283_v40, 0 }
0x10f7   : > { %v4153_v46 = vsub.s32 %v4149_v50, %v4152_v47  ;;  %v4252_v19 = vsel %vm4250_vm15, %v4251_v17, %v10336_v16  ;;  %vm10354_vm15 = vcmp.le.f32.partialorder %v4193_v23, 0.7853982 }
0x10f8   : > { %v4253_v61 = vadd.s32 %v4252_v19, %v4248_v12 }
0x10f9   : > { %v4155_v63 = vsub.s32 0, %v4153_v46 }
0x10fa   : > { %v4254_v48 = vadd.s32 536870912, %v4253_v61 }
0x10fb   : > { %v7005_v22 = vmin.u32 %v4155_v63, %v4153_v46  ;;  %v4176_v63 = vsel %vm4091_vm11, %v4175_v39, %v4151_v38 }
0x10fc   : > { %v4255_v25 = vshrl.u32 %v4254_v48, 30 }
0x10fd   : > { %v4157_v20 = vclz %v7005_v22 }
0x10fe   : > { %v4256_v27 = vshll.u32 %v4255_v25, 30 }
0x10ff   : > { %v7006_v53 = vadd.s32 4294967294, %v4157_v20 }
0x1100   : > { %v4257_v60 = vsub.s32 %v4253_v61, %v4256_v27  ;;  %v4178_v61 = vsel %vm4090_vm9, 0, %v4176_v63  ;;  %v4071_v63 = vld [vmem:[%s11653_s14] sm:$0xff] }
0x1101   : > { %vm7007_vm10 = vcmp.lt.s32.totalorder %v7006_v53, 0  ;;  %v4182_v48 = vadd.s32 3, %v4178_v61 }
0x1102   : > { %v4160_v28 = vsel %vm7007_vm10, 0, %v7006_v53  ;;  %v4259_v11 = vsub.s32 0, %v4257_v60  ;;  %v4279_v53 = vsub.s32 4, %v4255_v25 }
0x1103   : > { %v4161_v55 = vsub.s32 32, %v4160_v28  ;;  %v4165_v9 = vsub.s32 4294967266, %v4160_v28  ;;  %v4162_v33 = vshll.u32 %v4153_v46, %v4160_v28  ;;  %v4183_v28 = vand.u32 3, %v4182_v48 }
0x1104   : > { %v7009_v58 = vmin.u32 %v4259_v11, %v4257_v60 }
0x1105   : > { %v4163_v50 = vshrl.u32 %v4145_v49, %v4161_v55  ;;  %v4166_v30 = vadd.s32 127, %v4165_v9  ;;  %vm4188_vm10 = vcmp.eq.s32.totalorder %v4183_v28, 2 }
0x1106   : > { %v4261_v0 = vclz %v7009_v58 }
0x1107   : > { %v4164_v21 = vor.u32 %v4163_v50, %v4162_v33  ;;  %v4167_v31 = vshll.u32 %v4166_v30, 23 }
0x1108   : > { %v7010_v35 = vadd.s32 4294967294, %v4261_v0 }
0x1109   : > { %v4168_v29 = vor.u32 4788187, %v4167_v31  ;;  %v4171_v13 = vcvt.s32.f32 %v4164_v21  ;;  %v4301_v21 = vpop.permute.xlu1 %4300 }
0x110a   : > { %vm7011_vm1 = vcmp.lt.s32.totalorder %v7010_v35, 0 }
0x110b   : > { %v4169_v36 = vand.u32 2147483647, %v4168_v29  ;;  %v4264_v14 = vsel %vm7011_vm1, 0, %v7010_v35  ;;  %vm4185_vm1 = vcmp.eq.s32.totalorder %v4183_v28, 0 }
0x110c   : > { %v4265_v57 = vsub.s32 32, %v4264_v14  ;;  %v4269_v5 = vsub.s32 4294967266, %v4264_v14  ;;  %v4266_v16 = vshll.u32 %v4257_v60, %v4264_v14  ;;  %v4280_v60 = vsel %vm4195_vm14, %v4279_v53, %v4255_v25 }
0x110d   : > { %v4172_v32 = vmul.f32 %v4171_v13, %v4169_v36  ;;  %v4282_v23 = vsel %vm10354_vm15, 0, %v4280_v60 }
0x110e   : > { %v4267_v44 = vshrl.u32 %v4249_v43, %v4265_v57  ;;  %v4270_v47 = vadd.s32 127, %v4269_v5  ;;  %v4286_v58 = vadd.s32 3, %v4282_v23  ;;  %v4305_v5 = vpop.permute.xlu0 %4304 }
0x110f   : > { %v4173_v37 = vxor.u32 2147483648, %v4172_v32 }
0x1110   : > { %v4268_v17 = vor.u32 %v4267_v44, %v4266_v16  ;;  %v4271_v12 = vshll.u32 %v4270_v47, 23  ;;  %v4287_v29 = vand.u32 3, %v4286_v58 }
0x1111   : > { %v4174_v45 = vsel %vm4091_vm11, %v4173_v37, %v4172_v32  ;;  %vm4184_vm11 = vcmp.lt.s32.totalorder %v4183_v28, 2 }
0x1112   : > { %v4177_v46 = vsel %vm4090_vm9, %v10275_v42, %v4174_v45  ;;  %v4272_v24 = vor.u32 4788187, %v4271_v12  ;;  %v4275_v19 = vcvt.s32.f32 %v4268_v17  ;;  %vm4181_vm9 = vweird.f32 %v10275_v42  ;;  %v4070_v17 = vld [vmem:[#allocation38 + $0x8] sm:$0xff] }
0x1113   : > { %7932 = vcosq.f32 %v4177_v46  ;;  %v4072_v12 = vld [vmem:[%s11653_s14 + $0x8] sm:$0xff] }
0x1114   : > { %7934 = vsinq.f32 %v4177_v46  ;;  %v4273_v52 = vand.u32 2147483647, %v4272_v24  ;;  %v4069_v46 = vld [vmem:[#allocation38] sm:$0xff] }
0x1116   : > { %v4276_v22 = vmul.f32 %v4275_v19, %v4273_v52 }
0x1118   : > { %v4277_v20 = vxor.u32 2147483648, %v4276_v22 }
0x111a   : > { %v4278_v27 = vsel %vm4195_vm14, %v4277_v20, %v4276_v22  ;;  %vm4292_vm14 = vcmp.eq.s32.totalorder %v4287_v29, 2 }
0x111b   : > { %v4281_v38 = vsel %vm10354_vm15, %v10283_v40, %v4278_v27  ;;  %vm4289_vm15 = vcmp.eq.s32.totalorder %v4287_v29, 0 }
0x111c   : > { %7936 = vcosq.f32 %v4281_v38 }
0x111d   : > { %7938 = vsinq.f32 %v4281_v38 }
0x1120   : > { %v7933_v49 = vpop.eup %7932 }
0x1121   : > { %v7935_v55 = vpop.eup %7934  ;;  %v4189_v9 = vxor.u32 2147483648, %v7933_v49 }
0x1122   : > { %v4186_v11 = vxor.u32 2147483648, %v7935_v55 }
0x1123   : > { %v4190_v33 = vsel %vm4188_vm10, %v4189_v9, %v7935_v55  ;;  %vm4288_vm10 = vcmp.lt.s32.totalorder %v4287_v29, 2 }
0x1124   : > { %v4187_v50 = vsel %vm4185_vm1, %v7933_v49, %v4186_v11  ;;  %vm4285_vm1 = vweird.f32 %v10283_v40 }
0x1125   : > { %v4191_v30 = vsel %vm4184_vm11, %v4187_v50, %v4190_v33  ;;  %vm4369_vm11 = vcmask 211968  }
0x1126   : > { %v4192_v31 = vsel %vm4181_vm9, nan, %v4191_v30  ;;  %vm4378_vm9 = vcmask 187392  }
0x1127   : > { %v4297_v25 = vmul.f32 %v4192_v31, %v4192_v31 }
0x1129   : > { %v4307_v0 = vmul.f32 %v4301_v21, %v4297_v25  ;;  %v7937_v35 = vpop.eup %7936 }
0x112a   : > { %v7939_v13 = vpop.eup %7938  ;;  %v4293_v32 = vxor.u32 2147483648, %v7937_v35 }
0x112b   : > { %v4309_v36 = vadd.f32 %v4307_v0, %v10272_v51  ;;  %v4290_v14 = vxor.u32 2147483648, %v7939_v13 }
0x112c   : > { %v4294_v42 = vsel %vm4292_vm14, %v4293_v32, %v7939_v13  ;;  %vm4342_vm14 = vcmask 261168   ;;  %v7882_v32 = vld [vmem:[#allocation36] sm:$0xff]  }
0x112d   : > { %4353 = vst.msk [vmem:[#allocation2 + $0x30] sm:$0xff] %vm3324_vm4, %v4309_v36  ;;  %4363 = vrot.lane.b32.xlu0 %v4309_v36, %s11652_s17  ;;  %4372 = vrot.lane.b32.xlu1 %v4309_v36, %s11522_s16  ;;  %v4291_v43 = vsel %vm4289_vm15, %v7937_v35, %v4290_v14  ;;  %vm4333_vm15 = vcmask 261192  }
0x112e   : > { %v4295_v57 = vsel %vm4288_vm10, %v4291_v43, %v4294_v42 }
0x112f   : > { %v4296_v37 = vsel %vm4285_vm1, nan, %v4295_v57 }
0x1130   : > { %v4298_v39 = vmul.f32 %v4296_v37, %v4296_v37 }
0x1131   : > { %4355 = vrot.lane.b32.xlu0 %v4309_v36, %s11641_s12 }
0x1132   : > { %v4308_v16 = vmul.f32 %v4305_v5, %v4298_v39 }
0x1134   : > { %v10370_v44 = vld [vmem:[#allocation2 + $0x30] sm:$0xff]  ;;  %v4310_v47 = vadd.f32 %v4308_v16, %v10280_v41 }
0x1135   : > { %4345 = vrot.lane.b32.xlu0 %v4309_v36, %s11644_s8  ;;  %5009 = vst.msk [vmem:[#allocation2 + $0x30] sm:$0xff] %vm3324_vm4, %v8864_v2 }
0x1136   : > { %4354 = vst.msk [vmem:[#allocation2 + $0x38] sm:$0xff] %vm3324_vm4, %v4310_v47  ;;  %4374 = vrot.lane.b32.xlu1 %v4310_v47, %s11522_s16 }
0x1139   : > { %4336 = vrot.lane.b32.xlu0 %v4309_v36, %s11654_s15 }
0x113a   : > { %4365 = vrot.lane.b32.xlu1 %v4310_v47, %s11652_s17  ;;  %s11655_s17 = sld [smem:[#allocation88_spill]] }
0x113d   : > { %4327 = vrot.lane.b32.xlu0 %v4309_v36, %s11524_s5  ;;  %v10381_v40 = vld [vmem:[#allocation2 + $0x38] sm:$0xff] }
0x113e   : > { %4357 = vrot.lane.b32.xlu1 %v4310_v47, %s11641_s12  ;;  %v4398_v45 = vpack.c.bf16 %v10381_v40, %v10370_v44  ;;  %5010 = vst.msk [vmem:[#allocation2 + $0x38] sm:$0xff] %vm3324_vm4, %v8864_v2  ;;  %s11664_s12 = sld [smem:[#allocation91_spill]] }
0x1140   : > { %v4075_v14 = vld [vmem:[%s11655_s17] sm:$0xff]  ;;  %v4076_v43 = vld [vmem:[%s11655_s17 + $0x8] sm:$0xff] }
0x1141   : > { %4404 = vperm.xlu0 %7858, %v4069_v46  }
0x1142   : > { %4347 = vrot.lane.b32.xlu1 %v4310_v47, %s11644_s8  ;;  %s11663_s8 = smov 101  }
0x1145   : > { %4468 = vperm.xlu0 %7858, %v4072_v12  }
0x1146   : > { %4338 = vrot.lane.b32.xlu1 %v4310_v47, %s11654_s15  ;;  %s11656_s15 = sld [smem:[#allocation89_spill]] }
0x1149   : > { %7861 = vset.pattern.permute.xlu0 %v8863_v1 }
0x114a   : > { %4329 = vrot.lane.b32.xlu1 %v4310_v47, %s11524_s5  ;;  %4688 = vperm.xlu0 %7861, %v4072_v12  }
0x114c   : > { %v4757_v42 = vld [vmem:[%s11656_s15] sm:$0xff]  ;;  %v4758_v57 = vld [vmem:[%s11656_s15 + $0x8] sm:$0xff] }
0x114e   : > { %4409 = vperm.xlu1 %7859, %v4070_v17   ;;  %7863 = vset.pattern.permute.xlu0 %v8869_v8 }
0x114f   : > { %4771 = vperm.xlu0 %7863, %v4757_v42  }
0x1152   : > { %4463 = vperm.xlu1 %7859, %v4071_v63  }
0x1153   : > { %7865 = vset.pattern.permute.xlu0 %v8863_v1 }
0x1154   : > { %4996 = vperm.xlu0 %7865, %v4758_v57  }
0x1156   : > { %7860 = vset.pattern.permute.xlu1 %v8863_v1 }
0x1157   : > { %4684 = vperm.xlu1 %7860, %v4071_v63  }
0x1158   : > { %7866 = vset.pattern.permute.xlu0 %v8869_v8 }
0x115b   : > { %7862 = vset.pattern.permute.xlu1 %v8869_v8 }
0x115c   : > { %4698 = vperm.xlu1 %7862, %v4075_v14  }
0x1160   : > { %4703 = vperm.xlu1 %7862, %v4076_v43  }
0x1164   : > { %4776 = vperm.xlu1 %7862, %v4758_v57  }
0x1168   : > { %7864 = vset.pattern.permute.xlu1 %v8863_v1 }
0x1169   : > { %4992 = vperm.xlu1 %7864, %v4757_v42  }
0x116d   : > { %7867 = vset.pattern.permute.xlu1 %v8869_v8 }
0x119f   : > { %v4364_v24 = vpop.permute.xlu0 %4363  ;;  %v4373_v52 = vpop.permute.xlu1 %4372 }
0x11a0   : > { %4370 = vst.msk [vmem:[#allocation2 + $0x50] sm:$0xff] %vm4369_vm11, %v4364_v24 }
0x11a1   : > { %4379 = vst.msk [vmem:[#allocation2 + $0x60] sm:$0xff] %vm4378_vm9, %v4373_v52 }
0x11a3   : > { %v4356_v19 = vpop.permute.xlu0 %4355 }
0x11a4   : > { %4361 = vst.msk [vmem:[#allocation2 + $0x40] sm:$0xff] %vm3684_vm6, %v4356_v19 }
0x11a7   : > { %v4346_v61 = vpop.permute.xlu0 %4345  ;;  %v4391_v48 = vld [vmem:[#allocation2 + $0x50] sm:$0xff] }
0x11a8   : > { %v4393_v22 = vld [vmem:[#allocation2 + $0x60] sm:$0xff]  ;;  %4351 = vst.msk [vmem:[#allocation2 + $0x20] sm:$0xff] %vm3637_vm5, %v4346_v61  ;;  %v4375_v20 = vpop.permute.xlu1 %4374 }
0x11a9   : > { %5015 = vst.msk [vmem:[#allocation2 + $0x60] sm:$0xff] %vm3324_vm4, %v8864_v2  ;;  %5013 = vst.msk [vmem:[#allocation2 + $0x50] sm:$0xff] %vm3324_vm4, %v8864_v2 }
0x11aa   : > { %4380 = vst.msk [vmem:[#allocation2 + $0x68] sm:$0xff] %vm4378_vm9, %v4375_v20 }
0x11ab   : > { %v4337_v53 = vpop.permute.xlu0 %4336  ;;  %v4389_v34 = vld [vmem:[#allocation2 + $0x40] sm:$0xff] }
0x11ac   : > { %4343 = vst.msk [vmem:[#allocation2 + $0x10] sm:$0xff] %vm4342_vm14, %v4337_v53  ;;  %v4366_v27 = vpop.permute.xlu1 %4365 }
0x11ad   : > { %5011 = vst.msk [vmem:[#allocation2 + $0x40] sm:$0xff] %vm3324_vm4, %v8864_v2 }
0x11ae   : > { %4371 = vst.msk [vmem:[#allocation2 + $0x58] sm:$0xff] %vm4369_vm11, %v4366_v27 }
0x11af   : > { %v4328_v38 = vpop.permute.xlu0 %4327  ;;  %v4385_v28 = vld [vmem:[#allocation2 + $0x20] sm:$0xff] }
0x11b0   : > { %4334 = vst.msk [vmem:[#allocation2] sm:$0xff] %vm4333_vm15, %v4328_v38  ;;  %v4358_v60 = vpop.permute.xlu1 %4357 }
0x11b1   : > { %5007 = vst.msk [vmem:[#allocation2 + $0x20] sm:$0xff] %vm3324_vm4, %v8864_v2  ;;  %v4394_v49 = vld [vmem:[#allocation2 + $0x68] sm:$0xff] }
0x11b2   : > { %4362 = vst.msk [vmem:[#allocation2 + $0x48] sm:$0xff] %vm3684_vm6, %v4358_v60  ;;  %v4401_v55 = vpack.c.bf16 %v4394_v49, %v4393_v22 }
0x11b3   : > { %5016 = vst.msk [vmem:[#allocation2 + $0x68] sm:$0xff] %vm3324_vm4, %v8864_v2  ;;  %v4383_v9 = vld [vmem:[#allocation2 + $0x10] sm:$0xff] }
0x11b4   : > { %5005 = vst.msk [vmem:[#allocation2 + $0x10] sm:$0xff] %vm3324_vm4, %v8864_v2  ;;  %7261 = vmatpush3.bf16.msra.mxu0 %v4401_v55  ;;  %v4348_v11 = vpop.permute.xlu1 %4347 }
0x11b5   : > { %7262 = vmatprep.subr.bf16.mxu0 %v8864_v2  ;;  %v4392_v23 = vld [vmem:[#allocation2 + $0x58] sm:$0xff]  ;;  %4352 = vst.msk [vmem:[#allocation2 + $0x28] sm:$0xff] %vm3637_vm5, %v4348_v11 }
0x11b6   : > { %v4400_v33 = vpack.c.bf16 %v4392_v23, %v4391_v48  ;;  %5014 = vst.msk [vmem:[#allocation2 + $0x58] sm:$0xff] %vm3324_vm4, %v8864_v2 }
0x11b7   : > { %v4381_v50 = vld [vmem:[#allocation2] sm:$0xff] }
0x11b8   : > { %5003 = vst.msk [vmem:[#allocation2] sm:$0xff] %vm3324_vm4, %v8864_v2  ;;  %7263 = vmatpush3.bf16.msra.mxu0 %v4400_v33  ;;  %v4339_v30 = vpop.permute.xlu1 %4338 }
0x11b9   : > { %7264 = vmatprep.subr.bf16.mxu0 %v8864_v2  ;;  %v4390_v58 = vld [vmem:[#allocation2 + $0x48] sm:$0xff]  ;;  %4344 = vst.msk [vmem:[#allocation2 + $0x18] sm:$0xff] %vm4342_vm14, %v4339_v30 }
0x11ba   : > { %v4399_v21 = vpack.c.bf16 %v4390_v58, %v4389_v34  ;;  %5012 = vst.msk [vmem:[#allocation2 + $0x48] sm:$0xff] %vm3324_vm4, %v8864_v2 }
0x11bc   : > { %7265 = vmatpush3.bf16.msra.mxu0 %v4399_v21  ;;  %v4330_v31 = vpop.permute.xlu1 %4329  ;;  %v4386_v25 = vld [vmem:[#allocation2 + $0x28] sm:$0xff]  ;;  %v4405_v37 = vpop.permute.xlu0 %4404 }
0x11bd   : > { %7266 = vmatprep.subr.bf16.mxu0 %v8864_v2  ;;  %4335 = vst.msk [vmem:[#allocation2 + $0x8] sm:$0xff] %vm4333_vm15, %v4330_v31  ;;  %v4397_v29 = vpack.c.bf16 %v4386_v25, %v4385_v28 }
0x11be   : > { %5008 = vst.msk [vmem:[#allocation2 + $0x28] sm:$0xff] %vm3324_vm4, %v8864_v2 }
0x11c0   : > { %7267 = vmatpush3.bf16.msra.mxu0 %v4398_v45  ;;  %v4384_v0 = vld [vmem:[#allocation2 + $0x18] sm:$0xff]  ;;  %v4469_v63 = vpop.permute.xlu0 %4468 }
0x11c1   : > { %7268 = vmatprep.subr.bf16.mxu0 %v8864_v2  ;;  %5006 = vst.msk [vmem:[#allocation2 + $0x18] sm:$0xff] %vm3324_vm4, %v8864_v2  ;;  %v4396_v36 = vpack.c.bf16 %v4384_v0, %v4383_v9 }
0x11c4   : > { %7269 = vmatpush3.bf16.msra.mxu0 %v4397_v29  ;;  %v4382_v35 = vld [vmem:[#allocation2 + $0x8] sm:$0xff] }
0x11c5   : > { %7270 = vmatprep.subr.bf16.mxu0 %v8864_v2  ;;  %5004 = vst.msk [vmem:[#allocation2 + $0x8] sm:$0xff] %vm3324_vm4, %v8864_v2  ;;  %v4395_v13 = vpack.c.bf16 %v4382_v35, %v4381_v50 }
0x11c8   : > { %7271 = vmatpush3.bf16.msra.mxu0 %v4396_v36 }
0x11c9   : > { %7272 = vmatprep.subr.bf16.mxu0 %v8864_v2  ;;  %v4410_v5 = vpop.permute.xlu1 %4409 }
0x11cc   : > { %7273 = vmatpush3.bf16.msra.mxu0 %v4395_v13 }
0x11cd   : > { %7302 = vmatprep.subr.bf16.mxu0 %v8864_v2  ;;  %v4464_v16 = vpop.permute.xlu1 %4463 }
0x11cf   : > { %7275 = vmatmul.mubr.msk.bf16.vlgmr.msra.gmra.mxu0 %vm3723_vm7, %v7882_v32 }
0x11d0   : > { %7304 = vmatprep.mubr.msk.bf16.mxu0 %vm8885_vm0, %v8864_v2 }
0x128f   : > { %v4454_v39 = vpop.f32.mrf.mxu0 }
0x1290   : > { %v10453_v44 = vadd.f32 %v4454_v39, %v4405_v37 }
0x1291   : > { %v7276_v47 = vpop.f32.mrf.mxu0 }
0x1292   : > { %v10456_v40 = vmul.f32 %v4464_v16, %v10453_v44 }
0x1293   : > { %v4457_v45 = vpop.f32.mrf.mxu0 }
0x1294   : > { %v4473_v46 = vand.u32 2147483647, %v10456_v40  ;;  %v4476_v17 = vand.u32 2139095040, %v10456_v40  ;;  %v10461_v12 = vadd.f32 %v4457_v45, %v4410_v5 }
0x1295   : > { %v7277_v24 = vpop.f32.mrf.mxu0 }
0x1296   : > { %v4477_v52 = vshrl.u32 %v4476_v17, 23  ;;  %v10464_v19 = vmul.f32 %v4469_v63, %v10461_v12  ;;  %v4480_v61 = vand.u32 8388607, %v4473_v46 }
0x1298   : > { %v7014_v22 = vadd.s32 4294967169, %v4477_v52  ;;  %v4580_v48 = vand.u32 2139095040, %v10464_v19  ;;  %v4577_v20 = vand.u32 2147483647, %v10464_v19  ;;  %v4481_v27 = vor.u32 8388608, %v4480_v61 }
0x129a   : > { %v4483_v53 = vadd.s32 1, %v7014_v22  ;;  %v4581_v34 = vshrl.u32 %v4580_v48, 23  ;;  %v4584_v38 = vand.u32 8388607, %v4577_v20  ;;  %v10472_v9 = vshll.u32 %v4481_v27, 8 }
0x129c   : > { %vm4484_vm6 = vcmp.gt.s32.totalorder %v4483_v53, 0  ;;  %v7018_v28 = vadd.s32 4294967169, %v4581_v34  ;;  %v4585_v11 = vor.u32 8388608, %v4584_v38 }
0x129d   : > { %v4485_v60 = vsel %vm4484_vm6, %v4483_v53, 0 }
0x129e   : > { %v4486_v49 = vshrl.u32 %v4485_v60, 5  ;;  %v4487_v55 = vand.u32 31, %v4485_v60  ;;  %v4587_v30 = vadd.s32 1, %v7018_v28 }
0x12a0   : > { %v4488_v23 = vsub.s32 32, %v4487_v55  ;;  %v4490_v33 = vshll.u32 %v8877_v54, %v4487_v55  ;;  %v4493_v50 = vshll.u32 %v8878_v56, %v4487_v55  ;;  %v4496_v58 = vshll.u32 %v8879_v59, %v4487_v55 }
0x12a1   : > { %v4499_v21 = vshll.u32 %v8880_v62, %v4487_v55  ;;  %v4502_v31 = vshll.u32 %v8881_v3, %v4487_v55  ;;  %vm4505_vm5 = vcmp.lt.s32.totalorder %v4486_v49, 1  ;;  %vm4506_vm10 = vcmp.lt.s32.totalorder %v4486_v49, 2 }
0x12a2   : > { %v4491_v25 = vshrl.u32 %v8878_v56, %v4488_v23  ;;  %v4494_v0 = vshrl.u32 %v8879_v59, %v4488_v23  ;;  %v4497_v29 = vshrl.u32 %v8880_v62, %v4488_v23  ;;  %v4489_v35 = vshrl.u32 %v8877_v54, %v4488_v23 }
0x12a3   : > { %v4500_v36 = vshrl.u32 %v8881_v3, %v4488_v23  ;;  %v4503_v13 = vshrl.u32 %v8882_v6, %v4488_v23  ;;  %vm4507_vm1 = vcmp.lt.s32.totalorder %v4486_v49, 3  ;;  %vm4588_vm11 = vcmp.gt.s32.totalorder %v4587_v30, 0 }
0x12a4   : > { %v4492_v32 = vor.u32 %v4491_v25, %v4490_v33  ;;  %v4495_v14 = vor.u32 %v4494_v0, %v4493_v50  ;;  %v4498_v42 = vor.u32 %v4497_v29, %v4496_v58  ;;  %vm4508_vm14 = vcmp.lt.s32.totalorder %v4486_v49, 4 }
0x12a5   : > { %v4501_v43 = vor.u32 %v4500_v36, %v4499_v21  ;;  %v4504_v57 = vor.u32 %v4503_v13, %v4502_v31  ;;  %v4589_v5 = vsel %vm4588_vm11, %v4587_v30, 0  ;;  %v4625_v33 = vshll.u32 %v4585_v11, 8 }
0x12a6   : > { %v4509_v37 = vsel %vm4505_vm5, %v4489_v35, %v4492_v32  ;;  %v4510_v39 = vsel %vm4508_vm14, %v4498_v42, 2102212464  ;;  %v4513_v16 = vsel %vm4505_vm5, %v4492_v32, %v4495_v14  ;;  %v4517_v47 = vsel %vm4505_vm5, %v4495_v14, %v4498_v42 }
0x12a7   : > { %v4511_v45 = vsel %vm4507_vm1, %v4495_v14, %v4510_v39  ;;  %v4514_v17 = vsel %vm4508_vm14, %v4501_v43, 920167782  ;;  %v4518_v63 = vsel %vm4508_vm14, %v4504_v57, 1326507024  ;;  %v4590_v24 = vshrl.u32 %v4589_v5, 5 }
0x12a8   : > { %v4512_v52 = vsel %vm4506_vm10, %v4509_v37, %v4511_v45  ;;  %v4515_v61 = vsel %vm4507_vm1, %v4498_v42, %v4514_v17  ;;  %v4519_v22 = vsel %vm4507_vm1, %v4501_v43, %v4518_v63  ;;  %v4591_v48 = vand.u32 31, %v4589_v5 }
0x12a9   : > { %v4516_v53 = vsel %vm4506_vm10, %v4513_v16, %v4515_v61  ;;  %v4520_v34 = vsel %vm4506_vm10, %v4517_v47, %v4519_v22  ;;  %v4528_v55 = vmul.u32 %v10472_v9, %v4512_v52  ;;  %vm4612_vm6 = vcmp.lt.s32.totalorder %v4590_v24, 4 }
0x12aa   : > { %v10495_v27 = vmul.u32.u64.low %v10472_v9, %v4520_v34  ;;  %v10496_v38 = vmul.u32.u64.high %v10472_v9, %v4520_v34, %v10495_v27  ;;  %v10499_v28 = vmul.u32.u64.low %v10472_v9, %v4516_v53  ;;  %v10500_v60 = vmul.u32.u64.high %v10472_v9, %v4516_v53, %v10499_v28 }
0x12ab   : > { %v4592_v23 = vsub.s32 32, %v4591_v48  ;;  %v4603_v50 = vshll.u32 %v8880_v62, %v4591_v48  ;;  %v4606_v30 = vshll.u32 %v8881_v3, %v4591_v48  ;;  %v4594_v49 = vshll.u32 %v8877_v54, %v4591_v48 }
0x12ac   : > { %v4597_v25 = vshll.u32 %v8878_v56, %v4591_v48  ;;  %vm4530_vm5 = vc.u32 %v10496_v38, %v10499_v28  ;;  %v4531_v9 = vadd.s32 1, %v10500_v60  ;;  %v4600_v0 = vshll.u32 %v8879_v59, %v4591_v48 }
0x12ad   : > { %v4604_v58 = vshrl.u32 %v8881_v3, %v4592_v23  ;;  %v4607_v21 = vshrl.u32 %v8882_v6, %v4592_v23  ;;  %v4595_v31 = vshrl.u32 %v8878_v56, %v4592_v23  ;;  %v4598_v11 = vshrl.u32 %v8879_v59, %v4592_v23 }
0x12ae   : > { %v4601_v13 = vshrl.u32 %v8880_v62, %v4592_v23  ;;  %v4532_v32 = vsel %vm4530_vm5, %v4531_v9, %v10500_v60  ;;  %vm4609_vm10 = vcmp.lt.s32.totalorder %v4590_v24, 1  ;;  %vm4611_vm1 = vcmp.lt.s32.totalorder %v4590_v24, 3 }
0x12af   : > { %v4605_v29 = vor.u32 %v4604_v58, %v4603_v50  ;;  %v4608_v35 = vor.u32 %v4607_v21, %v4606_v30  ;;  %v4596_v36 = vor.u32 %v4595_v31, %v4594_v49  ;;  %v4599_v14 = vor.u32 %v4598_v11, %v4597_v25 }
0x12b0   : > { %v4533_v42 = vadd.s32 %v4532_v32, %v4528_v55  ;;  %v4602_v5 = vor.u32 %v4601_v13, %v4600_v0  ;;  %v4593_v37 = vshrl.u32 %v8877_v54, %v4592_v23  ;;  %vm4610_vm11 = vcmp.lt.s32.totalorder %v4590_v24, 2 }
0x12b1   : > { %v4618_v43 = vsel %vm4612_vm6, %v4605_v29, 920167782  ;;  %v4622_v57 = vsel %vm4612_vm6, %v4608_v35, 1326507024  ;;  %v4617_v39 = vsel %vm4609_vm10, %v4596_v36, %v4599_v14  ;;  %v4529_v24 = vadd.s32 %v10499_v28, %v10496_v38 }
0x12b2   : > { %v4623_v16 = vsel %vm4611_vm1, %v4605_v29, %v4622_v57  ;;  %v4534_v47 = vadd.s32 536870912, %v4533_v42  ;;  %v4614_v45 = vsel %vm4612_vm6, %v4602_v5, 2102212464  ;;  %v4619_v17 = vsel %vm4611_vm1, %v4602_v5, %v4618_v43 }
0x12b3   : > { %v4621_v63 = vsel %vm4609_vm10, %v4599_v14, %v4602_v5  ;;  %v4613_v52 = vsel %vm4609_vm10, %v4593_v37, %v4596_v36  ;;  %v4620_v61 = vsel %vm4610_vm11, %v4617_v39, %v4619_v17  ;;  %v4615_v53 = vsel %vm4611_vm1, %v4599_v14, %v4614_v45 }
0x12b4   : > { %v4624_v22 = vsel %vm4610_vm11, %v4621_v63, %v4623_v16  ;;  %v4535_v48 = vshrl.u32 %v4534_v47, 30  ;;  %v10530_v60 = vmul.u32.u64.low %v4625_v33, %v4620_v61  ;;  %v10531_v55 = vmul.u32.u64.high %v4625_v33, %v4620_v61, %v10530_v60 }
0x12b5   : > { %v10527_v34 = vmul.u32.u64.low %v4625_v33, %v4624_v22  ;;  %v10528_v27 = vmul.u32.u64.high %v4625_v33, %v4624_v22, %v10527_v34  ;;  %v4616_v50 = vsel %vm4610_vm11, %v4613_v52, %v4615_v53  ;;  %vm4475_vm10 = vcmp.lt.s32.totalorder %v10456_v40, 0 }
0x12b6   : > { %v4536_v23 = vshll.u32 %v4535_v48, 30  ;;  %v4635_v49 = vadd.s32 1, %v10531_v55  ;;  %v4632_v21 = vmul.u32 %v4625_v33, %v4616_v50  ;;  %vm10545_vm1 = vcmp.le.f32.partialorder %v4473_v46, 0.7853982 }
0x12b7   : > { %vm4634_vm14 = vc.u32 %v10528_v27, %v10530_v60  ;;  %v4633_v38 = vadd.s32 %v10530_v60, %v10528_v27  ;;  %v4559_v27 = vsub.s32 4, %v4535_v48  ;;  %vm4579_vm11 = vcmp.lt.s32.totalorder %v10464_v19, 0 }
0x12b8   : > { %v4537_v30 = vsub.s32 %v4533_v42, %v4536_v23  ;;  %v4636_v31 = vsel %vm4634_vm14, %v4635_v49, %v10531_v55  ;;  %vm10559_vm14 = vcmp.le.f32.partialorder %v4577_v20, 0.7853982 }
0x12b9   : > { %v4637_v9 = vadd.s32 %v4636_v31, %v4632_v21 }
0x12ba   : > { %v4539_v58 = vsub.s32 0, %v4537_v30 }
0x12bb   : > { %v4638_v0 = vadd.s32 536870912, %v4637_v9 }
0x12bc   : > { %v7015_v25 = vmin.u32 %v4539_v58, %v4537_v30 }
0x12bd   : > { %v4639_v35 = vshrl.u32 %v4638_v0, 30 }
0x12be   : > { %v4541_v11 = vclz %v7015_v25  ;;  %v4560_v25 = vsel %vm4475_vm10, %v4559_v27, %v4535_v48 }
0x12bf   : > { %v4640_v13 = vshll.u32 %v4639_v35, 30  ;;  %v4562_v0 = vsel %vm10545_vm1, 0, %v4560_v25 }
0x12c0   : > { %v7016_v29 = vadd.s32 4294967294, %v4541_v11 }
0x12c1   : > { %v4641_v42 = vsub.s32 %v4637_v9, %v4640_v13  ;;  %v4566_v13 = vadd.s32 3, %v4562_v0 }
0x12c2   : > { %vm7017_vm6 = vcmp.lt.s32.totalorder %v7016_v29, 0 }
0x12c3   : > { %v4544_v36 = vsel %vm7017_vm6, 0, %v7016_v29  ;;  %v4643_v5 = vsub.s32 0, %v4641_v42 }
0x12c4   : > { %v4545_v32 = vsub.s32 32, %v4544_v36  ;;  %v4549_v14 = vsub.s32 4294967266, %v4544_v36  ;;  %v4546_v43 = vshll.u32 %v4537_v30, %v4544_v36  ;;  %v4663_v36 = vsub.s32 4, %v4639_v35 }
0x12c5   : > { %v7019_v16 = vmin.u32 %v4643_v5, %v4641_v42 }
0x12c6   : > { %v4547_v57 = vshrl.u32 %v4529_v24, %v4545_v32  ;;  %v4550_v33 = vadd.s32 127, %v4549_v14 }
0x12c7   : > { %v4645_v45 = vclz %v7019_v16 }
0x12c8   : > { %v4548_v37 = vor.u32 %v4547_v57, %v4546_v43  ;;  %v4551_v39 = vshll.u32 %v4550_v33, 23  ;;  %v4664_v43 = vsel %vm4579_vm11, %v4663_v36, %v4639_v35  ;;  %v4567_v57 = vand.u32 3, %v4566_v13 }
0x12c9   : > { %v7020_v52 = vadd.s32 4294967294, %v4645_v45 }
0x12ca   : > { %v4552_v47 = vor.u32 4788187, %v4551_v39  ;;  %v4555_v63 = vcvt.s32.f32 %v4548_v37  ;;  %v4666_v37 = vsel %vm10559_vm14, 0, %v4664_v43  ;;  %vm4569_vm6 = vcmp.eq.s32.totalorder %v4567_v57, 0 }
0x12cb   : > { %vm7021_vm5 = vcmp.lt.s32.totalorder %v7020_v52, 0  ;;  %v4670_v16 = vadd.s32 3, %v4666_v37 }
0x12cc   : > { %v4553_v17 = vand.u32 2147483647, %v4552_v47  ;;  %v4648_v53 = vsel %vm7021_vm5, 0, %v7020_v52  ;;  %vm4572_vm5 = vcmp.eq.s32.totalorder %v4567_v57, 2 }
0x12cd   : > { %v4649_v28 = vsub.s32 32, %v4648_v53  ;;  %v4653_v34 = vsub.s32 4294967266, %v4648_v53  ;;  %v4650_v30 = vshll.u32 %v4641_v42, %v4648_v53  ;;  %v4671_v45 = vand.u32 3, %v4670_v16 }
0x12ce   : > { %v4556_v61 = vmul.f32 %v4555_v63, %v4553_v17 }
0x12cf   : > { %v4651_v49 = vshrl.u32 %v4633_v38, %v4649_v28  ;;  %v4654_v58 = vadd.s32 127, %v4653_v34  ;;  %vm4673_vm13 = vcmp.eq.s32.totalorder %v4671_v45, 0  ;;  %v4685_v38 = vpop.permute.xlu1 %4684 }
0x12d0   : > { %v4557_v22 = vxor.u32 2147483648, %v4556_v61 }
0x12d1   : > { %v4652_v60 = vor.u32 %v4651_v49, %v4650_v30  ;;  %v4655_v21 = vshll.u32 %v4654_v58, 23 }
0x12d2   : > { %v4558_v55 = vsel %vm4475_vm10, %v4557_v22, %v4556_v61  ;;  %vm4568_vm10 = vcmp.lt.s32.totalorder %v4567_v57, 2 }
0x12d3   : > { %v4561_v50 = vsel %vm10545_vm1, %v10456_v40, %v4558_v55  ;;  %v4656_v31 = vor.u32 4788187, %v4655_v21  ;;  %v4659_v9 = vcvt.s32.f32 %v4652_v60  ;;  %vm4565_vm1 = vweird.f32 %v10456_v40  ;;  %v4689_v55 = vpop.permute.xlu0 %4688  ;;  %v7883_v60 = vld [vmem:[#allocation39] sm:$0xff]  }
0x12d4   : > { %7940 = vcosq.f32 %v4561_v50 }
0x12d5   : > { %7942 = vsinq.f32 %v4561_v50  ;;  %v4657_v46 = vand.u32 2147483647, %v4656_v31 }
0x12d7   : > { %v4660_v11 = vmul.f32 %v4659_v9, %v4657_v46  ;;  %v4772_v9 = vpop.permute.xlu0 %4771 }
0x12d9   : > { %v4661_v29 = vxor.u32 2147483648, %v4660_v11 }
0x12db   : > { %v4662_v32 = vsel %vm4579_vm11, %v4661_v29, %v4660_v11  ;;  %vm4676_vm11 = vcmp.eq.s32.totalorder %v4671_v45, 2 }
0x12dc   : > { %v4665_v48 = vsel %vm10559_vm14, %v10464_v19, %v4662_v32  ;;  %vm4672_vm14 = vcmp.lt.s32.totalorder %v4671_v45, 2 }
0x12dd   : > { %7944 = vcosq.f32 %v4665_v48 }
0x12de   : > { %7946 = vsinq.f32 %v4665_v48 }
0x12e1   : > { %v7941_v14 = vpop.eup %7940 }
0x12e2   : > { %v7943_v42 = vpop.eup %7942  ;;  %v4573_v5 = vxor.u32 2147483648, %v7941_v14 }
0x12e3   : > { %v4570_v33 = vxor.u32 2147483648, %v7943_v42 }
0x12e4   : > { %v4574_v39 = vsel %vm4572_vm5, %v4573_v5, %v7943_v42 }
0x12e5   : > { %v4571_v20 = vsel %vm4569_vm6, %v7941_v14, %v4570_v33  ;;  %vm4669_vm6 = vweird.f32 %v10464_v19  ;;  %v4699_v19 = vpop.permute.xlu1 %4698 }
0x12e6   : > { %v4575_v47 = vsel %vm4568_vm10, %v4571_v20, %v4574_v39 }
0x12e7   : > { %v4576_v63 = vsel %vm4565_vm1, nan, %v4575_v47 }
0x12e8   : > { %v4681_v22 = vmul.f32 %v4576_v63, %v4576_v63 }
0x12e9   : > { %v4704_v31 = vpop.permute.xlu1 %4703 }
0x12ea   : > { %v7945_v17 = vpop.eup %7944  ;;  %v4691_v50 = vmul.f32 %v4685_v38, %v4681_v22 }
0x12eb   : > { %v7947_v35 = vpop.eup %7946  ;;  %v4677_v52 = vxor.u32 2147483648, %v7945_v17 }
0x12ec   : > { %v4674_v61 = vxor.u32 2147483648, %v7947_v35  ;;  %v4693_v49 = vadd.f32 %v4691_v50, %v10453_v44 }
0x12ed   : > { %v4678_v53 = vsel %vm4676_vm11, %v4677_v52, %v7947_v35  ;;  %v4777_v32 = vpop.permute.xlu1 %4776 }
0x12ee   : > { %v4675_v28 = vsel %vm4673_vm13, %v7945_v17, %v4674_v61 }
0x12ef   : > { %v4679_v34 = vsel %vm4672_vm14, %v4675_v28, %v4678_v53 }
0x12f0   : > { %v4680_v23 = vsel %vm4669_vm6, nan, %v4679_v34 }
0x12f1   : > { %v4682_v30 = vmul.f32 %v4680_v23, %v4680_v23 }
0x12f3   : > { %v4692_v40 = vmul.f32 %v4689_v55, %v4682_v30 }
0x12f5   : > { %v4694_v58 = vadd.f32 %v4692_v40, %v10461_v12 }
0x12f7   : > { %v4695_v27 = vpack.c.bf16 %v4694_v58, %v4693_v49 }
0x12f9   : > { %7279 = vmatpush3.bf16.msra.mxu1 %v4695_v27 }
0x12fa   : > { %7284 = vmatprep.subr.bf16.mxu1 %v8864_v2 }
0x12fc   : > { %7281 = vmatmul.mubr.msk.bf16.vlgmr.msra.gmra.mxu1 %vm4018_vm2, %v7883_v60 }
0x12fd   : > { %7298 = vmatprep.mubr.msk.bf16.mxu1 %vm8885_vm0, %v8864_v2 }
0x13bc   : > { %v4748_v21 = vpop.f32.mrf.mxu1 }
0x13bd   : > { %v4749_v25 = vadd.f32 %v4748_v21, %v4699_v19 }
0x13be   : > { %v7282_v46 = vpop.f32.mrf.mxu1 }
0x13bf   : > { %v10577_v44 = vadd.f32 %v4749_v25, %v10272_v51 }
0x13c0   : > { %v4751_v12 = vpop.f32.mrf.mxu1 }
0x13c1   : > { %v10580_v11 = vmul.f32 %v4772_v9, %v10577_v44  ;;  %v4752_v0 = vadd.f32 %v4751_v12, %v4704_v31 }
0x13c2   : > { %v7283_v29 = vpop.f32.mrf.mxu1 }
0x13c3   : > { %v4781_v36 = vand.u32 2147483647, %v10580_v11  ;;  %v4784_v13 = vand.u32 2139095040, %v10580_v11  ;;  %v10585_v24 = vadd.f32 %v4752_v0, %v10280_v41 }
0x13c5   : > { %v4785_v48 = vshrl.u32 %v4784_v13, 23  ;;  %v10588_v14 = vmul.f32 %v4777_v32, %v10585_v24  ;;  %v4788_v51 = vand.u32 8388607, %v4781_v36 }
0x13c7   : > { %v7024_v42 = vadd.s32 4294967169, %v4785_v48  ;;  %v4888_v43 = vand.u32 2139095040, %v10588_v14  ;;  %v4789_v5 = vor.u32 8388608, %v4788_v51  ;;  %v4885_v20 = vand.u32 2147483647, %v10588_v14 }
0x13c9   : > { %v4791_v57 = vadd.s32 1, %v7024_v42  ;;  %v4889_v33 = vshrl.u32 %v4888_v43, 23  ;;  %v10594_v47 = vshll.u32 %v4789_v5, 8  ;;  %v4892_v35 = vand.u32 8388607, %v4885_v20 }
0x13cb   : > { %vm4792_vm13 = vcmp.gt.s32.totalorder %v4791_v57, 0  ;;  %v7028_v37 = vadd.s32 4294967169, %v4889_v33  ;;  %v4893_v0 = vor.u32 8388608, %v4892_v35 }
0x13cc   : > { %v4793_v41 = vsel %vm4792_vm13, %v4791_v57, 0 }
0x13cd   : > { %v4794_v39 = vshrl.u32 %v4793_v41, 5  ;;  %v4795_v16 = vand.u32 31, %v4793_v41  ;;  %v4895_v63 = vadd.s32 1, %v7028_v37 }
0x13cf   : > { %v4796_v45 = vsub.s32 32, %v4795_v16  ;;  %v4798_v17 = vshll.u32 %v8877_v54, %v4795_v16  ;;  %v4801_v52 = vshll.u32 %v8878_v56, %v4795_v16  ;;  %v4804_v61 = vshll.u32 %v8879_v59, %v4795_v16 }
0x13d0   : > { %v4807_v22 = vshll.u32 %v8880_v62, %v4795_v16  ;;  %v4810_v53 = vshll.u32 %v8881_v3, %v4795_v16  ;;  %vm4813_vm5 = vcmp.lt.s32.totalorder %v4794_v39, 1  ;;  %vm4815_vm10 = vcmp.lt.s32.totalorder %v4794_v39, 3 }
0x13d1   : > { %v4799_v38 = vshrl.u32 %v8878_v56, %v4796_v45  ;;  %v4802_v28 = vshrl.u32 %v8879_v59, %v4796_v45  ;;  %v4805_v34 = vshrl.u32 %v8880_v62, %v4796_v45  ;;  %v4797_v55 = vshrl.u32 %v8877_v54, %v4796_v45 }
0x13d2   : > { %v4808_v23 = vshrl.u32 %v8881_v3, %v4796_v45  ;;  %v4811_v50 = vshrl.u32 %v8882_v6, %v4796_v45  ;;  %vm4896_vm1 = vcmp.gt.s32.totalorder %v4895_v63, 0  ;;  %vm4816_vm11 = vcmp.lt.s32.totalorder %v4794_v39, 4 }
0x13d3   : > { %v4800_v30 = vor.u32 %v4799_v38, %v4798_v17  ;;  %v4803_v40 = vor.u32 %v4802_v28, %v4801_v52  ;;  %v4806_v49 = vor.u32 %v4805_v34, %v4804_v61  ;;  %v4897_v60 = vsel %vm4896_vm1, %v4895_v63, 0 }
0x13d4   : > { %v4809_v58 = vor.u32 %v4808_v23, %v4807_v22  ;;  %v4812_v27 = vor.u32 %v4811_v50, %v4810_v53  ;;  %vm4814_vm14 = vcmp.lt.s32.totalorder %v4794_v39, 2  ;;  %v4899_v32 = vand.u32 31, %v4897_v60 }
0x13d5   : > { %v4817_v19 = vsel %vm4813_vm5, %v4797_v55, %v4800_v30  ;;  %v4818_v21 = vsel %vm4816_vm11, %v4806_v49, 2102212464  ;;  %v4821_v31 = vsel %vm4813_vm5, %v4800_v30, %v4803_v40  ;;  %v4825_v25 = vsel %vm4813_vm5, %v4803_v40, %v4806_v49 }
0x13d6   : > { %v4819_v46 = vsel %vm4815_vm10, %v4803_v40, %v4818_v21  ;;  %v4822_v9 = vsel %vm4816_vm11, %v4809_v58, 920167782  ;;  %v4826_v12 = vsel %vm4816_vm11, %v4812_v27, 1326507024  ;;  %v4898_v37 = vshrl.u32 %v4897_v60, 5 }
0x13d7   : > { %v4823_v29 = vsel %vm4815_vm10, %v4806_v49, %v4822_v9  ;;  %v4827_v13 = vsel %vm4815_vm10, %v4809_v58, %v4826_v12  ;;  %v4820_v48 = vsel %vm4814_vm14, %v4817_v19, %v4819_v46  ;;  %v4900_v41 = vsub.s32 32, %v4899_v32 }
0x13d8   : > { %v4824_v51 = vsel %vm4814_vm14, %v4821_v31, %v4823_v29  ;;  %v4828_v42 = vsel %vm4814_vm14, %v4825_v25, %v4827_v13  ;;  %v4933_v16 = vshll.u32 %v4893_v0, 8  ;;  %v4836_v45 = vmul.u32 %v10594_v47, %v4820_v48 }
0x13d9   : > { %v10616_v43 = vmul.u32.u64.low %v10594_v47, %v4828_v42  ;;  %v10617_v57 = vmul.u32.u64.high %v10594_v47, %v4828_v42, %v10616_v43  ;;  %v10620_v33 = vmul.u32.u64.low %v10594_v47, %v4824_v51  ;;  %v10621_v5 = vmul.u32.u64.high %v10594_v47, %v4824_v51, %v10620_v33 }
0x13da   : > { %v4902_v39 = vshll.u32 %v8877_v54, %v4899_v32  ;;  %v4905_v17 = vshll.u32 %v8878_v56, %v4899_v32  ;;  %v4908_v63 = vshll.u32 %v8879_v59, %v4899_v32  ;;  %v4903_v35 = vshrl.u32 %v8878_v56, %v4900_v41 }
0x13db   : > { %v4906_v52 = vshrl.u32 %v8879_v59, %v4900_v41  ;;  %v4909_v61 = vshrl.u32 %v8880_v62, %v4900_v41  ;;  %v4911_v22 = vshll.u32 %v8880_v62, %v4899_v32  ;;  %vm4838_vm6 = vc.u32 %v10617_v57, %v10620_v33 }
0x13dc   : > { %v4839_v53 = vadd.s32 1, %v10621_v5  ;;  %v4912_v47 = vshrl.u32 %v8881_v3, %v4900_v41  ;;  %v4914_v38 = vshll.u32 %v8881_v3, %v4899_v32  ;;  %v4904_v28 = vor.u32 %v4903_v35, %v4902_v39 }
0x13dd   : > { %v4907_v34 = vor.u32 %v4906_v52, %v4905_v17  ;;  %v4910_v55 = vor.u32 %v4909_v61, %v4908_v63  ;;  %v4915_v23 = vshrl.u32 %v8882_v6, %v4900_v41  ;;  %vm4917_vm13 = vcmp.lt.s32.totalorder %v4898_v37, 1 }
0x13de   : > { %v4840_v50 = vsel %vm4838_vm6, %v4839_v53, %v10621_v5  ;;  %v4913_v30 = vor.u32 %v4912_v47, %v4911_v22  ;;  %vm4920_vm5 = vcmp.lt.s32.totalorder %v4898_v37, 4  ;;  %vm4919_vm10 = vcmp.lt.s32.totalorder %v4898_v37, 3 }
0x13df   : > { %v4841_v40 = vadd.s32 %v4840_v50, %v4836_v45  ;;  %v4916_v49 = vor.u32 %v4915_v23, %v4914_v38  ;;  %v4922_v58 = vsel %vm4920_vm5, %v4910_v55, 2102212464  ;;  %v4901_v27 = vshrl.u32 %v8877_v54, %v4900_v41 }
0x13e0   : > { %v4925_v60 = vsel %vm4917_vm13, %v4904_v28, %v4907_v34  ;;  %v4926_v19 = vsel %vm4920_vm5, %v4913_v30, 920167782  ;;  %v4929_v21 = vsel %vm4917_vm13, %v4907_v34, %v4910_v55  ;;  %vm4918_vm1 = vcmp.lt.s32.totalorder %v4898_v37, 2 }
0x13e1   : > { %v4842_v31 = vadd.s32 536870912, %v4841_v40  ;;  %v4927_v25 = vsel %vm4919_vm10, %v4910_v55, %v4926_v19  ;;  %v4930_v46 = vsel %vm4920_vm5, %v4916_v49, 1326507024  ;;  %v4921_v9 = vsel %vm4917_vm13, %v4901_v27, %v4904_v28 }
0x13e2   : > { %v4923_v12 = vsel %vm4919_vm10, %v4907_v34, %v4922_v58  ;;  %v4928_v0 = vsel %vm4918_vm1, %v4925_v60, %v4927_v25  ;;  %v4931_v29 = vsel %vm4919_vm10, %v4913_v30, %v4930_v46  ;;  %v4837_v55 = vadd.s32 %v10620_v33, %v10617_v57 }
0x13e3   : > { %v4843_v13 = vshrl.u32 %v4842_v31, 30  ;;  %v4932_v32 = vsel %vm4918_vm1, %v4929_v21, %v4931_v29  ;;  %v10640_v48 = vmul.u32.u64.low %v4933_v16, %v4928_v0  ;;  %v10641_v51 = vmul.u32.u64.high %v4933_v16, %v4928_v0, %v10640_v48 }
0x13e4   : > { %v10643_v42 = vmul.u32.u64.low %v4933_v16, %v4932_v32  ;;  %v10644_v43 = vmul.u32.u64.high %v4933_v16, %v4932_v32, %v10643_v42  ;;  %v4924_v41 = vsel %vm4918_vm1, %v4921_v9, %v4923_v12  ;;  %vm4783_vm13 = vcmp.lt.s32.totalorder %v10580_v11, 0 }
0x13e5   : > { %v4844_v5 = vshll.u32 %v4843_v13, 30  ;;  %v4943_v39 = vadd.s32 1, %v10641_v51  ;;  %v4940_v37 = vmul.u32 %v4933_v16, %v4924_v41  ;;  %v4867_v32 = vsub.s32 4, %v4843_v13 }
0x13e6   : > { %vm4942_vm11 = vc.u32 %v10644_v43, %v10640_v48  ;;  %v4941_v0 = vadd.s32 %v10640_v48, %v10644_v43  ;;  %vm4782_vm5 = vcmp.le.f32.partialorder %v4781_v36, 0.7853982  ;;  %vm4887_vm10 = vcmp.lt.s32.totalorder %v10588_v14, 0 }
0x13e7   : > { %v4845_v45 = vsub.s32 %v4841_v40, %v4844_v5  ;;  %v4944_v63 = vsel %vm4942_vm11, %v4943_v39, %v10641_v51  ;;  %vm10659_vm1 = vcmp.le.f32.partialorder %v4885_v20, 0.7853982 }
0x13e8   : > { %v4945_v35 = vadd.s32 %v4944_v63, %v4940_v37 }
0x13e9   : > { %v4847_v17 = vsub.s32 0, %v4845_v45 }
0x13ea   : > { %v4946_v61 = vadd.s32 536870912, %v4945_v35 }
0x13eb   : > { %v7025_v52 = vmin.u32 %v4847_v17, %v4845_v45  ;;  %v4868_v17 = vsel %vm4783_vm13, %v4867_v32, %v4843_v13 }
0x13ec   : > { %v4947_v53 = vshrl.u32 %v4946_v61, 30 }
0x13ed   : > { %v4849_v22 = vclz %v7025_v52 }
0x13ee   : > { %v4948_v38 = vshll.u32 %v4947_v53, 30 }
0x13ef   : > { %v7026_v47 = vadd.s32 4294967294, %v4849_v22 }
0x13f0   : > { %v4949_v34 = vsub.s32 %v4945_v35, %v4948_v38  ;;  %v4870_v35 = vsel %vm4782_vm5, 0, %v4868_v17 }
0x13f1   : > { %vm7027_vm14 = vcmp.lt.s32.totalorder %v7026_v47, 0  ;;  %v4874_v61 = vadd.s32 3, %v4870_v35 }
0x13f2   : > { %v4852_v28 = vsel %vm7027_vm14, 0, %v7026_v47  ;;  %v4951_v50 = vsub.s32 0, %v4949_v34  ;;  %v4971_v47 = vsub.s32 4, %v4947_v53 }
0x13f3   : > { %v4853_v23 = vsub.s32 32, %v4852_v28  ;;  %v4857_v16 = vsub.s32 4294967266, %v4852_v28  ;;  %v4854_v30 = vshll.u32 %v4845_v45, %v4852_v28  ;;  %v4875_v28 = vand.u32 3, %v4874_v61 }
0x13f4   : > { %v7029_v58 = vmin.u32 %v4951_v50, %v4949_v34 }
0x13f5   : > { %v4855_v40 = vshrl.u32 %v4837_v55, %v4853_v23  ;;  %v4858_v49 = vadd.s32 127, %v4857_v16  ;;  %vm4880_vm11 = vcmp.eq.s32.totalorder %v4875_v28, 2  ;;  %vm4877_vm14 = vcmp.eq.s32.totalorder %v4875_v28, 0 }
0x13f6   : > { %v4953_v19 = vclz %v7029_v58 }
0x13f7   : > { %v4856_v27 = vor.u32 %v4855_v40, %v4854_v30  ;;  %v4859_v60 = vshll.u32 %v4858_v49, 23 }
0x13f8   : > { %v7030_v31 = vadd.s32 4294967294, %v4953_v19 }
0x13f9   : > { %v4860_v21 = vor.u32 4788187, %v4859_v60  ;;  %v4863_v46 = vcvt.s32.f32 %v4856_v27  ;;  %v4993_v27 = vpop.permute.xlu1 %4992 }
0x13fa   : > { %vm7031_vm6 = vcmp.lt.s32.totalorder %v7030_v31, 0 }
0x13fb   : > { %v4861_v25 = vand.u32 2147483647, %v4860_v21  ;;  %v4956_v12 = vsel %vm7031_vm6, 0, %v7030_v31  ;;  %vm4876_vm6 = vcmp.lt.s32.totalorder %v4875_v28, 2 }
0x13fc   : > { %v4957_v57 = vsub.s32 32, %v4956_v12  ;;  %v4961_v33 = vsub.s32 4294967266, %v4956_v12  ;;  %v4958_v51 = vshll.u32 %v4949_v34, %v4956_v12  ;;  %v4972_v34 = vsel %vm4887_vm10, %v4971_v47, %v4947_v53 }
0x13fd   : > { %v4864_v9 = vmul.f32 %v4863_v46, %v4861_v25  ;;  %v4974_v20 = vsel %vm10659_vm1, 0, %v4972_v34 }
0x13fe   : > { %v4959_v42 = vshrl.u32 %v4941_v0, %v4957_v57  ;;  %v4962_v5 = vadd.s32 127, %v4961_v33  ;;  %v4978_v58 = vadd.s32 3, %v4974_v20  ;;  %v4997_v33 = vpop.permute.xlu0 %4996 }
0x13ff   : > { %v4865_v29 = vxor.u32 2147483648, %v4864_v9 }
0x1400   : > { %v4960_v39 = vor.u32 %v4959_v42, %v4958_v51  ;;  %v4963_v37 = vshll.u32 %v4962_v5, 23  ;;  %v4979_v21 = vand.u32 3, %v4978_v58 }
0x1401   : > { %v4866_v41 = vsel %vm4783_vm13, %v4865_v29, %v4864_v9  ;;  %vm4873_vm13 = vweird.f32 %v10580_v11 }
0x1402   : > { %v4869_v45 = vsel %vm4782_vm5, %v10580_v11, %v4866_v41  ;;  %v4964_v48 = vor.u32 4788187, %v4963_v37  ;;  %v4967_v63 = vcvt.s32.f32 %v4960_v39  ;;  %vm4984_vm5 = vcmp.eq.s32.totalorder %v4979_v21, 2  ;;  %v4762_v39 = vld [vmem:[%s11664_s12 + $0x8] sm:$0xff] }
0x1403   : > { %7948 = vcosq.f32 %v4869_v45 }
0x1404   : > { %7950 = vsinq.f32 %v4869_v45  ;;  %v4965_v43 = vand.u32 2147483647, %v4964_v48  ;;  %v4761_v45 = vld [vmem:[%s11664_s12] sm:$0xff] }
0x1406   : > { %v4968_v52 = vmul.f32 %v4967_v63, %v4965_v43 }
0x1408   : > { %v4969_v22 = vxor.u32 2147483648, %v4968_v52 }
0x140a   : > { %v4970_v38 = vsel %vm4887_vm10, %v4969_v22, %v4968_v52  ;;  %vm4981_vm10 = vcmp.eq.s32.totalorder %v4979_v21, 0 }
0x140b   : > { %v4973_v13 = vsel %vm10659_vm1, %v10588_v14, %v4970_v38  ;;  %vm4980_vm1 = vcmp.lt.s32.totalorder %v4979_v21, 2 }
0x140c   : > { %7952 = vcosq.f32 %v4973_v13 }
0x140d   : > { %7954 = vsinq.f32 %v4973_v13 }
0x1410   : > { %v7949_v55 = vpop.eup %7948 }
0x1411   : > { %v7951_v23 = vpop.eup %7950  ;;  %v4881_v16 = vxor.u32 2147483648, %v7949_v55 }
0x1412   : > { %v4878_v50 = vxor.u32 2147483648, %v7951_v23 }
0x1413   : > { %v4882_v30 = vsel %vm4880_vm11, %v4881_v16, %v7951_v23  ;;  %vm4977_vm11 = vweird.f32 %v10588_v14 }
0x1414   : > { %v4879_v40 = vsel %vm4877_vm14, %v7949_v55, %v4878_v50  ;;  %vm5070_vm14 = vcmask 39936  }
0x1415   : > { %v4883_v49 = vsel %vm4876_vm6, %v4879_v40, %v4882_v30  ;;  %vm5034_vm6 = vcmask 261264  }
0x1416   : > { %v4884_v60 = vsel %vm4873_vm13, nan, %v4883_v49  ;;  %vm5025_vm13 = vcmask 261336  }
0x1417   : > { %v4989_v53 = vmul.f32 %v4884_v60, %v4884_v60 }
0x1419   : > { %v4999_v19 = vmul.f32 %v4993_v27, %v4989_v53  ;;  %v7953_v31 = vpop.eup %7952 }
0x141a   : > { %v7955_v46 = vpop.eup %7954  ;;  %v4985_v9 = vxor.u32 2147483648, %v7953_v31 }
0x141b   : > { %v5001_v25 = vadd.f32 %v4999_v19, %v10577_v44  ;;  %v4982_v12 = vxor.u32 2147483648, %v7955_v46 }
0x141c   : > { %v4986_v11 = vsel %vm4984_vm5, %v4985_v9, %v7955_v46  ;;  %v7884_v9 = vld [vmem:[#allocation41] sm:$0xff]  }
0x141d   : > { %5045 = vst.msk [vmem:[#allocation2 + $0x30] sm:$0xff] %vm3324_vm4, %v5001_v25  ;;  %5055 = vrot.lane.b32.xlu0 %v5001_v25, %s11520_s18  ;;  %5064 = vrot.lane.b32.xlu1 %v5001_v25, %s11663_s8  ;;  %v4983_v0 = vsel %vm4981_vm10, %v7953_v31, %v4982_v12  ;;  %s11665_s18 = sld [smem:[#allocation92_spill]] }
0x141e   : > { %v4987_v57 = vsel %vm4980_vm1, %v4983_v0, %v4986_v11 }
0x141f   : > { %v4988_v29 = vsel %vm4977_vm11, nan, %v4987_v57 }
0x1420   : > { %v4990_v32 = vmul.f32 %v4988_v29, %v4988_v29 }
0x1421   : > { %5047 = vrot.lane.b32.xlu0 %v5001_v25, %s11522_s16  ;;  %s11667_s16 = smov 110  }
0x1422   : > { %v5000_v51 = vmul.f32 %v4997_v33, %v4990_v32 }
0x1423   : > { %v4764_v37 = vld [vmem:[%s11665_s18 + $0x8] sm:$0xff]  ;;  %v4763_v17 = vld [vmem:[%s11665_s18] sm:$0xff] }
0x1424   : > { %v10675_v42 = vld [vmem:[#allocation2 + $0x30] sm:$0xff]  ;;  %v5002_v5 = vadd.f32 %v5000_v51, %v10585_v24 }
0x1425   : > { %5037 = vrot.lane.b32.xlu0 %v5001_v25, %s11524_s5  ;;  %5699 = vst.msk [vmem:[#allocation2 + $0x30] sm:$0xff] %vm3666_vm8, %v8864_v2  ;;  %s11669_s5 = smov 119  }
0x1426   : > { %5046 = vst.msk [vmem:[#allocation2 + $0x38] sm:$0xff] %vm3324_vm4, %v5002_v5  ;;  %5066 = vrot.lane.b32.xlu1 %v5002_v5, %s11663_s8  ;;  %vm5061_vm4 = vcmask 113664   ;;  %s11684_s8 = sld [smem:[#allocation96_spill]] }
0x1429   : > { %5028 = vrot.lane.b32.xlu0 %v5001_v25, %s11666_s6 }
0x142a   : > { %5057 = vrot.lane.b32.xlu1 %v5002_v5, %s11667_s16  ;;  %s11680_s16 = smov 127  }
0x142d   : > { %5019 = vrot.lane.b32.xlu0 %v5001_v25, %s11668_s7  ;;  %v10686_v14 = vld [vmem:[#allocation2 + $0x38] sm:$0xff] }
0x142e   : > { %5049 = vrot.lane.b32.xlu1 %v5002_v5, %s11669_s5  ;;  %v5090_v41 = vpack.c.bf16 %v10686_v14, %v10675_v42  ;;  %5700 = vst.msk [vmem:[#allocation2 + $0x38] sm:$0xff] %vm3666_vm8, %v8864_v2  ;;  %s11672_s5 = sld [smem:[#allocation95_spill]] }
0x1431   : > { %5096 = vperm.xlu0 %7866, %v4761_v45  }
0x1432   : > { %5039 = vrot.lane.b32.xlu1 %v5002_v5, %s11670_s9  ;;  %s11682_s9 = smov 126  }
0x1434   : > { %v5449_v11 = vld [vmem:[%s11672_s5] sm:$0xff]  ;;  %v5450_v57 = vld [vmem:[%s11672_s5 + $0x8] sm:$0xff]  ;;  %s7080_s5 = sshll.u32 %s9167_s11, 7 }
0x1435   : > { %5160 = vperm.xlu0 %7866, %v4764_v37  }
0x1436   : > { %5030 = vrot.lane.b32.xlu1 %v5002_v5, %s11666_s6  ;;  %s11681_s6 = smov 1  }
0x1439   : > { %7869 = vset.pattern.permute.xlu0 %v8863_v1 }
0x143a   : > { %5021 = vrot.lane.b32.xlu1 %v5002_v5, %s11668_s7  ;;  %5380 = vperm.xlu0 %7869, %v4764_v37   ;;  %s11671_s7 = sld [smem:[#allocation94_spill]] }
0x143e   : > { %5101 = vperm.xlu1 %7867, %v4762_v39   ;;  %7871 = vset.pattern.permute.xlu0 %v8869_v8 }
0x143f   : > { %5461 = vperm.xlu0 %7871, %v5449_v11  }
0x1440   : > { %v4767_v12 = vld [vmem:[%s11671_s7] sm:$0xff]  ;;  %v4768_v0 = vld [vmem:[%s11671_s7 + $0x8] sm:$0xff] }
0x1442   : > { %5155 = vperm.xlu1 %7867, %v4763_v17  }
0x1443   : > { %7873 = vset.pattern.permute.xlu0 %v8863_v1 }
0x1444   : > { %5686 = vperm.xlu0 %7873, %v5450_v57  }
0x1446   : > { %7868 = vset.pattern.permute.xlu1 %v8863_v1 }
0x1447   : > { %5376 = vperm.xlu1 %7868, %v4763_v17  }
0x1448   : > { %7874 = vset.pattern.permute.xlu0 %v8869_v8 }
0x144b   : > { %7870 = vset.pattern.permute.xlu1 %v8869_v8 }
0x144c   : > { %5390 = vperm.xlu1 %7870, %v4767_v12  }
0x1450   : > { %5395 = vperm.xlu1 %7870, %v4768_v0  }
0x1454   : > { %5466 = vperm.xlu1 %7870, %v5450_v57  }
0x1458   : > { %7872 = vset.pattern.permute.xlu1 %v8863_v1 }
0x1459   : > { %5682 = vperm.xlu1 %7872, %v5449_v11  }
0x145d   : > { %7875 = vset.pattern.permute.xlu1 %v8869_v8 }
0x148f   : > { %v5056_v48 = vpop.permute.xlu0 %5055  ;;  %v5065_v43 = vpop.permute.xlu1 %5064 }
0x1490   : > { %5062 = vst.msk [vmem:[#allocation2 + $0x50] sm:$0xff] %vm5061_vm4, %v5056_v48 }
0x1491   : > { %5071 = vst.msk [vmem:[#allocation2 + $0x60] sm:$0xff] %vm5070_vm14, %v5065_v43 }
0x1493   : > { %v5048_v63 = vpop.permute.xlu0 %5047 }
0x1494   : > { %5053 = vst.msk [vmem:[#allocation2 + $0x40] sm:$0xff] %vm4378_vm9, %v5048_v63 }
0x1497   : > { %v5038_v35 = vpop.permute.xlu0 %5037  ;;  %v5083_v52 = vld [vmem:[#allocation2 + $0x50] sm:$0xff] }
0x1498   : > { %5043 = vst.msk [vmem:[#allocation2 + $0x20] sm:$0xff] %vm4333_vm15, %v5038_v35  ;;  %v5067_v61 = vpop.permute.xlu1 %5066  ;;  %v5085_v34 = vld [vmem:[#allocation2 + $0x60] sm:$0xff] }
0x1499   : > { %6395 = vst.msk [vmem:[#allocation2 + $0x50] sm:$0xff] %vm4018_vm2, %v8864_v2 }
0x149a   : > { %5072 = vst.msk [vmem:[#allocation2 + $0x68] sm:$0xff] %vm5070_vm14, %v5067_v61 }
0x149b   : > { %v5029_v22 = vpop.permute.xlu0 %5028  ;;  %v5081_v47 = vld [vmem:[#allocation2 + $0x40] sm:$0xff] }
0x149c   : > { %5035 = vst.msk [vmem:[#allocation2 + $0x10] sm:$0xff] %vm5034_vm6, %v5029_v22  ;;  %v5058_v36 = vpop.permute.xlu1 %5057 }
0x149d   : > { %6393 = vst.msk [vmem:[#allocation2 + $0x40] sm:$0xff] %vm4018_vm2, %v8864_v2 }
0x149e   : > { %5063 = vst.msk [vmem:[#allocation2 + $0x58] sm:$0xff] %vm5061_vm4, %v5058_v36 }
0x149f   : > { %v5020_v38 = vpop.permute.xlu0 %5019  ;;  %v5077_v13 = vld [vmem:[#allocation2 + $0x20] sm:$0xff] }
0x14a0   : > { %5026 = vst.msk [vmem:[#allocation2] sm:$0xff] %vm5025_vm13, %v5020_v38  ;;  %v5050_v28 = vpop.permute.xlu1 %5049 }
0x14a1   : > { %5697 = vst.msk [vmem:[#allocation2 + $0x20] sm:$0xff] %vm3666_vm8, %v8864_v2  ;;  %v5086_v55 = vld [vmem:[#allocation2 + $0x68] sm:$0xff] }
0x14a2   : > { %5054 = vst.msk [vmem:[#allocation2 + $0x48] sm:$0xff] %vm4378_vm9, %v5050_v28  ;;  %v5093_v23 = vpack.c.bf16 %v5086_v55, %v5085_v34 }
0x14a3   : > { %v5075_v16 = vld [vmem:[#allocation2 + $0x10] sm:$0xff] }
0x14a4   : > { %5695 = vst.msk [vmem:[#allocation2 + $0x10] sm:$0xff] %vm3666_vm8, %v8864_v2  ;;  %7285 = vmatpush3.bf16.msra.mxu1 %v5093_v23  ;;  %v5040_v50 = vpop.permute.xlu1 %5039 }
0x14a5   : > { %7286 = vmatprep.subr.bf16.mxu1 %v8864_v2  ;;  %v5084_v20 = vld [vmem:[#allocation2 + $0x58] sm:$0xff]  ;;  %5044 = vst.msk [vmem:[#allocation2 + $0x28] sm:$0xff] %vm4333_vm15, %v5040_v50 }
0x14a6   : > { %v5092_v30 = vpack.c.bf16 %v5084_v20, %v5083_v52  ;;  %6396 = vst.msk [vmem:[#allocation2 + $0x58] sm:$0xff] %vm4018_vm2, %v8864_v2 }
0x14a7   : > { %v5073_v40 = vld [vmem:[#allocation2] sm:$0xff] }
0x14a8   : > { %5693 = vst.msk [vmem:[#allocation2] sm:$0xff] %vm3666_vm8, %v8864_v2  ;;  %7287 = vmatpush3.bf16.msra.mxu1 %v5092_v30  ;;  %v5031_v49 = vpop.permute.xlu1 %5030 }
0x14a9   : > { %7288 = vmatprep.subr.bf16.mxu1 %v8864_v2  ;;  %v5082_v58 = vld [vmem:[#allocation2 + $0x48] sm:$0xff]  ;;  %5036 = vst.msk [vmem:[#allocation2 + $0x18] sm:$0xff] %vm5034_vm6, %v5031_v49 }
0x14aa   : > { %v5091_v27 = vpack.c.bf16 %v5082_v58, %v5081_v47  ;;  %6394 = vst.msk [vmem:[#allocation2 + $0x48] sm:$0xff] %vm4018_vm2, %v8864_v2 }
0x14ac   : > { %7289 = vmatpush3.bf16.msra.mxu1 %v5091_v27  ;;  %v5022_v60 = vpop.permute.xlu1 %5021  ;;  %v5078_v53 = vld [vmem:[#allocation2 + $0x28] sm:$0xff]  ;;  %v5097_v29 = vpop.permute.xlu0 %5096 }
0x14ad   : > { %7290 = vmatprep.subr.bf16.mxu1 %v8864_v2  ;;  %5027 = vst.msk [vmem:[#allocation2 + $0x8] sm:$0xff] %vm5025_vm13, %v5022_v60  ;;  %v5089_v21 = vpack.c.bf16 %v5078_v53, %v5077_v13 }
0x14ae   : > { %5698 = vst.msk [vmem:[#allocation2 + $0x28] sm:$0xff] %vm3666_vm8, %v8864_v2 }
0x14b0   : > { %7291 = vmatpush3.bf16.msra.mxu1 %v5090_v41  ;;  %v5076_v19 = vld [vmem:[#allocation2 + $0x18] sm:$0xff]  ;;  %v5161_v17 = vpop.permute.xlu0 %5160 }
0x14b1   : > { %7292 = vmatprep.subr.bf16.mxu1 %v8864_v2  ;;  %5696 = vst.msk [vmem:[#allocation2 + $0x18] sm:$0xff] %vm3666_vm8, %v8864_v2  ;;  %v5088_v25 = vpack.c.bf16 %v5076_v19, %v5075_v16 }
0x14b4   : > { %7293 = vmatpush3.bf16.msra.mxu1 %v5089_v21  ;;  %v5074_v31 = vld [vmem:[#allocation2 + $0x8] sm:$0xff] }
0x14b5   : > { %7294 = vmatprep.subr.bf16.mxu1 %v8864_v2  ;;  %5694 = vst.msk [vmem:[#allocation2 + $0x8] sm:$0xff] %vm3666_vm8, %v8864_v2  ;;  %v5087_v46 = vpack.c.bf16 %v5074_v31, %v5073_v40 }
0x14b8   : > { %7295 = vmatpush3.bf16.msra.mxu1 %v5088_v25 }
0x14b9   : > { %7296 = vmatprep.subr.bf16.mxu1 %v8864_v2  ;;  %v5102_v33 = vpop.permute.xlu1 %5101 }
0x14bc   : > { %7297 = vmatpush3.bf16.msra.mxu1 %v5087_v46 }
0x14bd   : > { %7332 = vmatprep.subr.bf16.mxu1 %v8864_v2  ;;  %v5156_v51 = vpop.permute.xlu1 %5155 }
0x14bf   : > { %7299 = vmatmul.mubr.msk.bf16.vlgmr.msra.gmra.mxu1 %vm3723_vm7, %v7884_v9 }
0x14c0   : > { %7344 = vmatprep.mubr.msk.bf16.mxu1 %vm8885_vm0, %v8864_v2 }
0x157f   : > { %v5146_v32 = vpop.f32.mrf.mxu1 }
0x1580   : > { %v10754_v42 = vadd.f32 %v5146_v32, %v5097_v29 }
0x1581   : > { %v7300_v5 = vpop.f32.mrf.mxu1 }
0x1582   : > { %v10757_v14 = vmul.f32 %v5156_v51, %v10754_v42 }
0x1583   : > { %v5149_v41 = vpop.f32.mrf.mxu1 }
0x1584   : > { %v5165_v45 = vand.u32 2147483647, %v10757_v14  ;;  %v5168_v39 = vand.u32 2139095040, %v10757_v14  ;;  %v10762_v37 = vadd.f32 %v5149_v41, %v5102_v33 }
0x1585   : > { %v7301_v48 = vpop.f32.mrf.mxu1 }
0x1586   : > { %v5169_v43 = vshrl.u32 %v5168_v39, 23  ;;  %v10765_v63 = vmul.f32 %v5161_v17, %v10762_v37  ;;  %v5172_v35 = vand.u32 8388607, %v5165_v45 }
0x1588   : > { %v7034_v52 = vadd.s32 4294967169, %v5169_v43  ;;  %v5272_v61 = vand.u32 2139095040, %v10765_v63  ;;  %v5269_v22 = vand.u32 2147483647, %v10765_v63  ;;  %v5173_v38 = vor.u32 8388608, %v5172_v35 }
0x158a   : > { %v5175_v47 = vadd.s32 1, %v7034_v52  ;;  %v5273_v36 = vshrl.u32 %v5272_v61, 23  ;;  %v5276_v13 = vand.u32 8388607, %v5269_v22  ;;  %v10773_v16 = vshll.u32 %v5173_v38, 8 }
0x158c   : > { %vm5176_vm0 = vcmp.gt.s32.totalorder %v5175_v47, 0  ;;  %v7038_v28 = vadd.s32 4294967169, %v5273_v36  ;;  %v5277_v50 = vor.u32 8388608, %v5276_v13 }
0x158d   : > { %v5177_v34 = vsel %vm5176_vm0, %v5175_v47, 0 }
0x158e   : > { %v5178_v55 = vshrl.u32 %v5177_v34, 5  ;;  %v5179_v23 = vand.u32 31, %v5177_v34  ;;  %v5279_v49 = vadd.s32 1, %v7038_v28 }
0x1590   : > { %v5180_v20 = vsub.s32 32, %v5179_v23  ;;  %v5182_v30 = vshll.u32 %v8877_v54, %v5179_v23  ;;  %v5185_v40 = vshll.u32 %v8878_v56, %v5179_v23  ;;  %v5188_v58 = vshll.u32 %v8879_v59, %v5179_v23 }
0x1591   : > { %v5191_v27 = vshll.u32 %v8880_v62, %v5179_v23  ;;  %v5194_v60 = vshll.u32 %v8881_v3, %v5179_v23  ;;  %vm5197_vm7 = vcmp.lt.s32.totalorder %v5178_v55, 1  ;;  %vm5198_vm9 = vcmp.lt.s32.totalorder %v5178_v55, 2 }
0x1592   : > { %v5183_v53 = vshrl.u32 %v8878_v56, %v5180_v20  ;;  %v5186_v19 = vshrl.u32 %v8879_v59, %v5180_v20  ;;  %v5189_v21 = vshrl.u32 %v8880_v62, %v5180_v20  ;;  %v5181_v31 = vshrl.u32 %v8877_v54, %v5180_v20 }
0x1593   : > { %v5192_v25 = vshrl.u32 %v8881_v3, %v5180_v20  ;;  %v5195_v46 = vshrl.u32 %v8882_v6, %v5180_v20  ;;  %vm5199_vm15 = vcmp.lt.s32.totalorder %v5178_v55, 3  ;;  %vm5280_vm5 = vcmp.gt.s32.totalorder %v5279_v49, 0 }
0x1594   : > { %v5184_v9 = vor.u32 %v5183_v53, %v5182_v30  ;;  %v5187_v12 = vor.u32 %v5186_v19, %v5185_v40  ;;  %v5190_v11 = vor.u32 %v5189_v21, %v5188_v58  ;;  %vm5200_vm10 = vcmp.lt.s32.totalorder %v5178_v55, 4 }
0x1595   : > { %v5193_v0 = vor.u32 %v5192_v25, %v5191_v27  ;;  %v5196_v57 = vor.u32 %v5195_v46, %v5194_v60  ;;  %v5281_v33 = vsel %vm5280_vm5, %v5279_v49, 0  ;;  %v5317_v30 = vshll.u32 %v5277_v50, 8 }
0x1596   : > { %v5201_v29 = vsel %vm5197_vm7, %v5181_v31, %v5184_v9  ;;  %v5202_v32 = vsel %vm5200_vm10, %v5190_v11, 2102212464  ;;  %v5205_v51 = vsel %vm5197_vm7, %v5184_v9, %v5187_v12  ;;  %v5209_v5 = vsel %vm5197_vm7, %v5187_v12, %v5190_v11 }
0x1597   : > { %v5203_v41 = vsel %vm5199_vm15, %v5187_v12, %v5202_v32  ;;  %v5206_v39 = vsel %vm5200_vm10, %v5193_v0, 920167782  ;;  %v5210_v17 = vsel %vm5200_vm10, %v5196_v57, 1326507024  ;;  %v5282_v48 = vshrl.u32 %v5281_v33, 5 }
0x1598   : > { %v5204_v43 = vsel %vm5198_vm9, %v5201_v29, %v5203_v41  ;;  %v5207_v35 = vsel %vm5199_vm15, %v5190_v11, %v5206_v39  ;;  %v5211_v52 = vsel %vm5199_vm15, %v5193_v0, %v5210_v17  ;;  %v5283_v61 = vand.u32 31, %v5281_v33 }
0x1599   : > { %v5208_v47 = vsel %vm5198_vm9, %v5205_v51, %v5207_v35  ;;  %v5212_v36 = vsel %vm5198_vm9, %v5209_v5, %v5211_v52  ;;  %v5220_v23 = vmul.u32 %v10773_v16, %v5204_v43  ;;  %vm5304_vm1 = vcmp.lt.s32.totalorder %v5282_v48, 4 }
0x159a   : > { %v10796_v38 = vmul.u32.u64.low %v10773_v16, %v5212_v36  ;;  %v10797_v13 = vmul.u32.u64.high %v10773_v16, %v5212_v36, %v10796_v38  ;;  %v10800_v28 = vmul.u32.u64.low %v10773_v16, %v5208_v47  ;;  %v10801_v34 = vmul.u32.u64.high %v10773_v16, %v5208_v47, %v10800_v28 }
0x159b   : > { %v5284_v20 = vsub.s32 32, %v5283_v61  ;;  %v5295_v40 = vshll.u32 %v8880_v62, %v5283_v61  ;;  %v5298_v49 = vshll.u32 %v8881_v3, %v5283_v61  ;;  %v5286_v55 = vshll.u32 %v8877_v54, %v5283_v61 }
0x159c   : > { %v5289_v53 = vshll.u32 %v8878_v56, %v5283_v61  ;;  %vm5222_vm11 = vc.u32 %v10797_v13, %v10800_v28  ;;  %v5223_v16 = vadd.s32 1, %v10801_v34  ;;  %v5292_v19 = vshll.u32 %v8879_v59, %v5283_v61 }
0x159d   : > { %v5296_v58 = vshrl.u32 %v8881_v3, %v5284_v20  ;;  %v5299_v27 = vshrl.u32 %v8882_v6, %v5284_v20  ;;  %v5287_v60 = vshrl.u32 %v8878_v56, %v5284_v20  ;;  %v5290_v50 = vshrl.u32 %v8879_v59, %v5284_v20 }
0x159e   : > { %v5293_v46 = vshrl.u32 %v8880_v62, %v5284_v20  ;;  %v5224_v9 = vsel %vm5222_vm11, %v5223_v16, %v10801_v34  ;;  %vm5301_vm4 = vcmp.lt.s32.totalorder %v5282_v48, 1  ;;  %vm5303_vm14 = vcmp.lt.s32.totalorder %v5282_v48, 3 }
0x159f   : > { %v5297_v21 = vor.u32 %v5296_v58, %v5295_v40  ;;  %v5300_v31 = vor.u32 %v5299_v27, %v5298_v49  ;;  %v5288_v25 = vor.u32 %v5287_v60, %v5286_v55  ;;  %v5291_v12 = vor.u32 %v5290_v50, %v5289_v53 }
0x15a0   : > { %v5225_v11 = vadd.s32 %v5224_v9, %v5220_v23  ;;  %v5294_v33 = vor.u32 %v5293_v46, %v5292_v19  ;;  %v5285_v29 = vshrl.u32 %v8877_v54, %v5284_v20  ;;  %vm5302_vm6 = vcmp.lt.s32.totalorder %v5282_v48, 2 }
0x15a1   : > { %v5310_v0 = vsel %vm5304_vm1, %v5297_v21, 920167782  ;;  %v5314_v57 = vsel %vm5304_vm1, %v5300_v31, 1326507024  ;;  %v5309_v32 = vsel %vm5301_vm4, %v5288_v25, %v5291_v12  ;;  %v5221_v48 = vadd.s32 %v10800_v28, %v10797_v13 }
0x15a2   : > { %v5315_v51 = vsel %vm5303_vm14, %v5297_v21, %v5314_v57  ;;  %v5226_v5 = vadd.s32 536870912, %v5225_v11  ;;  %v5306_v41 = vsel %vm5304_vm1, %v5294_v33, 2102212464  ;;  %v5311_v39 = vsel %vm5303_vm14, %v5294_v33, %v5310_v0 }
0x15a3   : > { %v5313_v17 = vsel %vm5301_vm4, %v5291_v12, %v5294_v33  ;;  %v5305_v43 = vsel %vm5301_vm4, %v5285_v29, %v5288_v25  ;;  %v5312_v35 = vsel %vm5302_vm6, %v5309_v32, %v5311_v39  ;;  %v5307_v47 = vsel %vm5303_vm14, %v5291_v12, %v5306_v41 }
0x15a4   : > { %v5316_v52 = vsel %vm5302_vm6, %v5313_v17, %v5315_v51  ;;  %v5227_v61 = vshrl.u32 %v5226_v5, 30  ;;  %v10831_v34 = vmul.u32.u64.low %v5317_v30, %v5312_v35  ;;  %v10832_v23 = vmul.u32.u64.high %v5317_v30, %v5312_v35, %v10831_v34 }
0x15a5   : > { %v10828_v36 = vmul.u32.u64.low %v5317_v30, %v5316_v52  ;;  %v10829_v38 = vmul.u32.u64.high %v5317_v30, %v5316_v52, %v10828_v36  ;;  %v5308_v40 = vsel %vm5302_vm6, %v5305_v43, %v5307_v47  ;;  %vm5167_vm9 = vcmp.lt.s32.totalorder %v10757_v14, 0 }
0x15a6   : > { %v5228_v20 = vshll.u32 %v5227_v61, 30  ;;  %v5327_v55 = vadd.s32 1, %v10832_v23  ;;  %v5324_v27 = vmul.u32 %v5317_v30, %v5308_v40  ;;  %vm10846_vm15 = vcmp.le.f32.partialorder %v5165_v45, 0.7853982 }
0x15a7   : > { %vm5326_vm13 = vc.u32 %v10829_v38, %v10831_v34  ;;  %v5325_v13 = vadd.s32 %v10831_v34, %v10829_v38  ;;  %v5251_v38 = vsub.s32 4, %v5227_v61  ;;  %vm5271_vm5 = vcmp.lt.s32.totalorder %v10765_v63, 0 }
0x15a8   : > { %v5229_v49 = vsub.s32 %v5225_v11, %v5228_v20  ;;  %v5328_v60 = vsel %vm5326_vm13, %v5327_v55, %v10832_v23  ;;  %vm10860_vm10 = vcmp.le.f32.partialorder %v5269_v22, 0.7853982  ;;  %vm5257_vm14 = vweird.f32 %v10757_v14 }
0x15a9   : > { %v5329_v16 = vadd.s32 %v5328_v60, %v5324_v27 }
0x15aa   : > { %v5231_v58 = vsub.s32 0, %v5229_v49 }
0x15ab   : > { %v5330_v19 = vadd.s32 536870912, %v5329_v16 }
0x15ac   : > { %v7035_v53 = vmin.u32 %v5231_v58, %v5229_v49 }
0x15ad   : > { %v5331_v31 = vshrl.u32 %v5330_v19, 30 }
0x15ae   : > { %v5233_v50 = vclz %v7035_v53  ;;  %v5252_v53 = vsel %vm5167_vm9, %v5251_v38, %v5227_v61 }
0x15af   : > { %v5332_v46 = vshll.u32 %v5331_v31, 30  ;;  %v5254_v19 = vsel %vm10846_vm15, 0, %v5252_v53 }
0x15b0   : > { %v7036_v21 = vadd.s32 4294967294, %v5233_v50 }
0x15b1   : > { %v5333_v11 = vsub.s32 %v5329_v16, %v5332_v46  ;;  %v5258_v46 = vadd.s32 3, %v5254_v19 }
0x15b2   : > { %vm7037_vm0 = vcmp.lt.s32.totalorder %v7036_v21, 0 }
0x15b3   : > { %v5236_v25 = vsel %vm7037_vm0, 0, %v7036_v21  ;;  %v5335_v33 = vsub.s32 0, %v5333_v11 }
0x15b4   : > { %v5237_v9 = vsub.s32 32, %v5236_v25  ;;  %v5241_v12 = vsub.s32 4294967266, %v5236_v25  ;;  %v5238_v0 = vshll.u32 %v5229_v49, %v5236_v25  ;;  %v5355_v25 = vsub.s32 4, %v5331_v31 }
0x15b5   : > { %v7039_v51 = vmin.u32 %v5335_v33, %v5333_v11 }
0x15b6   : > { %v5239_v57 = vshrl.u32 %v5221_v48, %v5237_v9  ;;  %v5242_v30 = vadd.s32 127, %v5241_v12 }
0x15b7   : > { %v5337_v41 = vclz %v7039_v51 }
0x15b8   : > { %v5240_v29 = vor.u32 %v5239_v57, %v5238_v0  ;;  %v5243_v32 = vshll.u32 %v5242_v30, 23  ;;  %v5356_v0 = vsel %vm5271_vm5, %v5355_v25, %v5331_v31  ;;  %v5259_v57 = vand.u32 3, %v5258_v46 }
0x15b9   : > { %v7040_v43 = vadd.s32 4294967294, %v5337_v41 }
0x15ba   : > { %v5244_v5 = vor.u32 4788187, %v5243_v32  ;;  %v5247_v17 = vcvt.s32.f32 %v5240_v29  ;;  %v5358_v29 = vsel %vm10860_vm10, 0, %v5356_v0  ;;  %vm5261_vm1 = vcmp.eq.s32.totalorder %v5259_v57, 0 }
0x15bb   : > { %vm7041_vm7 = vcmp.lt.s32.totalorder %v7040_v43, 0  ;;  %vm5264_vm11 = vcmp.eq.s32.totalorder %v5259_v57, 2  ;;  %v5362_v51 = vadd.s32 3, %v5358_v29  ;;  %vm5260_vm4 = vcmp.lt.s32.totalorder %v5259_v57, 2 }
0x15bc   : > { %v5245_v39 = vand.u32 2147483647, %v5244_v5  ;;  %v5340_v47 = vsel %vm7041_vm7, 0, %v7040_v43  ;;  %vm5361_vm7 = vweird.f32 %v10765_v63 }
0x15bd   : > { %v5341_v28 = vsub.s32 32, %v5340_v47  ;;  %v5345_v36 = vsub.s32 4294967266, %v5340_v47  ;;  %v5342_v49 = vshll.u32 %v5333_v11, %v5340_v47  ;;  %v5363_v41 = vand.u32 3, %v5362_v51 }
0x15be   : > { %v5248_v35 = vmul.f32 %v5247_v17, %v5245_v39 }
0x15bf   : > { %v5343_v55 = vshrl.u32 %v5325_v13, %v5341_v28  ;;  %v5346_v58 = vadd.s32 127, %v5345_v36  ;;  %vm5368_vm6 = vcmp.eq.s32.totalorder %v5363_v41, 2  ;;  %vm5365_vm13 = vcmp.eq.s32.totalorder %v5363_v41, 0  ;;  %v5377_v13 = vpop.permute.xlu1 %5376 }
0x15c0   : > { %v5249_v52 = vxor.u32 2147483648, %v5248_v35  ;;  %vm5364_vm0 = vcmp.lt.s32.totalorder %v5363_v41, 2 }
0x15c1   : > { %v5344_v34 = vor.u32 %v5343_v55, %v5342_v49  ;;  %v5347_v27 = vshll.u32 %v5346_v58, 23 }
0x15c2   : > { %v5250_v23 = vsel %vm5167_vm9, %v5249_v52, %v5248_v35 }
0x15c3   : > { %v5253_v40 = vsel %vm10846_vm15, %v10757_v14, %v5250_v23  ;;  %v5348_v60 = vor.u32 4788187, %v5347_v27  ;;  %v5351_v16 = vcvt.s32.f32 %v5344_v34  ;;  %v5381_v23 = vpop.permute.xlu0 %5380  ;;  %v7885_v34 = vld [vmem:[#allocation42] sm:$0xff]   ;;  %v5391_v27 = vpop.permute.xlu1 %5390 }
0x15c4   : > { %7956 = vcosq.f32 %v5253_v40 }
0x15c5   : > { %7958 = vsinq.f32 %v5253_v40  ;;  %v5349_v45 = vand.u32 2147483647, %v5348_v60 }
0x15c7   : > { %v5352_v50 = vmul.f32 %v5351_v16, %v5349_v45  ;;  %v5396_v53 = vpop.permute.xlu1 %5395  ;;  %v5462_v16 = vpop.permute.xlu0 %5461 }
0x15c9   : > { %v5353_v21 = vxor.u32 2147483648, %v5352_v50 }
0x15cb   : > { %v5354_v9 = vsel %vm5271_vm5, %v5353_v21, %v5352_v50 }
0x15cc   : > { %v5357_v61 = vsel %vm10860_vm10, %v10765_v63, %v5354_v9  ;;  %v5467_v9 = vpop.permute.xlu1 %5466 }
0x15cd   : > { %7960 = vcosq.f32 %v5357_v61 }
0x15ce   : > { %7962 = vsinq.f32 %v5357_v61 }
0x15d1   : > { %v7957_v12 = vpop.eup %7956 }
0x15d2   : > { %v7959_v11 = vpop.eup %7958  ;;  %v5265_v33 = vxor.u32 2147483648, %v7957_v12 }
0x15d3   : > { %v5262_v30 = vxor.u32 2147483648, %v7959_v11 }
0x15d4   : > { %v5266_v32 = vsel %vm5264_vm11, %v5265_v33, %v7959_v11 }
0x15d5   : > { %v5263_v22 = vsel %vm5261_vm1, %v7957_v12, %v5262_v30 }
0x15d6   : > { %v5267_v5 = vsel %vm5260_vm4, %v5263_v22, %v5266_v32 }
0x15d7   : > { %v5268_v17 = vsel %vm5257_vm14, nan, %v5267_v5 }
0x15d8   : > { %v5373_v52 = vmul.f32 %v5268_v17, %v5268_v17 }
0x15da   : > { %v7961_v39 = vpop.eup %7960  ;;  %v5383_v40 = vmul.f32 %v5377_v13, %v5373_v52 }
0x15db   : > { %v7963_v31 = vpop.eup %7962  ;;  %v5369_v43 = vxor.u32 2147483648, %v7961_v39 }
0x15dc   : > { %v5366_v35 = vxor.u32 2147483648, %v7963_v31  ;;  %v5385_v55 = vadd.f32 %v5383_v40, %v10754_v42 }
0x15dd   : > { %v5370_v47 = vsel %vm5368_vm6, %v5369_v43, %v7963_v31 }
0x15de   : > { %v5367_v28 = vsel %vm5365_vm13, %v7961_v39, %v5366_v35 }
0x15df   : > { %v5371_v36 = vsel %vm5364_vm0, %v5367_v28, %v5370_v47 }
0x15e0   : > { %v5372_v20 = vsel %vm5361_vm7, nan, %v5371_v36 }
0x15e1   : > { %v5374_v49 = vmul.f32 %v5372_v20, %v5372_v20 }
0x15e3   : > { %v5384_v14 = vmul.f32 %v5381_v23, %v5374_v49 }
0x15e5   : > { %v5386_v58 = vadd.f32 %v5384_v14, %v10762_v37 }
0x15e7   : > { %v5387_v38 = vpack.c.bf16 %v5386_v58, %v5385_v55 }
0x15e9   : > { %7303 = vmatpush3.bf16.msra.mxu0 %v5387_v38 }
0x15ec   : > { %7305 = vmatmul.mubr.msk.bf16.vlgmr.msra.gmra.mxu0 %vm4018_vm2, %v7885_v34 }
0x16ac   : > { %v5440_v60 = vpop.f32.mrf.mxu0 }
0x16ad   : > { %v5441_v45 = vadd.f32 %v5440_v60, %v5391_v27 }
0x16ae   : > { %v7306_v63 = vpop.f32.mrf.mxu0 }
0x16af   : > { %v10875_v50 = vadd.f32 %v5441_v45, %v10577_v44 }
0x16b0   : > { %v5443_v19 = vpop.f32.mrf.mxu0 }
0x16b1   : > { %v10878_v21 = vmul.f32 %v5462_v16, %v10875_v50  ;;  %v5444_v42 = vadd.f32 %v5443_v19, %v5396_v53 }
0x16b2   : > { %v7307_v37 = vpop.f32.mrf.mxu0 }
0x16b3   : > { %v5471_v25 = vand.u32 2147483647, %v10878_v21  ;;  %v5474_v46 = vand.u32 2139095040, %v10878_v21  ;;  %v10883_v48 = vadd.f32 %v5444_v42, %v10585_v24 }
0x16b5   : > { %v5475_v61 = vshrl.u32 %v5474_v46, 23  ;;  %v10886_v12 = vmul.f32 %v5467_v9, %v10883_v48  ;;  %v5478_v44 = vand.u32 8388607, %v5471_v25 }
0x16b7   : > { %v7044_v11 = vadd.s32 4294967169, %v5475_v61  ;;  %v5578_v0 = vand.u32 2139095040, %v10886_v12  ;;  %v5479_v33 = vor.u32 8388608, %v5478_v44  ;;  %v5575_v22 = vand.u32 2147483647, %v10886_v12 }
0x16b9   : > { %v5481_v57 = vadd.s32 1, %v7044_v11  ;;  %v5579_v30 = vshrl.u32 %v5578_v0, 23  ;;  %v10892_v5 = vshll.u32 %v5479_v33, 8  ;;  %v5582_v31 = vand.u32 8388607, %v5575_v22 }
0x16bb   : > { %vm5482_vm9 = vcmp.gt.s32.totalorder %v5481_v57, 0  ;;  %v7048_v29 = vadd.s32 4294967169, %v5579_v30  ;;  %v5583_v42 = vor.u32 8388608, %v5582_v31 }
0x16bc   : > { %v5483_v24 = vsel %vm5482_vm9, %v5481_v57, 0 }
0x16bd   : > { %v5484_v32 = vshrl.u32 %v5483_v24, 5  ;;  %v5485_v51 = vand.u32 31, %v5483_v24  ;;  %v5585_v17 = vadd.s32 1, %v7048_v29 }
0x16bf   : > { %v5486_v41 = vsub.s32 32, %v5485_v51  ;;  %v5488_v39 = vshll.u32 %v8877_v54, %v5485_v51  ;;  %v5491_v43 = vshll.u32 %v8878_v56, %v5485_v51  ;;  %v5494_v35 = vshll.u32 %v8879_v59, %v5485_v51 }
0x16c0   : > { %v5497_v52 = vshll.u32 %v8880_v62, %v5485_v51  ;;  %v5500_v47 = vshll.u32 %v8881_v3, %v5485_v51  ;;  %vm5503_vm15 = vcmp.lt.s32.totalorder %v5484_v32, 1  ;;  %vm5505_vm5 = vcmp.lt.s32.totalorder %v5484_v32, 3 }
0x16c1   : > { %v5489_v13 = vshrl.u32 %v8878_v56, %v5486_v41  ;;  %v5492_v28 = vshrl.u32 %v8879_v59, %v5486_v41  ;;  %v5495_v36 = vshrl.u32 %v8880_v62, %v5486_v41  ;;  %v5487_v23 = vshrl.u32 %v8877_v54, %v5486_v41 }
0x16c2   : > { %v5498_v20 = vshrl.u32 %v8881_v3, %v5486_v41  ;;  %v5501_v40 = vshrl.u32 %v8882_v6, %v5486_v41  ;;  %vm5586_vm10 = vcmp.gt.s32.totalorder %v5585_v17, 0  ;;  %vm5506_vm1 = vcmp.lt.s32.totalorder %v5484_v32, 4 }
0x16c3   : > { %v5490_v49 = vor.u32 %v5489_v13, %v5488_v39  ;;  %v5493_v14 = vor.u32 %v5492_v28, %v5491_v43  ;;  %v5496_v55 = vor.u32 %v5495_v36, %v5494_v35  ;;  %v5587_v34 = vsel %vm5586_vm10, %v5585_v17, 0 }
0x16c4   : > { %v5499_v58 = vor.u32 %v5498_v20, %v5497_v52  ;;  %v5502_v38 = vor.u32 %v5501_v40, %v5500_v47  ;;  %vm5504_vm11 = vcmp.lt.s32.totalorder %v5484_v32, 2  ;;  %v5589_v9 = vand.u32 31, %v5587_v34 }
0x16c5   : > { %v5507_v27 = vsel %vm5503_vm15, %v5487_v23, %v5490_v49  ;;  %v5508_v60 = vsel %vm5506_vm1, %v5496_v55, 2102212464  ;;  %v5511_v53 = vsel %vm5503_vm15, %v5490_v49, %v5493_v14  ;;  %v5515_v45 = vsel %vm5503_vm15, %v5493_v14, %v5496_v55 }
0x16c6   : > { %v5509_v63 = vsel %vm5505_vm5, %v5493_v14, %v5508_v60  ;;  %v5512_v16 = vsel %vm5506_vm1, %v5499_v58, 920167782  ;;  %v5516_v19 = vsel %vm5506_vm1, %v5502_v38, 1326507024  ;;  %v5588_v29 = vshrl.u32 %v5587_v34, 5 }
0x16c7   : > { %v5513_v37 = vsel %vm5505_vm5, %v5496_v55, %v5512_v16  ;;  %v5517_v46 = vsel %vm5505_vm5, %v5499_v58, %v5516_v19  ;;  %v5510_v61 = vsel %vm5504_vm11, %v5507_v27, %v5509_v63  ;;  %v5590_v24 = vsub.s32 32, %v5589_v9 }
0x16c8   : > { %v5514_v44 = vsel %vm5504_vm11, %v5511_v53, %v5513_v37  ;;  %v5518_v11 = vsel %vm5504_vm11, %v5515_v45, %v5517_v46  ;;  %v5623_v51 = vshll.u32 %v5583_v42, 8  ;;  %v5526_v41 = vmul.u32 %v10892_v5, %v5510_v61 }
0x16c9   : > { %v10914_v0 = vmul.u32.u64.low %v10892_v5, %v5518_v11  ;;  %v10915_v57 = vmul.u32.u64.high %v10892_v5, %v5518_v11, %v10914_v0  ;;  %v10918_v30 = vmul.u32.u64.low %v10892_v5, %v5514_v44  ;;  %v10919_v33 = vmul.u32.u64.high %v10892_v5, %v5514_v44, %v10918_v30 }
0x16ca   : > { %v5592_v32 = vshll.u32 %v8877_v54, %v5589_v9  ;;  %v5595_v39 = vshll.u32 %v8878_v56, %v5589_v9  ;;  %v5598_v17 = vshll.u32 %v8879_v59, %v5589_v9  ;;  %v5593_v31 = vshrl.u32 %v8878_v56, %v5590_v24 }
0x16cb   : > { %v5596_v43 = vshrl.u32 %v8879_v59, %v5590_v24  ;;  %v5599_v35 = vshrl.u32 %v8880_v62, %v5590_v24  ;;  %v5601_v52 = vshll.u32 %v8880_v62, %v5589_v9  ;;  %vm5528_vm4 = vc.u32 %v10915_v57, %v10918_v30 }
0x16cc   : > { %v5529_v47 = vadd.s32 1, %v10919_v33  ;;  %v5602_v5 = vshrl.u32 %v8881_v3, %v5590_v24  ;;  %v5604_v13 = vshll.u32 %v8881_v3, %v5589_v9  ;;  %v5594_v28 = vor.u32 %v5593_v31, %v5592_v32 }
0x16cd   : > { %v5597_v36 = vor.u32 %v5596_v43, %v5595_v39  ;;  %v5600_v23 = vor.u32 %v5599_v35, %v5598_v17  ;;  %v5605_v20 = vshrl.u32 %v8882_v6, %v5590_v24  ;;  %vm5607_vm14 = vcmp.lt.s32.totalorder %v5588_v29, 1 }
0x16ce   : > { %v5530_v40 = vsel %vm5528_vm4, %v5529_v47, %v10919_v33  ;;  %v5603_v49 = vor.u32 %v5602_v5, %v5601_v52  ;;  %vm5610_vm6 = vcmp.lt.s32.totalorder %v5588_v29, 4  ;;  %vm5609_vm13 = vcmp.lt.s32.totalorder %v5588_v29, 3 }
0x16cf   : > { %v5531_v14 = vadd.s32 %v5530_v40, %v5526_v41  ;;  %v5606_v55 = vor.u32 %v5605_v20, %v5604_v13  ;;  %v5612_v58 = vsel %vm5610_vm6, %v5600_v23, 2102212464  ;;  %v5591_v38 = vshrl.u32 %v8877_v54, %v5590_v24 }
0x16d0   : > { %v5615_v34 = vsel %vm5607_vm14, %v5594_v28, %v5597_v36  ;;  %v5616_v27 = vsel %vm5610_vm6, %v5603_v49, 920167782  ;;  %v5619_v60 = vsel %vm5607_vm14, %v5597_v36, %v5600_v23  ;;  %vm5608_vm0 = vcmp.lt.s32.totalorder %v5588_v29, 2 }
0x16d1   : > { %v5532_v53 = vadd.s32 536870912, %v5531_v14  ;;  %v5617_v45 = vsel %vm5609_vm13, %v5600_v23, %v5616_v27  ;;  %v5620_v63 = vsel %vm5610_vm6, %v5606_v55, 1326507024  ;;  %v5611_v16 = vsel %vm5607_vm14, %v5591_v38, %v5594_v28 }
0x16d2   : > { %v5613_v19 = vsel %vm5609_vm13, %v5597_v36, %v5612_v58  ;;  %v5618_v42 = vsel %vm5608_vm0, %v5615_v34, %v5617_v45  ;;  %v5621_v37 = vsel %vm5609_vm13, %v5603_v49, %v5620_v63  ;;  %v5527_v23 = vadd.s32 %v10918_v30, %v10915_v57 }
0x16d3   : > { %v5533_v46 = vshrl.u32 %v5532_v53, 30  ;;  %v5622_v9 = vsel %vm5608_vm0, %v5619_v60, %v5621_v37  ;;  %v10938_v61 = vmul.u32.u64.low %v5623_v51, %v5618_v42  ;;  %v10939_v44 = vmul.u32.u64.high %v5623_v51, %v5618_v42, %v10938_v61 }
0x16d4   : > { %v10941_v11 = vmul.u32.u64.low %v5623_v51, %v5622_v9  ;;  %v10942_v0 = vmul.u32.u64.high %v5623_v51, %v5622_v9, %v10941_v11  ;;  %v5614_v24 = vsel %vm5608_vm0, %v5611_v16, %v5613_v19  ;;  %vm5473_vm5 = vcmp.lt.s32.totalorder %v10878_v21, 0 }
0x16d5   : > { %v5534_v33 = vshll.u32 %v5533_v46, 30  ;;  %v5633_v32 = vadd.s32 1, %v10939_v44  ;;  %v5630_v29 = vmul.u32 %v5623_v51, %v5614_v24  ;;  %v5557_v9 = vsub.s32 4, %v5533_v46 }
0x16d6   : > { %vm5632_vm7 = vc.u32 %v10942_v0, %v10938_v61  ;;  %v5631_v42 = vadd.s32 %v10938_v61, %v10942_v0  ;;  %vm5472_vm10 = vcmp.le.f32.partialorder %v5471_v25, 0.7853982  ;;  %vm5577_vm1 = vcmp.lt.s32.totalorder %v10886_v12, 0 }
0x16d7   : > { %v5535_v41 = vsub.s32 %v5531_v14, %v5534_v33  ;;  %v5634_v17 = vsel %vm5632_vm7, %v5633_v32, %v10939_v44  ;;  %vm10957_vm11 = vcmp.le.f32.partialorder %v5575_v22, 0.7853982  ;;  %vm5563_vm13 = vweird.f32 %v10878_v21 }
0x16d8   : > { %v5635_v31 = vadd.s32 %v5634_v17, %v5630_v29  ;;  %vm11679_vm0 = vcmp.eq.s32.totalorder %v9918_v7, %v9865_v10 }
0x16d9   : > { %v5537_v39 = vsub.s32 0, %v5535_v41 }
0x16da   : > { %v5636_v35 = vadd.s32 536870912, %v5635_v31 }
0x16db   : > { %v7045_v43 = vmin.u32 %v5537_v39, %v5535_v41  ;;  %v5558_v39 = vsel %vm5473_vm5, %v5557_v9, %v5533_v46 }
0x16dc   : > { %v5637_v47 = vshrl.u32 %v5636_v35, 30 }
0x16dd   : > { %v5539_v52 = vclz %v7045_v43 }
0x16de   : > { %v5638_v13 = vshll.u32 %v5637_v47, 30 }
0x16df   : > { %v7046_v5 = vadd.s32 4294967294, %v5539_v52 }
0x16e0   : > { %v5639_v36 = vsub.s32 %v5635_v31, %v5638_v13  ;;  %v5560_v31 = vsel %vm5472_vm10, 0, %v5558_v39 }
0x16e1   : > { %vm7047_vm9 = vcmp.lt.s32.totalorder %v7046_v5, 0  ;;  %v5564_v35 = vadd.s32 3, %v5560_v31 }
0x16e2   : > { %v5542_v28 = vsel %vm7047_vm9, 0, %v7046_v5  ;;  %v5641_v40 = vsub.s32 0, %v5639_v36  ;;  %v5661_v5 = vsub.s32 4, %v5637_v47 }
0x16e3   : > { %v5543_v20 = vsub.s32 32, %v5542_v28  ;;  %v5547_v51 = vsub.s32 4294967266, %v5542_v28  ;;  %v5544_v49 = vshll.u32 %v5535_v41, %v5542_v28  ;;  %v5565_v28 = vand.u32 3, %v5564_v35 }
0x16e4   : > { %v7049_v58 = vmin.u32 %v5641_v40, %v5639_v36 }
0x16e5   : > { %v5545_v14 = vshrl.u32 %v5527_v23, %v5543_v20  ;;  %v5548_v55 = vadd.s32 127, %v5547_v51  ;;  %vm5570_vm4 = vcmp.eq.s32.totalorder %v5565_v28, 2  ;;  %vm5567_vm14 = vcmp.eq.s32.totalorder %v5565_v28, 0 }
0x16e6   : > { %v5643_v27 = vclz %v7049_v58  ;;  %vm5566_vm6 = vcmp.lt.s32.totalorder %v5565_v28, 2  ;;  %v5913_v28 = vld [vmem:[%s11573_s4 + $0x10] sm:$0xff] }
0x16e7   : > { %v5546_v38 = vor.u32 %v5545_v14, %v5544_v49  ;;  %v5549_v34 = vshll.u32 %v5548_v55, 23 }
0x16e8   : > { %v7050_v53 = vadd.s32 4294967294, %v5643_v27  ;;  %v6968_v27 = vsel %vm3219_vm12, 1.0, %v8864_v2 }
0x16e9   : > { %v5550_v60 = vor.u32 4788187, %v5549_v34  ;;  %v5553_v63 = vcvt.s32.f32 %v5546_v38  ;;  %v5683_v38 = vpop.permute.xlu1 %5682 }
0x16ea   : > { %vm7051_vm15 = vcmp.lt.s32.totalorder %v7050_v53, 0 }
0x16eb   : > { %v5551_v45 = vand.u32 2147483647, %v5550_v60  ;;  %v5646_v19 = vsel %vm7051_vm15, 0, %v7050_v53  ;;  %v6969_v60 = vsel %vm11679_vm0, 1.0, %v8864_v2  ;;  %vm5667_vm15 = vweird.f32 %v10886_v12 }
0x16ec   : > { %v5647_v57 = vsub.s32 32, %v5646_v19  ;;  %v5651_v30 = vsub.s32 4294967266, %v5646_v19  ;;  %v5648_v44 = vshll.u32 %v5639_v36, %v5646_v19  ;;  %v5662_v36 = vsel %vm5577_vm1, %v5661_v5, %v5637_v47  ;;  %v7886_v5 = vld [vmem:[%s11684_s8] sm:$0xff]  }
0x16ed   : > { %v5554_v16 = vmul.f32 %v5553_v63, %v5551_v45  ;;  %v5664_v22 = vsel %vm10957_vm11, 0, %v5662_v36 }
0x16ee   : > { %v5649_v11 = vshrl.u32 %v5631_v42, %v5647_v57  ;;  %v5652_v33 = vadd.s32 127, %v5651_v30  ;;  %v5668_v58 = vadd.s32 3, %v5664_v22  ;;  %v5687_v30 = vpop.permute.xlu0 %5686 }
0x16ef   : > { %v5555_v37 = vxor.u32 2147483648, %v5554_v16 }
0x16f0   : > { %v5650_v32 = vor.u32 %v5649_v11, %v5648_v44  ;;  %v5653_v29 = vshll.u32 %v5652_v33, 23  ;;  %v5669_v45 = vand.u32 3, %v5668_v58 }
0x16f1   : > { %v5556_v24 = vsel %vm5473_vm5, %v5555_v37, %v5554_v16  ;;  %v3242_v16 = vpack.c.bf16 %v6969_v60, %v6968_v27  ;;  %vm11683_vm5 = vcmask 244736  }
0x16f2   : > { %v5559_v41 = vsel %vm5472_vm10, %v10878_v21, %v5556_v24  ;;  %v5654_v61 = vor.u32 4788187, %v5653_v29  ;;  %v5657_v17 = vcvt.s32.f32 %v5650_v32  ;;  %vm5674_vm7 = vcmp.eq.s32.totalorder %v5669_v45, 2  ;;  %vm11685_vm10 = vmmov %vm11683_vm5 }
0x16f3   : > { %7964 = vcosq.f32 %v5559_v41  ;;  %v5755_v18 = vand.u32 %v9871_v15, %v3242_v16  ;;  %vm5671_vm12 = vcmp.eq.s32.totalorder %v5669_v45, 0  ;;  %vm5670_vm9 = vcmp.lt.s32.totalorder %v5669_v45, 2 }
0x16f4   : > { %7966 = vsinq.f32 %v5559_v41  ;;  %v5655_v0 = vand.u32 2147483647, %v5654_v61 }
0x16f5   : > { %7308 = vmatprep.subr.bf16.mxu0 %v5755_v18 }
0x16f6   : > { %v5658_v43 = vmul.f32 %v5657_v17, %v5655_v0  ;;  %7309 = vmatpush3.bf16.msra.mxu0 %v5755_v18 }
0x16f7   : > { %7310 = vmatprep.subr.msk.bf16.mxu0 %vm9937_vm3, %v8894_v4 }
0x16f8   : > { %v5659_v52 = vxor.u32 2147483648, %v5658_v43 }
0x16fa   : > { %v5660_v13 = vsel %vm5577_vm1, %v5659_v52, %v5658_v43  ;;  %7311 = vmatpush3.bf16.msk.msra.mxu0 %vm9937_vm3, %v8894_v4  ;;  %vm5709_vm3 = vcmask 252936   ;;  %vm11687_vm1 = vcmask 523264  }
0x16fb   : > { %v5663_v46 = vsel %vm10957_vm11, %v10886_v12, %v5660_v13 }
0x16fc   : > { %7968 = vcosq.f32 %v5663_v46 }
0x16fd   : > { %7970 = vsinq.f32 %v5663_v46  ;;  %v5914_v46 = vld [vmem:[%s11573_s4 + $0x18] sm:$0xff] }
0x1700   : > { %v7965_v23 = vpop.eup %7964 }
0x1701   : > { %v7967_v20 = vpop.eup %7966  ;;  %v5571_v51 = vxor.u32 2147483648, %v7965_v23 }
0x1702   : > { %v5568_v40 = vxor.u32 2147483648, %v7967_v20 }
0x1703   : > { %v5572_v49 = vsel %vm5570_vm4, %v5571_v51, %v7967_v20  ;;  %v5912_v20 = vld [vmem:[%s11573_s4 + $0x8] sm:$0xff]  ;;  %v5911_v51 = vld [vmem:[%s11573_s4] sm:$0xff]  ;;  %s6929_s4 = sshll.u32 %s9412_s13, 3 }
0x1704   : > { %v5569_v14 = vsel %vm5567_vm14, %v7965_v23, %v5568_v40  ;;  %s1781_s7 = scalar_lea.vmem [#allocation44], %s6929_s4  ;;  %s8895_s4 = smov [#allocation44]  }
0x1705   : > { %v5573_v55 = vsel %vm5566_vm6, %v5569_v14, %v5572_v49  ;;  %s8670_s11 = sshll.u32 %s8895_s4, 4  ;;  %s8671_s11 = int_to_ptr.vmem [resolvable:$false] %s8670_s11 }
0x1706   : > { %v5574_v34 = vsel %vm5563_vm13, nan, %v5573_v55 }
0x1707   : > { %v5679_v47 = vmul.f32 %v5574_v34, %v5574_v34 }
0x1709   : > { %v5689_v53 = vmul.f32 %v5683_v38, %v5679_v47  ;;  %v7969_v63 = vpop.eup %7968 }
0x170a   : > { %v7971_v19 = vpop.eup %7970  ;;  %v5675_v42 = vxor.u32 2147483648, %v7969_v63 }
0x170b   : > { %v5691_v21 = vadd.f32 %v5689_v53, %v10875_v50  ;;  %v5672_v57 = vxor.u32 2147483648, %v7971_v19 }
0x170c   : > { %v5676_v10 = vsel %vm5674_vm7, %v5675_v42, %v7971_v19 }
0x170d   : > { %5712 = vst.msk [vmem:[#allocation2 + $0x10] sm:$0xff] %vm3666_vm8, %v5691_v21  ;;  %5714 = vrot.lane.b32.xlu0 %v5691_v21, %s11680_s16  ;;  %5703 = vrot.lane.b32.xlu1 %v5691_v21, %s11681_s6  ;;  %v5673_v7 = vsel %vm5671_vm12, %v7969_v63, %v5672_v57 }
0x170e   : > { %v5677_v50 = vsel %vm5670_vm9, %v5673_v7, %v5676_v10 }
0x170f   : > { %v5678_v37 = vsel %vm5667_vm15, nan, %v5677_v50 }
0x1710   : > { %v5680_v9 = vmul.f32 %v5678_v37, %v5678_v37 }
0x1711   : > { %5722 = vrot.lane.b32.xlu0 %v5691_v21, %s11682_s9 }
0x1712   : > { %v5690_v44 = vmul.f32 %v5687_v30, %v5680_v9 }
0x1714   : > { %v5732_v15 = vld [vmem:[#allocation2 + $0x10] sm:$0xff]  ;;  %v5692_v12 = vadd.f32 %v5690_v44, %v10883_v48 }
0x1715   : > { %6387 = vst.msk [vmem:[#allocation2 + $0x10] sm:$0xff] %vm4018_vm2, %v8864_v2 }
0x1716   : > { %5713 = vst.msk [vmem:[#allocation2 + $0x18] sm:$0xff] %vm3666_vm8, %v5692_v12  ;;  %5705 = vrot.lane.b32.xlu1 %v5692_v12, %s11681_s6 }
0x171a   : > { %5716 = vrot.lane.b32.xlu1 %v5692_v12, %s11680_s16 }
0x171d   : > { %v5733_v11 = vld [vmem:[#allocation2 + $0x18] sm:$0xff] }
0x171e   : > { %5724 = vrot.lane.b32.xlu1 %v5692_v12, %s11682_s9  ;;  %v5739_v33 = vpack.c.bf16 %v5733_v11, %v5732_v15  ;;  %6388 = vst.msk [vmem:[#allocation2 + $0x18] sm:$0xff] %vm4018_vm2, %v8864_v2  ;;  %s11686_s9 = sld [smem:[#allocation97_spill]] }
0x1724   : > { %v5457_v25 = vld [vmem:[%s11686_s9 + $0x10] sm:$0xff]  ;;  %v5458_v13 = vld [vmem:[%s11686_s9 + $0x18] sm:$0xff]  ;;  %v5456_v36 = vld [vmem:[%s11686_s9 + $0x8] sm:$0xff] }
0x1725   : > { %5838 = vperm.xlu0 %7874, %v5457_v25   ;;  %5843 = vperm.xlu1 %7875, %v5458_v13   ;;  %v5455_v23 = vld [vmem:[%s11686_s9] sm:$0xff] }
0x1729   : > { %5934 = vperm.xlu0 %7874, %v5914_v46   ;;  %5929 = vperm.xlu1 %7875, %v5913_v28  }
0x172d   : > { %5833 = vperm.xlu0 %7874, %v5456_v36   ;;  %5828 = vperm.xlu1 %7875, %v5455_v23  }
0x1731   : > { %5924 = vperm.xlu0 %7874, %v5912_v20   ;;  %5919 = vperm.xlu1 %7875, %v5911_v51  }
0x1735   : > { %7876 = vset.pattern.permute.xlu1 %v8863_v1  ;;  %7877 = vset.pattern.permute.xlu0 %v8863_v1 }
0x1736   : > { %6370 = vperm.xlu1 %7876, %v5913_v28   ;;  %6374 = vperm.xlu0 %7877, %v5914_v46  }
0x173a   : > { %6362 = vperm.xlu1 %7876, %v5911_v51   ;;  %7878 = vset.pattern.permute.xlu0 %v8869_v8  ;;  %v7887_v8 = vld [vmem:[%s11684_s8 + $0x8] sm:$0xff]   ;;  %s6521_s8 = sshll.u32 %s1781_s7, 4  ;;  %s11433_s8 = int_to_ptr.vmem [resolvable:$true] %s6521_s8 }
0x173b   : > { %s8666_s10 = scalar_lea.vmem %s11433_s8, 128  ;;  %p8673_p13 = scmp.lt.s32.totalorder %s11433_s8, %s8671_s11 }
0x173c   : > { %p8667_p1 = scmp.ne.s32.totalorder %s11433_s8, %s8666_s10 }
0x173e   : > { %6366 = vperm.xlu1 %7876, %v5912_v20   ;;  %p8668_p9 = pnand %p8667_p1, %p11697_p12 }
0x1740   : > { %p8669_p6 = pneg %p8668_p9 }
0x177f   : > { %v5715_v4 = vpop.permute.xlu0 %5714  ;;  %v5704_v26 = vpop.permute.xlu1 %5703 }
0x1780   : > { %5720 = vst.msk [vmem:[#allocation2 + $0x20] sm:$0xff] %vm3666_vm8, %v5715_v4 }
0x1781   : > { %5710 = vst.msk [vmem:[#allocation2] sm:$0xff] %vm5709_vm3, %v5704_v26 }
0x1783   : > { %v5723_v48 = vpop.permute.xlu0 %5722 }
0x1784   : > { %5728 = vst.msk [vmem:[#allocation2 + $0x30] sm:$0xff] %vm11683_vm5, %v5723_v48 }
0x1787   : > { %v5734_v41 = vld [vmem:[#allocation2 + $0x20] sm:$0xff] }
0x1788   : > { %v5730_v24 = vld [vmem:[#allocation2] sm:$0xff]  ;;  %6389 = vst.msk [vmem:[#allocation2 + $0x20] sm:$0xff] %vm4018_vm2, %v8864_v2  ;;  %v5706_v32 = vpop.permute.xlu1 %5705 }
0x1789   : > { %6385 = vst.msk [vmem:[#allocation2] sm:$0xff] %vm4018_vm2, %v8864_v2 }
0x178a   : > { %5711 = vst.msk [vmem:[#allocation2 + $0x8] sm:$0xff] %vm5709_vm3, %v5706_v32 }
0x178b   : > { %v5736_v29 = vld [vmem:[#allocation2 + $0x30] sm:$0xff] }
0x178c   : > { %6391 = vst.msk [vmem:[#allocation2 + $0x30] sm:$0xff] %vm4018_vm2, %v8864_v2  ;;  %v5717_v39 = vpop.permute.xlu1 %5716 }
0x178d   : > { %5721 = vst.msk [vmem:[#allocation2 + $0x28] sm:$0xff] %vm3666_vm8, %v5717_v39 }
0x1790   : > { %v5725_v61 = vpop.permute.xlu1 %5724 }
0x1791   : > { %v5731_v0 = vld [vmem:[#allocation2 + $0x8] sm:$0xff]  ;;  %5729 = vst.msk [vmem:[#allocation2 + $0x38] sm:$0xff] %vm11685_vm10, %v5725_v61 }
0x1792   : > { %v5738_v17 = vpack.c.bf16 %v5731_v0, %v5730_v24  ;;  %6386 = vst.msk [vmem:[#allocation2 + $0x8] sm:$0xff] %vm4018_vm2, %v8864_v2 }
0x1794   : > { %7312 = vmatprep.mubr.msk.bf16.mxu0 %vm3666_vm8, %v5738_v17  ;;  %v5735_v31 = vld [vmem:[#allocation2 + $0x28] sm:$0xff] }
0x1795   : > { %7313 = vmatmul.mubr.msk.bf16.vlgmr.msra.gmra.mxu0 %vm3666_vm8, %v5739_v33  ;;  %v5740_v43 = vpack.c.bf16 %v5735_v31, %v5734_v41  ;;  %6390 = vst.msk [vmem:[#allocation2 + $0x28] sm:$0xff] %vm4018_vm2, %v8864_v2 }
0x1797   : > { %7316 = vmatprep.mubr.msk.bf16.mxu0 %vm3666_vm8, %v5740_v43 }
0x1798   : > { %v5737_v35 = vld [vmem:[#allocation2 + $0x38] sm:$0xff] }
0x1799   : > { %v5741_v52 = vpack.c.bf16 %v5737_v35, %v5736_v29  ;;  %6392 = vst.msk [vmem:[#allocation2 + $0x38] sm:$0xff] %vm4018_vm2, %v8864_v2 }
0x179d   : > { %7317 = vmatmul.mubr.msk.bf16.gmra.mxu0 %vm3666_vm8, %v5741_v52  ;;  %vm11688_vm8 = vmmov %vm11687_vm1 }
0x179e   : > { %7328 = vmatprep.mubr.msk.bf16.mxu0 %vm11687_vm1, %v7886_v5 }
0x17a0   : > { %v5844_v53 = vpop.permute.xlu1 %5843  ;;  %v5839_v63 = vpop.permute.xlu0 %5838 }
0x17a4   : > { %v5930_v45 = vpop.permute.xlu1 %5929  ;;  %v5935_v16 = vpop.permute.xlu0 %5934 }
0x17a8   : > { %v5829_v21 = vpop.permute.xlu1 %5828  ;;  %v5834_v30 = vpop.permute.xlu0 %5833 }
0x17ac   : > { %v5920_v7 = vpop.permute.xlu1 %5919  ;;  %v5925_v29 = vpop.permute.xlu0 %5924 }
0x1855   : > { %v7314_v40 = vpop.f32.mrf.mxu0 }
0x1857   : > { %v5791_v22 = vpop.f32.mrf.mxu0 }
0x1859   : > { %v7315_v49 = vpop.f32.mrf.mxu0 }
0x185a   : > { %v5823_v1 = vpack.c.bf16 %v7315_v49, %v7314_v40 }
0x185b   : > { %v5794_v14 = vpop.f32.mrf.mxu0 }
0x185c   : > { %v5822_v60 = vpack.c.bf16 %v5794_v14, %v5791_v22 }
0x185d   : > { %v7318_v55 = vpop.f32.mrf.mxu0 }
0x185f   : > { %v5807_v58 = vpop.f32.mrf.mxu0 }
0x1861   : > { %v7319_v38 = vpop.f32.mrf.mxu0 }
0x1862   : > { %v5825_v34 = vpack.c.bf16 %v7319_v38, %v7318_v55 }
0x1863   : > { %v5810_v47 = vpop.f32.mrf.mxu0 }
0x1864   : > { %v5824_v27 = vpack.c.bf16 %v5810_v47, %v5807_v58  ;;  %7320 = vmatprep.subr.bf16.mxu0 %v5825_v34 }
0x1865   : > { %7321 = vmatpush3.bf16.msra.mxu0 %v5825_v34 }
0x1866   : > { %7322 = vmatprep.subr.bf16.mxu0 %v5824_v27 }
0x1869   : > { %7323 = vmatpush3.bf16.msra.mxu0 %v5824_v27 }
0x186a   : > { %7324 = vmatprep.subr.bf16.mxu0 %v5823_v1 }
0x186d   : > { %7325 = vmatpush3.bf16.msra.mxu0 %v5823_v1 }
0x186e   : > { %7326 = vmatprep.subr.bf16.mxu0 %v5822_v60 }
0x1871   : > { %7327 = vmatpush3.bf16.msra.mxu0 %v5822_v60 }
0x1874   : > { %7329 = vmatmul.mubr.msk.bf16.vlgmr.msra.gmra.mxu0 %vm11688_vm8, %v7887_v8 }
0x1934   : > { %v7330_v19 = vpop.f32.mrf.mxu0 }
0x1935   : > { %v11032_v42 = vadd.f32 %v7330_v19, %v5839_v63 }
0x1936   : > { %v5896_v57 = vpop.f32.mrf.mxu0 }
0x1937   : > { %v11035_v18 = vmul.f32 %v5930_v45, %v11032_v42  ;;  %v11037_v10 = vadd.f32 %v5896_v57, %v5829_v21 }
0x1938   : > { %v7331_v50 = vpop.f32.mrf.mxu0 }
0x1939   : > { %v6152_v37 = vand.u32 2139095040, %v11035_v18  ;;  %v11041_v9 = vmul.f32 %v5920_v7, %v11037_v10  ;;  %v11043_v44 = vadd.f32 %v7331_v50, %v5844_v53  ;;  %v6149_v61 = vand.u32 2147483647, %v11035_v18 }
0x193a   : > { %v5899_v15 = vpop.f32.mrf.mxu0 }
0x193b   : > { %v6153_v12 = vshrl.u32 %v6152_v37, 23  ;;  %v5944_v11 = vand.u32 2139095040, %v11041_v9  ;;  %v5941_v33 = vand.u32 2147483647, %v11041_v9  ;;  %v11048_v4 = vmul.f32 %v5935_v16, %v11043_v44 }
0x193c   : > { %v11050_v26 = vadd.f32 %v5899_v15, %v5834_v30  ;;  %v11061_v52 = vand.u32 8388607, %v6149_v61 }
0x193d   : > { %v7070_v48 = vadd.s32 4294967169, %v6153_v12  ;;  %v5945_v24 = vshrl.u32 %v5944_v11, 23  ;;  %v6256_v41 = vand.u32 2139095040, %v11048_v4  ;;  %v5948_v0 = vand.u32 8388607, %v5941_v33 }
0x193e   : > { %v11057_v31 = vmul.f32 %v5925_v29, %v11050_v26  ;;  %v6157_v23 = vor.u32 8388608, %v11061_v52  ;;  %v6253_v20 = vand.u32 2147483647, %v11048_v4 }
0x193f   : > { %v6159_v32 = vadd.s32 1, %v7070_v48  ;;  %v7062_v39 = vadd.s32 4294967169, %v5945_v24  ;;  %v6257_v17 = vshrl.u32 %v6256_v41, 23  ;;  %v5949_v5 = vor.u32 8388608, %v5948_v0 }
0x1940   : > { %v6048_v46 = vand.u32 2139095040, %v11057_v31 }
0x1941   : > { %vm6160_vm11 = vcmp.gt.s32.totalorder %v6159_v32, 0  ;;  %v5951_v43 = vadd.s32 1, %v7062_v39  ;;  %v7074_v13 = vadd.s32 4294967169, %v6257_v17  ;;  %v11068_v40 = vshll.u32 %v5949_v5, 8 }
0x1942   : > { %v6161_v35 = vsel %vm6160_vm11, %v6159_v32, 0  ;;  %v6049_v49 = vshrl.u32 %v6048_v46, 23 }
0x1943   : > { %vm5952_vm4 = vcmp.gt.s32.totalorder %v5951_v43, 0  ;;  %v11064_v28 = vand.u32 31, %v6161_v35  ;;  %v6263_v22 = vadd.s32 1, %v7074_v13  ;;  %v11100_v13 = vand.u32 8388607, %v6253_v20 }
0x1944   : > { %v5953_v25 = vsel %vm5952_vm4, %v5951_v43, 0  ;;  %v11102_v46 = vshrl.u32 %v6161_v35, 5 }
0x1945   : > { %v5955_v36 = vand.u32 31, %v5953_v25  ;;  %v11071_v14 = vsub.s32 32, %v11064_v28  ;;  %v5954_v55 = vshrl.u32 %v5953_v25, 5  ;;  %vm6264_vm14 = vcmp.gt.s32.totalorder %v6263_v22, 0 }
0x1946   : > { %v6265_v41 = vsel %vm6264_vm14, %v6263_v22, 0  ;;  %v7066_v22 = vadd.s32 4294967169, %v6049_v49  ;;  %vm6184_vm9 = vcmp.lt.s32.totalorder %v11102_v46, 4  ;;  %vm6181_vm3 = vcmp.lt.s32.totalorder %v11102_v46, 1 }
0x1947   : > { %v5956_v51 = vsub.s32 32, %v5955_v36  ;;  %v5958_v58 = vshll.u32 %v8877_v54, %v5955_v36  ;;  %v5961_v38 = vshll.u32 %v8878_v56, %v5955_v36  ;;  %v5964_v27 = vshll.u32 %v8879_v59, %v5955_v36 }
0x1948   : > { %v5967_v60 = vshll.u32 %v8880_v62, %v5955_v36  ;;  %v5970_v53 = vshll.u32 %v8881_v3, %v5955_v36  ;;  %v6179_v19 = vshrl.u32 %v8882_v6, %v11071_v14  ;;  %vm5973_vm6 = vcmp.lt.s32.totalorder %v5954_v55, 1 }
0x1949   : > { %v5959_v34 = vshrl.u32 %v8878_v56, %v5956_v51  ;;  %v5962_v47 = vshrl.u32 %v8879_v59, %v5956_v51  ;;  %v5965_v1 = vshrl.u32 %v8880_v62, %v5956_v51  ;;  %v5968_v8 = vshrl.u32 %v8881_v3, %v5956_v51 }
0x194a   : > { %v5971_v45 = vshrl.u32 %v8882_v6, %v5956_v51  ;;  %vm5975_vm13 = vcmp.lt.s32.totalorder %v5954_v55, 3  ;;  %vm5976_vm0 = vcmp.lt.s32.totalorder %v5954_v55, 4  ;;  %v5957_v37 = vshrl.u32 %v8877_v54, %v5956_v51 }
0x194b   : > { %v5960_v63 = vor.u32 %v5959_v34, %v5958_v58  ;;  %v5963_v21 = vor.u32 %v5962_v47, %v5961_v38  ;;  %v5966_v16 = vor.u32 %v5965_v1, %v5964_v27  ;;  %v5969_v57 = vor.u32 %v5968_v8, %v5967_v60 }
0x194c   : > { %v5972_v7 = vor.u32 %v5971_v45, %v5970_v53  ;;  %vm5974_vm7 = vcmp.lt.s32.totalorder %v5954_v55, 2  ;;  %v6176_v25 = vshrl.u32 %v8881_v3, %v11071_v14  ;;  %v6178_v36 = vshll.u32 %v8881_v3, %v11064_v28 }
0x194d   : > { %v5981_v50 = vsel %vm5973_vm6, %v5960_v63, %v5963_v21  ;;  %v5985_v30 = vsel %vm5973_vm6, %v5963_v21, %v5966_v16  ;;  %v5978_v15 = vsel %vm5976_vm0, %v5966_v16, 2102212464  ;;  %v5982_v12 = vsel %vm5976_vm0, %v5969_v57, 920167782 }
0x194e   : > { %v5986_v11 = vsel %vm5976_vm0, %v5972_v7, 1326507024  ;;  %v5983_v48 = vsel %vm5975_vm13, %v5966_v16, %v5982_v12  ;;  %v5977_v32 = vsel %vm5973_vm6, %v5957_v37, %v5960_v63  ;;  %v5979_v29 = vsel %vm5975_vm13, %v5963_v21, %v5978_v15 }
0x194f   : > { %v5987_v24 = vsel %vm5975_vm13, %v5969_v57, %v5986_v11  ;;  %v5984_v39 = vsel %vm5974_vm7, %v5981_v50, %v5983_v48  ;;  %v5980_v51 = vsel %vm5974_vm7, %v5977_v32, %v5979_v29  ;;  %v6175_v55 = vshll.u32 %v8880_v62, %v11064_v28 }
0x1950   : > { %v5988_v0 = vsel %vm5974_vm7, %v5985_v30, %v5987_v24  ;;  %v11092_v52 = vmul.u32.u64.low %v11068_v40, %v5984_v39  ;;  %v11093_v5 = vmul.u32.u64.high %v11068_v40, %v5984_v39, %v11092_v52  ;;  %v6267_v58 = vand.u32 31, %v6265_v41 }
0x1951   : > { %v11088_v17 = vmul.u32.u64.low %v11068_v40, %v5988_v0  ;;  %v11089_v43 = vmul.u32.u64.high %v11068_v40, %v5988_v0, %v11088_v17  ;;  %v6167_v38 = vshrl.u32 %v8878_v56, %v11071_v14  ;;  %v6170_v34 = vshrl.u32 %v8879_v59, %v11071_v14 }
0x1952   : > { %v6180_v47 = vor.u32 %v6179_v19, %v6178_v36  ;;  %v5999_v35 = vadd.s32 1, %v11093_v5  ;;  %v11115_v27 = vshll.u32 %v6157_v23, 8  ;;  %v6177_v1 = vor.u32 %v6176_v25, %v6175_v55 }
0x1953   : > { %vm5998_vm12 = vc.u32 %v11089_v43, %v11092_v52  ;;  %v5996_v49 = vmul.u32 %v11068_v40, %v5980_v51  ;;  %v6166_v60 = vshll.u32 %v8877_v54, %v11064_v28  ;;  %v6169_v8 = vshll.u32 %v8878_v56, %v11064_v28 }
0x1954   : > { %v6000_v53 = vsel %vm5998_vm12, %v5999_v35, %v11093_v5  ;;  %v6055_v45 = vadd.s32 1, %v7066_v22  ;;  %v6261_v63 = vor.u32 8388608, %v11100_v13  ;;  %v11125_v16 = vsub.s32 32, %v6267_v58 }
0x1955   : > { %v6001_v21 = vadd.s32 %v6000_v53, %v5996_v49  ;;  %v6168_v23 = vor.u32 %v6167_v38, %v6166_v60  ;;  %v6171_v19 = vor.u32 %v6170_v34, %v6169_v8  ;;  %v6194_v40 = vsel %vm6184_vm9, %v6180_v47, 1326507024 }
0x1956   : > { %v6165_v57 = vshrl.u32 %v8877_v54, %v11071_v14  ;;  %v6172_v7 = vshll.u32 %v8879_v59, %v11064_v28  ;;  %v6173_v50 = vshrl.u32 %v8880_v62, %v11071_v14  ;;  %v6190_v30 = vsel %vm6184_vm9, %v6177_v1, 920167782 }
0x1957   : > { %v6002_v37 = vadd.s32 536870912, %v6001_v21  ;;  %v11137_v15 = vshrl.u32 %v6265_v41, 5  ;;  %v6279_v12 = vshll.u32 %v8880_v62, %v6267_v58  ;;  %vm6056_vm15 = vcmp.gt.s32.totalorder %v6055_v45, 0 }
0x1958   : > { %v6174_v11 = vor.u32 %v6173_v50, %v6172_v7  ;;  %vm6183_vm5 = vcmp.lt.s32.totalorder %v11102_v46, 3  ;;  %v6280_v28 = vshrl.u32 %v8881_v3, %v11125_v16  ;;  %v6189_v14 = vsel %vm6181_vm3, %v6168_v23, %v6171_v19 }
0x1959   : > { %v11142_v48 = vshrl.u32 %v6002_v37, 30  ;;  %v6195_v24 = vsel %vm6183_vm5, %v6177_v1, %v6194_v40  ;;  %v6283_v32 = vshrl.u32 %v8882_v6, %v11125_v16  ;;  %v6282_v17 = vshll.u32 %v8881_v3, %v6267_v58 }
0x195a   : > { %v6186_v41 = vsel %vm6184_vm9, %v6174_v11, 2102212464  ;;  %v6191_v29 = vsel %vm6183_vm5, %v6174_v11, %v6190_v30  ;;  %v6193_v39 = vsel %vm6181_vm3, %v6171_v19, %v6174_v11  ;;  %v11152_v5 = vsel %vm6056_vm15, %v6055_v45, 0 }
0x195b   : > { %v6004_v0 = vshll.u32 %v11142_v48, 30  ;;  %vm6182_vm10 = vcmp.lt.s32.totalorder %v11102_v46, 2  ;;  %v6185_v25 = vsel %vm6181_vm3, %v6165_v57, %v6168_v23  ;;  %v6187_v36 = vsel %vm6183_vm5, %v6171_v19, %v6186_v41 }
0x195c   : > { %v6192_v51 = vsel %vm6182_vm10, %v6189_v14, %v6191_v29  ;;  %v6196_v22 = vsel %vm6182_vm10, %v6193_v39, %v6195_v24  ;;  %v6281_v38 = vor.u32 %v6280_v28, %v6279_v12  ;;  %v6284_v35 = vor.u32 %v6283_v32, %v6282_v17 }
0x195d   : > { %v11155_v55 = vsub.s32 %v6001_v21, %v6004_v0  ;;  %v11158_v34 = vmul.u32.u64.low %v11115_v27, %v6196_v22  ;;  %v11159_v47 = vmul.u32.u64.high %v11115_v27, %v6196_v22, %v11158_v34  ;;  %v11162_v1 = vand.u32 31, %v11152_v5 }
0x195e   : > { %v11165_v49 = vmul.u32.u64.low %v11115_v27, %v6192_v51  ;;  %v11166_v60 = vmul.u32.u64.high %v11115_v27, %v6192_v51, %v11165_v49  ;;  %v6188_v8 = vsel %vm6182_vm10, %v6185_v25, %v6187_v36  ;;  %v6270_v53 = vshll.u32 %v8877_v54, %v6267_v58 }
0x195f   : > { %v6007_v46 = vsub.s32 0, %v11155_v55  ;;  %v6271_v45 = vshrl.u32 %v8878_v56, %v11125_v16  ;;  %v6273_v21 = vshll.u32 %v8878_v56, %v6267_v58  ;;  %v6274_v23 = vshrl.u32 %v8879_v59, %v11125_v16 }
0x1960   : > { %v6276_v19 = vshll.u32 %v8879_v59, %v6267_v58  ;;  %v6277_v40 = vshrl.u32 %v8880_v62, %v11125_v16  ;;  %v5997_v57 = vadd.s32 %v11092_v52, %v11089_v43  ;;  %vm6288_vm1 = vcmp.lt.s32.totalorder %v11137_v15, 4 }
0x1961   : > { %v7063_v7 = vmin.u32 %v6007_v46, %v11155_v55  ;;  %vm6206_vm8 = vc.u32 %v11159_v47, %v11165_v49  ;;  %v6207_v50 = vadd.s32 1, %v11166_v60  ;;  %v6272_v30 = vor.u32 %v6271_v45, %v6270_v53 }
0x1962   : > { %v6275_v37 = vor.u32 %v6274_v23, %v6273_v21  ;;  %v6278_v12 = vor.u32 %v6277_v40, %v6276_v19  ;;  %v6294_v58 = vsel %vm6288_vm1, %v6281_v38, 920167782  ;;  %v6298_v28 = vsel %vm6288_vm1, %v6284_v35, 1326507024 }
0x1963   : > { %v6009_v11 = vclz %v7063_v7  ;;  %v6204_v43 = vmul.u32 %v11115_v27, %v6188_v8  ;;  %v11192_v52 = vsub.s32 32, %v11162_v1  ;;  %v6071_v14 = vshll.u32 %v8880_v62, %v11162_v1 }
0x1964   : > { %v6208_v24 = vsel %vm6206_vm8, %v6207_v50, %v11166_v60  ;;  %v6269_v32 = vshrl.u32 %v8877_v54, %v11125_v16  ;;  %vm6285_vm11 = vcmp.lt.s32.totalorder %v11137_v15, 1  ;;  %vm6287_vm4 = vcmp.lt.s32.totalorder %v11137_v15, 3 }
0x1965   : > { %v7064_v41 = vadd.s32 4294967294, %v6009_v11  ;;  %v6209_v29 = vadd.s32 %v6208_v24, %v6204_v43  ;;  %vm6286_vm14 = vcmp.lt.s32.totalorder %v11137_v15, 2  ;;  %v6290_v27 = vsel %vm6288_vm1, %v6278_v12, 2102212464 }
0x1966   : > { %v6293_v39 = vsel %vm6285_vm11, %v6272_v30, %v6275_v37  ;;  %v6295_v0 = vsel %vm6287_vm4, %v6278_v12, %v6294_v58  ;;  %v6297_v25 = vsel %vm6285_vm11, %v6275_v37, %v6278_v12  ;;  %v6072_v51 = vshrl.u32 %v8881_v3, %v11192_v52 }
0x1967   : > { %vm7065_vm6 = vcmp.lt.s32.totalorder %v7064_v41, 0  ;;  %v6210_v17 = vadd.s32 536870912, %v6209_v29  ;;  %v6296_v16 = vsel %vm6286_vm14, %v6293_v39, %v6295_v0  ;;  %v6299_v22 = vsel %vm6287_vm4, %v6281_v38, %v6298_v28 }
0x1968   : > { %v6012_v36 = vsel %vm7065_vm6, 0, %v7064_v41  ;;  %v6301_v34 = vshll.u32 %v6261_v63, 8  ;;  %v6289_v8 = vsel %vm6285_vm11, %v6269_v32, %v6272_v30  ;;  %v6291_v53 = vsel %vm6287_vm4, %v6275_v37, %v6290_v27 }
0x1969   : > { %v6013_v35 = vsub.s32 32, %v6012_v36  ;;  %v6017_v60 = vsub.s32 4294967266, %v6012_v36  ;;  %v11218_v46 = vshrl.u32 %v6210_v17, 30  ;;  %v6300_v45 = vsel %vm6286_vm14, %v6297_v25, %v6299_v22 }
0x196a   : > { %v11226_v21 = vmul.u32.u64.low %v6301_v34, %v6296_v16  ;;  %v11227_v23 = vmul.u32.u64.high %v6301_v34, %v6296_v16, %v11226_v21  ;;  %v6014_v13 = vshll.u32 %v11155_v55, %v6012_v36  ;;  %v6075_v40 = vshrl.u32 %v8882_v6, %v11192_v52 }
0x196b   : > { %v6015_v63 = vshrl.u32 %v5997_v57, %v6013_v35  ;;  %v6018_v38 = vadd.s32 127, %v6017_v60  ;;  %v6212_v19 = vshll.u32 %v11218_v46, 30  ;;  %v6027_v7 = vsub.s32 4, %v11142_v48 }
0x196c   : > { %v11235_v50 = vmul.u32.u64.low %v6301_v34, %v6300_v45  ;;  %v11236_v30 = vmul.u32.u64.high %v6301_v34, %v6300_v45, %v11235_v50  ;;  %v6292_v58 = vsel %vm6286_vm14, %v6289_v8, %v6291_v53  ;;  %v11243_v55 = vshrl.u32 %v11152_v5, 5 }
0x196d   : > { %v6016_v37 = vor.u32 %v6015_v63, %v6014_v13  ;;  %v6019_v12 = vshll.u32 %v6018_v38, 23  ;;  %v11238_v11 = vsub.s32 %v6209_v29, %v6212_v19  ;;  %v6074_v57 = vshll.u32 %v8881_v3, %v11162_v1 }
0x196e   : > { %v6311_v6 = vadd.s32 1, %v11227_v23  ;;  %vm5943_vm13 = vcmp.lt.s32.totalorder %v11041_v9, 0  ;;  %v6073_v43 = vor.u32 %v6072_v51, %v6071_v14  ;;  %v6308_v41 = vmul.u32 %v6301_v34, %v6292_v58 }
0x196f   : > { %v6020_v28 = vor.u32 4788187, %v6019_v12  ;;  %v6215_v24 = vsub.s32 0, %v11238_v11  ;;  %v6076_v32 = vor.u32 %v6075_v40, %v6074_v57  ;;  %v6028_v15 = vsel %vm5943_vm13, %v6027_v7, %v11142_v48 }
0x1970   : > { %vm6310_vm0 = vc.u32 %v11236_v30, %v11226_v21  ;;  %v6023_v29 = vcvt.s32.f32 %v6016_v37  ;;  %vm6080_vm7 = vcmp.lt.s32.totalorder %v11243_v55, 4  ;;  %vm11260_vm12 = vcmp.le.f32.partialorder %v5941_v33, 0.7853982 }
0x1971   : > { %v6021_v5 = vand.u32 2147483647, %v6020_v28  ;;  %v7071_v3 = vmin.u32 %v6215_v24, %v11238_v11  ;;  %v6312_v27 = vsel %vm6310_vm0, %v6311_v6, %v11227_v23  ;;  %v6045_v48 = vand.u32 2147483647, %v11057_v31 }
0x1972   : > { %v6313_v39 = vadd.s32 %v6312_v27, %v6308_v41  ;;  %v6086_v17 = vsel %vm6080_vm7, %v6073_v43, 920167782  ;;  %v6063_v25 = vshrl.u32 %v8878_v56, %v11192_v52  ;;  %v6090_v36 = vsel %vm6080_vm7, %v6076_v32, 1326507024 }
0x1973   : > { %v6024_v0 = vmul.f32 %v6023_v29, %v6021_v5  ;;  %v6217_v16 = vclz %v7071_v3  ;;  %v6030_v33 = vsel %vm11260_vm12, 0, %v6028_v15  ;;  %v6066_v22 = vshrl.u32 %v8879_v59, %v11192_v52 }
0x1974   : > { %v6314_v51 = vadd.s32 536870912, %v6313_v39  ;;  %v6062_v60 = vshll.u32 %v8877_v54, %v11162_v1  ;;  %v6069_v8 = vshrl.u32 %v8880_v62, %v11192_v52  ;;  %v6205_v53 = vadd.s32 %v11165_v49, %v11159_v47 }
0x1975   : > { %v6025_v34 = vxor.u32 2147483648, %v6024_v0  ;;  %v7072_v35 = vadd.s32 4294967294, %v6217_v16  ;;  %v6052_v23 = vand.u32 8388607, %v6045_v48  ;;  %v6065_v13 = vshll.u32 %v8878_v56, %v11162_v1 }
0x1976   : > { %v11281_v45 = vshrl.u32 %v6314_v51, 30  ;;  %v6064_v38 = vor.u32 %v6063_v25, %v6062_v60  ;;  %v6068_v19 = vshll.u32 %v8879_v59, %v11162_v1  ;;  %v6034_v37 = vadd.s32 3, %v6030_v33 }
0x1977   : > { %v6026_v63 = vsel %vm5943_vm13, %v6025_v34, %v6024_v0  ;;  %vm7073_vm9 = vcmp.lt.s32.totalorder %v7072_v35, 0  ;;  %v6067_v40 = vor.u32 %v6066_v22, %v6065_v13  ;;  %v6053_v58 = vor.u32 8388608, %v6052_v23 }
0x1978   : > { %v6220_v62 = vsel %vm7073_vm9, 0, %v7072_v35  ;;  %v6029_v47 = vsel %vm11260_vm12, %v11041_v9, %v6026_v63  ;;  %v6316_v49 = vshll.u32 %v11281_v45, 30  ;;  %v6070_v56 = vor.u32 %v6069_v8, %v6068_v19 }
0x1979   : > { %v6221_v7 = vsub.s32 32, %v6220_v62  ;;  %v6225_v50 = vsub.s32 4294967266, %v6220_v62  ;;  %7972 = vcosq.f32 %v6029_v47  ;;  %v6222_v57 = vshll.u32 %v11238_v11, %v6220_v62 }
0x197a   : > { %7974 = vsinq.f32 %v6029_v47  ;;  %v11295_v12 = vsub.s32 %v6313_v39, %v6316_v49  ;;  %vm6077_vm15 = vcmp.lt.s32.totalorder %v11243_v55, 1  ;;  %v6061_v28 = vshrl.u32 %v8877_v54, %v11192_v52 }
0x197b   : > { %v6223_v59 = vshrl.u32 %v6205_v53, %v6221_v7  ;;  %v6226_v1 = vadd.s32 127, %v6225_v50  ;;  %vm6079_vm3 = vcmp.lt.s32.totalorder %v11243_v55, 3  ;;  %v6085_v24 = vsel %vm6077_vm15, %v6064_v38, %v6067_v40 }
0x197c   : > { %v6319_v6 = vsub.s32 0, %v11295_v12  ;;  %v6087_v41 = vsel %vm6079_vm3, %v6070_v56, %v6086_v17  ;;  %v6089_v11 = vsel %vm6077_vm15, %v6067_v40, %v6070_v56  ;;  %vm6078_vm5 = vcmp.lt.s32.totalorder %v11243_v55, 2 }
0x197d   : > { %v6224_v32 = vor.u32 %v6223_v59, %v6222_v57  ;;  %v6227_v15 = vshll.u32 %v6226_v1, 23  ;;  %v6082_v54 = vsel %vm6080_vm7, %v6070_v56, 2102212464  ;;  %v6091_v52 = vsel %vm6079_vm3, %v6073_v43, %v6090_v36 }
0x197e   : > { %v7075_v5 = vmin.u32 %v6319_v6, %v11295_v12  ;;  %v6088_v3 = vsel %vm6078_vm5, %v6085_v24, %v6087_v41  ;;  %v6092_v27 = vsel %vm6078_vm5, %v6089_v11, %v6091_v52  ;;  %v6093_v14 = vshll.u32 %v6053_v58, 8 }
0x197f   : > { %v6228_v29 = vor.u32 4788187, %v6227_v15  ;;  %v6035_v39 = vand.u32 3, %v6034_v37  ;;  %v6081_v17 = vsel %vm6077_vm15, %v6061_v28, %v6064_v38  ;;  %v6231_v25 = vcvt.s32.f32 %v6224_v32 }
0x1980   : > { %v6321_v0 = vclz %v7075_v5  ;;  %v11321_v33 = vmul.u32.u64.low %v6093_v14, %v6092_v27  ;;  %v11322_v51 = vmul.u32.u64.high %v6093_v14, %v6092_v27, %v11321_v33  ;;  %v6083_v43 = vsel %vm6079_vm3, %v6067_v40, %v6082_v54  ;;  %v11351_v40 = vpop.permute.xlu1 %6370 }
0x1981   : > { %v6229_v16 = vand.u32 2147483647, %v6228_v29  ;;  %v11326_v36 = vmul.u32.u64.low %v6093_v14, %v6088_v3  ;;  %v11327_v34 = vmul.u32.u64.high %v6093_v14, %v6088_v3, %v11326_v36  ;;  %vm11332_vm10 = vcmp.le.f32.partialorder %v6149_v61, 0.7853982 }
0x1982   : > { %v7076_v22 = vadd.s32 4294967294, %v6321_v0  ;;  %vm6151_vm1 = vcmp.lt.s32.totalorder %v11035_v18, 0  ;;  %v6235_v8 = vsub.s32 4, %v11218_v46  ;;  %vm6036_vm8 = vcmp.lt.s32.totalorder %v6035_v39, 2 }
0x1983   : > { %v6232_v60 = vmul.f32 %v6231_v25, %v6229_v16  ;;  %vm6037_vm11 = vcmp.eq.s32.totalorder %v6035_v39, 0  ;;  %vm6040_vm4 = vcmp.eq.s32.totalorder %v6035_v39, 2  ;;  %v6309_v23 = vadd.s32 %v11226_v21, %v11236_v30 }
0x1984   : > { %vm7077_vm14 = vcmp.lt.s32.totalorder %v7076_v22, 0  ;;  %v6084_v61 = vsel %vm6078_vm5, %v6081_v17, %v6083_v43  ;;  %vm6102_vm6 = vc.u32 %v11322_v51, %v11326_v36  ;;  %v6103_v62 = vadd.s32 1, %v11327_v34  ;;  %v6363_v5 = vpop.permute.xlu1 %6362 }
0x1985   : > { %v6233_v53 = vxor.u32 2147483648, %v6232_v60  ;;  %v6324_v13 = vsel %vm7077_vm14, 0, %v7076_v22  ;;  %v6236_v21 = vsel %vm6151_vm1, %v6235_v8, %v11218_v46  ;;  %v6100_v57 = vmul.u32 %v6093_v14, %v6084_v61 }
0x1986   : > { %v7973_v63 = vpop.eup %7972  ;;  %v6325_v38 = vsub.s32 32, %v6324_v13  ;;  %v6329_v19 = vsub.s32 4294967266, %v6324_v13  ;;  %v6326_v55 = vshll.u32 %v11295_v12, %v6324_v13  ;;  %v6104_v59 = vsel %vm6102_vm6, %v6103_v62, %v11327_v34 }
0x1987   : > { %v7975_v47 = vpop.eup %7974  ;;  %v6234_v49 = vsel %vm6151_vm1, %v6233_v53, %v6232_v60  ;;  %v6041_v30 = vxor.u32 2147483648, %v7973_v63  ;;  %vm6033_vm13 = vweird.f32 %v11041_v9  ;;  %v6105_v28 = vadd.s32 %v6104_v59, %v6100_v57 }
0x1988   : > { %v6237_v7 = vsel %vm11332_vm10, %v11035_v18, %v6234_v49  ;;  %v6038_v50 = vxor.u32 2147483648, %v7975_v47  ;;  %v6327_v56 = vshrl.u32 %v6309_v23, %v6325_v38  ;;  %v6330_v37 = vadd.s32 127, %v6329_v19 }
0x1989   : > { %7976 = vcosq.f32 %v6237_v7  ;;  %v6042_v58 = vsel %vm6040_vm4, %v6041_v30, %v7975_v47  ;;  %v6238_v15 = vsel %vm11332_vm10, 0, %v6236_v21  ;;  %v6106_v11 = vadd.s32 536870912, %v6105_v28 }
0x198a   : > { %7978 = vsinq.f32 %v6237_v7  ;;  %v6039_v46 = vsel %vm6037_vm11, %v7973_v63, %v6038_v50  ;;  %v6328_v1 = vor.u32 %v6327_v56, %v6326_v55  ;;  %v6331_v12 = vshll.u32 %v6330_v37, 23 }
0x198b   : > { %v6043_v6 = vsel %vm6036_vm8, %v6039_v46, %v6042_v58  ;;  %v11363_v3 = vshrl.u32 %v6106_v11, 30  ;;  %v6242_v27 = vadd.s32 3, %v6238_v15  ;;  %v6339_v17 = vsub.s32 4, %v11281_v45 }
0x198c   : > { %v6044_v24 = vsel %vm6033_vm13, nan, %v6043_v6  ;;  %v6332_v32 = vor.u32 4788187, %v6331_v12  ;;  %v6335_v52 = vcvt.s32.f32 %v6328_v1  ;;  %vm6255_vm0 = vcmp.lt.s32.totalorder %v11048_v4, 0 }
0x198d   : > { %v6357_v41 = vmul.f32 %v6044_v24, %v6044_v24  ;;  %v6108_v39 = vshll.u32 %v11363_v3, 30  ;;  %v6243_v25 = vand.u32 3, %v6242_v27  ;;  %vm11375_vm7 = vcmp.le.f32.partialorder %v6253_v20, 0.7853982 }
0x198e   : > { %v6333_v54 = vand.u32 2147483647, %v6332_v32  ;;  %v6340_v35 = vsel %vm6255_vm0, %v6339_v17, %v11281_v45  ;;  %vm6241_vm3 = vweird.f32 %v11035_v18  ;;  %v6101_v30 = vadd.s32 %v11326_v36, %v11322_v51  ;;  %v6375_v32 = vpop.permute.xlu0 %6374 }
0x198f   : > { %v6377_v29 = vmul.f32 %v6363_v5, %v6357_v41  ;;  %v6109_v16 = vsub.s32 %v6105_v28, %v6108_v39  ;;  %vm6248_vm12 = vcmp.eq.s32.totalorder %v6243_v25, 2  ;;  %vm6245_vm9 = vcmp.eq.s32.totalorder %v6243_v25, 0 }
0x1990   : > { %v6336_v14 = vmul.f32 %v6335_v52, %v6333_v54  ;;  %v6342_v13 = vsel %vm11375_vm7, 0, %v6340_v35  ;;  %vm6244_vm15 = vcmp.lt.s32.totalorder %v6243_v25, 2  ;;  %vm6345_vm11 = vweird.f32 %v11048_v4 }
0x1991   : > { %v11366_v9 = vadd.f32 %v6377_v29, %v11037_v10  ;;  %v6111_v43 = vsub.s32 0, %v6109_v16  ;;  %v6346_v62 = vadd.s32 3, %v6342_v13  ;;  %vm6047_vm4 = vcmp.lt.s32.totalorder %v11057_v31, 0 }
0x1992   : > { %v6337_v0 = vxor.u32 2147483648, %v6336_v14  ;;  %v6131_v52 = vsub.s32 4, %v11363_v3  ;;  %vm6046_vm14 = vcmp.le.f32.partialorder %v6045_v48, 0.7853982 }
0x1993   : > { %6418 = vst.msk [vmem:[#allocation2 + $0x20] sm:$0xff] %vm4018_vm2, %v11366_v9  ;;  %v7067_v53 = vmin.u32 %v6111_v43, %v6109_v16  ;;  %v6347_v50 = vand.u32 3, %v6346_v62  ;;  %v6367_v43 = vpop.permute.xlu1 %6366 }
0x1994   : > { %v6338_v10 = vsel %vm6255_vm0, %v6337_v0, %v6336_v14  ;;  %v6132_v14 = vsel %vm6047_vm4, %v6131_v52, %v11363_v3 }
0x1995   : > { %v6341_v22 = vsel %vm11375_vm7, %v11048_v4, %v6338_v10  ;;  %v6113_v61 = vclz %v7067_v53  ;;  %vm6352_vm10 = vcmp.eq.s32.totalorder %v6347_v50, 2  ;;  %vm6349_vm1 = vcmp.eq.s32.totalorder %v6347_v50, 0 }
0x1996   : > { %v7977_v34 = vpop.eup %7976  ;;  %7980 = vcosq.f32 %v6341_v22  ;;  %vm6348_vm8 = vcmp.lt.s32.totalorder %v6347_v50, 2  ;;  %v6134_v39 = vsel %vm6046_vm14, 0, %v6132_v14  ;;  %vm6137_vm7 = vweird.f32 %v11057_v31 }
0x1997   : > { %v7979_v60 = vpop.eup %7978  ;;  %v6249_v8 = vxor.u32 2147483648, %v7977_v34  ;;  %7982 = vsinq.f32 %v6341_v22  ;;  %v7068_v19 = vadd.s32 4294967294, %v6113_v61  ;;  %v6138_v0 = vadd.s32 3, %v6134_v39 }
0x1998   : > { %v6246_v23 = vxor.u32 2147483648, %v7979_v60 }
0x1999   : > { %v6250_v20 = vsel %vm6248_vm12, %v6249_v8, %v7979_v60  ;;  %vm7069_vm5 = vcmp.lt.s32.totalorder %v7068_v19, 0  ;;  %v6139_v17 = vand.u32 3, %v6138_v0  ;;  %v5916_v60 = vld [vmem:[%s9139_s24] sm:$0xff]  ;;  %vm6434_vm12 = vcmask 121856  }
0x199a   : > { %v6247_v63 = vsel %vm6245_vm9, %v7977_v34, %v6246_v23  ;;  %v6116_v49 = vsel %vm7069_vm5, 0, %v7068_v19  ;;  %vm6413_vm9 = vcmask 130056  }
0x199b   : > { %v6251_v38 = vsel %vm6244_vm15, %v6247_v63, %v6250_v20  ;;  %v6117_v55 = vsub.s32 32, %v6116_v49  ;;  %v6121_v7 = vsub.s32 4294967266, %v6116_v49  ;;  %v6118_v37 = vshll.u32 %v6109_v16, %v6116_v49 }
0x199c   : > { %v6252_v45 = vsel %vm6241_vm3, nan, %v6251_v38  ;;  %vm6144_vm6 = vcmp.eq.s32.totalorder %v6139_v17, 2  ;;  %vm6141_vm13 = vcmp.eq.s32.totalorder %v6139_v17, 0  ;;  %vm6140_vm0 = vcmp.lt.s32.totalorder %v6139_v17, 2 }
0x199d   : > { %v6359_v47 = vmul.f32 %v6252_v45, %v6252_v45  ;;  %v6119_v58 = vshrl.u32 %v6101_v30, %v6117_v55  ;;  %v6122_v18 = vadd.s32 127, %v6121_v7  ;;  %v6443_v7 = vld [vmem:[#allocation2 + $0x20] sm:$0xff]  ;;  %vm6462_vm15 = vcmask 785408  }
0x199f   : > { %v6379_v21 = vmul.f32 %v11351_v40, %v6359_v47  ;;  %v6120_v59 = vor.u32 %v6119_v58, %v6118_v37  ;;  %v6123_v46 = vshll.u32 %v6122_v18, 23 }
0x19a1   : > { %v6383_v56 = vadd.f32 %v6379_v21, %v11032_v42  ;;  %v6124_v51 = vor.u32 4788187, %v6123_v46  ;;  %v6127_v28 = vcvt.s32.f32 %v6120_v59 }
0x19a3   : > { %v7981_v57 = vpop.eup %7980  ;;  %6420 = vst.msk [vmem:[#allocation2 + $0x30] sm:$0xff] %vm4018_vm2, %v6383_v56  ;;  %6426 = vrot.lane.b32.xlu0 %v6383_v56, %s11680_s16  ;;  %v6125_v42 = vand.u32 2147483647, %v6124_v51 }
0x19a4   : > { %v7983_v1 = vpop.eup %7982  ;;  %v6353_v40 = vxor.u32 2147483648, %v7981_v57 }
0x19a5   : > { %v6350_v12 = vxor.u32 2147483648, %v7983_v1  ;;  %v6128_v41 = vmul.f32 %v6127_v28, %v6125_v42 }
0x19a6   : > { %v6354_v36 = vsel %vm6352_vm10, %v6353_v40, %v7983_v1 }
0x19a7   : > { %v6351_v6 = vsel %vm6349_vm1, %v7981_v57, %v6350_v12  ;;  %6422 = vrot.lane.b32.xlu0 %v11366_v9, %s11680_s16  ;;  %v6129_v5 = vxor.u32 2147483648, %v6128_v41 }
0x19a8   : > { %v6355_v24 = vsel %vm6348_vm8, %v6351_v6, %v6354_v36 }
0x19a9   : > { %v6356_v15 = vsel %vm6345_vm11, nan, %v6355_v24  ;;  %v6130_v29 = vsel %vm6047_vm4, %v6129_v5, %v6128_v41 }
0x19aa   : > { %v6360_v11 = vmul.f32 %v6356_v15, %v6356_v15  ;;  %v6133_v4 = vsel %vm6046_vm14, %v11057_v31, %v6130_v29  ;;  %v6445_v21 = vld [vmem:[#allocation2 + $0x30] sm:$0xff] }
0x19ab   : > { %6405 = vrot.lane.b32.xlu0 %v6383_v56, %s11681_s6  ;;  %7984 = vcosq.f32 %v6133_v4 }
0x19ac   : > { %v6380_v54 = vmul.f32 %v6375_v32, %v6360_v11  ;;  %7986 = vsinq.f32 %v6133_v4 }
0x19ae   : > { %v6384_v27 = vadd.f32 %v6380_v54, %v11043_v44 }
0x19af   : > { %6401 = vrot.lane.b32.xlu0 %v11366_v9, %s11681_s6 }
0x19b0   : > { %6421 = vst.msk [vmem:[#allocation2 + $0x38] sm:$0xff] %vm4018_vm2, %v6384_v27  ;;  %6428 = vrot.lane.b32.xlu1 %v6384_v27, %s11680_s16 }
0x19b3   : > { %6459 = vperm.xlu0 %7878, %v5916_v60  }
0x19b7   : > { %v6446_v49 = vld [vmem:[#allocation2 + $0x38] sm:$0xff] }
0x19b8   : > { %v7985_v48 = vpop.eup %7984  ;;  %v6454_v30 = vpack.c.bf16 %v6446_v49, %v6445_v21 }
0x19b9   : > { %v7987_v16 = vpop.eup %7986  ;;  %v6145_v25 = vxor.u32 2147483648, %v7985_v48 }
0x19ba   : > { %v6142_v44 = vxor.u32 2147483648, %v7987_v16 }
0x19bb   : > { %v6146_v33 = vsel %vm6144_vm6, %v6145_v25, %v7987_v16 }
0x19bc   : > { %v6143_v9 = vsel %vm6141_vm13, %v7985_v48, %v6142_v44 }
0x19bd   : > { %v6147_v10 = vsel %vm6140_vm0, %v6143_v9, %v6146_v33 }
0x19be   : > { %v6148_v3 = vsel %vm6137_vm7, nan, %v6147_v10 }
0x19bf   : > { %v6358_v22 = vmul.f32 %v6148_v3, %v6148_v3 }
0x19c1   : > { %v6378_v34 = vmul.f32 %v6367_v43, %v6358_v22 }
0x19c3   : > { %v6382_v35 = vadd.f32 %v6378_v34, %v11050_v26 }
0x19c5   : > { %6419 = vst.msk [vmem:[#allocation2 + $0x28] sm:$0xff] %vm4018_vm2, %v6382_v35  ;;  %6424 = vrot.lane.b32.xlu1 %v6382_v35, %s11680_s16  ;;  %s11695_s16 = sld [smem:[#allocation99_spill]] }
0x19c9   : > { %6407 = vrot.lane.b32.xlu1 %v6384_v27, %s11681_s6 }
0x19cb   : > { %v5915_v46 = vld [vmem:[%s11695_s16] sm:$0xf]  ;;  %s6508_s16 = scalar_lea.sflag [#allocation5], %s9412_s13 }
0x19cc   : > { %v6444_v55 = vld [vmem:[#allocation2 + $0x28] sm:$0xff] }
0x19cd   : > { %6403 = vrot.lane.b32.xlu1 %v6382_v35, %s11681_s6  ;;  %v6453_v50 = vpack.c.bf16 %v6444_v55, %v6443_v7  ;;  %s11696_s6 = sld [smem:[#allocation100_spill]] }
0x19d3   : > { %s11431_s9 = scalar_lea.hbm %s11696_s6, %s7080_s5  ;;  %s8672_s5 = scalar_lea.vmem %s8671_s11, 256 }
0x19d4   : > { %p8674_p7 = scmp.lt.s32.totalorder %s8672_s5, %s8666_s10 }
0x19d6   : > { %p8675_p3 = por %p8674_p7, %p8673_p13 }
0x19d8   : > { %p8676_p4 = pnand %p8675_p3, %p8669_p6 }
0x1a15   : > { %v6427_v8 = vpop.permute.xlu0 %6426 }
0x1a16   : > { %6437 = vst.msk [vmem:[#allocation2 + $0x50] sm:$0xff] %vm6434_vm12, %v6427_v8 }
0x1a19   : > { %v6423_v31 = vpop.permute.xlu0 %6422 }
0x1a1a   : > { %6435 = vst.msk [vmem:[#allocation2 + $0x40] sm:$0xff] %vm6434_vm12, %v6423_v31 }
0x1a1d   : > { %v6406_v53 = vpop.permute.xlu0 %6405  ;;  %v6449_v20 = vld [vmem:[#allocation2 + $0x50] sm:$0xff] }
0x1a1e   : > { %6416 = vst.msk [vmem:[#allocation2 + $0x10] sm:$0xff] %vm6413_vm9, %v6406_v53 }
0x1a21   : > { %v6402_v26 = vpop.permute.xlu0 %6401  ;;  %v6447_v45 = vld [vmem:[#allocation2 + $0x40] sm:$0xff] }
0x1a22   : > { %v6429_v23 = vpop.permute.xlu1 %6428  ;;  %6414 = vst.msk [vmem:[#allocation2] sm:$0xff] %vm6413_vm9, %v6402_v26 }
0x1a23   : > { %6438 = vst.msk [vmem:[#allocation2 + $0x58] sm:$0xff] %vm6434_vm12, %v6429_v23 }
0x1a25   : > { %v6441_v37 = vld [vmem:[#allocation2 + $0x10] sm:$0xff] }
0x1a29   : > { %v6439_v57 = vld [vmem:[#allocation2] sm:$0xff] }
0x1a2a   : > { %v6450_v13 = vld [vmem:[#allocation2 + $0x58] sm:$0xff] }
0x1a2b   : > { %v6456_v61 = vpack.c.bf16 %v6450_v13, %v6449_v20 }
0x1a2d   : > { %7333 = vmatpush3.bf16.msra.mxu1 %v6456_v61 }
0x1a2e   : > { %7334 = vmatprep.subr.bf16.mxu1 %v8864_v2  ;;  %v6460_v1 = vpop.permute.xlu0 %6459 }
0x1a37   : > { %v6425_v63 = vpop.permute.xlu1 %6424 }
0x1a38   : > { %6436 = vst.msk [vmem:[#allocation2 + $0x48] sm:$0xff] %vm6434_vm12, %v6425_v63 }
0x1a3b   : > { %v6408_v38 = vpop.permute.xlu1 %6407 }
0x1a3c   : > { %6417 = vst.msk [vmem:[#allocation2 + $0x18] sm:$0xff] %vm6413_vm9, %v6408_v38 }
0x1a3f   : > { %v6404_v19 = vpop.permute.xlu1 %6403  ;;  %v6448_v62 = vld [vmem:[#allocation2 + $0x48] sm:$0xff] }
0x1a40   : > { %6415 = vst.msk [vmem:[#allocation2 + $0x8] sm:$0xff] %vm6413_vm9, %v6404_v19  ;;  %v6455_v47 = vpack.c.bf16 %v6448_v62, %v6447_v45 }
0x1a42   : > { %7335 = vmatpush3.bf16.msra.mxu1 %v6455_v47 }
0x1a43   : > { %7336 = vmatprep.subr.bf16.mxu1 %v8864_v2  ;;  %v6442_v56 = vld [vmem:[#allocation2 + $0x18] sm:$0xff] }
0x1a44   : > { %v6452_v58 = vpack.c.bf16 %v6442_v56, %v6441_v37 }
0x1a46   : > { %7337 = vmatpush3.bf16.msra.mxu1 %v6454_v30 }
0x1a47   : > { %7338 = vmatprep.subr.bf16.mxu1 %v8864_v2  ;;  %v6440_v18 = vld [vmem:[#allocation2 + $0x8] sm:$0xff] }
0x1a48   : > { %v6451_v59 = vpack.c.bf16 %v6440_v18, %v6439_v57 }
0x1a4a   : > { %7339 = vmatpush3.bf16.msra.mxu1 %v6453_v50 }
0x1a4b   : > { %7340 = vmatprep.subr.bf16.mxu1 %v8864_v2 }
0x1a4e   : > { %7341 = vmatpush3.bf16.msra.mxu1 %v6452_v58 }
0x1a4f   : > { %7342 = vmatprep.subr.bf16.mxu1 %v8864_v2 }
0x1a52   : > { %7343 = vmatpush3.bf16.msra.mxu1 %v6451_v59 }
0x1a55   : > { %7345 = vmatmul.mubr.msk.bf16.vlgmr.msra.gmra.mxu1 %vm6462_vm15, %v5915_v46 }
0x1b15   : > { %v6500_v40 = vpop.f32.mrf.mxu1 }
0x1b16   : > { %v6501_v12 = vadd.f32 %v6500_v40, %v6460_v1 }
0x1b17   : > { %v7346_v2 = vpop.f32.mrf.mxu1 }
0x1b18   : > { %6506 = vst.msk [vmem:[%s1781_s7] sm:$0xff] %vm4018_vm2, %v6501_v12 }
0x1b19   : > { %v6503_v51 = vpop.f32.mrf.mxu1 }
0x1b1a   : > { %8679 = shalt.err (!%p8676_p4)
}
0x1b1b   : > { %s8680_s13 = scalar_lea.hbm %s11431_s9, 128  ;;  %s8684_s7 = scalar_lea.hbm %s11696_s6, 256 }
0x1b1c   : > { %p8681_p8 = scmp.ne.s32.totalorder %s11431_s9, %s8680_s13  ;;  %p8685_p11 = scmp.lt.s32.totalorder %s11431_s9, %s11696_s6 }
0x1b1d   : > { %p8686_p0 = scmp.lt.s32.totalorder %s8684_s7, %s8680_s13 }
0x1b1e   : > { %p8682_p10 = pnand %p8681_p8, %p11697_p12 }
0x1b1f   : > { %p8687_p2 = por %p8686_p0, %p8685_p11 }
0x1b20   : > { %p8683_p5 = pneg %p8682_p10 }
0x1b22   : > { %p8688_p1 = pnand %p8687_p2, %p8683_p5 }
0x1b24   : > { %8691 = shalt.err (!%p8688_p1)
}
0x1b25   : > { %7550 = dma.vmem_to_hbm [thread:$0]  (%p11697_p12), %s11433_s8, 128, %s11431_s9, %s6508_s16   ;;  %v7347_v36 = vpop.f32.mrf.mxu1 }
0x1b26 PF: > { %s6533_s10 = sand.u32 1, %s8770_s28   ;;  %p11698_p9 = scmp.ne.s32.totalorder %s11601_s23, 0 }
0x1b27   : > { %p11699_p6 = scmp.ge.s32.totalorder %s8782_s2, 2  ;;  %s6534_s4 = scalar_lea.sflag [#allocation5], %s6533_s10 }
0x1b29   : > { %p7633_p13 = pnand %p11699_p6, %p11698_p9 }
0x1b2b   : > { %p7634_p7 = pneg %p7633_p13 }
0x1b2d   : > { %8765 = dma.done.wait (%p7634_p7), %s6534_s4, 128  }
0x1b2e   : > { %8767 = vsyncadd (%p7634_p7), %s6534_s4, 4294967168  ;;  %p123_p3 = scmp.ge.s32.totalorder %s9361_s26, 4   ;;  %s11700_s28 = smov %s8774_s0 }
0x1b2f   : > { %s11701_s0 = smov %s8778_s1  ;;  %s11702_s1 = smov %s9373_s22 }
0x1b30   : > { %s11703_s2 = smov %s9361_s26  ;;  %125 = sbr.rel (!%p123_p3) target bundleno = 116 (0x74), region = 405 }
0x1b35   :  { %6539 = vsyncpa [#allocation4], 1 }
0x1b36   :  { %6541 = vsyncpa [#allocation4 + $0x1], 1 }
0x1b37   :  { %6542 = vsyncpa [#allocation7], 1 }
0x1b38   :  { %6543 = vsyncpa [#allocation10], 1 }
0x1b39   :  { %6544 = vsyncpa [#allocation13], 1 }
0x1b3a   :  { %6545 = vsyncpa [#allocation16], 1 }
0x1b3b   :  { %6546 = vsyncpa [#allocation19], 1 }
0x1b3c   :  { %6547 = vsyncpa [#allocation22], 1 }
0x1b3d   :  { %6548 = vsyncpa [#allocation25], 1 }
0x1b3e   :  { %6549 = vsyncpa [#allocation28], 1 }
0x1b3f   :  { %6550 = vsyncpa [#allocation31], 1 }
0x1b40   :  { %6551 = vsyncpa [#allocation34], 1 }
0x1b41   :  { %6552 = vsyncpa [#allocation37], 1 }
0x1b42   :  { %6553 = vsyncpa [#allocation40], 1 }
0x1b43   :  { %6554 = vsyncpa [#allocation43], 1 }
0x1b44   :  { %6555 = vsyncpa [#allocation5], 1 }
0x1b45   :  { %6557 = vsyncpa [#allocation5 + $0x1], 1 }

</bundles_post_ra>
